<compile_context>
chip_gen: v5e
topology: v5e:2x2
jax: 0.10.0
libtpu: 0.0.40
codegen_flags: <defaults>
</compile_context>

<pallas_src>
import functools
import sys

import jax
import jax.numpy as jnp
from jax.experimental import pallas as pl
from jax.experimental.pallas import tpu as pltpu


_QKV_PARAMS = ("g1", "b1", "w_qkv")
_BLK_PARAMS = ("w_proj", "b_proj", "g2", "b2", "w_fc1", "b_fc1", "w_fc2", "b_fc2")


def _layernorm(v, gamma, beta, eps=1e-5):
    mu = jnp.mean(v, axis=-1, keepdims=True)
    var = jnp.mean((v - mu) ** 2, axis=-1, keepdims=True)
    return (v - mu) * jax.lax.rsqrt(var + eps) * gamma + beta


def _erf(x):
    # Abramowitz & Stegun 7.1.26 polynomial (|err| <= 1.5e-7): exact-GELU fidelity without
    # relying on an erf primitive lowering; only exp (EUP) + basic VPU ops.
    p = 0.3275911
    a1, a2, a3, a4, a5 = 0.254829592, -0.284496736, 1.421413741, -1.453152027, 1.061405429
    s = jnp.where(x >= 0.0, 1.0, -1.0)
    z = jnp.abs(x)
    t = 1.0 / (1.0 + p * z)
    poly = ((((a5 * t + a4) * t + a3) * t + a2) * t + a1) * t
    return s * (1.0 - poly * jnp.exp(-z * z))


def _gelu_exact(x):
    # nn.GELU() default (erf form).  TODO(synk): optionally switch to tanh GELU (EUP) behind a
    # numerics check if the VPU becomes the binding slot (review suggestion).
    return 0.5 * x * (1.0 + _erf(x * 0.7071067811865475))


# --------------------------------------------------------------------------------------------
# Kernel 1: LN1 + qkv projection, head-leading bf16 q/k/v output (scale folded into q).
# --------------------------------------------------------------------------------------------
def qkv_kernel(num_heads, x_ref, g1_ref, b1_ref, wqkv_ref, q_ref, k_ref, v_ref):
    f32, bf16 = jnp.float32, jnp.bfloat16
    x = x_ref[0].astype(f32)                                  # (TQ, C)
    tq, c = x.shape
    h = num_heads
    hd = c // h
    scale = hd ** -0.5

    xn = _layernorm(x, g1_ref[0], b1_ref[0])
    qkv = jnp.dot(xn.astype(bf16), wqkv_ref[...],
                  preferred_element_type=f32)                 # (TQ, 3C), fp32 accumulate

    # Fold softmax scale into q; cast to bf16 BEFORE the head relayout so the einshape
    # transposes move half the bytes (review item).
    q = (qkv[:, :c] * scale).astype(bf16).reshape(tq, h, hd)
    k = qkv[:, c:2 * c].astype(bf16).reshape(tq, h, hd)
    v = qkv[:, 2 * c:].astype(bf16).reshape(tq, h, hd)
    q_ref[0] = pltpu.einshape("thd->htd", q)                  # (H, TQ, hd)
    k_ref[0] = pltpu.einshape("thd->htd", k)
    v_ref[0] = pltpu.einshape("thd->htd", v)


# --------------------------------------------------------------------------------------------
# Kernel 2: query-tiled attention (K/V resident) + proj + residual + LN2 + MLP + residual.
# --------------------------------------------------------------------------------------------
def attn_mlp_kernel(x_ref, q_ref, k_ref, v_ref,
                    wproj_ref, bproj_ref, g2_ref, b2_ref,
                    wfc1_ref, bfc1_ref, wfc2_ref, bfc2_ref,
                    out_ref):
    f32, bf16 = jnp.float32, jnp.bfloat16
    x = x_ref[0].astype(f32)                                  # (TQ, C)
    tq, c = x.shape
    q = q_ref[0]                                              # (H, TQ, hd) bf16, scale folded
    k = k_ref[0]                                              # (H, N,  hd) bf16
    v = v_ref[0]                                              # (H, N,  hd) bf16

    # ---- Attention: softmax(q k^T) v, all heads in one batched MXU op ----
    s = jnp.einsum("hqd,hkd->hqk", q, k, preferred_element_type=f32)   # (H, TQ, N) fp32
    s = s - jnp.max(s, axis=-1, keepdims=True)
    p = jnp.exp(s)
    p = p * pl.reciprocal(jnp.sum(p, axis=-1, keepdims=True), approx=True)
    ctx = jnp.einsum("hqk,hkd->hqd", p.astype(bf16), v,
                     preferred_element_type=f32)              # (H, TQ, hd)
    # Relayout back to (TQ, C) in bf16 (halves relayout bytes vs fp32).
    ctx = pltpu.einshape("htd->thd", ctx.astype(bf16)).reshape(tq, c)

    attn_out = jnp.dot(ctx, wproj_ref[...], preferred_element_type=f32) + bproj_ref[0]
    x1 = x + attn_out                                         # residual 1

    # ---- MLP: x1 + fc2(GELU(fc1(LN2(x1)))) ----
    xn2 = _layernorm(x1, g2_ref[0], b2_ref[0])
    h1 = jnp.dot(xn2.astype(bf16), wfc1_ref[...], preferred_element_type=f32) + bfc1_ref[0]
    h1 = _gelu_exact(h1)
    h2 = jnp.dot(h1.astype(bf16), wfc2_ref[...], preferred_element_type=f32) + bfc2_ref[0]
    out_ref[0] = (x1 + h2).astype(out_ref.dtype)              # residual 2


# --------------------------------------------------------------------------------------------
# Wrapper
# --------------------------------------------------------------------------------------------
def _device_kind():
    try:
        return jax.devices()[0].device_kind.lower()
    except Exception:  # noqa: BLE001
        return ""


def _chip_vmem_bytes():
    try:
        cap = getattr(pltpu.get_tpu_info(), "vmem_capacity_bytes", None)
        if cap:
            return int(cap)
    except Exception:  # noqa: BLE001
        pass
    return (64 << 20) if "v7" in _device_kind() else (128 << 20)


def _pick_token_tile(n_tokens):
    kind = _device_kind()
    pref = 256 if ("v6" in kind or "v7" in kind) else 128     # 256x256 MXU on v6e/v7x
    for t in (pref, 256, 128, 64, 32, 16, 8):
        if t <= n_tokens and n_tokens % t == 0:
            return t
    return n_tokens


def vit_block(x, params, num_heads):
    B, N, C = x.shape
    H = num_heads
    assert C % H == 0, "dim must be divisible by num_heads"
    hd = C // H
    hidden = params["w_fc1"].shape[1]
    TQ = _pick_token_tile(N)
    n_tiles = N // TQ
    xbytes = jnp.dtype(x.dtype).itemsize

    qkv_weights = tuple(params[k] for k in _QKV_PARAMS)
    blk_weights = tuple(params[k] for k in _BLK_PARAMS)

    cap = _chip_vmem_bytes()

    def clamp_vmem(est):
        # Chip-aware scoped-VMEM limit (v7x has only 64 MiB per TensorCore).
        return int(min(max(est, 32 << 20), cap - (8 << 20)))

    def build(single_buffer_weights):
        def w_spec(w):
            idx = lambda b, t: (0,) * w.ndim                  # noqa: E731 - constant index map
            if single_buffer_weights:
                # Constant index_map -> weight fetched once; double-buffering is VMEM waste.
                return pl.BlockSpec(w.shape, idx, pipeline_mode=pl.Buffered(1))
            return pl.BlockSpec(w.shape, idx)

        nbuf = 1 if single_buffer_weights else 2
        wb1 = sum(int(a.size) * a.dtype.itemsize for a in qkv_weights) * nbuf
        wb2 = sum(int(a.size) * a.dtype.itemsize for a in blk_weights) * nbuf
        io1 = 2 * (TQ * C * xbytes + 3 * H * TQ * hd * 2)                 # double-buffered tiles
        act1 = 4 * (3 * TQ * 3 * C)
        io2 = 2 * (2 * TQ * C * xbytes + H * TQ * hd * 2 + 2 * H * N * hd * 2)
        act2 = 4 * (2 * H * TQ * N + 2 * TQ * hidden + 8 * TQ * C)
        vmem1 = clamp_vmem(wb1 + io1 + 2 * act1 + (4 << 20))
        vmem2 = clamp_vmem(wb2 + io2 + 2 * act2 + (4 << 20))

        qkv_call = pl.pallas_call(
            functools.partial(qkv_kernel, H),
            out_shape=tuple(jax.ShapeDtypeStruct((B, H, N, hd), jnp.bfloat16) for _ in range(3)),
            grid_spec=pltpu.PrefetchScalarGridSpec(
                num_scalar_prefetch=0,
                grid=(B, n_tiles),
                in_specs=[pl.BlockSpec((1, TQ, C), lambda b, t: (b, t, 0))]
                + [w_spec(w) for w in qkv_weights],
                out_specs=tuple(pl.BlockSpec((1, H, TQ, hd), lambda b, t: (b, 0, t, 0))
                                for _ in range(3)),
            ),
            compiler_params=pltpu.CompilerParams(
                dimension_semantics=("parallel", "parallel"),
                vmem_limit_bytes=vmem1,
            ),
        )

        blk_call = pl.pallas_call(
            attn_mlp_kernel,
            out_shape=jax.ShapeDtypeStruct((B, N, C), x.dtype),
            grid_spec=pltpu.PrefetchScalarGridSpec(
                num_scalar_prefetch=0,
                grid=(B, n_tiles),
                in_specs=[
                    pl.BlockSpec((1, TQ, C), lambda b, t: (b, t, 0)),        # x tile (residual)
                    pl.BlockSpec((1, H, TQ, hd), lambda b, t: (b, 0, t, 0)),  # q tile
                    pl.BlockSpec((1, H, N, hd), lambda b, t: (b, 0, 0, 0)),   # k (resident)
                    pl.BlockSpec((1, H, N, hd), lambda b, t: (b, 0, 0, 0)),   # v (resident)
                ] + [w_spec(w) for w in blk_weights],
                out_specs=pl.BlockSpec((1, TQ, C), lambda b, t: (b, t, 0)),   # lane-dense C
            ),
            compiler_params=pltpu.CompilerParams(
                dimension_semantics=("parallel", "parallel"),
                vmem_limit_bytes=vmem2,
            ),
        )

        def run(xx):
            q, k, v = qkv_call(xx, *qkv_weights)
            return blk_call(xx, q, k, v, *blk_weights)

        return run

    # Single, explicit capability probe: the only speculative feature is single-buffered
    # (Buffered(1)) weight specs.  The compute path (batched heads, token tiling) is identical
    # in both builds; any fallback is logged to stderr instead of silently swallowed.
    try:
        return build(single_buffer_weights=True)(x)
    except Exception as err:  # noqa: BLE001 - narrow: only Buffered(1) differs between builds
        print(f"[vit_block] single-buffered weight specs rejected ({type(err).__name__}); "
              "retrying with default double-buffered weight specs.", file=sys.stderr)
        return build(single_buffer_weights=False)(x)


# --------------------------------------------------------------------------------------------
# Pure-JAX fp32 reference mirroring the PyTorch Block.forward
# --------------------------------------------------------------------------------------------
def vit_block_reference(x, params, num_heads):
    B, N, C = x.shape
    hd = C // num_heads
    scale = hd ** -0.5
    w = {k: jnp.asarray(v, jnp.float32) for k, v in params.items()}

    def ln(v, g, b):
        mu = jnp.mean(v, axis=-1, keepdims=True)
        var = jnp.mean((v - mu) ** 2, axis=-1, keepdims=True)
        return (v - mu) / jnp.sqrt(var + 1e-5) * g + b

    xn = ln(x, w["g1"][0], w["b1"][0])
    qkv = xn @ w["w_qkv"]                                     # (B, N, 3C)
    qkv = qkv.reshape(B, N, 3, num_heads, hd).transpose(2, 0, 3, 1, 4)
    q, k, v = qkv[0], qkv[1], qkv[2]                          # (B, H, N, hd)
    attn = jnp.einsum("bhqd,bhkd->bhqk", q, k) * scale
    attn = jax.nn.softmax(attn, axis=-1)
    ao = jnp.einsum("bhqk,bhkd->bhqd", attn, v)
    ao = ao.transpose(0, 2, 1, 3).reshape(B, N, C)
    ao = ao @ w["w_proj"] + w["b_proj"][0]
    x1 = x + ao
    xn2 = ln(x1, w["g2"][0], w["b2"][0])
    h1 = jax.nn.gelu(xn2 @ w["w_fc1"] + w["b_fc1"][0], approximate=False)
    h2 = h1 @ w["w_fc2"] + w["b_fc2"][0]
    return x1 + h2


def init_params(key, dim, num_heads, mlp_ratio=4.0, weight_dtype=jnp.bfloat16):
    hidden = int(dim * mlp_ratio)
    ks = jax.random.split(key, 4)
    std = 0.02

    def w(k, shape):
        return (jax.random.normal(k, shape, jnp.float32) * std).astype(weight_dtype)

    return {
        # qkv_bias=False in the module, so no qkv bias.  Linear weights pre-transposed (in,out):
        # y = x @ W + b is numerically identical to PyTorch's x @ W.T + b.
        "w_qkv": w(ks[0], (dim, 3 * dim)),
        "w_proj": w(ks[1], (dim, dim)),
        "b_proj": jnp.zeros((1, dim), jnp.float32),
        "g1": jnp.ones((1, dim), jnp.float32),
        "b1": jnp.zeros((1, dim), jnp.float32),
        "g2": jnp.ones((1, dim), jnp.float32),
        "b2": jnp.zeros((1, dim), jnp.float32),
        "w_fc1": w(ks[2], (dim, hidden)),
        "b_fc1": jnp.zeros((1, hidden), jnp.float32),
        "w_fc2": w(ks[3], (hidden, dim)),
        "b_fc2": jnp.zeros((1, dim), jnp.float32),
    }


if __name__ == "__main__":
    # Small but TPU-friendly: 2 images, 512 tokens, dim=256, 2 heads (head_dim=128) -> the
    # token-tile grid axis has >= 2 tiles per batch element on every TPU generation.
    B, N, C = 2, 512, 256
    num_heads = 2

    key = jax.random.PRNGKey(0)
    kx, kp = jax.random.split(key)
    x = jax.random.normal(kx, (B, N, C), jnp.float32)
    params = init_params(kp, C, num_heads)

    out = jax.block_until_ready(vit_block(x, params, num_heads))
    ref = vit_block_reference(x, params, num_heads)

    assert out.shape == (B, N, C)
    max_err = float(jnp.max(jnp.abs(out - ref)))
    assert jnp.allclose(out, ref, atol=2e-2, rtol=2e-2), (
        f"mismatch vs reference (max abs err {max_err})")
    print("KERNEL_OK")
</pallas_src>

<mosaic_0001>
module attributes {stable_mosaic.version = 11 : i64} {
  func.func @qkv_kernel(%arg0: i32, %arg1: i32, %arg2: memref<1x128x256xf32, #tpu.memory_space<vmem>>, %arg3: memref<1x256xf32, #tpu.memory_space<vmem>>, %arg4: memref<1x256xf32, #tpu.memory_space<vmem>>, %arg5: memref<256x768xbf16, #tpu.memory_space<vmem>>, %arg6: memref<1x2x128x128xbf16, #tpu.memory_space<vmem>>, %arg7: memref<1x2x128x128xbf16, #tpu.memory_space<vmem>>, %arg8: memref<1x2x128x128xbf16, #tpu.memory_space<vmem>>) attributes {dimension_semantics = [#tpu.dimension_semantics<parallel>, #tpu.dimension_semantics<parallel>], iteration_bounds = array<i64: 2, 4>, scalar_prefetch = 0 : i64, scratch_operands = 0 : i64, tpu.core_type = #tpu.core_type<tc>, window_params = [{transform_indices = @transform_0, window_bounds = array<i64: 1, 128, 256>}, {pipeline_mode = #tpu.pipeline_mode<synchronous>, transform_indices = @transform_1, window_bounds = array<i64: 1, 256>}, {pipeline_mode = #tpu.pipeline_mode<synchronous>, transform_indices = @transform_2, window_bounds = array<i64: 1, 256>}, {pipeline_mode = #tpu.pipeline_mode<synchronous>, transform_indices = @transform_3, window_bounds = array<i64: 256, 768>}, {transform_indices = @transform_4, window_bounds = array<i64: 1, 2, 128, 128>}, {transform_indices = @transform_5, window_bounds = array<i64: 1, 2, 128, 128>}, {transform_indices = @transform_6, window_bounds = array<i64: 1, 2, 128, 128>}]} {
    %c0 = arith.constant 0 : index
    %c0_0 = arith.constant 0 : index
    %c0_1 = arith.constant 0 : index
    %0 = vector.load %arg2[%c0, %c0_0, %c0_1] : memref<1x128x256xf32, #tpu.memory_space<vmem>>, vector<1x128x256xf32>
    %1 = vector.shape_cast %0 : vector<1x128x256xf32> to vector<128x256xf32>
    %c0_2 = arith.constant 0 : index
    %c0_3 = arith.constant 0 : index
    %2 = vector.load %arg3[%c0_2, %c0_3] : memref<1x256xf32, #tpu.memory_space<vmem>>, vector<1x256xf32>
    %3 = vector.shape_cast %2 : vector<1x256xf32> to vector<256xf32>
    %c0_4 = arith.constant 0 : index
    %c0_5 = arith.constant 0 : index
    %4 = vector.load %arg4[%c0_4, %c0_5] : memref<1x256xf32, #tpu.memory_space<vmem>>, vector<1x256xf32>
    %5 = vector.shape_cast %4 : vector<1x256xf32> to vector<256xf32>
    %cst = arith.constant dense<0.000000e+00> : vector<128xf32>
    %6 = vector.multi_reduction <add>, %1, %cst [1] : vector<128x256xf32> to vector<128xf32>
    %7 = vector.shape_cast %6 : vector<128xf32> to vector<128x1xf32>
    %cst_6 = arith.constant 2.560000e+02 : f32
    %8 = vector.broadcast %cst_6 : f32 to vector<128x1xf32>
    %9 = arith.divf %7, %8 : vector<128x1xf32>
    %10 = vector.broadcast %9 : vector<128x1xf32> to vector<128x256xf32>
    %11 = arith.subf %1, %10 : vector<128x256xf32>
    %12 = arith.mulf %11, %11 : vector<128x256xf32>
    %cst_7 = arith.constant dense<0.000000e+00> : vector<128xf32>
    %13 = vector.multi_reduction <add>, %12, %cst_7 [1] : vector<128x256xf32> to vector<128xf32>
    %14 = vector.shape_cast %13 : vector<128xf32> to vector<128x1xf32>
    %cst_8 = arith.constant 2.560000e+02 : f32
    %15 = vector.broadcast %cst_8 : f32 to vector<128x1xf32>
    %16 = arith.divf %14, %15 : vector<128x1xf32>
    %17 = vector.broadcast %9 : vector<128x1xf32> to vector<128x256xf32>
    %18 = arith.subf %1, %17 : vector<128x256xf32>
    %cst_9 = arith.constant 9.99999974E-6 : f32
    %19 = vector.broadcast %cst_9 : f32 to vector<128x1xf32>
    %20 = arith.addf %16, %19 : vector<128x1xf32>
    %21 = math.rsqrt %20 : vector<128x1xf32>
    %22 = vector.broadcast %21 : vector<128x1xf32> to vector<128x256xf32>
    %23 = arith.mulf %18, %22 : vector<128x256xf32>
    %24 = vector.shape_cast %3 : vector<256xf32> to vector<1x256xf32>
    %25 = vector.broadcast %24 : vector<1x256xf32> to vector<128x256xf32>
    %26 = arith.mulf %23, %25 : vector<128x256xf32>
    %27 = vector.shape_cast %5 : vector<256xf32> to vector<1x256xf32>
    %28 = vector.broadcast %27 : vector<1x256xf32> to vector<128x256xf32>
    %29 = arith.addf %26, %28 : vector<128x256xf32>
    %30 = arith.truncf %29 : vector<128x256xf32> to vector<128x256xbf16>
    %c0_10 = arith.constant 0 : index
    %c0_11 = arith.constant 0 : index
    %31 = vector.load %arg5[%c0_10, %c0_11] : memref<256x768xbf16, #tpu.memory_space<vmem>>, vector<256x768xbf16>
    %cst_12 = arith.constant dense<0.000000e+00> : vector<128x768xf32>
    %32 = tpu.matmul %30, %31, %cst_12 {dimension_numbers = #tpu.dot_dimension_numbers<[1], [0], [0], [1], [0, 0, 1, 1], [], []>} : vector<128x256xbf16>, vector<256x768xbf16>, vector<128x768xf32> -> vector<128x768xf32>
    %33 = vector.extract_strided_slice %32 {offsets = [0, 0], sizes = [128, 256], strides = [1, 1]} : vector<128x768xf32> to vector<128x256xf32>
    %cst_13 = arith.constant 0.0883883461 : f32
    %34 = vector.broadcast %cst_13 : f32 to vector<128x256xf32>
    %35 = arith.mulf %33, %34 : vector<128x256xf32>
    %36 = arith.truncf %35 : vector<128x256xf32> to vector<128x256xbf16>
    %37 = vector.shape_cast %36 : vector<128x256xbf16> to vector<128x2x128xbf16>
    %38 = vector.extract_strided_slice %32 {offsets = [0, 256], sizes = [128, 256], strides = [1, 1]} : vector<128x768xf32> to vector<128x256xf32>
    %39 = arith.truncf %38 : vector<128x256xf32> to vector<128x256xbf16>
    %40 = vector.shape_cast %39 : vector<128x256xbf16> to vector<128x2x128xbf16>
    %41 = vector.extract_strided_slice %32 {offsets = [0, 512], sizes = [128, 256], strides = [1, 1]} : vector<128x768xf32> to vector<128x256xf32>
    %42 = arith.truncf %41 : vector<128x256xf32> to vector<128x256xbf16>
    %43 = vector.shape_cast %42 : vector<128x256xbf16> to vector<128x2x128xbf16>
    %44 = tpu.transpose %37, [1, 0, 2] : vector<128x2x128xbf16> -> vector<2x128x128xbf16>
    %c0_14 = arith.constant 0 : index
    %c0_15 = arith.constant 0 : index
    %c0_16 = arith.constant 0 : index
    %c0_17 = arith.constant 0 : index
    %45 = vector.load %arg6[%c0_14, %c0_15, %c0_16, %c0_17] : memref<1x2x128x128xbf16, #tpu.memory_space<vmem>>, vector<1x2x128x128xbf16>
    %46 = vector.shape_cast %45 : vector<1x2x128x128xbf16> to vector<2x128x128xbf16>
    %47 = vector.shape_cast %44 : vector<2x128x128xbf16> to vector<1x2x128x128xbf16>
    tpu.vector_store %arg6[%c0_14, %c0_15, %c0_16, %c0_17], %47 {strides = array<i32>} : memref<1x2x128x128xbf16, #tpu.memory_space<vmem>>, vector<1x2x128x128xbf16>,
    %48 = tpu.transpose %40, [1, 0, 2] : vector<128x2x128xbf16> -> vector<2x128x128xbf16>
    %c0_18 = arith.constant 0 : index
    %c0_19 = arith.constant 0 : index
    %c0_20 = arith.constant 0 : index
    %c0_21 = arith.constant 0 : index
    %49 = vector.load %arg7[%c0_18, %c0_19, %c0_20, %c0_21] : memref<1x2x128x128xbf16, #tpu.memory_space<vmem>>, vector<1x2x128x128xbf16>
    %50 = vector.shape_cast %49 : vector<1x2x128x128xbf16> to vector<2x128x128xbf16>
    %51 = vector.shape_cast %48 : vector<2x128x128xbf16> to vector<1x2x128x128xbf16>
    tpu.vector_store %arg7[%c0_18, %c0_19, %c0_20, %c0_21], %51 {strides = array<i32>} : memref<1x2x128x128xbf16, #tpu.memory_space<vmem>>, vector<1x2x128x128xbf16>,
    %52 = tpu.transpose %43, [1, 0, 2] : vector<128x2x128xbf16> -> vector<2x128x128xbf16>
    %c0_22 = arith.constant 0 : index
    %c0_23 = arith.constant 0 : index
    %c0_24 = arith.constant 0 : index
    %c0_25 = arith.constant 0 : index
    %53 = vector.load %arg8[%c0_22, %c0_23, %c0_24, %c0_25] : memref<1x2x128x128xbf16, #tpu.memory_space<vmem>>, vector<1x2x128x128xbf16>
    %54 = vector.shape_cast %53 : vector<1x2x128x128xbf16> to vector<2x128x128xbf16>
    %55 = vector.shape_cast %52 : vector<2x128x128xbf16> to vector<1x2x128x128xbf16>
    tpu.vector_store %arg8[%c0_22, %c0_23, %c0_24, %c0_25], %55 {strides = array<i32>} : memref<1x2x128x128xbf16, #tpu.memory_space<vmem>>, vector<1x2x128x128xbf16>,
    return
  }
  func.func @transform_0(%arg0: i32, %arg1: i32) -> (i32, i32, i32) {
    %c0_i32 = arith.constant 0 : i32
    %c0_i32_0 = arith.constant 0 : i32
    return %arg0, %arg1, %c0_i32 : i32, i32, i32
  }
  func.func @transform_1(%arg0: i32, %arg1: i32) -> (i32, i32) {
    %c0_i32 = arith.constant 0 : i32
    %c0_i32_0 = arith.constant 0 : i32
    %c0_i32_1 = arith.constant 0 : i32
    return %c0_i32, %c0_i32_0 : i32, i32
  }
  func.func @transform_2(%arg0: i32, %arg1: i32) -> (i32, i32) {
    %c0_i32 = arith.constant 0 : i32
    %c0_i32_0 = arith.constant 0 : i32
    %c0_i32_1 = arith.constant 0 : i32
    return %c0_i32, %c0_i32_0 : i32, i32
  }
  func.func @transform_3(%arg0: i32, %arg1: i32) -> (i32, i32) {
    %c0_i32 = arith.constant 0 : i32
    %c0_i32_0 = arith.constant 0 : i32
    %c0_i32_1 = arith.constant 0 : i32
    return %c0_i32, %c0_i32_0 : i32, i32
  }
  func.func @transform_4(%arg0: i32, %arg1: i32) -> (i32, i32, i32, i32) {
    %c0_i32 = arith.constant 0 : i32
    %c0_i32_0 = arith.constant 0 : i32
    %c0_i32_1 = arith.constant 0 : i32
    return %arg0, %c0_i32, %arg1, %c0_i32_0 : i32, i32, i32, i32
  }
  func.func @transform_5(%arg0: i32, %arg1: i32) -> (i32, i32, i32, i32) {
    %c0_i32 = arith.constant 0 : i32
    %c0_i32_0 = arith.constant 0 : i32
    %c0_i32_1 = arith.constant 0 : i32
    return %arg0, %c0_i32, %arg1, %c0_i32_0 : i32, i32, i32, i32
  }
  func.func @transform_6(%arg0: i32, %arg1: i32) -> (i32, i32, i32, i32) {
    %c0_i32 = arith.constant 0 : i32
    %c0_i32_0 = arith.constant 0 : i32
    %c0_i32_1 = arith.constant 0 : i32
    return %arg0, %c0_i32, %arg1, %c0_i32_0 : i32, i32, i32, i32
  }
}

module attributes {stable_mosaic.version = 11 : i64} {
  func.func @qkv_kernel(%arg0: i32, %arg1: i32, %arg2: memref<1x128x256xf32, #tpu.memory_space<vmem>>, %arg3: memref<1x256xf32, #tpu.memory_space<vmem>>, %arg4: memref<1x256xf32, #tpu.memory_space<vmem>>, %arg5: memref<256x768xbf16, #tpu.memory_space<vmem>>, %arg6: memref<1x2x128x128xbf16, #tpu.memory_space<vmem>>, %arg7: memref<1x2x128x128xbf16, #tpu.memory_space<vmem>>, %arg8: memref<1x2x128x128xbf16, #tpu.memory_space<vmem>>) attributes {dimension_semantics = [#tpu.dimension_semantics<parallel>, #tpu.dimension_semantics<parallel>], iteration_bounds = array<i64: 2, 4>, scalar_prefetch = 0 : i64, scratch_operands = 0 : i64, tpu.core_type = #tpu.core_type<tc>, window_params = [{transform_indices = @transform_0, window_bounds = array<i64: 1, 128, 256>}, {pipeline_mode = #tpu.pipeline_mode<synchronous>, transform_indices = @transform_1, window_bounds = array<i64: 1, 256>}, {pipeline_mode = #tpu.pipeline_mode<synchronous>, transform_indices = @transform_2, window_bounds = array<i64: 1, 256>}, {pipeline_mode = #tpu.pipeline_mode<synchronous>, transform_indices = @transform_3, window_bounds = array<i64: 256, 768>}, {transform_indices = @transform_4, window_bounds = array<i64: 1, 2, 128, 128>}, {transform_indices = @transform_5, window_bounds = array<i64: 1, 2, 128, 128>}, {transform_indices = @transform_6, window_bounds = array<i64: 1, 2, 128, 128>}]} {
    %c0 = arith.constant 0 : index
    %c0_0 = arith.constant 0 : index
    %c0_1 = arith.constant 0 : index
    %0 = vector.load %arg2[%c0, %c0_0, %c0_1] : memref<1x128x256xf32, #tpu.memory_space<vmem>>, vector<1x128x256xf32>
    %1 = vector.shape_cast %0 : vector<1x128x256xf32> to vector<128x256xf32>
    %c0_2 = arith.constant 0 : index
    %c0_3 = arith.constant 0 : index
    %2 = vector.load %arg3[%c0_2, %c0_3] : memref<1x256xf32, #tpu.memory_space<vmem>>, vector<1x256xf32>
    %3 = vector.shape_cast %2 : vector<1x256xf32> to vector<256xf32>
    %c0_4 = arith.constant 0 : index
    %c0_5 = arith.constant 0 : index
    %4 = vector.load %arg4[%c0_4, %c0_5] : memref<1x256xf32, #tpu.memory_space<vmem>>, vector<1x256xf32>
    %5 = vector.shape_cast %4 : vector<1x256xf32> to vector<256xf32>
    %cst = arith.constant dense<0.000000e+00> : vector<128xf32>
    %6 = vector.multi_reduction <add>, %1, %cst [1] : vector<128x256xf32> to vector<128xf32>
    %7 = vector.shape_cast %6 : vector<128xf32> to vector<128x1xf32>
    %cst_6 = arith.constant 2.560000e+02 : f32
    %8 = vector.broadcast %cst_6 : f32 to vector<128x1xf32>
    %9 = arith.divf %7, %8 : vector<128x1xf32>
    %10 = vector.broadcast %9 : vector<128x1xf32> to vector<128x256xf32>
    %11 = arith.subf %1, %10 : vector<128x256xf32>
    %12 = arith.mulf %11, %11 : vector<128x256xf32>
    %cst_7 = arith.constant dense<0.000000e+00> : vector<128xf32>
    %13 = vector.multi_reduction <add>, %12, %cst_7 [1] : vector<128x256xf32> to vector<128xf32>
    %14 = vector.shape_cast %13 : vector<128xf32> to vector<128x1xf32>
    %cst_8 = arith.constant 2.560000e+02 : f32
    %15 = vector.broadcast %cst_8 : f32 to vector<128x1xf32>
    %16 = arith.divf %14, %15 : vector<128x1xf32>
    %17 = vector.broadcast %9 : vector<128x1xf32> to vector<128x256xf32>
    %18 = arith.subf %1, %17 : vector<128x256xf32>
    %cst_9 = arith.constant 9.99999974E-6 : f32
    %19 = vector.broadcast %cst_9 : f32 to vector<128x1xf32>
    %20 = arith.addf %16, %19 : vector<128x1xf32>
    %21 = math.rsqrt %20 : vector<128x1xf32>
    %22 = vector.broadcast %21 : vector<128x1xf32> to vector<128x256xf32>
    %23 = arith.mulf %18, %22 : vector<128x256xf32>
    %24 = vector.shape_cast %3 : vector<256xf32> to vector<1x256xf32>
    %25 = vector.broadcast %24 : vector<1x256xf32> to vector<128x256xf32>
    %26 = arith.mulf %23, %25 : vector<128x256xf32>
    %27 = vector.shape_cast %5 : vector<256xf32> to vector<1x256xf32>
    %28 = vector.broadcast %27 : vector<1x256xf32> to vector<128x256xf32>
    %29 = arith.addf %26, %28 : vector<128x256xf32>
    %30 = arith.truncf %29 : vector<128x256xf32> to vector<128x256xbf16>
    %c0_10 = arith.constant 0 : index
    %c0_11 = arith.constant 0 : index
    %31 = vector.load %arg5[%c0_10, %c0_11] : memref<256x768xbf16, #tpu.memory_space<vmem>>, vector<256x768xbf16>
    %cst_12 = arith.constant dense<0.000000e+00> : vector<128x768xf32>
    %32 = tpu.matmul %30, %31, %cst_12 {dimension_numbers = #tpu.dot_dimension_numbers<[1], [0], [0], [1], [0, 0, 1, 1], [], []>} : vector<128x256xbf16>, vector<256x768xbf16>, vector<128x768xf32> -> vector<128x768xf32>
    %33 = vector.extract_strided_slice %32 {offsets = [0, 0], sizes = [128, 256], strides = [1, 1]} : vector<128x768xf32> to vector<128x256xf32>
    %cst_13 = arith.constant 0.0883883461 : f32
    %34 = vector.broadcast %cst_13 : f32 to vector<128x256xf32>
    %35 = arith.mulf %33, %34 : vector<128x256xf32>
    %36 = arith.truncf %35 : vector<128x256xf32> to vector<128x256xbf16>
    %37 = vector.shape_cast %36 : vector<128x256xbf16> to vector<128x2x128xbf16>
    %38 = vector.extract_strided_slice %32 {offsets = [0, 256], sizes = [128, 256], strides = [1, 1]} : vector<128x768xf32> to vector<128x256xf32>
    %39 = arith.truncf %38 : vector<128x256xf32> to vector<128x256xbf16>
    %40 = vector.shape_cast %39 : vector<128x256xbf16> to vector<128x2x128xbf16>
    %41 = vector.extract_strided_slice %32 {offsets = [0, 512], sizes = [128, 256], strides = [1, 1]} : vector<128x768xf32> to vector<128x256xf32>
    %42 = arith.truncf %41 : vector<128x256xf32> to vector<128x256xbf16>
    %43 = vector.shape_cast %42 : vector<128x256xbf16> to vector<128x2x128xbf16>
    %44 = tpu.transpose %37, [1, 0, 2] : vector<128x2x128xbf16> -> vector<2x128x128xbf16>
    %c0_14 = arith.constant 0 : index
    %c0_15 = arith.constant 0 : index
    %c0_16 = arith.constant 0 : index
    %c0_17 = arith.constant 0 : index
    %45 = vector.load %arg6[%c0_14, %c0_15, %c0_16, %c0_17] : memref<1x2x128x128xbf16, #tpu.memory_space<vmem>>, vector<1x2x128x128xbf16>
    %46 = vector.shape_cast %45 : vector<1x2x128x128xbf16> to vector<2x128x128xbf16>
    %47 = vector.shape_cast %44 : vector<2x128x128xbf16> to vector<1x2x128x128xbf16>
    tpu.vector_store %arg6[%c0_14, %c0_15, %c0_16, %c0_17], %47 {strides = array<i32>} : memref<1x2x128x128xbf16, #tpu.memory_space<vmem>>, vector<1x2x128x128xbf16>,
    %48 = tpu.transpose %40, [1, 0, 2] : vector<128x2x128xbf16> -> vector<2x128x128xbf16>
    %c0_18 = arith.constant 0 : index
    %c0_19 = arith.constant 0 : index
    %c0_20 = arith.constant 0 : index
    %c0_21 = arith.constant 0 : index
    %49 = vector.load %arg7[%c0_18, %c0_19, %c0_20, %c0_21] : memref<1x2x128x128xbf16, #tpu.memory_space<vmem>>, vector<1x2x128x128xbf16>
    %50 = vector.shape_cast %49 : vector<1x2x128x128xbf16> to vector<2x128x128xbf16>
    %51 = vector.shape_cast %48 : vector<2x128x128xbf16> to vector<1x2x128x128xbf16>
    tpu.vector_store %arg7[%c0_18, %c0_19, %c0_20, %c0_21], %51 {strides = array<i32>} : memref<1x2x128x128xbf16, #tpu.memory_space<vmem>>, vector<1x2x128x128xbf16>,
    %52 = tpu.transpose %43, [1, 0, 2] : vector<128x2x128xbf16> -> vector<2x128x128xbf16>
    %c0_22 = arith.constant 0 : index
    %c0_23 = arith.constant 0 : index
    %c0_24 = arith.constant 0 : index
    %c0_25 = arith.constant 0 : index
    %53 = vector.load %arg8[%c0_22, %c0_23, %c0_24, %c0_25] : memref<1x2x128x128xbf16, #tpu.memory_space<vmem>>, vector<1x2x128x128xbf16>
    %54 = vector.shape_cast %53 : vector<1x2x128x128xbf16> to vector<2x128x128xbf16>
    %55 = vector.shape_cast %52 : vector<2x128x128xbf16> to vector<1x2x128x128xbf16>
    tpu.vector_store %arg8[%c0_22, %c0_23, %c0_24, %c0_25], %55 {strides = array<i32>} : memref<1x2x128x128xbf16, #tpu.memory_space<vmem>>, vector<1x2x128x128xbf16>,
    return
  }
  func.func @transform_0(%arg0: i32, %arg1: i32) -> (i32, i32, i32) {
    %c0_i32 = arith.constant 0 : i32
    %c0_i32_0 = arith.constant 0 : i32
    return %arg0, %arg1, %c0_i32 : i32, i32, i32
  }
  func.func @transform_1(%arg0: i32, %arg1: i32) -> (i32, i32) {
    %c0_i32 = arith.constant 0 : i32
    %c0_i32_0 = arith.constant 0 : i32
    %c0_i32_1 = arith.constant 0 : i32
    return %c0_i32, %c0_i32_0 : i32, i32
  }
  func.func @transform_2(%arg0: i32, %arg1: i32) -> (i32, i32) {
    %c0_i32 = arith.constant 0 : i32
    %c0_i32_0 = arith.constant 0 : i32
    %c0_i32_1 = arith.constant 0 : i32
    return %c0_i32, %c0_i32_0 : i32, i32
  }
  func.func @transform_3(%arg0: i32, %arg1: i32) -> (i32, i32) {
    %c0_i32 = arith.constant 0 : i32
    %c0_i32_0 = arith.constant 0 : i32
    %c0_i32_1 = arith.constant 0 : i32
    return %c0_i32, %c0_i32_0 : i32, i32
  }
  func.func @transform_4(%arg0: i32, %arg1: i32) -> (i32, i32, i32, i32) {
    %c0_i32 = arith.constant 0 : i32
    %c0_i32_0 = arith.constant 0 : i32
    %c0_i32_1 = arith.constant 0 : i32
    return %arg0, %c0_i32, %arg1, %c0_i32_0 : i32, i32, i32, i32
  }
  func.func @transform_5(%arg0: i32, %arg1: i32) -> (i32, i32, i32, i32) {
    %c0_i32 = arith.constant 0 : i32
    %c0_i32_0 = arith.constant 0 : i32
    %c0_i32_1 = arith.constant 0 : i32
    return %arg0, %c0_i32, %arg1, %c0_i32_0 : i32, i32, i32, i32
  }
  func.func @transform_6(%arg0: i32, %arg1: i32) -> (i32, i32, i32, i32) {
    %c0_i32 = arith.constant 0 : i32
    %c0_i32_0 = arith.constant 0 : i32
    %c0_i32_1 = arith.constant 0 : i32
    return %arg0, %c0_i32, %arg1, %c0_i32_0 : i32, i32, i32, i32
  }
}

</mosaic_0001>

<bundles_post_ra>
// kernel: tpu_custom_call.1
= control target key start
LH: loop header
LB: loop body
LE: loop exit
PB: predicated region body
PF: predicated region fallthrough
CT: control target
= control target key end

     0   :  { %s10097_s0 = inlined_call_operand.hbm [shape: f32[2,512,256], index: 0, kind: input, shape index: {}]   ;;  %s10098_s1 = inlined_call_operand.hbm [shape: f32[1,256], index: 1, kind: input, shape index: {}]   ;;  %s10099_s2 = inlined_call_operand.hbm [shape: f32[1,256], index: 2, kind: input, shape index: {}]   ;;  %s10100_s3 = inlined_call_operand.hbm [shape: bf16[256,768], index: 3, kind: input, shape index: {}]   ;;  %s10101_s4 = inlined_call_operand.hbm [shape: bf16[2,2,512,128], index: 4, kind: output, shape index: {0}]   ;;  %s10102_s5 = inlined_call_operand.hbm [shape: bf16[2,2,512,128], index: 5, kind: output, shape index: {1}]   ;;  %s10103_s6 = inlined_call_operand.hbm [shape: bf16[2,2,512,128], index: 6, kind: output, shape index: {2}]  }
   0x1   :  { %10109 = sst [smem:[#allocation29_spill]] %s10098_s1 }
   0x2   :  { %10110 = sst [smem:[#allocation30_spill]] %s10099_s2 }
   0x3   :  { %10111 = sst [smem:[#allocation31_spill]] %s10100_s3 }
   0x4   :  { %10112 = sst [smem:[#allocation32_spill]] %s10102_s5 }
   0x5   :  { %10113 = sst [smem:[#allocation33_spill]] %s10103_s6 }
   0x6   :  { %12 = vsyncpa [#allocation3], 0 }
   0x7   :  { %14 = vsyncpa [#allocation3 + $0x1], 0 }
   0x8   :  { %15 = vsyncpa [#allocation6], 0 }
   0x9   :  { %16 = vsyncpa [#allocation9], 0 }
   0xa   :  { %17 = vsyncpa [#allocation4], 0 }
   0xb   :  { %19 = vsyncpa [#allocation4 + $0x1], 0 }
   0xc   :  { %20 = vsyncpa [#allocation12], 0 }
   0xd   :  { %22 = vsyncpa [#allocation12 + $0x1], 0  ;;  %s7767_s21 = smov 0   ;;  %s7769_s22 = smov 0  }
   0xe   :  { %s7771_s23 = smov 0   ;;  %s7773_s24 = smov 0  }
   0xf   :  { %s7775_s25 = smov 0   ;;  %s7777_s26 = smov 0  }
  0x10   :  { %s7779_s27 = smov 0   ;;  %s7781_s28 = smov 0  }
  0x11 LB: > { %10114 = sst [smem:[#allocation25_spill]] %s7671_s21  ;;  %s7808_s29 = sadd.s32 4294967295, %s7699_s28   ;;  %s7699_s28 = sphi %s7781_s28, %s28_s28   ;;  %s7695_s27 = sphi %s7779_s27, %s10140_s27   ;;  %s7691_s26 = sphi %s7777_s26, %s10135_s26   ;;  %s7687_s25 = sphi %s7775_s25, %s10139_s25   ;;  %s7683_s24 = sphi %s7773_s24, %s10134_s24   ;;  %s7679_s23 = sphi %s7771_s23, %s10138_s23   ;;  %s7675_s22 = sphi %s7769_s22, %s10137_s22   ;;  %s7671_s21 = sphi %s7767_s21, %s10136_s21  }
  0x12   : > { %10115 = sst [smem:[#allocation26_spill]] %s7691_s26  ;;  %s10104_s30 = sadd.s32 4294967294, %s7699_s28  }
  0x13   : > { %p62_p0 = scmp.ne.s32.totalorder %s7675_s22, %s7671_s21  ;;  %p63_p1 = scmp.eq.s32.totalorder %s7808_s29, 0 }
  0x14   : > { %p151_p2 = scmp.eq.s32.totalorder %s7808_s29, 7  ;;  %p157_p3 = scmp.eq.s32.totalorder %s10104_s30, 7 }
  0x15   : > { %p7819_p4 = por %p63_p1, %p62_p0  ;;  %p6785_p5 = scmp.ge.s32.totalorder %s7699_s28, 1 }
  0x16   : > { %p7824_p6 = por %p157_p3, %p62_p0  ;;  %p220_p7 = scmp.lt.s32.totalorder %s7699_s28, 9 }
  0x17   : > { %s10119_s1 = sld [smem:[#allocation29_spill]]  ;;  %s7701_s13 = smov [#allocation5]  }
  0x18   : > { %s10117_s8 = scalar_select %p7824_p6, 1, 0 }
  0x19   : > { %p7832_p8 = pnand %p6785_p5, %p220_p7  ;;  %s234_s14 = sshll.u32 %s7701_s13, 4  ;;  %s235_s14 = int_to_ptr.vmem [resolvable:$true] %s234_s14 }
  0x1a   : > { %10118 = sst [smem:[#allocation27_spill]] %s10117_s8  ;;  %s7702_s10 = smov [#allocation7]  }
  0x1b   : > { %p7336_p9 = pneg %p7832_p8  ;;  %s10121_s2 = sld [smem:[#allocation30_spill]] }
  0x1c   : > { %s10123_s3 = sld [smem:[#allocation31_spill]]  ;;  %s246_s13 = sshll.u32 %s7702_s10, 4  ;;  %s247_s13 = int_to_ptr.vmem [resolvable:$true] %s246_s13 }
  0x1d   : > { %s232_s11 = sshll.u32 %s10119_s1, 4  ;;  %p7843_p10 = pnand %p7336_p9, %p63_p1  ;;  %s233_s11 = int_to_ptr.hbm [resolvable:$true] %s232_s11 }
  0x1e   : > { %s7703_s15 = smov [#allocation8]   ;;  %s7704_s19 = smov 384  }
  0x1f   : > { %7339 = dma.hbm_to_vmem [thread:$0]  (!%p7843_p10), %s233_s11, 32, %s235_s14, [#allocation6]  }
  0x20   : > { %s257_s16 = sshll.u32 %s7703_s15, 4  ;;  %s7705_s20 = smov 24   ;;  %s258_s16 = int_to_ptr.vmem [resolvable:$true] %s257_s16 }
  0x21   : > { %s244_s17 = sshll.u32 %s10121_s2, 4  ;;  %s37_s10 = sadd.s32 1, %s7691_s26  ;;  %s245_s17 = int_to_ptr.hbm [resolvable:$true] %s244_s17 }
  0x22   : > { %s255_s9 = sshll.u32 %s10123_s3, 4  ;;  %p38_p11 = scmp.ge.s32.totalorder %s37_s10, 4  ;;  %s256_s9 = int_to_ptr.hbm [resolvable:$true] %s255_s9 }
  0x23   : > { %7342 = dma.hbm_to_vmem [thread:$0]  (!%p7843_p10), %s245_s17, 32, %s247_s13, [#allocation6]  }
  0x24   : > { %7345 = dma.hbm_to_vmem [thread:$0]  (!%p7843_p10), %s256_s9, 12288, %s258_s16, [#allocation9], %s7704_s19, %s7704_s19, %s7705_s20  }
  0x25   : > { %s40_s11 = sadd.s32 1, %s7695_s27  ;;  %s49_s14 = sadd.s32 1, %s7679_s23 }
  0x26   : > { %p56_p12 = scmp.ne.s32.totalorder %s7679_s23, %s7675_s22  ;;  %s10142_s10 = smov (%p38_p11, %s37_s10), 0 }
  0x27   : > { %10124 = sst [smem:[#allocation28_spill]] %s10142_s10  ;;  %s10144_s11 = smov (!%p38_p11, %s40_s11), %s7695_s27 }
  0x28   : > { %s45_s17 = ssub.s32 %s7691_s26, %s10142_s10  ;;  %p57_p13 = scmp.eq.s32.totalorder %s7699_s28, 0 }
  0x29   : > { %p42_p0 = scmp.ge.s32.totalorder %s10144_s11, 2  ;;  %p7869_p3 = por %p151_p2, %p56_p12 }
  0x2a   : > { %p7873_p5 = por %p57_p13, %p56_p12  ;;  %p7363_p7 = scmp.lt.s32.totalorder %s7699_s28, 8 }
  0x2b   : > { %s10146_s11 = smov (%p42_p0, %s10144_s11), 0  ;;  %s271_s13 = sand.u32 1, %s7679_s23  }
  0x2c   : > { %s7201_s15 = sshll.u32 %s7691_s26, 5  ;;  %s44_s16 = ssub.s32 %s7695_s27, %s10146_s11 }
  0x2d   : > { %s46_s19 = sor.u32 %s45_s17, %s44_s16  ;;  %s6790_s20 = sshll.u32 %s271_s13, 8 }
  0x2e   : > { %p47_p9 = scmp.eq.s32.totalorder %s46_s19, 0  ;;  %s6793_s30 = sshll.u32 %s7695_s27, 7 }
  0x2f   : > { %s275_s1 = scalar_lea.vmem [#allocation2], %s6790_s20  ;;  %s281_s10 = sadd.s32 %s7201_s15, %s6793_s30 }
  0x30   : > { %s286_s2 = sshll.u32 %s275_s1, 4  ;;  %s6794_s8 = sshll.u32 %s281_s10, 3  ;;  %s287_s2 = int_to_ptr.vmem [resolvable:$true] %s286_s2 }
  0x31   : > { %s7886_s3 = scalar_select %p47_p9, %s7679_s23, %s49_s14  }
  0x32   : > { %p7347_p2 = pnand %p7363_p7, %p7873_p5  ;;  %s283_s5 = scalar_lea.hbm %s10097_s0, %s6794_s8 }
  0x33   : > { %s284_s26 = sshll.u32 %s283_s5, 4  ;;  %s272_s17 = scalar_lea.sflag [#allocation3], %s271_s13  ;;  %s285_s26 = int_to_ptr.hbm [resolvable:$true] %s284_s26 }
  0x34   : > { %s7706_s16 = smov 256   ;;  %s7707_s19 = smov 16  }
  0x35   : > { %7349 = dma.hbm_to_vmem [thread:$0]  (!%p7347_p2), %s285_s26, 4096, %s287_s2, %s272_s17, %s7706_s16, %s7706_s16, %s7707_s19  }
  0x36   : > { %298 = sbr.rel (%p7832_p8) target bundleno = 1123 (0x463), region = 36  ;;  %s7898_s1 = sand.u32 (!%p7832_p8), 1, %s7675_s22  }
  0x37   : > { %s6796_s30 = sshll.u32 (!%p7832_p8), %s7898_s1, 8  ;;  %s301_s10 = scalar_lea.sflag (!%p7832_p8), [#allocation3], %s7898_s1 }
  0x38   : > { %s7902_s14 = scalar_lea.vmem (!%p7832_p8), [#allocation2], %s6796_s30 }
  0x3b   : > { %7650 = dma.done.wait (%p7819_p4), %s301_s10, 4096  }
  0x3c   : > { %7652 = vsyncadd (%p7819_p4), %s301_s10, 4294963200 }
  0x3d   : > { %7654 = dma.done.wait (%p63_p1), [#allocation6], 64  }
  0x3e   : > { %7656 = vsyncadd (%p63_p1), [#allocation6], 4294967232 }
  0x3f   : > { %7658 = dma.done.wait (%p63_p1), [#allocation9], 12288  }
  0x40   : > { %7660 = vsyncadd (%p63_p1), [#allocation9], 4294955008  ;;  %v7917_v0 = vld [vmem:[%s7902_s14 + $0x20] sm:$0xff]  ;;  %v7920_v1 = vld [vmem:[%s7902_s14 + $0x28] sm:$0xff]  ;;  %v7708_v27 = vmov 256.0   ;;  %s8553_s2 = sshll.u32 %s7898_s1, 7 }
  0x41   : > { %v364_v2 = vld [vmem:[%s7902_s14] sm:$0xff]  ;;  %v404_v3 = vadd.f32 %v7920_v1, %v7917_v0  ;;  %v365_v4 = vld [vmem:[%s7902_s14 + $0x8] sm:$0xff]  ;;  %v370_v8 = vld [vmem:[%s7902_s14 + $0x30] sm:$0xff]  ;;  %7463 = vrcp.f32 %v7708_v27  ;;  %s8575_s5 = scalar_lea.vmem [#allocation10], %s8553_s2  ;;  %s9109_s6 = scalar_lea.vmem [#allocation11], %s8553_s2 }
  0x42   : > { %v398_v5 = vadd.f32 %v365_v4, %v364_v2  ;;  %v372_v6 = vld [vmem:[%s7902_s14 + $0x40] sm:$0xff]  ;;  %v373_v7 = vld [vmem:[%s7902_s14 + $0x48] sm:$0xff]  ;;  %v371_v9 = vld [vmem:[%s7902_s14 + $0x38] sm:$0xff]  ;;  %s9590_s21 = scalar_lea.vmem [#allocation13], %s8553_s2  ;;  %s6465_s26 = sand.u32 1, %s7808_s29  }
  0x43   : > { %405 = vadd.xlane.f32.xlu1 %v404_v3  ;;  %v410_v10 = vadd.f32 %v373_v7, %v372_v6  ;;  %v366_v11 = vld [vmem:[%s7902_s14 + $0x10] sm:$0xff]  ;;  %v367_v12 = vld [vmem:[%s7902_s14 + $0x18] sm:$0xff]  ;;  %v407_v13 = vadd.f32 %v371_v9, %v370_v8  ;;  %v7947_v20 = vld [vmem:[%s7902_s14 + $0x60] sm:$0xff]  ;;  %s6461_s7 = scalar_lea.sflag [#allocation4], %s7898_s1  ;;  %s10002_s8 = scalar_lea.sflag [#allocation12], %s6465_s26 }
  0x44   : > { %399 = vadd.xlane.f32.xlu0 %v398_v5  ;;  %v7933_v14 = vld [vmem:[%s7902_s14 + $0x50] sm:$0xff]  ;;  %v7936_v15 = vld [vmem:[%s7902_s14 + $0x58] sm:$0xff]  ;;  %v401_v16 = vadd.f32 %v367_v12, %v366_v11  ;;  %v7950_v21 = vld [vmem:[%s7902_s14 + $0x68] sm:$0xff] }
  0x45   : > { %411 = vadd.xlane.f32.xlu2 %v410_v10  ;;  %v413_v17 = vadd.f32 %v7936_v15, %v7933_v14  ;;  %v7941_v18 = vld [vmem:[%s7902_s14 + $0x70] sm:$0xff]  ;;  %v7944_v19 = vld [vmem:[%s7902_s14 + $0x78] sm:$0xff]  ;;  %v416_v23 = vadd.f32 %v7950_v21, %v7947_v20  ;;  %v7957_v24 = vld [vmem:[%s7902_s14 + $0x80] sm:$0xff] }
  0x46   : > { %v419_v22 = vadd.f32 %v7944_v19, %v7941_v18  ;;  %v7960_v25 = vld [vmem:[%s7902_s14 + $0x88] sm:$0xff]  ;;  %v7978_v47 = vld [vmem:[%s7902_s14 + $0x90] sm:$0xff]  ;;  %v7981_v48 = vld [vmem:[%s7902_s14 + $0x98] sm:$0xff] }
  0x47   : > { %v422_v26 = vadd.f32 %v7960_v25, %v7957_v24  ;;  %v7464_v28 = vpop.eup %7463  ;;  %v425_v55 = vadd.f32 %v7981_v48, %v7978_v47  ;;  %v8048_v27 = vld [vmem:[%s7902_s14 + $0xb0] sm:$0xff] }
  0x48   : > { %v447_v29 = vmul.f32 256.0, %v7464_v28  ;;  %vm451_vm0 = vweird.f32 %v7464_v28 }
  0x4a   : > { %v448_v30 = vsub.f32 1.0, %v447_v29 }
  0x4b   : > { %408 = vadd.xlane.f32.xlu1 %v407_v13 }
  0x4c   : > { %402 = vadd.xlane.f32.xlu0 %v401_v16  ;;  %v449_v31 = vmul.f32 %v7464_v28, %v448_v30 }
  0x4d   : > { %414 = vadd.xlane.f32.xlu2 %v413_v17 }
  0x4e   : > { %v450_v32 = vadd.f32 %v7464_v28, %v449_v31 }
  0x50   : > { %v7964_v33 = vsel %vm451_vm0, %v7464_v28, %v450_v32  ;;  %v8051_v28 = vld [vmem:[%s7902_s14 + $0xb8] sm:$0xff] }
  0x53   : > { %420 = vadd.xlane.f32.xlu1 %v419_v22 }
  0x54   : > { %417 = vadd.xlane.f32.xlu0 %v416_v23  ;;  %v8038_v23 = vld [vmem:[%s7902_s14 + $0xd0] sm:$0xff] }
  0x5b   : > { %423 = vadd.xlane.f32.xlu1 %v422_v26  ;;  %v8041_v26 = vld [vmem:[%s7902_s14 + $0xd8] sm:$0xff] }
  0x5c   : > { %v437_v29 = vadd.f32 %v8041_v26, %v8038_v23 }
  0xb6   : > { %v406_v34 = vpop.xlane.xlu1 %405 }
  0xb7   : > { %v400_v35 = vpop.xlane.xlu0 %399  ;;  %v455_v49 = vmul.f32 %v7964_v33, %v406_v34 }
  0xb8   : > { %v453_v36 = vmul.f32 %v7964_v33, %v400_v35  ;;  %v412_v39 = vpop.xlane.xlu2 %411  ;;  %v431_v35 = vadd.f32 %v8051_v28, %v8048_v27 }
  0xb9   : > { %v457_v46 = vmul.f32 %v7964_v33, %v412_v39  ;;  %v8004_v60 = vsub.f32 %v7917_v0, %v455_v49  ;;  %v8007_v61 = vsub.f32 %v7920_v1, %v455_v49  ;;  %v8065_v39 = vld [vmem:[%s7902_s14 + $0xe0] sm:$0xff] }
  0xba   : > { %v7967_v37 = vsub.f32 %v364_v2, %v453_v36  ;;  %v7969_v38 = vsub.f32 %v365_v4, %v453_v36 }
  0xbb   : > { %v7995_v56 = vsub.f32 %v372_v6, %v457_v46  ;;  %v7997_v57 = vsub.f32 %v373_v7, %v457_v46  ;;  %v505_v6 = vmul.f32 %v8004_v60, %v8004_v60  ;;  %v506_v7 = vmul.f32 %v8007_v61, %v8007_v61 }
  0xbc   : > { %v501_v40 = vmul.f32 %v7967_v37, %v7967_v37  ;;  %v502_v41 = vmul.f32 %v7969_v38, %v7969_v38 }
  0xbd   : > { %v509_v5 = vmul.f32 %v7995_v56, %v7995_v56  ;;  %v510_v0 = vmul.f32 %v7997_v57, %v7997_v57  ;;  %v539_v16 = vadd.f32 %v506_v7, %v505_v6  ;;  %v7165_v6 = vld [vmem:[#allocation8 + $0x2d0] sm:$0xf] }
  0xbe   : > { %v409_v42 = vpop.xlane.xlu1 %408  ;;  %v533_v43 = vadd.f32 %v502_v41, %v501_v40  ;;  %v8068_v40 = vld [vmem:[%s7902_s14 + $0xe8] sm:$0xff]  ;;  %v8075_v41 = vld [vmem:[%s7902_s14 + $0xc0] sm:$0xff] }
  0xbf   : > { %v456_v44 = vmul.f32 %v7964_v33, %v409_v42  ;;  %v403_v45 = vpop.xlane.xlu0 %402  ;;  %v545_v10 = vadd.f32 %v510_v0, %v509_v5  ;;  %v8078_v42 = vld [vmem:[%s7902_s14 + $0xc8] sm:$0xff] }
  0xc0   : > { %v454_v50 = vmul.f32 %v7964_v33, %v403_v45  ;;  %534 = vadd.xlane.f32.xlu2 %v533_v43  ;;  %v415_v3 = vpop.xlane.xlu2 %414  ;;  %v440_v43 = vadd.f32 %v8068_v40, %v8065_v39  ;;  %v434_v46 = vadd.f32 %v8078_v42, %v8075_v41 }
  0xc1   : > { %v7985_v51 = vsub.f32 %v370_v8, %v456_v44  ;;  %v7987_v52 = vsub.f32 %v371_v9, %v456_v44  ;;  %v458_v1 = vmul.f32 %v7964_v33, %v415_v3  ;;  %v8023_v8 = vld [vmem:[%s7902_s14 + $0xa0] sm:$0xff]  ;;  %v8026_v9 = vld [vmem:[%s7902_s14 + $0xa8] sm:$0xff] }
  0xc2   : > { %v7989_v53 = vsub.f32 %v366_v11, %v454_v50  ;;  %v7991_v54 = vsub.f32 %v367_v12, %v454_v50  ;;  %v428_v13 = vadd.f32 %v8026_v9, %v8023_v8 }
  0xc3   : > { %v507_v58 = vmul.f32 %v7985_v51, %v7985_v51  ;;  %v508_v59 = vmul.f32 %v7987_v52, %v7987_v52  ;;  %v8029_v11 = vsub.f32 %v7933_v14, %v458_v1  ;;  %v8032_v12 = vsub.f32 %v7936_v15, %v458_v1  ;;  %v6973_v1 = vld [vmem:[#allocation8 + $0x150] sm:$0xf] }
  0xc4   : > { %v503_v62 = vmul.f32 %v7989_v53, %v7989_v53  ;;  %v504_v63 = vmul.f32 %v7991_v54, %v7991_v54 }
  0xc5   : > { %v542_v2 = vadd.f32 %v508_v59, %v507_v58  ;;  %v511_v14 = vmul.f32 %v8029_v11, %v8029_v11  ;;  %v512_v15 = vmul.f32 %v8032_v12, %v8032_v12  ;;  %v8096_v59 = vld [vmem:[%s7902_s14 + $0xf0] sm:$0xff] }
  0xc6   : > { %v536_v4 = vadd.f32 %v504_v63, %v503_v62  ;;  %v421_v30 = vpop.xlane.xlu1 %420 }
  0xc7   : > { %543 = vadd.xlane.f32.xlu1 %v542_v2  ;;  %v418_v17 = vpop.xlane.xlu0 %417  ;;  %v548_v34 = vadd.f32 %v512_v15, %v511_v14  ;;  %v460_v36 = vmul.f32 %v7964_v33, %v421_v30  ;;  %v7167_v14 = vld [vmem:[#allocation8 + $0x2e8] sm:$0xf0]  ;;  %v7241_v30 = vld [vmem:[#allocation8 + $0x134] sm:$0xf0] }
  0xc8   : > { %426 = vadd.xlane.f32.xlu2 %v425_v55  ;;  %537 = vadd.xlane.f32.xlu0 %v536_v4  ;;  %v459_v22 = vmul.f32 %v7964_v33, %v418_v17 }
  0xc9   : > { %v8083_v44 = vsub.f32 %v7941_v18, %v460_v36  ;;  %v8086_v45 = vsub.f32 %v7944_v19, %v460_v36  ;;  %v8099_v19 = vld [vmem:[%s7902_s14 + $0xf8] sm:$0xff] }
  0xca   : > { %v8056_v31 = vsub.f32 %v7947_v20, %v459_v22  ;;  %v8059_v32 = vsub.f32 %v7950_v21, %v459_v22  ;;  %v443_v3 = vadd.f32 %v8099_v19, %v8096_v59  ;;  %v7292_v22 = vld [vmem:[#allocation8 + $0x2d4] sm:$0xf]  ;;  %v7289_v36 = vld [vmem:[#allocation8 + $0x2b4] sm:$0xf0] }
  0xcb   : > { %v515_v58 = vmul.f32 %v8083_v44, %v8083_v44  ;;  %v516_v18 = vmul.f32 %v8086_v45, %v8086_v45  ;;  %v7170_v15 = vor.u32 %v7292_v22, %v7167_v14  ;;  %v7277_v22 = vld [vmem:[#allocation8 + $0x254] sm:$0xf0]  ;;  %v7226_v14 = vld [vmem:[#allocation8 + $0xc4] sm:$0xf] }
  0xcc   : > { %v513_v20 = vmul.f32 %v8056_v31, %v8056_v31  ;;  %v514_v21 = vmul.f32 %v8059_v32, %v8059_v32 }
  0xcd   : > { %v554_v2 = vadd.f32 %v516_v18, %v515_v58  ;;  %1618 = vmatpush.bf16.msra.mxu3 %v7170_v15  ;;  %v6925_v58 = vld [vmem:[#allocation8 + $0xf0] sm:$0xf]  ;;  %v7235_v18 = vld [vmem:[#allocation8 + $0x104] sm:$0xf0]  ;;  %v6903_v15 = vld [vmem:[#allocation8 + $0xd8] sm:$0xf0] }
  0xce   : > { %v551_v49 = vadd.f32 %v514_v21, %v513_v20  ;;  %v424_v50 = vpop.xlane.xlu1 %423  ;;  %v7238_v20 = vld [vmem:[#allocation8 + $0x124] sm:$0xf]  ;;  %v6951_v21 = vld [vmem:[#allocation8 + $0x138] sm:$0xf0] }
  0xcf   : > { %546 = vadd.xlane.f32.xlu1 %v545_v10  ;;  %v461_v55 = vmul.f32 %v7964_v33, %v424_v50  ;;  %v7244_v10 = vld [vmem:[#allocation8 + $0x154] sm:$0xf]  ;;  %v7143_v50 = vld [vmem:[#allocation8 + $0x2b8] sm:$0xf0] }
  0xd0   : > { %429 = vadd.xlane.f32.xlu2 %v428_v13  ;;  %540 = vadd.xlane.f32.xlu0 %v539_v16  ;;  %v6975_v13 = vld [vmem:[#allocation8 + $0x168] sm:$0xf0] }
  0xd1   : > { %v8102_v62 = vsub.f32 %v7957_v24, %v461_v55  ;;  %v8105_v63 = vsub.f32 %v7960_v25, %v461_v55  ;;  %v7247_v24 = vld [vmem:[#allocation8 + $0x164] sm:$0xf0]  ;;  %v6978_v17 = vor.u32 %v7244_v10, %v6975_v13  ;;  %v6901_v10 = vld [vmem:[#allocation8 + $0xc0] sm:$0xf]  ;;  %v7229_v13 = vld [vmem:[#allocation8 + $0xd4] sm:$0xf0] }
  0xd2   : > { %v6974_v7 = vor.u32 %v7247_v24, %v6973_v1  ;;  %v7295_v25 = vld [vmem:[#allocation8 + $0x2e4] sm:$0xf0] }
  0xd3   : > { %v517_v4 = vmul.f32 %v8102_v62, %v8102_v62  ;;  %v518_v5 = vmul.f32 %v8105_v63, %v8105_v63  ;;  %v7166_v16 = vor.u32 %v7295_v25, %v7165_v6  ;;  %1569 = vmatpush.bf16.msra.mxu2 %v6978_v17  ;;  %v7280_v6 = vld [vmem:[#allocation8 + $0x274] sm:$0xf]  ;;  %v6902_v17 = vor.u32 %v7229_v13, %v6901_v10 }
  0xd4   : > { %1471 = vmatpush.bf16.msra.mxu0 %v6974_v7  ;;  %v7119_v7 = vld [vmem:[#allocation8 + $0x288] sm:$0xf0] }
  0xd5   : > { %v557_v0 = vadd.f32 %v518_v5, %v517_v4  ;;  %1520 = vmatpush.bf16.msra.mxu1 %v7166_v16  ;;  %v7283_v4 = vld [vmem:[#allocation8 + $0x284] sm:$0xf0]  ;;  %v7232_v5 = vld [vmem:[#allocation8 + $0xf4] sm:$0xf]  ;;  %v7122_v25 = vor.u32 %v7280_v6, %v7119_v7  ;;  %v7093_v16 = vld [vmem:[#allocation8 + $0x240] sm:$0xf] }
  0xd6   : > { %v7265_v6 = vld [vmem:[#allocation8 + $0x1f4] sm:$0xf0]  ;;  %v7214_v7 = vld [vmem:[#allocation8 + $0x64] sm:$0xf] }
  0xd7   : > { %438 = vadd.xlane.f32.xlu1 %v437_v29  ;;  %v6949_v29 = vld [vmem:[#allocation8 + $0x120] sm:$0xf] }
  0xd8   : > { %549 = vadd.xlane.f32.xlu2 %v548_v34  ;;  %432 = vadd.xlane.f32.xlu0 %v431_v35  ;;  %v7141_v34 = vld [vmem:[#allocation8 + $0x2a0] sm:$0xf]  ;;  %v6950_v35 = vor.u32 %v7241_v30, %v6949_v29  ;;  %v7094_v29 = vor.u32 %v7277_v22, %v7093_v16  ;;  %v6906_v30 = vor.u32 %v7226_v14, %v6903_v15  ;;  %v7262_v16 = vld [vmem:[#allocation8 + $0x1e4] sm:$0xf]  ;;  %v6829_v15 = vld [vmem:[#allocation8 + $0x30] sm:$0xf] }
  0xda   : > { %1472 = vmatpush.bf16.msra.mxu0 %v6950_v35  ;;  %v7095_v35 = vld [vmem:[#allocation8 + $0x258] sm:$0xf0] }
  0xdf   : > { %441 = vadd.xlane.f32.xlu1 %v440_v43  ;;  %v7142_v43 = vor.u32 %v7289_v36, %v7141_v34  ;;  %v7274_v34 = vld [vmem:[#allocation8 + $0x244] sm:$0xf] }
  0xe0   : > { %435 = vadd.xlane.f32.xlu0 %v434_v46  ;;  %552 = vadd.xlane.f32.xlu2 %v551_v49  ;;  %v6954_v46 = vor.u32 %v7238_v20, %v6951_v21  ;;  %v7286_v49 = vld [vmem:[#allocation8 + $0x2a4] sm:$0xf]  ;;  %v7098_v36 = vor.u32 %v7274_v34, %v7095_v35  ;;  %v6877_v20 = vld [vmem:[#allocation8 + $0x90] sm:$0xf]  ;;  %v7223_v21 = vld [vmem:[#allocation8 + $0xa4] sm:$0xf0] }
  0xe1   : > { %v7146_v55 = vor.u32 %v7286_v49, %v7143_v50  ;;  %1521 = vmatpush.bf16.msra.mxu1 %v7142_v43  ;;  %v7069_v43 = vld [vmem:[#allocation8 + $0x210] sm:$0xf]  ;;  %v7271_v49 = vld [vmem:[#allocation8 + $0x224] sm:$0xf0]  ;;  %v7220_v50 = vld [vmem:[#allocation8 + $0x94] sm:$0xf] }
  0xe2   : > { %1570 = vmatpush.bf16.msra.mxu2 %v6954_v46  ;;  %v6878_v46 = vor.u32 %v7223_v21, %v6877_v20  ;;  %v7208_v20 = vld [vmem:[#allocation8 + $0x34] sm:$0xf]  ;;  %v6831_v21 = vld [vmem:[#allocation8 + $0x48] sm:$0xf0] }
  0xe3   : > { %1619 = vmatpush.bf16.msra.mxu3 %v7146_v55  ;;  %v6879_v55 = vld [vmem:[#allocation8 + $0xa8] sm:$0xf0] }
  0xe7   : > { %1620 = vmatpush.bf16.msra.mxu3 %v7122_v25  ;;  %v6855_v25 = vld [vmem:[#allocation8 + $0x78] sm:$0xf0] }
  0xe8   : > { %555 = vadd.xlane.f32.xlu0 %v554_v2  ;;  %444 = vadd.xlane.f32.xlu2 %v443_v3  ;;  %v7117_v2 = vld [vmem:[#allocation8 + $0x270] sm:$0xf]  ;;  %v6926_v3 = vor.u32 %v7235_v18, %v6925_v58  ;;  %v7070_v58 = vor.u32 %v7271_v49, %v7069_v43  ;;  %v6882_v18 = vor.u32 %v7220_v50, %v6879_v55  ;;  %v7256_v49 = vld [vmem:[#allocation8 + $0x1b4] sm:$0xf]  ;;  %v7023_v50 = vld [vmem:[#allocation8 + $0x1c8] sm:$0xf0] }
  0xe9   : > { %v7118_v1 = vor.u32 %v7283_v4, %v7117_v2  ;;  %v7268_v2 = vld [vmem:[#allocation8 + $0x214] sm:$0xf]  ;;  %v6858_v13 = vor.u32 %v7214_v7, %v6855_v25 }
  0xea   : > { %1473 = vmatpush.bf16.msra.mxu0 %v6926_v3  ;;  %v7071_v3 = vld [vmem:[#allocation8 + $0x228] sm:$0xf0] }
  0xeb   : > { %1522 = vmatpush.bf16.msra.mxu1 %v7118_v1  ;;  %1621 = vmatpush.bf16.msra.mxu3 %v7098_v36  ;;  %v7074_v4 = vor.u32 %v7268_v2, %v7071_v3  ;;  %v7045_v1 = vld [vmem:[#allocation8 + $0x1e0] sm:$0xf]  ;;  %v7259_v36 = vld [vmem:[#allocation8 + $0x1c4] sm:$0xf0] }
  0xec   : > { %v7046_v10 = vor.u32 %v7265_v6, %v7045_v1 }
  0xee   : > { %1474 = vmatpush.bf16.msra.mxu0 %v6902_v17  ;;  %v7047_v17 = vld [vmem:[#allocation8 + $0x1f8] sm:$0xf0] }
  0xef   : > { %1523 = vmatpush.bf16.msra.mxu1 %v7094_v29  ;;  %1622 = vmatpush.bf16.msra.mxu3 %v7074_v4  ;;  %v7050_v22 = vor.u32 %v7262_v16, %v7047_v17  ;;  %v7211_v29 = vld [vmem:[#allocation8 + $0x44] sm:$0xf0] }
  0xf0   : > { %558 = vadd.xlane.f32.xlu0 %v557_v0  ;;  %v6927_v0 = vld [vmem:[#allocation8 + $0x108] sm:$0xf0]  ;;  %v6830_v35 = vor.u32 %v7211_v29, %v6829_v15 }
  0xf1   : > { %v6930_v24 = vor.u32 %v7232_v5, %v6927_v0  ;;  %v6853_v5 = vld [vmem:[#allocation8 + $0x60] sm:$0xf]  ;;  %v7217_v0 = vld [vmem:[#allocation8 + $0x74] sm:$0xf0] }
  0xf2   : > { %1475 = vmatpush.bf16.msra.mxu0 %v6878_v46  ;;  %v6834_v46 = vor.u32 %v7208_v20, %v6831_v21 }
  0xf3   : > { %1571 = vmatpush.bf16.msra.mxu2 %v6930_v24  ;;  %1524 = vmatpush.bf16.msra.mxu1 %v7070_v58  ;;  %v6854_v24 = vor.u32 %v7217_v0, %v6853_v5  ;;  %v7026_v58 = vor.u32 %v7256_v49, %v7023_v50  ;;  %v7250_v50 = vld [vmem:[#allocation8 + $0x184] sm:$0xf] }
  0xf4   : > { %1623 = vmatpush.bf16.msra.mxu3 %v7050_v22  ;;  %v7205_v22 = vld [vmem:[#allocation8 + $0x14] sm:$0xf0] }
  0xf6   : > { %1476 = vmatpush.bf16.msra.mxu0 %v6854_v24 }
  0xf7   : > { %1572 = vmatpush.bf16.msra.mxu2 %v6906_v30  ;;  %1525 = vmatpush.bf16.msra.mxu1 %v7046_v10  ;;  %v7021_v30 = vld [vmem:[#allocation8 + $0x1b0] sm:$0xf] }
  0xf8   : > { %v7022_v43 = vor.u32 %v7259_v36, %v7021_v30  ;;  %1624 = vmatpush.bf16.msra.mxu3 %v7026_v58  ;;  %v7253_v30 = vld [vmem:[#allocation8 + $0x194] sm:$0xf0]  ;;  %v6999_v58 = vld [vmem:[#allocation8 + $0x198] sm:$0xf0] }
  0xfa   : > { %1477 = vmatpush.bf16.msra.mxu0 %v6830_v35  ;;  %v6807_v35 = vld [vmem:[#allocation8 + $0x18] sm:$0xf0] }
  0xfb   : > { %1573 = vmatpush.bf16.msra.mxu2 %v6882_v18  ;;  %1526 = vmatpush.bf16.msra.mxu1 %v7022_v43 }
  0xff   : > { %1574 = vmatpush.bf16.msra.mxu2 %v6858_v13 }
 0x103   : > { %1575 = vmatpush.bf16.msra.mxu2 %v6834_v46 }
 0x133   : > { %v535_v14 = vpop.xlane.xlu2 %534 }
 0x134   : > { %v581_v34 = vmul.f32 %v535_v14, %v7964_v33  ;;  %v6997_v14 = vld [vmem:[#allocation8 + $0x180] sm:$0xf] }
 0x135   : > { %v6998_v46 = vor.u32 %v7253_v30, %v6997_v14 }
 0x136   : > { %v8114_v55 = vadd.f32 1e-05, %v581_v34  ;;  %v7202_v34 = vld [vmem:[#allocation8 + $0x4] sm:$0xf] }
 0x137   : > { %v6810_v49 = vor.u32 %v7202_v34, %v6807_v35  ;;  %1527 = vmatpush.bf16.msra.mxu1 %v6998_v46  ;;  %v397_v46 = vld [vmem:[#allocation7] sm:$0x3] }
 0x138   : > { %7465 = vrsqrt.f32 %v8114_v55  ;;  %vm619_vm2 = vweird.f32 %v8114_v55 }
 0x139   : > { %1576 = vmatpush.bf16.msra.mxu2 %v6810_v49 }
 0x13a   : > { %v544_v18 = vpop.xlane.xlu1 %543 }
 0x13b   : > { %v584_v2 = vmul.f32 %v544_v18, %v7964_v33  ;;  %v427_v3 = vpop.xlane.xlu2 %426  ;;  %v538_v4 = vpop.xlane.xlu0 %537 }
 0x13c   : > { %v462_v5 = vmul.f32 %v7964_v33, %v427_v3  ;;  %v582_v0 = vmul.f32 %v538_v4, %v7964_v33  ;;  %v7002_v3 = vor.u32 %v7250_v50, %v6999_v58 }
 0x13d   : > { %v8120_v1 = vadd.f32 1e-05, %v584_v2 }
 0x13e   : > { %v7466_v24 = vpop.eup %7465  ;;  %v8123_v6 = vsub.f32 %v7978_v47, %v462_v5  ;;  %v8126_v7 = vsub.f32 %v7981_v48, %v462_v5  ;;  %v8128_v25 = vadd.f32 1e-05, %v582_v0  ;;  %v6805_v47 = vld [vmem:[#allocation8] sm:$0xf]  ;;  %1625 = vmatpush.bf16.msra.mxu3 %v7002_v3 }
 0x13f   : > { %v614_v10 = vmul.f32 %v7466_v24, %v8114_v55  ;;  %7467 = vrsqrt.f32 %v8120_v1  ;;  %v6806_v29 = vor.u32 %v7205_v22, %v6805_v47  ;;  %vm620_vm1 = vweird.f32 %v7466_v24 }
 0x140   : > { %7469 = vrsqrt.f32 %v8128_v25  ;;  %v519_v13 = vmul.f32 %v8123_v6, %v8123_v6  ;;  %v520_v16 = vmul.f32 %v8126_v7, %v8126_v7  ;;  %vm621_vm3 = vmor %vm619_vm2, %vm620_vm1  ;;  %vm629_vm5 = vweird.f32 %v8128_v25 }
 0x141   : > { %v615_v17 = vmul.f32 %v7466_v24, %v614_v10  ;;  %1478 = vmatpush.bf16.msra.mxu0 %v6806_v29  ;;  %vm649_vm6 = vweird.f32 %v8120_v1 }
 0x142   : > { %v547_v48 = vpop.xlane.xlu1 %546  ;;  %v560_v15 = vadd.f32 %v520_v16, %v519_v13 }
 0x143   : > { %v616_v36 = vmul.f32 0.5, %v615_v17  ;;  %v585_v20 = vmul.f32 %v547_v48, %v7964_v33  ;;  %v430_v21 = vpop.xlane.xlu2 %429  ;;  %v541_v43 = vpop.xlane.xlu0 %540 }
 0x144   : > { %v463_v18 = vmul.f32 %v7964_v33, %v430_v21  ;;  %v583_v2 = vmul.f32 %v541_v43, %v7964_v33  ;;  %561 = vadd.xlane.f32.xlu1 %v560_v15 }
 0x145   : > { %v8140_v4 = vpop.eup %7467  ;;  %v617_v5 = vsub.f32 1.5, %v616_v36  ;;  %v8142_v0 = vadd.f32 1e-05, %v585_v20 }
 0x146   : > { %v7470_v10 = vpop.eup %7469  ;;  %v644_v13 = vmul.f32 %v8140_v4, %v8120_v1  ;;  %v8147_v16 = vsub.f32 %v8023_v8, %v463_v18  ;;  %v8150_v17 = vsub.f32 %v8026_v9, %v463_v18  ;;  %v8155_v48 = vadd.f32 1e-05, %v583_v2  ;;  %v396_v9 = vld [vmem:[#allocation5] sm:$0x3] }
 0x147   : > { %v618_v47 = vmul.f32 %v7466_v24, %v617_v5  ;;  %v624_v22 = vmul.f32 %v7470_v10, %v8128_v25  ;;  %7471 = vrsqrt.f32 %v8142_v0  ;;  %v8164_v49 = vperm.slane %v396_v9, 0 }
 0x148   : > { %v645_v14 = vmul.f32 %v8140_v4, %v644_v13  ;;  %v521_v15 = vmul.f32 %v8147_v16, %v8147_v16  ;;  %v522_v8 = vmul.f32 %v8150_v17, %v8150_v17  ;;  %7473 = vrsqrt.f32 %v8155_v48 }
 0x149   : > { %v625_v29 = vmul.f32 %v7470_v10, %v624_v22  ;;  %v622_v30 = vsel %vm621_vm3, %v7466_v24, %v618_v47  ;;  %vm630_vm4 = vweird.f32 %v7470_v10  ;;  %v8167_v18 = vperm.slane %v396_v9, 1 }
 0x14a   : > { %v563_v36 = vadd.f32 %v522_v8, %v521_v15  ;;  %v646_v20 = vmul.f32 0.5, %v645_v14  ;;  %v439_v21 = vpop.xlane.xlu1 %438  ;;  %v773_v50 = vmul.f32 %v622_v30, %v7967_v37  ;;  %v774_v24 = vmul.f32 %v622_v30, %v7969_v38  ;;  %vm631_vm7 = vmor %vm629_vm5, %vm630_vm4 }
 0x14b   : > { %v626_v34 = vmul.f32 0.5, %v625_v29  ;;  %v550_v55 = vpop.xlane.xlu2 %549  ;;  %v433_v35 = vpop.xlane.xlu0 %432  ;;  %v8175_v47 = vperm.slane %v397_v46, 0  ;;  %v8177_v22 = vperm.slane %v397_v46, 1  ;;  %v466_v29 = vmul.f32 %v7964_v33, %v439_v21 }
 0x14c   : > { %v586_v43 = vmul.f32 %v550_v55, %v7964_v33  ;;  %564 = vadd.xlane.f32.xlu2 %v563_v36  ;;  %v647_v37 = vsub.f32 1.5, %v646_v20  ;;  %v810_v14 = vmul.f32 %v8164_v49, %v773_v50  ;;  %v811_v25 = vmul.f32 %v8167_v18, %v774_v24 }
 0x14d   : > { %v627_v58 = vsub.f32 1.5, %v626_v34  ;;  %v8170_v2 = vpop.eup %7471  ;;  %vm650_vm8 = vweird.f32 %v8140_v4  ;;  %v464_v46 = vmul.f32 %v7964_v33, %v433_v35  ;;  %vm639_vm10 = vweird.f32 %v8155_v48 }
 0x14e   : > { %v8173_v5 = vadd.f32 1e-05, %v586_v43  ;;  %v7474_v13 = vpop.eup %7473  ;;  %v654_v30 = vmul.f32 %v8170_v2, %v8142_v0  ;;  %v648_v36 = vmul.f32 %v8140_v4, %v647_v37  ;;  %v847_v43 = vadd.f32 %v8175_v47, %v810_v14  ;;  %vm651_vm9 = vmor %vm649_vm6, %vm650_vm8 }
 0x14f   : > { %v628_v3 = vmul.f32 %v7470_v10, %v627_v58  ;;  %v634_v38 = vmul.f32 %v7474_v13, %v8155_v48  ;;  %v848_v50 = vadd.f32 %v8177_v22, %v811_v25  ;;  %vm640_vm11 = vweird.f32 %v7474_v13 }
 0x150   : > { %7475 = vrsqrt.f32 %v8173_v5  ;;  %v655_v14 = vmul.f32 %v8170_v2, %v654_v30  ;;  %v8220_v30 = vsub.f32 %v8051_v28, %v464_v46  ;;  %vm641_vm12 = vmor %vm639_vm10, %vm640_vm11  ;;  %vm669_vm13 = vweird.f32 %v8173_v5 }
 0x151   : > { %v632_v15 = vsel %vm631_vm7, %v7470_v10, %v628_v3  ;;  %v635_v34 = vmul.f32 %v7474_v13, %v634_v38  ;;  %v8212_v38 = vsub.f32 %v8041_v26, %v466_v29  ;;  %vm659_vm15 = vweird.f32 %v8142_v0 }
 0x152   : > { %v775_v8 = vmul.f32 %v632_v15, %v7989_v53  ;;  %v776_v9 = vmul.f32 %v632_v15, %v7991_v54  ;;  %v8197_v54 = vsub.f32 %v8038_v23, %v466_v29  ;;  %v442_v3 = vpop.xlane.xlu1 %441  ;;  %v652_v23 = vsel %vm651_vm9, %v8140_v4, %v648_v36 }
 0x153   : > { %v553_v55 = vpop.xlane.xlu2 %552  ;;  %v436_v10 = vpop.xlane.xlu0 %435  ;;  %v636_v53 = vmul.f32 0.5, %v635_v34  ;;  %v467_v48 = vmul.f32 %v7964_v33, %v442_v3  ;;  %v780_v28 = vmul.f32 %v652_v23, %v7987_v52  ;;  %vm660_vm0 = vweird.f32 %v8170_v2 }
 0x154   : > { %v812_v20 = vmul.f32 %v8164_v49, %v775_v8  ;;  %v813_v21 = vmul.f32 %v8167_v18, %v776_v9  ;;  %v587_v37 = vmul.f32 %v553_v55, %v7964_v33  ;;  %v8217_v9 = vsub.f32 %v8048_v27, %v464_v46  ;;  %vm661_vm2 = vmor %vm659_vm15, %vm660_vm0 }
 0x155   : > { %v637_v15 = vsub.f32 1.5, %v636_v53  ;;  %v465_v26 = vmul.f32 %v7964_v33, %v436_v10  ;;  %v527_v29 = vmul.f32 %v8197_v54, %v8197_v54  ;;  %v779_v27 = vmul.f32 %v652_v23, %v7985_v51 }
 0x156   : > { %v849_v58 = vadd.f32 %v8175_v47, %v812_v20  ;;  %v850_v24 = vadd.f32 %v8177_v22, %v813_v21  ;;  %v8214_v25 = vpop.eup %7475  ;;  %v8225_v34 = vadd.f32 1e-05, %v587_v37  ;;  %v656_v55 = vmul.f32 0.5, %v655_v14 }
 0x157   : > { %v638_v8 = vmul.f32 %v7474_v13, %v637_v15  ;;  %v664_v4 = vmul.f32 %v8214_v25, %v8173_v5  ;;  %v8242_v51 = vsub.f32 %v8065_v39, %v467_v48  ;;  %v8245_v52 = vsub.f32 %v8068_v40, %v467_v48 }
 0x158   : > { %v8207_v1 = vpack.c.bf16 %v849_v58, %v847_v43  ;;  %v8209_v35 = vpack.c.bf16 %v850_v24, %v848_v50  ;;  %v528_v43 = vmul.f32 %v8212_v38, %v8212_v38  ;;  %7477 = vrsqrt.f32 %v8225_v34 }
 0x159   : > { %v642_v36 = vsel %vm641_vm12, %v7474_v13, %v638_v8  ;;  %v665_v10 = vmul.f32 %v8214_v25, %v664_v4  ;;  %v8253_v50 = vsub.f32 %v8075_v41, %v465_v26  ;;  %v8256_v24 = vsub.f32 %v8078_v42, %v465_v26 }
 0x15a   : > { %1479 = vmatmul.bf16.vlgmr.msra.gmra.mxu0 %v8207_v1  ;;  %1528 = vmatmul.bf16.vlgmr.msra.gmra.mxu1 %v8209_v35  ;;  %v777_v20 = vmul.f32 %v642_v36, %v8004_v60  ;;  %v778_v21 = vmul.f32 %v642_v36, %v8007_v61  ;;  %v523_v60 = vmul.f32 %v8217_v9, %v8217_v9  ;;  %v657_v48 = vsub.f32 1.5, %v656_v55 }
 0x15b   : > { %1577 = vmatmul.bf16.vlgmr.msra.gmra.mxu2 %v8207_v1  ;;  %1626 = vmatmul.bf16.vlgmr.msra.gmra.mxu3 %v8209_v35  ;;  %v445_v53 = vpop.xlane.xlu2 %444  ;;  %v556_v46 = vpop.xlane.xlu0 %555  ;;  %v524_v61 = vmul.f32 %v8220_v30, %v8220_v30  ;;  %v666_v13 = vmul.f32 0.5, %v665_v10  ;;  %v572_v58 = vadd.f32 %v528_v43, %v527_v29  ;;  %v816_v37 = vmul.f32 %v8164_v49, %v779_v27 }
 0x15c   : > { %v468_v40 = vmul.f32 %v7964_v33, %v445_v53  ;;  %v588_v3 = vmul.f32 %v556_v46, %v7964_v33  ;;  %v814_v14 = vmul.f32 %v8164_v49, %v777_v20  ;;  %v815_v15 = vmul.f32 %v8167_v18, %v778_v21 }
 0x15d   : > { %v566_v39 = vadd.f32 %v524_v61, %v523_v60  ;;  %573 = vadd.xlane.f32.xlu2 %v572_v58  ;;  %v817_v23 = vmul.f32 %v8167_v18, %v780_v28  ;;  %v667_v41 = vsub.f32 1.5, %v666_v13  ;;  %v529_v42 = vmul.f32 %v8242_v51, %v8242_v51 }
 0x15e   : > { %v530_v8 = vmul.f32 %v8245_v52, %v8245_v52  ;;  %vm670_vm14 = vweird.f32 %v8214_v25  ;;  %v8270_v4 = vadd.f32 1e-05, %v588_v3  ;;  %v8273_v26 = vsub.f32 %v8096_v59, %v468_v40  ;;  %v8282_v36 = vpop.eup %7477 }
 0x15f   : > { %567 = vadd.xlane.f32.xlu0 %v566_v39  ;;  %v8276_v29 = vsub.f32 %v8099_v19, %v468_v40  ;;  %v525_v27 = vmul.f32 %v8253_v50, %v8253_v50  ;;  %v526_v28 = vmul.f32 %v8256_v24, %v8256_v24  ;;  %v851_v55 = vadd.f32 %v8175_v47, %v814_v14  ;;  %vm671_vm1 = vmor %vm669_vm13, %vm670_vm14 }
 0x160   : > { %v852_v20 = vadd.f32 %v8177_v22, %v815_v15  ;;  %7479 = vrsqrt.f32 %v8270_v4  ;;  %v668_v59 = vmul.f32 %v8214_v25, %v667_v41  ;;  %v575_v19 = vadd.f32 %v530_v8, %v529_v42  ;;  %v6983_v15 = vld [vmem:[#allocation8 + $0x170] sm:$0xf0] }
 0x161   : > { %v569_v21 = vadd.f32 %v526_v28, %v525_v27  ;;  %v853_v10 = vadd.f32 %v8175_v47, %v816_v37  ;;  %v854_v43 = vadd.f32 %v8177_v22, %v817_v23  ;;  %v658_v53 = vmul.f32 %v8170_v2, %v657_v48  ;;  %v7293_v23 = vld [vmem:[#allocation8 + $0x2dc] sm:$0xf]  ;;  %v7175_v8 = vld [vmem:[#allocation8 + $0x2f0] sm:$0xf0]  ;;  %v6981_v48 = vld [vmem:[#allocation8 + $0x158] sm:$0xf] }
 0x162   : > { %v674_v46 = vmul.f32 %v8282_v36, %v8225_v34  ;;  %v531_v60 = vmul.f32 %v8273_v26, %v8273_v26  ;;  %v532_v61 = vmul.f32 %v8276_v29, %v8276_v29  ;;  %v672_v5 = vsel %vm671_vm1, %v8214_v25, %v668_v59  ;;  %v7245_v25 = vld [vmem:[#allocation8 + $0x15c] sm:$0xf]  ;;  %v7173_v59 = vld [vmem:[#allocation8 + $0x2d8] sm:$0xf] }
 0x163   : > { %570 = vadd.xlane.f32.xlu1 %v569_v21  ;;  %v8305_v13 = vpack.c.bf16 %v853_v10, %v851_v55  ;;  %v8307_v58 = vpack.c.bf16 %v854_v43, %v852_v20  ;;  %v662_v40 = vsel %vm661_vm2, %v8170_v2, %v658_v53  ;;  %v783_v14 = vmul.f32 %v672_v5, %v8029_v11  ;;  %v7248_v20 = vld [vmem:[#allocation8 + $0x16c] sm:$0xf0]  ;;  %v7239_v43 = vld [vmem:[#allocation8 + $0x12c] sm:$0xf] }
 0x164   : > { %v675_v3 = vmul.f32 %v8282_v36, %v674_v46  ;;  %v578_v37 = vadd.f32 %v532_v61, %v531_v60  ;;  %v784_v41 = vmul.f32 %v672_v5, %v8032_v12  ;;  %v6986_v2 = vor.u32 %v7245_v25, %v6983_v15  ;;  %v7296_v11 = vld [vmem:[#allocation8 + $0x2ec] sm:$0xf0]  ;;  %v6959_v12 = vld [vmem:[#allocation8 + $0x140] sm:$0xf0]  ;;  %v7287_v61 = vld [vmem:[#allocation8 + $0x2ac] sm:$0xf] }
 0x165   : > { %v781_v27 = vmul.f32 %v662_v40, %v7995_v56  ;;  %v782_v28 = vmul.f32 %v662_v40, %v7997_v57  ;;  %v7178_v55 = vor.u32 %v7293_v23, %v7175_v8  ;;  %v6982_v10 = vor.u32 %v7248_v20, %v6981_v48  ;;  %v7151_v56 = vld [vmem:[#allocation8 + $0x2c0] sm:$0xf0]  ;;  %v7149_v23 = vld [vmem:[#allocation8 + $0x2a8] sm:$0xf]  ;;  %v6935_v8 = vld [vmem:[#allocation8 + $0x110] sm:$0xf0] }
 0x166   : > { %v8310_v39 = vpop.eup %7479  ;;  %1765 = vmatpush.bf16.msrb.mxu2 %v6986_v2  ;;  %v820_v53 = vmul.f32 %v8164_v49, %v783_v14  ;;  %v7174_v46 = vor.u32 %v7296_v11, %v7173_v59  ;;  %v6962_v60 = vor.u32 %v7239_v43, %v6959_v12  ;;  %v821_v57 = vmul.f32 %v8167_v18, %v784_v41  ;;  %v7290_v14 = vld [vmem:[#allocation8 + $0x2bc] sm:$0xf0]  ;;  %v7281_v48 = vld [vmem:[#allocation8 + $0x27c] sm:$0xf] }
 0x167   : > { %576 = vadd.xlane.f32.xlu0 %v575_v19  ;;  %v684_v0 = vmul.f32 %v8310_v39, %v8270_v4  ;;  %v676_v19 = vmul.f32 0.5, %v675_v3  ;;  %1814 = vmatpush.bf16.msrb.mxu3 %v7178_v55  ;;  %v7154_v40 = vor.u32 %v7287_v61, %v7151_v56  ;;  %v7242_v3 = vld [vmem:[#allocation8 + $0x13c] sm:$0xf0]  ;;  %v819_v25 = vmul.f32 %v8167_v18, %v782_v28  ;;  %v7127_v28 = vld [vmem:[#allocation8 + $0x290] sm:$0xf0] }
 0x168   : > { %1667 = vmatpush.bf16.msrb.mxu0 %v6982_v10  ;;  %1716 = vmatpush.bf16.msrb.mxu1 %v7174_v46  ;;  %vm689_vm3 = vweird.f32 %v8270_v4  ;;  %vm690_vm4 = vweird.f32 %v8310_v39  ;;  %v7150_v41 = vor.u32 %v7290_v14, %v7149_v23  ;;  %v857_v55 = vadd.f32 %v8175_v47, %v820_v53  ;;  %v6933_v23 = vld [vmem:[#allocation8 + $0xf8] sm:$0xf]  ;;  %v7236_v14 = vld [vmem:[#allocation8 + $0x10c] sm:$0xf0] }
 0x169   : > { %v685_v42 = vmul.f32 %v8310_v39, %v684_v0  ;;  %v6957_v0 = vld [vmem:[#allocation8 + $0x128] sm:$0xf]  ;;  %v677_v2 = vsub.f32 1.5, %v676_v19  ;;  %vm679_vm5 = vweird.f32 %v8225_v34  ;;  %v858_v20 = vadd.f32 %v8177_v22, %v821_v57  ;;  %vm691_vm7 = vmor %vm689_vm3, %vm690_vm4 }
 0x16a   : > { %1484 = vmatmul.bf16.gmra.mxu0 %v8305_v13  ;;  %1533 = vmatmul.bf16.gmra.mxu1 %v8307_v58  ;;  %v6958_v15 = vor.u32 %v7242_v3, %v6957_v0  ;;  %vm680_vm6 = vweird.f32 %v8282_v36  ;;  %v7130_v11 = vor.u32 %v7281_v48, %v7127_v28 }
 0x16b   : > { %1582 = vmatmul.bf16.gmra.mxu2 %v8305_v13  ;;  %1631 = vmatmul.bf16.gmra.mxu3 %v8307_v58  ;;  %v686_v21 = vmul.f32 0.5, %v685_v42  ;;  %v7233_v42 = vld [vmem:[#allocation8 + $0xfc] sm:$0xf]  ;;  %v678_v10 = vmul.f32 %v8282_v36, %v677_v2  ;;  %vm681_vm8 = vmor %vm679_vm5, %vm680_vm6  ;;  %v6934_v2 = vor.u32 %v7236_v14, %v6933_v23 }
 0x16c   : > { %579 = vadd.xlane.f32.xlu1 %v578_v37  ;;  %v818_v37 = vmul.f32 %v8164_v49, %v781_v27  ;;  %1766 = vmatpush.bf16.msrb.mxu2 %v6962_v60  ;;  %v6938_v27 = vor.u32 %v7233_v42, %v6935_v8  ;;  %v7125_v42 = vld [vmem:[#allocation8 + $0x278] sm:$0xf] }
 0x16d   : > { %v687_v5 = vsub.f32 1.5, %v686_v21  ;;  %1815 = vmatpush.bf16.msrb.mxu3 %v7154_v40  ;;  %1668 = vmatpush.bf16.msrb.mxu0 %v6958_v15  ;;  %v856_v21 = vadd.f32 %v8177_v22, %v819_v25  ;;  %v682_v4 = vsel %vm681_vm8, %v8282_v36, %v678_v10  ;;  %v7103_v10 = vld [vmem:[#allocation8 + $0x260] sm:$0xf0] }
 0x16e   : > { %v855_v19 = vadd.f32 %v8175_v47, %v818_v37  ;;  %1717 = vmatpush.bf16.msrb.mxu1 %v7150_v41  ;;  %v785_v60 = vmul.f32 %v682_v4, %v8056_v31  ;;  %v786_v61 = vmul.f32 %v682_v4, %v8059_v32  ;;  %v559_v32 = vpop.xlane.xlu0 %558  ;;  %v7284_v41 = vld [vmem:[#allocation8 + $0x28c] sm:$0xf0] }
 0x16f   : > { %v688_v59 = vmul.f32 %v8310_v39, %v687_v5  ;;  %v8347_v12 = vpack.c.bf16 %v858_v20, %v856_v21  ;;  %v589_v3 = vmul.f32 %v559_v32, %v7964_v33  ;;  %v7126_v48 = vor.u32 %v7284_v41, %v7125_v42 }
 0x170   : > { %1767 = vmatpush.bf16.msrb.mxu2 %v6938_v27  ;;  %v8343_v43 = vpack.c.bf16 %v857_v55, %v855_v19  ;;  %v822_v36 = vmul.f32 %v8164_v49, %v785_v60  ;;  %v823_v57 = vmul.f32 %v8167_v18, %v786_v61  ;;  %v7275_v19 = vld [vmem:[#allocation8 + $0x24c] sm:$0xf] }
 0x171   : > { %1816 = vmatpush.bf16.msrb.mxu3 %v7130_v11  ;;  %v692_v53 = vsel %vm691_vm7, %v8310_v39, %v688_v59  ;;  %v605_v37 = vadd.f32 1e-05, %v589_v3  ;;  %1669 = vmatpush.bf16.msrb.mxu0 %v6934_v2  ;;  %v7227_v59 = vld [vmem:[#allocation8 + $0xcc] sm:$0xf]  ;;  %v6911_v11 = vld [vmem:[#allocation8 + $0xe0] sm:$0xf0] }
 0x172   : > { %v787_v46 = vmul.f32 %v692_v53, %v8083_v44  ;;  %v788_v34 = vmul.f32 %v692_v53, %v8086_v45  ;;  %v859_v40 = vadd.f32 %v8175_v47, %v822_v36  ;;  %v860_v45 = vadd.f32 %v8177_v22, %v823_v57  ;;  %1718 = vmatpush.bf16.msrb.mxu1 %v7126_v48 }
 0x173   : > { %7481 = vrsqrt.f32 %v605_v37  ;;  %v6914_v21 = vor.u32 %v7227_v59, %v6911_v11  ;;  %v7106_v53 = vor.u32 %v7275_v19, %v7103_v10  ;;  %vm699_vm9 = vweird.f32 %v605_v37 }
 0x174   : > { %v824_v39 = vmul.f32 %v8164_v49, %v787_v46  ;;  %v825_v56 = vmul.f32 %v8167_v18, %v788_v34 }
 0x175   : > { %1768 = vmatpush.bf16.msrb.mxu2 %v6914_v21  ;;  %1817 = vmatpush.bf16.msrb.mxu3 %v7106_v53 }
 0x176   : > { %v861_v5 = vadd.f32 %v8175_v47, %v824_v39  ;;  %v862_v44 = vadd.f32 %v8177_v22, %v825_v56 }
 0x178   : > { %v8367_v0 = vpack.c.bf16 %v861_v5, %v859_v40  ;;  %v8369_v31 = vpack.c.bf16 %v862_v44, %v860_v45 }
 0x179   : > { %v7482_v25 = vpop.eup %7481 }
 0x17a   : > { %1489 = vmatmul.bf16.gmra.mxu0 %v8343_v43  ;;  %1538 = vmatmul.bf16.gmra.mxu1 %v8347_v12  ;;  %v694_v15 = vmul.f32 %v7482_v25, %v605_v37  ;;  %vm700_vm10 = vweird.f32 %v7482_v25 }
 0x17b   : > { %1587 = vmatmul.bf16.gmra.mxu2 %v8343_v43  ;;  %1636 = vmatmul.bf16.gmra.mxu3 %v8347_v12  ;;  %vm701_vm11 = vmor %vm699_vm9, %vm700_vm10  ;;  %vm2241_vm10 = vcmask 1047556  }
 0x17c   : > { %v695_v8 = vmul.f32 %v7482_v25, %v694_v15 }
 0x17e   : > { %v696_v28 = vmul.f32 0.5, %v695_v8 }
 0x180   : > { %v697_v4 = vsub.f32 1.5, %v696_v28  ;;  %v7101_v28 = vld [vmem:[#allocation8 + $0x248] sm:$0xf] }
 0x182   : > { %v698_v61 = vmul.f32 %v7482_v25, %v697_v4 }
 0x184   : > { %v702_v57 = vsel %vm701_vm11, %v7482_v25, %v698_v61 }
 0x185   : > { %v789_v44 = vmul.f32 %v702_v57, %v8102_v62  ;;  %v790_v40 = vmul.f32 %v702_v57, %v8105_v63 }
 0x187   : > { %v826_v15 = vmul.f32 %v8164_v49, %v789_v44  ;;  %v827_v23 = vmul.f32 %v8167_v18, %v790_v40  ;;  %v7221_v44 = vld [vmem:[#allocation8 + $0x9c] sm:$0xf]  ;;  %v6887_v40 = vld [vmem:[#allocation8 + $0xb0] sm:$0xf0] }
 0x189   : > { %v863_v8 = vadd.f32 %v8175_v47, %v826_v15  ;;  %v864_v48 = vadd.f32 %v8177_v22, %v827_v23  ;;  %v7709_v15 = vmov 1983009808  }
 0x18a   : > { %1494 = vmatmul.bf16.gmra.mxu0 %v8367_v0  ;;  %1543 = vmatmul.bf16.gmra.mxu1 %v8369_v31  ;;  %v2237_v23 = vunpack.c.l.s4 %v7709_v15 }
 0x18b   : > { %1592 = vmatmul.bf16.gmra.mxu2 %v8367_v0  ;;  %1641 = vmatmul.bf16.gmra.mxu3 %v8369_v31 }
 0x1b7   : > { %v562_v55 = vpop.xlane.xlu1 %561 }
 0x1b8   : > { %v590_v27 = vmul.f32 %v562_v55, %v7964_v33  ;;  %v6909_v55 = vld [vmem:[#allocation8 + $0xc8] sm:$0xf] }
 0x1ba   : > { %v606_v20 = vadd.f32 1e-05, %v590_v27  ;;  %v7230_v27 = vld [vmem:[#allocation8 + $0xdc] sm:$0xf0] }
 0x1bb   : > { %v6910_v11 = vor.u32 %v7230_v27, %v6909_v55  ;;  %v8416_v27 = vunpack.c.0.s8 %v2237_v23 }
 0x1bc   : > { %7483 = vrsqrt.f32 %v606_v20  ;;  %vm709_vm13 = vweird.f32 %v606_v20 }
 0x1bd   : > { %1670 = vmatpush.bf16.msrb.mxu0 %v6910_v11  ;;  %v7077_v11 = vld [vmem:[#allocation8 + $0x218] sm:$0xf] }
 0x1bf   : > { %v565_v46 = vpop.xlane.xlu2 %564 }
 0x1c0   : > { %v591_v34 = vmul.f32 %v565_v46, %v7964_v33 }
 0x1c2   : > { %v7484_v60 = vpop.eup %7483  ;;  %v607_v56 = vadd.f32 1e-05, %v591_v34 }
 0x1c3   : > { %v704_v39 = vmul.f32 %v7484_v60, %v606_v20  ;;  %vm710_vm12 = vweird.f32 %v7484_v60 }
 0x1c4   : > { %7485 = vrsqrt.f32 %v607_v56  ;;  %vm711_vm14 = vmor %vm709_vm13, %vm710_vm12  ;;  %vm719_vm15 = vweird.f32 %v607_v56 }
 0x1c5   : > { %v705_v36 = vmul.f32 %v7484_v60, %v704_v39 }
 0x1c7   : > { %v706_v5 = vmul.f32 0.5, %v705_v36 }
 0x1c9   : > { %v707_v45 = vsub.f32 1.5, %v706_v5 }
 0x1ca   : > { %v7486_v32 = vpop.eup %7485 }
 0x1cb   : > { %v708_v3 = vmul.f32 %v7484_v60, %v707_v45  ;;  %v714_v37 = vmul.f32 %v7486_v32, %v607_v56  ;;  %vm720_vm0 = vweird.f32 %v7486_v32  ;;  %v7269_v45 = vld [vmem:[#allocation8 + $0x21c] sm:$0xf]  ;;  %v7079_v56 = vld [vmem:[#allocation8 + $0x230] sm:$0xf0] }
 0x1cc   : > { %vm721_vm1 = vmor %vm719_vm15, %vm720_vm0 }
 0x1cd   : > { %v712_v14 = vsel %vm711_vm14, %v7484_v60, %v708_v3  ;;  %v715_v2 = vmul.f32 %v7486_v32, %v714_v37  ;;  %v6890_v37 = vor.u32 %v7221_v44, %v6887_v40 }
 0x1ce   : > { %v791_v42 = vmul.f32 %v712_v14, %v8123_v6  ;;  %v792_v25 = vmul.f32 %v712_v14, %v8126_v7  ;;  %v7278_v7 = vld [vmem:[#allocation8 + $0x25c] sm:$0xf0] }
 0x1cf   : > { %v716_v41 = vmul.f32 0.5, %v715_v2  ;;  %v7102_v21 = vor.u32 %v7278_v7, %v7101_v28  ;;  %v7710_v2 = vmov 1934713408   ;;  %1769 = vmatpush.bf16.msrb.mxu2 %v6890_v37 }
 0x1d0   : > { %v828_v62 = vmul.f32 %v8164_v49, %v791_v42  ;;  %v829_v63 = vmul.f32 %v8167_v18, %v792_v25  ;;  %v574_v19 = vpop.xlane.xlu2 %573  ;;  %v7082_v25 = vor.u32 %v7269_v45, %v7079_v56 }
 0x1d1   : > { %v717_v6 = vsub.f32 1.5, %v716_v41  ;;  %v594_v46 = vmul.f32 %v574_v19, %v7964_v33  ;;  %1719 = vmatpush.bf16.msrb.mxu1 %v7102_v21 }
 0x1d2   : > { %v865_v20 = vadd.f32 %v8175_v47, %v828_v62  ;;  %v866_v59 = vadd.f32 %v8177_v22, %v829_v63  ;;  %v568_v34 = vpop.xlane.xlu0 %567  ;;  %v2244_v62 = vunpack.c.l.s4 %v7710_v2  ;;  %1818 = vmatpush.bf16.msrb.mxu3 %v7082_v25 }
 0x1d3   : > { %v718_v4 = vmul.f32 %v7486_v32, %v717_v6  ;;  %v592_v60 = vmul.f32 %v568_v34, %v7964_v33  ;;  %v8396_v61 = vadd.f32 1e-05, %v594_v46  ;;  %v7224_v6 = vld [vmem:[#allocation8 + $0xac] sm:$0xf0] }
 0x1d4   : > { %v8390_v10 = vpack.c.bf16 %v865_v20, %v863_v8  ;;  %v8392_v53 = vpack.c.bf16 %v866_v59, %v864_v48  ;;  %v6885_v59 = vld [vmem:[#allocation8 + $0x98] sm:$0xf]  ;;  %v8424_v19 = vunpack.c.0.s8 %v2244_v62 }
 0x1d5   : > { %v8401_v39 = vadd.f32 1e-05, %v592_v60  ;;  %v722_v5 = vsel %vm721_vm1, %v7486_v32, %v718_v4  ;;  %7487 = vrsqrt.f32 %v8396_v61  ;;  %vm749_vm2 = vweird.f32 %v8396_v61 }
 0x1d6   : > { %1499 = vmatmul.bf16.gmra.mxu0 %v8390_v10  ;;  %1548 = vmatmul.bf16.gmra.mxu1 %v8392_v53  ;;  %v571_v3 = vpop.xlane.xlu1 %570  ;;  %v793_v14 = vmul.f32 %v722_v5, %v8147_v16  ;;  %v794_v32 = vmul.f32 %v722_v5, %v8150_v17  ;;  %v6886_v60 = vor.u32 %v7224_v6, %v6885_v59 }
 0x1d7   : > { %1597 = vmatmul.bf16.gmra.mxu2 %v8390_v10  ;;  %1646 = vmatmul.bf16.gmra.mxu3 %v8392_v53  ;;  %v1480_v36 = vpop.f32.mrf.mxu0  ;;  %v1529_v57 = vpop.f32.mrf.mxu1  ;;  %7489 = vrsqrt.f32 %v8401_v39  ;;  %v593_v42 = vmul.f32 %v571_v3, %v7964_v33  ;;  %vm729_vm3 = vweird.f32 %v8401_v39 }
 0x1d8   : > { %v1530_v55 = vadd.f32 %v1529_v57, %v1480_v36  ;;  %v830_v20 = vmul.f32 %v8164_v49, %v793_v14  ;;  %v831_v4 = vmul.f32 %v8167_v18, %v794_v32  ;;  %v7272_v36 = vld [vmem:[#allocation8 + $0x22c] sm:$0xf0]  ;;  %1671 = vmatpush.bf16.msrb.mxu0 %v6886_v60 }
 0x1d9   : > { %v8410_v41 = vadd.f32 1e-05, %v593_v42  ;;  %v7078_v44 = vor.u32 %v7272_v36, %v7077_v11 }
 0x1da   : > { %v577_v63 = vpop.xlane.xlu0 %576  ;;  %v2059_v3 = vmul.f32 0.088388346, %v1530_v55  ;;  %v867_v42 = vadd.f32 %v8175_v47, %v830_v20  ;;  %v868_v25 = vadd.f32 %v8177_v22, %v831_v4 }
 0x1db   : > { %v595_v8 = vmul.f32 %v577_v63, %v7964_v33  ;;  %v8413_v48 = vpop.eup %7487  ;;  %7491 = vrsqrt.f32 %v8410_v41  ;;  %1720 = vmatpush.bf16.msrb.mxu1 %v7078_v44  ;;  %vm739_vm5 = vweird.f32 %v8410_v41 }
 0x1dc   : > { %v744_v17 = vmul.f32 %v8413_v48, %v8396_v61  ;;  %vm750_vm4 = vweird.f32 %v8413_v48 }
 0x1dd   : > { %v8418_v28 = vpop.eup %7489  ;;  %v8429_v34 = vadd.f32 1e-05, %v595_v8  ;;  %vm8445_vm7 = vmor %vm749_vm2, %vm750_vm4 }
 0x1de   : > { %v1578_v16 = vpop.f32.mrf.mxu2  ;;  %v1627_v7 = vpop.f32.mrf.mxu3  ;;  %v724_v46 = vmul.f32 %v8418_v28, %v8401_v39  ;;  %v745_v5 = vmul.f32 %v8413_v48, %v744_v17  ;;  %vm730_vm6 = vweird.f32 %v8418_v28 }
 0x1df   : > { %v1482_v21 = vpop.f32.mrf.mxu0  ;;  %v1531_v57 = vpop.f32.mrf.mxu1  ;;  %v1628_v40 = vadd.f32 %v1627_v7, %v1578_v16  ;;  %7493 = vrsqrt.f32 %v8429_v34  ;;  %vm759_vm8 = vweird.f32 %v8429_v34  ;;  %vm731_vm11 = vmor %vm729_vm3, %vm730_vm6 }
 0x1e0   : > { %v725_v45 = vmul.f32 %v8418_v28, %v724_v46  ;;  %v580_v37 = vpop.xlane.xlu1 %579  ;;  %v1532_v56 = vadd.f32 %v1531_v57, %v1482_v21  ;;  %v746_v15 = vmul.f32 0.5, %v745_v5 }
 0x1e1   : > { %v596_v23 = vmul.f32 %v580_v37, %v7964_v33  ;;  %v2060_v14 = vmul.f32 0.088388346, %v1628_v40  ;;  %v7492_v62 = vpop.eup %7491 }
 0x1e2   : > { %v726_v2 = vmul.f32 0.5, %v725_v45  ;;  %v747_v32 = vsub.f32 1.5, %v746_v15  ;;  %v734_v16 = vmul.f32 %v7492_v62, %v8410_v41  ;;  %v8451_v20 = vmul.f32 0.088388346, %v1532_v56 }
 0x1e3   : > { %v8441_v63 = vadd.f32 1e-05, %v596_v23  ;;  %v2091_v8 = vpack.c.bf16 %v2060_v14, %v2059_v3  ;;  %vm740_vm9 = vweird.f32 %v7492_v62 }
 0x1e4   : > { %v727_v55 = vsub.f32 1.5, %v726_v2  ;;  %v748_v59 = vmul.f32 %v8413_v48, %v747_v32  ;;  %v735_v21 = vmul.f32 %v7492_v62, %v734_v16  ;;  %vm741_vm14 = vmor %vm739_vm5, %vm740_vm9 }
 0x1e5   : > { %7495 = vrsqrt.f32 %v8441_v63  ;;  %v2123_v6 = vrot.slane %v2091_v8, 4  ;;  %v7494_v11 = vpop.eup %7493  ;;  %v2142_v4 = vshrl.u32 %v2091_v8, 16  ;;  %vm769_vm13 = vweird.f32 %v8441_v63 }
 0x1e6   : > { %v1580_v17 = vpop.f32.mrf.mxu2  ;;  %v1629_v61 = vpop.f32.mrf.mxu3  ;;  %v728_v7 = vmul.f32 %v8418_v28, %v727_v55  ;;  %v752_v60 = vsel %vm8445_vm7, %v8413_v48, %v748_v59  ;;  %v754_v36 = vmul.f32 %v7494_v11, %v8429_v34  ;;  %vm760_vm12 = vweird.f32 %v7494_v11 }
 0x1e7   : > { %v1630_v46 = vadd.f32 %v1629_v61, %v1580_v17  ;;  %v2141_v57 = vpack.i.b16 %v2123_v6, %v2091_v8  ;;  %v799_v5 = vmul.f32 %v752_v60, %v8197_v54  ;;  %v800_v44 = vmul.f32 %v752_v60, %v8212_v38  ;;  %vm761_vm0 = vmor %vm759_vm8, %vm760_vm12 }
 0x1e8   : > { %v732_v40 = vsel %vm731_vm11, %v8418_v28, %v728_v7  ;;  %v736_v45 = vmul.f32 0.5, %v735_v21  ;;  %v755_v37 = vmul.f32 %v7494_v11, %v754_v36  ;;  %v2143_v39 = vshrl.u32 %v2123_v6, 16 }
 0x1e9   : > { %v795_v48 = vmul.f32 %v732_v40, %v8217_v9  ;;  %v796_v3 = vmul.f32 %v732_v40, %v8220_v30  ;;  %v836_v56 = vmul.f32 %v8164_v49, %v799_v5  ;;  %v837_v15 = vmul.f32 %v8167_v18, %v800_v44 }
 0x1ea   : > { %v737_v23 = vsub.f32 1.5, %v736_v45  ;;  %v2239_v54 = vperm.slane %v2141_v57, %v8416_v27  ;;  %v756_v2 = vmul.f32 0.5, %v755_v37  ;;  %v2144_v32 = vpack.i.b16 %v2143_v39, %v2142_v4 }
 0x1eb   : > { %v7496_v14 = vpop.eup %7495  ;;  %v832_v38 = vmul.f32 %v8164_v49, %v795_v48  ;;  %v833_v28 = vmul.f32 %v8167_v18, %v796_v3  ;;  %v873_v9 = vadd.f32 %v8175_v47, %v836_v56  ;;  %v874_v30 = vadd.f32 %v8177_v22, %v837_v15 }
 0x1ec   : > { %v738_v8 = vmul.f32 %v7492_v62, %v737_v23  ;;  %v764_v33 = vmul.f32 %v7496_v14, %v8441_v63  ;;  %v757_v17 = vsub.f32 1.5, %v756_v2  ;;  %vm770_vm15 = vweird.f32 %v7496_v14 }
 0x1ed   : > { %v869_v55 = vadd.f32 %v8175_v47, %v832_v38  ;;  %v870_v16 = vadd.f32 %v8177_v22, %v833_v28  ;;  %v2240_v61 = vrot.slane %v2239_v54, 4  ;;  %v2246_v7 = vperm.slane %v2239_v54, %v8424_v19  ;;  %vm771_vm1 = vmor %vm769_vm13, %vm770_vm15 }
 0x1ee   : > { %v742_v59 = vsel %vm741_vm14, %v7492_v62, %v738_v8  ;;  %v765_v6 = vmul.f32 %v7496_v14, %v764_v33  ;;  %v758_v41 = vmul.f32 %v7494_v11, %v757_v17  ;;  %v2259_v40 = vperm.slane %v2144_v32, %v8416_v27  ;;  %v1583_v38 = vpop.f32.mrf.mxu2  ;;  %v1632_v28 = vpop.f32.mrf.mxu3 }
 0x1ef   : > { %v8484_v21 = vpack.c.bf16 %v869_v55, %v867_v42  ;;  %v8486_v4 = vpack.c.bf16 %v870_v16, %v868_v25  ;;  %v797_v60 = vmul.f32 %v742_v59, %v8253_v50  ;;  %v798_v36 = vmul.f32 %v742_v59, %v8256_v24 }
 0x1f0   : > { %v766_v57 = vmul.f32 0.5, %v765_v6  ;;  %v2242_v62 = vsel %vm2241_vm10, 0, %v2240_v61  ;;  %v2251_v5 = vrot.slane %v2246_v7, 4  ;;  %v762_v50 = vsel %vm761_vm0, %v7494_v11, %v758_v41  ;;  %v1485_v11 = vpop.f32.mrf.mxu0 }
 0x1f1   : > { %v834_v44 = vmul.f32 %v8164_v49, %v797_v60  ;;  %v835_v42 = vmul.f32 %v8167_v18, %v798_v36  ;;  %v2250_v25 = vperm.slane %v2242_v62, %v8424_v19  ;;  %1504 = vmatmul.bf16.gmra.mxu0 %v8484_v21  ;;  %v2062_v45 = vmul.f32 0.088388346, %v1630_v46  ;;  %1553 = vmatmul.bf16.gmra.mxu1 %v8486_v4  ;;  %v1534_v46 = vpop.f32.mrf.mxu1  ;;  %v7215_v60 = vld [vmem:[#allocation8 + $0x6c] sm:$0xf]  ;;  %v6863_v36 = vld [vmem:[#allocation8 + $0x80] sm:$0xf0] }
 0x1f2   : > { %v767_v24 = vsub.f32 1.5, %v766_v57  ;;  %v2252_v34 = vsel %vm2241_vm10, 0, %v2251_v5  ;;  %1602 = vmatmul.bf16.gmra.mxu2 %v8484_v21  ;;  %v801_v37 = vmul.f32 %v762_v50, %v8242_v51  ;;  %v802_v39 = vmul.f32 %v762_v50, %v8245_v52  ;;  %1651 = vmatmul.bf16.gmra.mxu3 %v8486_v4 }
 0x1f3   : > { %v871_v48 = vadd.f32 %v8175_v47, %v834_v44  ;;  %v872_v3 = vadd.f32 %v8177_v22, %v835_v42  ;;  %v2253_v15 = vrot.slane %v2250_v25, 4  ;;  %v2260_v23 = vrot.slane %v2259_v40, 4  ;;  %v7055_v44 = vld [vmem:[#allocation8 + $0x200] sm:$0xf0] }
 0x1f4   : > { %v768_v56 = vmul.f32 %v7496_v14, %v767_v24  ;;  %v2265_v54 = vperm.slane %v2259_v40, %v8424_v19  ;;  %v838_v52 = vmul.f32 %v8164_v49, %v801_v37  ;;  %v839_v63 = vmul.f32 %v8167_v18, %v802_v39  ;;  %v7266_v39 = vld [vmem:[#allocation8 + $0x1fc] sm:$0xf0] }
 0x1f5   : > { %v8511_v2 = vpack.c.bf16 %v873_v9, %v871_v48  ;;  %v8513_v51 = vpack.c.bf16 %v874_v30, %v872_v3  ;;  %v2254_v8 = vsel %vm2241_vm10, 0, %v2253_v15  ;;  %v2261_v33 = vsel %vm2241_vm10, 0, %v2260_v23  ;;  %v6861_v48 = vld [vmem:[#allocation8 + $0x68] sm:$0xf] }
 0x1f6   : > { %v772_v32 = vsel %vm771_vm1, %v7496_v14, %v768_v56  ;;  %v2270_v55 = vrot.slane %v2265_v54, 4  ;;  %v875_v16 = vadd.f32 %v8175_v47, %v838_v52  ;;  %v876_v17 = vadd.f32 %v8177_v22, %v839_v63 }
 0x1f7   : > { %v803_v59 = vmul.f32 %v772_v32, %v8273_v26  ;;  %v804_v9 = vmul.f32 %v772_v32, %v8276_v29  ;;  %v2269_v30 = vperm.slane %v2261_v33, %v8424_v19  ;;  %v4348_v61 = vsel %vm2241_vm10, %v2253_v15, %v2246_v7  ;;  %v7263_v26 = vld [vmem:[#allocation8 + $0x1ec] sm:$0xf] }
 0x1f8   : > { %v2271_v6 = vsel %vm2241_vm10, 0, %v2270_v55  ;;  %v4353_v14 = vrot.slane %v2254_v8, 4  ;;  %v4352_v62 = vperm.slane %v4348_v61, %v8416_v27  ;;  %v2092_v5 = vpack.c.bf16 %v2062_v45, %v8451_v20  ;;  %v1487_v23 = vpop.f32.mrf.mxu0  ;;  %v1634_v55 = vpop.f32.mrf.mxu3 }
 0x1f9   : > { %v840_v41 = vmul.f32 %v8164_v49, %v803_v59  ;;  %v841_v57 = vmul.f32 %v8167_v18, %v804_v9  ;;  %v2272_v29 = vrot.slane %v2269_v30, 4  ;;  %v6866_v25 = vor.u32 %v7215_v60, %v6863_v36  ;;  %v7218_v18 = vld [vmem:[#allocation8 + $0x7c] sm:$0xf0]  ;;  %v1536_v52 = vpop.f32.mrf.mxu1 }
 0x1fa   : > { %v4354_v42 = vsel %vm2241_vm10, %v4353_v14, %v2252_v34  ;;  %v7058_v40 = vor.u32 %v7263_v26, %v7055_v44  ;;  %v2124_v49 = vrot.slane %v2092_v5, 4  ;;  %v2148_v45 = vshrl.u32 %v2092_v5, 16  ;;  %v7053_v34 = vld [vmem:[#allocation8 + $0x1e8] sm:$0xf] }
 0x1fb   : > { %v877_v7 = vadd.f32 %v8175_v47, %v840_v41  ;;  %v878_v50 = vadd.f32 %v8177_v22, %v841_v57  ;;  %v4358_v24 = vperm.slane %v4354_v42, %v8416_v27  ;;  %v2273_v3 = vsel %vm2241_vm10, 0, %v2272_v29  ;;  %1770 = vmatpush.bf16.msrb.mxu2 %v6866_v25 }
 0x1fc   : > { %v4365_v20 = vsel %vm2241_vm10, %v2272_v29, %v2265_v54  ;;  %1819 = vmatpush.bf16.msrb.mxu3 %v7058_v40  ;;  %v1535_v37 = vadd.f32 %v1534_v46, %v1485_v11  ;;  %v4370_v63 = vrot.slane %v2273_v3, 4  ;;  %v2147_v32 = vpack.i.b16 %v2124_v49, %v2092_v5  ;;  %v1585_v54 = vpop.f32.mrf.mxu2 }
 0x1fd   : > { %v8536_v56 = vpack.c.bf16 %v877_v7, %v875_v16  ;;  %v8538_v47 = vpack.c.bf16 %v878_v50, %v876_v17  ;;  %v4359_v22 = vrot.slane %v4358_v24, 4  ;;  %v4369_v15 = vperm.slane %v4365_v20, %v8416_v27 }
 0x1fe   : > { %v2149_v8 = vshrl.u32 %v2124_v49, 16  ;;  %v2063_v33 = vmul.f32 0.088388346, %v1535_v37  ;;  %v6862_v11 = vor.u32 %v7218_v18, %v6861_v48  ;;  %v7054_v46 = vor.u32 %v7266_v39, %v7053_v34 }
 0x1ff   : > { %v4360_v59 = vsel %vm2241_vm10, %v4359_v22, %v4352_v62  ;;  %v1633_v9 = vadd.f32 %v1632_v28, %v1583_v38  ;;  %v4371_v17 = vsel %vm2241_vm10, %v4370_v63, %v2271_v6  ;;  %v2278_v61 = vperm.slane %v2147_v32, %v8416_v27 }
 0x200   : > { %v4364_v16 = vperm.slane %v4360_v59, %v8424_v19  ;;  %v2150_v30 = vpack.i.b16 %v2149_v8, %v2148_v45  ;;  %v4375_v14 = vperm.slane %v4371_v17, %v8416_v27  ;;  %1672 = vmatpush.bf16.msrb.mxu0 %v6862_v11  ;;  %1721 = vmatpush.bf16.msrb.mxu1 %v7054_v46  ;;  %v8563_v22 = vpop.f32.mrf.mxu0 }
 0x201   : > { %v2064_v60 = vmul.f32 0.088388346, %v1633_v9  ;;  %v1537_v36 = vadd.f32 %v1536_v52, %v1487_v23  ;;  %v1635_v41 = vadd.f32 %v1634_v55, %v1585_v54  ;;  %v2279_v62 = vrot.slane %v2278_v61, 4  ;;  %1509 = vmatmul.bf16.gmra.mxu0 %v8511_v2  ;;  %1558 = vmatmul.bf16.gmra.mxu1 %v8513_v51 }
 0x202   : > { %v4896_v57 = vshrl.u32 %v4364_v16, 16  ;;  %v2284_v5 = vperm.slane %v2278_v61, %v8424_v19  ;;  %v2297_v38 = vperm.slane %v2150_v30, %v8416_v27  ;;  %v4376_v28 = vrot.slane %v4375_v14, 4  ;;  %1607 = vmatmul.bf16.gmra.mxu2 %v8511_v2  ;;  %1656 = vmatmul.bf16.gmra.mxu3 %v8513_v51 }
 0x203   : > { %v2093_v6 = vpack.c.bf16 %v2064_v60, %v2063_v33  ;;  %v2065_v26 = vmul.f32 0.088388346, %v1537_v36  ;;  %v2066_v44 = vmul.f32 0.088388346, %v1635_v41  ;;  %v2280_v29 = vsel %vm2241_vm10, 0, %v2279_v62  ;;  %v8570_v33 = vpop.f32.mrf.mxu3 }
 0x204   : > { %v2289_v42 = vrot.slane %v2284_v5, 4  ;;  %v2298_v25 = vrot.slane %v2297_v38, 4  ;;  %v2303_v40 = vperm.slane %v2297_v38, %v8424_v19  ;;  %v4377_v7 = vsel %vm2241_vm10, %v4376_v28, %v4369_v15  ;;  %v8565_v15 = vpop.f32.mrf.mxu1  ;;  %v8568_v8 = vpop.f32.mrf.mxu2 }
 0x205   : > { %v2288_v50 = vperm.slane %v2280_v29, %v8424_v19  ;;  %v2125_v24 = vrot.slane %v2093_v6, 4  ;;  %v2154_v49 = vshrl.u32 %v2093_v6, 16  ;;  %v4381_v48 = vperm.slane %v4377_v7, %v8424_v19 }
 0x206   : > { %v2290_v18 = vsel %vm2241_vm10, 0, %v2289_v42  ;;  %v2299_v3 = vsel %vm2241_vm10, 0, %v2298_v25  ;;  %v2308_v20 = vrot.slane %v2303_v40, 4  ;;  %v2094_v32 = vpack.c.bf16 %v2066_v44, %v2065_v26 }
 0x207   : > { %v2291_v45 = vrot.slane %v2288_v50, 4  ;;  %v2307_v37 = vperm.slane %v2299_v3, %v8424_v19  ;;  %v2153_v34 = vpack.i.b16 %v2125_v24, %v2093_v6  ;;  %v2155_v39 = vshrl.u32 %v2125_v24, 16 }
 0x208   : > { %v4894_v23 = vpack.i.b16 %v4381_v48, %v4364_v16  ;;  %v4897_v52 = vshrl.u32 %v4381_v48, 16  ;;  %v2309_v63 = vsel %vm2241_vm10, 0, %v2308_v20  ;;  %v2126_v60 = vrot.slane %v2094_v32, 4 }
 0x209   : > { %v2292_v54 = vsel %vm2241_vm10, 0, %v2291_v45  ;;  %v2310_v55 = vrot.slane %v2307_v37, 4  ;;  %v4382_v59 = vsel %vm2241_vm10, %v2291_v45, %v2284_v5  ;;  %v2156_v11 = vpack.i.b16 %v2155_v39, %v2154_v49 }
 0x20a   : > { %v4898_v46 = vpack.i.b16 %v4897_v52, %v4896_v57  ;;  %5020 = vst [vmem:[%s8575_s5] sm:$0xf] %v4894_v23  ;;  %v4386_v9 = vperm.slane %v4382_v59, %v8416_v27  ;;  %v4387_v16 = vrot.slane %v2292_v54, 4  ;;  %v2316_v17 = vperm.slane %v2153_v34, %v8416_v27  ;;  %v8597_v34 = vpop.f32.mrf.mxu0 }
 0x20b   : > { %v2311_v30 = vsel %vm2241_vm10, 0, %v2310_v55  ;;  %v4399_v61 = vsel %vm2241_vm10, %v2310_v55, %v2303_v40  ;;  %v2335_v14 = vperm.slane %v2156_v11, %v8416_v27  ;;  %v2159_v29 = vpack.i.b16 %v2126_v60, %v2094_v32  ;;  %v8606_v55 = vpop.f32.mrf.mxu3 }
 0x20c   : > { %5036 = vst [vmem:[%s8575_s5 + $0x40] sm:$0xf] %v4898_v46  ;;  %v4388_v36 = vsel %vm2241_vm10, %v4387_v16, %v2290_v18  ;;  %v4403_v41 = vperm.slane %v4399_v61, %v8416_v27  ;;  %v4404_v57 = vrot.slane %v2311_v30, 4  ;;  %v2317_v62 = vrot.slane %v2316_v17, 4  ;;  %v8599_v39 = vpop.f32.mrf.mxu1  ;;  %v8604_v54 = vpop.f32.mrf.mxu2 }
 0x20d   : > { %v4392_v5 = vperm.slane %v4388_v36, %v8416_v27  ;;  %v2322_v38 = vperm.slane %v2316_v17, %v8424_v19  ;;  %v2336_v28 = vrot.slane %v2335_v14, 4  ;;  %v2341_v6 = vperm.slane %v2335_v14, %v8424_v19 }
 0x20e   : > { %v4405_v26 = vsel %vm2241_vm10, %v4404_v57, %v2309_v63  ;;  %v2318_v44 = vsel %vm2241_vm10, 0, %v2317_v62  ;;  %v2160_v42 = vshrl.u32 %v2094_v32, 16  ;;  %v2161_v48 = vshrl.u32 %v2126_v60, 16 }
 0x20f   : > { %v4393_v25 = vrot.slane %v4392_v5, 4  ;;  %v4409_v40 = vperm.slane %v4405_v26, %v8416_v27  ;;  %v2326_v7 = vperm.slane %v2318_v44, %v8424_v19  ;;  %v2327_v50 = vrot.slane %v2322_v38, 4  ;;  %v6839_v26 = vld [vmem:[#allocation8 + $0x50] sm:$0xf0] }
 0x210   : > { %v2337_v24 = vsel %vm2241_vm10, 0, %v2336_v28  ;;  %v2346_v49 = vrot.slane %v2341_v6, 4  ;;  %v2354_v18 = vperm.slane %v2159_v29, %v8416_v27  ;;  %v2162_v32 = vpack.i.b16 %v2161_v48, %v2160_v42  ;;  %v7209_v28 = vld [vmem:[#allocation8 + $0x3c] sm:$0xf] }
 0x211   : > { %v4394_v3 = vsel %vm2241_vm10, %v4393_v25, %v4386_v9  ;;  %v4410_v20 = vrot.slane %v4409_v40, 4  ;;  %v2328_v45 = vsel %vm2241_vm10, 0, %v2327_v50  ;;  %v2329_v37 = vrot.slane %v2326_v7, 4  ;;  %1514 = vmatmul.bf16.gmra.mxu0 %v8536_v56  ;;  %1563 = vmatmul.bf16.gmra.mxu1 %v8538_v47 }
 0x212   : > { %v4398_v23 = vperm.slane %v4394_v3, %v8424_v19  ;;  %v2345_v52 = vperm.slane %v2337_v24, %v8424_v19  ;;  %v2347_v63 = vsel %vm2241_vm10, 0, %v2346_v49  ;;  %v2355_v9 = vrot.slane %v2354_v18, 4  ;;  %1612 = vmatmul.bf16.gmra.mxu2 %v8536_v56  ;;  %1661 = vmatmul.bf16.gmra.mxu3 %v8538_v47  ;;  %v7257_v3 = vld [vmem:[#allocation8 + $0x1bc] sm:$0xf] }
 0x213   : > { %v4411_v59 = vsel %vm2241_vm10, %v4410_v20, %v4403_v41  ;;  %v2330_v11 = vsel %vm2241_vm10, 0, %v2329_v37  ;;  %v4416_v46 = vsel %vm2241_vm10, %v2329_v37, %v2322_v38  ;;  %v2360_v36 = vperm.slane %v2354_v18, %v8424_v19  ;;  %v7031_v20 = vld [vmem:[#allocation8 + $0x1d0] sm:$0xf0] }
 0x214   : > { %v4415_v16 = vperm.slane %v4411_v59, %v8424_v19  ;;  %v4904_v17 = vshrl.u32 %v4398_v23, 16  ;;  %v2348_v30 = vrot.slane %v2345_v52, 4  ;;  %v4420_v61 = vperm.slane %v4416_v46, %v8416_v27  ;;  %v6837_v46 = vld [vmem:[#allocation8 + $0x38] sm:$0xf] }
 0x215   : > { %v4421_v14 = vrot.slane %v2330_v11, 4  ;;  %v2356_v60 = vsel %vm2241_vm10, 0, %v2355_v9  ;;  %v2373_v41 = vperm.slane %v2162_v32, %v8416_v27  ;;  %v2365_v50 = vrot.slane %v2360_v36, 4  ;;  %v7212_v9 = vld [vmem:[#allocation8 + $0x4c] sm:$0xf0] }
 0x216   : > { %v4902_v57 = vpack.i.b16 %v4415_v16, %v4398_v23  ;;  %v4905_v62 = vshrl.u32 %v4415_v16, 16  ;;  %v2349_v5 = vsel %vm2241_vm10, 0, %v2348_v30  ;;  %v4433_v38 = vsel %vm2241_vm10, %v2348_v30, %v2341_v6  ;;  %v1495_v16 = vpop.f32.mrf.mxu0 }
 0x217   : > { %v4422_v44 = vsel %vm2241_vm10, %v4421_v14, %v2328_v45  ;;  %v4437_v29 = vperm.slane %v4433_v38, %v8416_v27  ;;  %v4438_v42 = vrot.slane %v2349_v5, 4  ;;  %v2364_v25 = vperm.slane %v2356_v60, %v8424_v19 }
 0x218   : > { %v4906_v40 = vpack.i.b16 %v4905_v62, %v4904_v17  ;;  %5021 = vst [vmem:[%s8575_s5 + $0x4] sm:$0xf] %v4902_v57  ;;  %v4426_v7 = vperm.slane %v4422_v44, %v8416_v27  ;;  %v2374_v24 = vrot.slane %v2373_v41, 4  ;;  %v2379_v6 = vperm.slane %v2373_v41, %v8424_v19  ;;  %v1544_v17 = vpop.f32.mrf.mxu1  ;;  %v8638_v57 = vpop.f32.mrf.mxu2  ;;  %v7260_v44 = vld [vmem:[#allocation8 + $0x1cc] sm:$0xf0] }
 0x219   : > { %v4439_v49 = vsel %vm2241_vm10, %v4438_v42, %v2347_v63  ;;  %v2367_v48 = vrot.slane %v2364_v25, 4  ;;  %v6842_v18 = vor.u32 %v7209_v28, %v6839_v26  ;;  %v2366_v23 = vsel %vm2241_vm10, 0, %v2365_v50  ;;  %v8640_v62 = vpop.f32.mrf.mxu3  ;;  %v7029_v26 = vld [vmem:[#allocation8 + $0x1b8] sm:$0xf] }
 0x21a   : > { %5037 = vst [vmem:[%s8575_s5 + $0x44] sm:$0xf] %v4906_v40  ;;  %v4427_v45 = vrot.slane %v4426_v7, 4  ;;  %v4443_v37 = vperm.slane %v4439_v49, %v8416_v27  ;;  %v2375_v52 = vsel %vm2241_vm10, 0, %v2374_v24  ;;  %v2384_v11 = vrot.slane %v2379_v6, 4 }
 0x21b   : > { %v2368_v32 = vsel %vm2241_vm10, 0, %v2367_v48  ;;  %v2383_v59 = vperm.slane %v2375_v52, %v8424_v19  ;;  %v4450_v63 = vsel %vm2241_vm10, %v2367_v48, %v2360_v36  ;;  %1771 = vmatpush.bf16.msrb.mxu2 %v6842_v18  ;;  %v7034_v28 = vor.u32 %v7257_v3, %v7031_v20  ;;  %v7203_v48 = vld [vmem:[#allocation8 + $0xc] sm:$0xf] }
 0x21c   : > { %v4428_v30 = vsel %vm2241_vm10, %v4427_v45, %v4420_v61  ;;  %v4444_v14 = vrot.slane %v4443_v37, 4  ;;  %v4454_v60 = vperm.slane %v4450_v63, %v8416_v27  ;;  %v4455_v41 = vrot.slane %v2368_v32, 4  ;;  %v6815_v45 = vld [vmem:[#allocation8 + $0x20] sm:$0xf0]  ;;  %v7251_v52 = vld [vmem:[#allocation8 + $0x18c] sm:$0xf] }
 0x21d   : > { %v4432_v5 = vperm.slane %v4428_v30, %v8424_v19  ;;  %v2385_v38 = vsel %vm2241_vm10, 0, %v2384_v11  ;;  %v2386_v36 = vrot.slane %v2383_v59, 4  ;;  %v1540_v25 = vadd.f32 %v8565_v15, %v8563_v22  ;;  %1820 = vmatpush.bf16.msrb.mxu3 %v7034_v28  ;;  %v7007_v63 = vld [vmem:[#allocation8 + $0x1a0] sm:$0xf0] }
 0x21e   : > { %v4445_v42 = vsel %vm2241_vm10, %v4444_v14, %v4437_v29  ;;  %v4456_v61 = vsel %vm2241_vm10, %v4455_v41, %v2366_v23  ;;  %v6838_v40 = vor.u32 %v7212_v9, %v6837_v46  ;;  %v7030_v29 = vor.u32 %v7260_v44, %v7029_v26  ;;  %v6813_v46 = vld [vmem:[#allocation8 + $0x8] sm:$0xf]  ;;  %v7206_v9 = vld [vmem:[#allocation8 + $0x1c] sm:$0xf0]  ;;  %v1497_v44 = vpop.f32.mrf.mxu0 }
 0x21f   : > { %v4449_v7 = vperm.slane %v4445_v42, %v8424_v19  ;;  %v4912_v50 = vshrl.u32 %v4432_v5, 16  ;;  %v2387_v24 = vsel %vm2241_vm10, 0, %v2386_v36  ;;  %v4460_v49 = vperm.slane %v4456_v61, %v8416_v27 }
 0x220   : > { %v4467_v18 = vsel %vm2241_vm10, %v2386_v36, %v2379_v6  ;;  %v4472_v3 = vrot.slane %v2387_v24, 4  ;;  %v2067_v20 = vmul.f32 0.088388346, %v1540_v25  ;;  %1673 = vmatpush.bf16.msrb.mxu0 %v6838_v40  ;;  %1722 = vmatpush.bf16.msrb.mxu1 %v7030_v29  ;;  %v1638_v59 = vadd.f32 %v8570_v33, %v8568_v8  ;;  %v7254_v36 = vld [vmem:[#allocation8 + $0x19c] sm:$0xf0]  ;;  %v1546_v42 = vpop.f32.mrf.mxu1  ;;  %v1595_v40 = vpop.f32.mrf.mxu2 }
 0x221   : > { %v4910_v37 = vpack.i.b16 %v4449_v7, %v4432_v5  ;;  %v4913_v22 = vshrl.u32 %v4449_v7, 16  ;;  %v4461_v15 = vrot.slane %v4460_v49, 4  ;;  %v4471_v23 = vperm.slane %v4467_v18, %v8416_v27  ;;  %v1644_v7 = vpop.f32.mrf.mxu3 }
 0x222   : > { %v4473_v32 = vsel %vm2241_vm10, %v4472_v3, %v2385_v38  ;;  %v1542_v6 = vadd.f32 %v8599_v39, %v8597_v34  ;;  %v1640_v11 = vadd.f32 %v8606_v55, %v8604_v54  ;;  %v6818_v5 = vor.u32 %v7203_v48, %v6815_v45  ;;  %v7005_v38 = vld [vmem:[#allocation8 + $0x188] sm:$0xf] }
 0x223   : > { %v4914_v30 = vpack.i.b16 %v4913_v22, %v4912_v50  ;;  %5022 = vst [vmem:[%s8575_s5 + $0x8] sm:$0xf] %v4910_v37  ;;  %v4462_v14 = vsel %vm2241_vm10, %v4461_v15, %v4454_v60  ;;  %v4477_v41 = vperm.slane %v4473_v32, %v8416_v27  ;;  %v2068_v33 = vmul.f32 0.088388346, %v1638_v59 }
 0x224   : > { %v4466_v8 = vperm.slane %v4462_v14, %v8424_v19  ;;  %v2069_v34 = vmul.f32 0.088388346, %v1542_v6  ;;  %v2070_v39 = vmul.f32 0.088388346, %v1640_v11  ;;  %1772 = vmatpush.bf16.msrb.mxu2 %v6818_v5  ;;  %v7010_v54 = vor.u32 %v7251_v52, %v7007_v63 }
 0x225   : > { %5038 = vst [vmem:[%s8575_s5 + $0x48] sm:$0xf] %v4914_v30  ;;  %v4478_v28 = vrot.slane %v4477_v41, 4  ;;  %v1545_v55 = vadd.f32 %v1544_v17, %v1495_v16  ;;  %v6814_v26 = vor.u32 %v7206_v9, %v6813_v46  ;;  %v2095_v61 = vpack.c.bf16 %v2068_v33, %v2067_v20 }
 0x226   : > { %v2096_v60 = vpack.c.bf16 %v2070_v39, %v2069_v34  ;;  %v7006_v25 = vor.u32 %v7254_v36, %v7005_v38  ;;  %v4920_v24 = vshrl.u32 %v4466_v8, 16  ;;  %1821 = vmatpush.bf16.msrb.mxu3 %v7010_v54  ;;  %v1643_v48 = vadd.f32 %v8640_v62, %v8638_v57 }
 0x227   : > { %v4479_v50 = vsel %vm2241_vm10, %v4478_v28, %v4471_v23  ;;  %v2071_v49 = vmul.f32 0.088388346, %v1545_v55  ;;  %1674 = vmatpush.bf16.msrb.mxu0 %v6814_v26  ;;  %v2127_v16 = vrot.slane %v2095_v61, 4  ;;  %v1547_v3 = vadd.f32 %v1546_v42, %v1497_v44  ;;  %1773 = vmatmul.bf16.vlgmr.msrb.gmra.mxu2 %v8207_v1 }
 0x228   : > { %v4483_v18 = vperm.slane %v4479_v50, %v8424_v19  ;;  %v2128_v17 = vrot.slane %v2096_v60, 4  ;;  %1723 = vmatpush.bf16.msrb.mxu1 %v7006_v25  ;;  %v2166_v20 = vshrl.u32 %v2095_v61, 16  ;;  %v2172_v29 = vshrl.u32 %v2096_v60, 16 }
 0x229   : > { %v2072_v45 = vmul.f32 0.088388346, %v1643_v48  ;;  %v1645_v37 = vadd.f32 %v1644_v7, %v1595_v40  ;;  %v2165_v23 = vpack.i.b16 %v2127_v16, %v2095_v61  ;;  %v2167_v52 = vshrl.u32 %v2127_v16, 16  ;;  %1822 = vmatmul.bf16.vlgmr.msrb.gmra.mxu3 %v8209_v35 }
 0x22a   : > { %v4918_v22 = vpack.i.b16 %v4483_v18, %v4466_v8  ;;  %v4921_v15 = vshrl.u32 %v4483_v18, 16  ;;  %1675 = vmatmul.bf16.vlgmr.msrb.gmra.mxu0 %v8207_v1  ;;  %v2171_v57 = vpack.i.b16 %v2128_v17, %v2096_v60  ;;  %v2173_v62 = vshrl.u32 %v2128_v17, 16 }
 0x22b   : > { %v8672_v32 = vpack.c.bf16 %v2072_v45, %v2071_v49  ;;  %v2074_v59 = vmul.f32 0.088388346, %v1645_v37  ;;  %1724 = vmatmul.bf16.vlgmr.msrb.gmra.mxu1 %v8209_v35  ;;  %v2168_v11 = vpack.i.b16 %v2167_v52, %v2166_v20  ;;  %v2392_v63 = vperm.slane %v2165_v23, %v8416_v27 }
 0x22c   : > { %v4922_v6 = vpack.i.b16 %v4921_v15, %v4920_v24  ;;  %5023 = vst [vmem:[%s8575_s5 + $0xc] sm:$0xf] %v4918_v22  ;;  %v2073_v46 = vmul.f32 0.088388346, %v1547_v3  ;;  %v2174_v9 = vpack.i.b16 %v2173_v62, %v2172_v29  ;;  %v2430_v30 = vperm.slane %v2171_v57, %v8416_v27 }
 0x22d   : > { %v2129_v14 = vrot.slane %v8672_v32, 4  ;;  %v2178_v41 = vshrl.u32 %v8672_v32, 16  ;;  %v2393_v5 = vrot.slane %v2392_v63, 4  ;;  %v2398_v38 = vperm.slane %v2392_v63, %v8424_v19 }
 0x22e   : > { %5039 = vst [vmem:[%s8575_s5 + $0x4c] sm:$0xf] %v4922_v6  ;;  %v2411_v36 = vperm.slane %v2168_v11, %v8416_v27  ;;  %v8683_v8 = vpack.c.bf16 %v2074_v59, %v2073_v46  ;;  %v2431_v33 = vrot.slane %v2430_v30, 4  ;;  %v2436_v34 = vperm.slane %v2430_v30, %v8424_v19 }
 0x22f   : > { %v2449_v39 = vperm.slane %v2174_v9, %v8416_v27  ;;  %v2177_v28 = vpack.i.b16 %v2129_v14, %v8672_v32  ;;  %v2394_v54 = vsel %vm2241_vm10, 0, %v2393_v5  ;;  %v2403_v55 = vrot.slane %v2398_v38, 4 }
 0x230   : > { %v2412_v26 = vrot.slane %v2411_v36, 4  ;;  %v2417_v44 = vperm.slane %v2411_v36, %v8424_v19  ;;  %v2402_v42 = vperm.slane %v2394_v54, %v8424_v19  ;;  %v2432_v61 = vsel %vm2241_vm10, 0, %v2431_v33 }
 0x231   : > { %v2441_v60 = vrot.slane %v2436_v34, 4  ;;  %v2450_v25 = vrot.slane %v2449_v39, 4  ;;  %v2404_v40 = vsel %vm2241_vm10, 0, %v2403_v55  ;;  %v2440_v24 = vperm.slane %v2432_v61, %v8424_v19 }
 0x232   : > { %v2413_v7 = vsel %vm2241_vm10, 0, %v2412_v26  ;;  %v2422_v50 = vrot.slane %v2417_v44, 4  ;;  %v2405_v49 = vrot.slane %v2402_v42, 4  ;;  %v2455_v20 = vperm.slane %v2449_v39, %v8424_v19 }
 0x233   : > { %v2421_v48 = vperm.slane %v2413_v7, %v8424_v19  ;;  %v2442_v18 = vsel %vm2241_vm10, 0, %v2441_v60  ;;  %v2451_v16 = vsel %vm2241_vm10, 0, %v2450_v25  ;;  %v2443_v3 = vrot.slane %v2440_v24, 4 }
 0x234   : > { %v2423_v17 = vsel %vm2241_vm10, 0, %v2422_v50  ;;  %v2459_v29 = vperm.slane %v2451_v16, %v8424_v19  ;;  %v2406_v45 = vsel %vm2241_vm10, 0, %v2405_v49  ;;  %v4484_v22 = vsel %vm2241_vm10, %v2405_v49, %v2398_v38 }
 0x235   : > { %v2424_v37 = vrot.slane %v2421_v48, 4  ;;  %v2179_v15 = vshrl.u32 %v2129_v14, 16  ;;  %v4488_v23 = vperm.slane %v4484_v22, %v8416_v27  ;;  %v4489_v52 = vrot.slane %v2406_v45, 4 }
 0x236   : > { %v2444_v57 = vsel %vm2241_vm10, 0, %v2443_v3  ;;  %v2460_v62 = vrot.slane %v2455_v20, 4  ;;  %v2462_v6 = vrot.slane %v2459_v29, 4  ;;  %v4518_v11 = vsel %vm2241_vm10, %v2443_v3, %v2436_v34 }
 0x237   : > { %v2425_v32 = vsel %vm2241_vm10, 0, %v2424_v37  ;;  %v4501_v59 = vsel %vm2241_vm10, %v2424_v37, %v2417_v44  ;;  %v4490_v63 = vsel %vm2241_vm10, %v4489_v52, %v2404_v40  ;;  %1778 = vmatmul.bf16.gmra.mxu2 %v8305_v13  ;;  %v4522_v38 = vperm.slane %v4518_v11, %v8416_v27 }
 0x238   : > { %v4505_v46 = vperm.slane %v4501_v59, %v8416_v27  ;;  %v4506_v9 = vrot.slane %v2425_v32, 4  ;;  %v2461_v30 = vsel %vm2241_vm10, 0, %v2460_v62  ;;  %v4494_v14 = vperm.slane %v4490_v63, %v8416_v27 }
 0x239   : > { %v2463_v5 = vsel %vm2241_vm10, 0, %v2462_v6  ;;  %v4523_v36 = vrot.slane %v2444_v57, 4  ;;  %v4535_v34 = vsel %vm2241_vm10, %v2462_v6, %v2455_v20  ;;  %v2180_v54 = vpack.i.b16 %v2179_v15, %v2178_v41  ;;  %1827 = vmatmul.bf16.gmra.mxu3 %v8307_v58 }
 0x23a   : > { %v4507_v33 = vsel %vm2241_vm10, %v4506_v9, %v2423_v17  ;;  %v4540_v39 = vrot.slane %v2463_v5, 4  ;;  %1680 = vmatmul.bf16.gmra.mxu0 %v8305_v13  ;;  %v4495_v55 = vrot.slane %v4494_v14, 4  ;;  %v4539_v42 = vperm.slane %v4535_v34, %v8416_v27 }
 0x23b   : > { %v4511_v26 = vperm.slane %v4507_v33, %v8416_v27  ;;  %v4524_v44 = vsel %vm2241_vm10, %v4523_v36, %v2442_v18  ;;  %1729 = vmatmul.bf16.gmra.mxu1 %v8307_v58  ;;  %v2468_v25 = vperm.slane %v2177_v28, %v8416_v27  ;;  %v2487_v41 = vperm.slane %v2180_v54, %v8416_v27  ;;  %v7246_v36 = vld [vmem:[#allocation8 + $0x164] sm:$0xf]  ;;  %v6991_v33 = vld [vmem:[#allocation8 + $0x178] sm:$0xf0] }
 0x23c   : > { %v4528_v61 = vperm.slane %v4524_v44, %v8416_v27  ;;  %v4541_v60 = vsel %vm2241_vm10, %v4540_v39, %v2461_v30  ;;  %v4496_v40 = vsel %vm2241_vm10, %v4495_v55, %v4488_v23  ;;  %v2130_v24 = vrot.slane %v8683_v8, 4  ;;  %v7183_v44 = vld [vmem:[#allocation8 + $0x2f8] sm:$0xf0] }
 0x23d   : > { %v4512_v7 = vrot.slane %v4511_v26, 4  ;;  %v4545_v50 = vperm.slane %v4541_v60, %v8416_v27  ;;  %v4500_v49 = vperm.slane %v4496_v40, %v8424_v19  ;;  %v2469_v18 = vrot.slane %v2468_v25, 4  ;;  %v7294_v26 = vld [vmem:[#allocation8 + $0x2e4] sm:$0xf] }
 0x23e   : > { %v4529_v48 = vrot.slane %v4528_v61, 4  ;;  %v2474_v16 = vperm.slane %v2468_v25, %v8424_v19  ;;  %v2488_v20 = vrot.slane %v2487_v41, 4  ;;  %v2493_v28 = vperm.slane %v2487_v41, %v8424_v19  ;;  %v6989_v41 = vld [vmem:[#allocation8 + $0x160] sm:$0xf] }
 0x23f   : > { %v4513_v17 = vsel %vm2241_vm10, %v4512_v7, %v4505_v46  ;;  %v4546_v3 = vrot.slane %v4545_v50, 4  ;;  %v4928_v45 = vshrl.u32 %v4500_v49, 16  ;;  %v2470_v22 = vsel %vm2241_vm10, 0, %v2469_v18 }
 0x240   : > { %v4517_v29 = vperm.slane %v4513_v17, %v8424_v19  ;;  %v4530_v37 = vsel %vm2241_vm10, %v4529_v48, %v4522_v38  ;;  %v2478_v52 = vperm.slane %v2470_v22, %v8424_v19  ;;  %v2479_v57 = vrot.slane %v2474_v16, 4  ;;  %v7297_v22 = vld [vmem:[#allocation8 + $0x2f4] sm:$0xf0] }
 0x241   : > { %v4534_v15 = vperm.slane %v4530_v37, %v8424_v19  ;;  %v4547_v23 = vsel %vm2241_vm10, %v4546_v3, %v4539_v42  ;;  %v2489_v6 = vsel %vm2241_vm10, 0, %v2488_v20  ;;  %v2498_v38 = vrot.slane %v2493_v28, 4  ;;  %v7249_v3 = vld [vmem:[#allocation8 + $0x174] sm:$0xf0] }
 0x242   : > { %v4926_v62 = vpack.i.b16 %v4517_v29, %v4500_v49  ;;  %v4929_v32 = vshrl.u32 %v4517_v29, 16  ;;  %v4551_v59 = vperm.slane %v4547_v23, %v8424_v19  ;;  %v2480_v63 = vsel %vm2241_vm10, 0, %v2479_v57  ;;  %v6967_v57 = vld [vmem:[#allocation8 + $0x148] sm:$0xf0] }
 0x243   : > { %v4936_v11 = vshrl.u32 %v4534_v15, 16  ;;  %v2481_v46 = vrot.slane %v2478_v52, 4  ;;  %v2497_v9 = vperm.slane %v2489_v6, %v8424_v19  ;;  %v2183_v55 = vpack.i.b16 %v2130_v24, %v8683_v8 }
 0x244   : > { %v4930_v30 = vpack.i.b16 %v4929_v32, %v4928_v45  ;;  %5024 = vst [vmem:[%s8575_s5 + $0x10] sm:$0xf] %v4926_v62  ;;  %v4934_v14 = vpack.i.b16 %v4551_v59, %v4534_v15  ;;  %v4937_v5 = vshrl.u32 %v4551_v59, 16  ;;  %v2499_v61 = vsel %vm2241_vm10, 0, %v2498_v38  ;;  %v7288_v62 = vld [vmem:[#allocation8 + $0x2b4] sm:$0xf] }
 0x245   : > { %v2482_v34 = vsel %vm2241_vm10, 0, %v2481_v46  ;;  %v2500_v39 = vrot.slane %v2497_v9, 4  ;;  %v4552_v54 = vsel %vm2241_vm10, %v2481_v46, %v2474_v16  ;;  %v2184_v50 = vshrl.u32 %v8683_v8, 16  ;;  %v7240_v8 = vld [vmem:[#allocation8 + $0x134] sm:$0xf] }
 0x246   : > { %5040 = vst [vmem:[%s8575_s5 + $0x50] sm:$0xf] %v4930_v30  ;;  %v4938_v42 = vpack.i.b16 %v4937_v5, %v4936_v11  ;;  %v4556_v60 = vperm.slane %v4552_v54, %v8416_v27  ;;  %v4557_v25 = vrot.slane %v2482_v34, 4  ;;  %v2185_v49 = vshrl.u32 %v2130_v24, 16  ;;  %v6965_v46 = vld [vmem:[#allocation8 + $0x130] sm:$0xf] }
 0x247   : > { %5025 = vst [vmem:[%s8575_s5 + $0x14] sm:$0xf] %v4934_v14  ;;  %v2501_v40 = vsel %vm2241_vm10, 0, %v2500_v39  ;;  %v4569_v7 = vsel %vm2241_vm10, %v2500_v39, %v2493_v28  ;;  %v2506_v17 = vperm.slane %v2183_v55, %v8416_v27  ;;  %1783 = vmatmul.bf16.gmra.mxu2 %v8343_v43  ;;  %v6994_v45 = vor.u32 %v7246_v36, %v6991_v33  ;;  %v7181_v28 = vld [vmem:[#allocation8 + $0x2e0] sm:$0xf] }
 0x248   : > { %5041 = vst [vmem:[%s8575_s5 + $0x54] sm:$0xf] %v4938_v42  ;;  %v4558_v48 = vsel %vm2241_vm10, %v4557_v25, %v2480_v63  ;;  %v4573_v18 = vperm.slane %v4569_v7, %v8416_v27  ;;  %v4574_v16 = vrot.slane %v2501_v40, 4  ;;  %v2186_v29 = vpack.i.b16 %v2185_v49, %v2184_v50  ;;  %v7159_v63 = vld [vmem:[#allocation8 + $0x2c8] sm:$0xf0] }
 0x249   : > { %v4562_v20 = vperm.slane %v4558_v48, %v8416_v27  ;;  %v7186_v37 = vor.u32 %v7294_v26, %v7183_v44  ;;  %v2507_v15 = vrot.slane %v2506_v17, 4  ;;  %v8763_v23 = vperm.slane %v2506_v17, %v8424_v19  ;;  %1832 = vmatmul.bf16.gmra.mxu3 %v8347_v12  ;;  %1961 = vmatpush.bf16.msra.mxu2 %v6994_v45  ;;  %v7243_v38 = vld [vmem:[#allocation8 + $0x144] sm:$0xf0]  ;;  %v7157_v36 = vld [vmem:[#allocation8 + $0x2b0] sm:$0xf] }
 0x24a   : > { %v4575_v24 = vsel %vm2241_vm10, %v4574_v16, %v2499_v61  ;;  %v6990_v52 = vor.u32 %v7249_v3, %v6989_v41  ;;  %1685 = vmatmul.bf16.gmra.mxu0 %v8343_v43  ;;  %v2525_v6 = vperm.slane %v2186_v29, %v8416_v27  ;;  %v7182_v11 = vor.u32 %v7297_v22, %v7181_v28  ;;  %v7291_v55 = vld [vmem:[#allocation8 + $0x2c4] sm:$0xf0]  ;;  %v7234_v61 = vld [vmem:[#allocation8 + $0x104] sm:$0xf]  ;;  %v6943_v25 = vld [vmem:[#allocation8 + $0x118] sm:$0xf0] }
 0x24b   : > { %v4563_v32 = vrot.slane %v4562_v20, 4  ;;  %v4579_v59 = vperm.slane %v4575_v24, %v8416_v27  ;;  %2010 = vmatpush.bf16.msra.mxu3 %v7186_v37  ;;  %v2508_v9 = vsel %vm2241_vm10, 0, %v2507_v15  ;;  %v2517_v30 = vrot.slane %v8763_v23, 4  ;;  %1734 = vmatmul.bf16.gmra.mxu1 %v8347_v12  ;;  %v7282_v41 = vld [vmem:[#allocation8 + $0x284] sm:$0xf] }
 0x24c   : > { %1863 = vmatpush.bf16.msra.mxu0 %v6990_v52  ;;  %v6970_v14 = vor.u32 %v7240_v8, %v6967_v57  ;;  %v7162_v5 = vor.u32 %v7288_v62, %v7159_v63  ;;  %v2516_v39 = vperm.slane %v2508_v9, %v8424_v19  ;;  %v2526_v54 = vrot.slane %v2525_v6, 4  ;;  %1912 = vmatpush.bf16.msra.mxu1 %v7182_v11  ;;  %v7135_v49 = vld [vmem:[#allocation8 + $0x298] sm:$0xf0]  ;;  %v6941_v17 = vld [vmem:[#allocation8 + $0x100] sm:$0xf] }
 0x24d   : > { %v4564_v33 = vsel %vm2241_vm10, %v4563_v32, %v4556_v60  ;;  %v4580_v34 = vrot.slane %v4579_v59, 4  ;;  %v2531_v44 = vperm.slane %v2525_v6, %v8424_v19  ;;  %v6966_v42 = vor.u32 %v7243_v38, %v6965_v46  ;;  %v7237_v3 = vld [vmem:[#allocation8 + $0x114] sm:$0xf0]  ;;  %v7133_v20 = vld [vmem:[#allocation8 + $0x280] sm:$0xf] }
 0x24e   : > { %v4568_v26 = vperm.slane %v4564_v33, %v8424_v19  ;;  %v2519_v7 = vrot.slane %v2516_v39, 4  ;;  %v2527_v50 = vsel %vm2241_vm10, 0, %v2526_v54  ;;  %1962 = vmatpush.bf16.msra.mxu2 %v6970_v14  ;;  %v7158_v60 = vor.u32 %v7291_v55, %v7157_v36  ;;  %v7285_v28 = vld [vmem:[#allocation8 + $0x294] sm:$0xf0]  ;;  %v7228_v22 = vld [vmem:[#allocation8 + $0xd4] sm:$0xf] }
 0x24f   : > { %v4581_v40 = vsel %vm2241_vm10, %v4580_v34, %v4573_v18  ;;  %2011 = vmatpush.bf16.msra.mxu3 %v7162_v5  ;;  %v2535_v16 = vperm.slane %v2527_v50, %v8424_v19  ;;  %v2536_v45 = vrot.slane %v2531_v44, 4  ;;  %v6946_v18 = vor.u32 %v7234_v61, %v6943_v25  ;;  %v6919_v57 = vld [vmem:[#allocation8 + $0xe8] sm:$0xf0]  ;;  %v7276_v11 = vld [vmem:[#allocation8 + $0x254] sm:$0xf] }
 0x250   : > { %v4585_v48 = vperm.slane %v4581_v40, %v8424_v19  ;;  %1864 = vmatpush.bf16.msra.mxu0 %v6966_v42  ;;  %v2520_v29 = vsel %vm2241_vm10, 0, %v2519_v7  ;;  %1913 = vmatpush.bf16.msra.mxu1 %v7158_v60  ;;  %v7138_v37 = vor.u32 %v7282_v41, %v7135_v49  ;;  %v4944_v24 = vshrl.u32 %v4568_v26, 16  ;;  %v7111_v63 = vld [vmem:[#allocation8 + $0x268] sm:$0xf0]  ;;  %v6917_v33 = vld [vmem:[#allocation8 + $0xd0] sm:$0xf] }
 0x251   : > { %v2538_v52 = vrot.slane %v2535_v16, 4  ;;  %v2518_v62 = vsel %vm2241_vm10, 0, %v2517_v30  ;;  %v4591_v32 = vrot.slane %v2520_v29, 4  ;;  %v6942_v59 = vor.u32 %v7237_v3, %v6941_v17  ;;  %v7231_v55 = vld [vmem:[#allocation8 + $0xe4] sm:$0xf0] }
 0x252   : > { %v4942_v8 = vpack.i.b16 %v4585_v48, %v4568_v26  ;;  %v4945_v15 = vshrl.u32 %v4585_v48, 16  ;;  %1963 = vmatpush.bf16.msra.mxu2 %v6946_v18  ;;  %v7134_v6 = vor.u32 %v7285_v28, %v7133_v20  ;;  %v4586_v38 = vsel %vm2241_vm10, %v2519_v7, %v8763_v23  ;;  %v7109_v26 = vld [vmem:[#allocation8 + $0x250] sm:$0xf]  ;;  %v7279_v41 = vld [vmem:[#allocation8 + $0x264] sm:$0xf0] }
 0x253   : > { %2012 = vmatpush.bf16.msra.mxu3 %v7138_v37  ;;  %v1500_v46 = vpop.f32.mrf.mxu0  ;;  %v1549_v9 = vpop.f32.mrf.mxu1  ;;  %v2539_v5 = vsel %vm2241_vm10, 0, %v2538_v52  ;;  %v6922_v36 = vor.u32 %v7228_v22, %v6919_v57  ;;  %v2537_v30 = vsel %vm2241_vm10, 0, %v2536_v45  ;;  %v4592_v34 = vsel %vm2241_vm10, %v4591_v32, %v2518_v62  ;;  %v7222_v23 = vld [vmem:[#allocation8 + $0xa4] sm:$0xf]  ;;  %v6895_v60 = vld [vmem:[#allocation8 + $0xb8] sm:$0xf0] }
 0x254   : > { %v4946_v14 = vpack.i.b16 %v4945_v15, %v4944_v24  ;;  %5026 = vst [vmem:[%s8575_s5 + $0x18] sm:$0xf] %v4942_v8  ;;  %v4608_v39 = vrot.slane %v2539_v5, 4  ;;  %1865 = vmatpush.bf16.msra.mxu0 %v6942_v59  ;;  %1914 = vmatpush.bf16.msra.mxu1 %v7134_v6  ;;  %v7114_v54 = vor.u32 %v7276_v11, %v7111_v63  ;;  %v7270_v49 = vld [vmem:[#allocation8 + $0x224] sm:$0xf] }
 0x255   : > { %v4596_v42 = vperm.slane %v4592_v34, %v8416_v27  ;;  %v4603_v61 = vsel %vm2241_vm10, %v2538_v52, %v2531_v44  ;;  %v6918_v25 = vor.u32 %v7231_v55, %v6917_v33  ;;  %v7110_v7 = vor.u32 %v7279_v41, %v7109_v26  ;;  %v7087_v48 = vld [vmem:[#allocation8 + $0x238] sm:$0xf0]  ;;  %v6893_v6 = vld [vmem:[#allocation8 + $0xa0] sm:$0xf]  ;;  %v7225_v11 = vld [vmem:[#allocation8 + $0xb4] sm:$0xf0] }
 0x256   : > { %5042 = vst [vmem:[%s8575_s5 + $0x58] sm:$0xf] %v4946_v14  ;;  %v4609_v40 = vsel %vm2241_vm10, %v4608_v39, %v2537_v30  ;;  %1964 = vmatpush.bf16.msra.mxu2 %v6922_v36  ;;  %v1550_v50 = vadd.f32 %v1549_v9, %v1500_v46  ;;  %v4590_v16 = vperm.slane %v4586_v38, %v8416_v27  ;;  %v7085_v9 = vld [vmem:[#allocation8 + $0x220] sm:$0xf]  ;;  %v7273_v14 = vld [vmem:[#allocation8 + $0x234] sm:$0xf0] }
 0x257   : > { %2013 = vmatpush.bf16.msra.mxu3 %v7114_v54  ;;  %v4597_v17 = vrot.slane %v4596_v42, 4  ;;  %v4613_v3 = vperm.slane %v4609_v40, %v8416_v27  ;;  %1788 = vmatmul.bf16.gmra.mxu2 %v8367_v0  ;;  %v6898_v44 = vor.u32 %v7222_v23, %v6895_v60  ;;  %v7090_v45 = vor.u32 %v7270_v49, %v7087_v48 }
 0x258   : > { %1866 = vmatpush.bf16.msra.mxu0 %v6918_v25  ;;  %1915 = vmatpush.bf16.msra.mxu1 %v7110_v7  ;;  %v4607_v28 = vperm.slane %v4603_v61, %v8416_v27  ;;  %v2075_v24 = vmul.f32 0.088388346, %v1550_v50  ;;  %v6894_v46 = vor.u32 %v7225_v11, %v6893_v6  ;;  %v7086_v34 = vor.u32 %v7273_v14, %v7085_v9 }
 0x259   : > { %v4598_v37 = vsel %vm2241_vm10, %v4597_v17, %v4590_v16  ;;  %v4614_v22 = vrot.slane %v4613_v3, 4  ;;  %1837 = vmatmul.bf16.gmra.mxu3 %v8369_v31 }
 0x25a   : > { %v1598_v20 = vpop.f32.mrf.mxu2  ;;  %v1647_v29 = vpop.f32.mrf.mxu3  ;;  %1690 = vmatmul.bf16.gmra.mxu0 %v8367_v0  ;;  %v4602_v8 = vperm.slane %v4598_v37, %v8424_v19  ;;  %1965 = vmatpush.bf16.msra.mxu2 %v6898_v44 }
 0x25b   : > { %v1648_v18 = vadd.f32 %v1647_v29, %v1598_v20  ;;  %2014 = vmatpush.bf16.msra.mxu3 %v7090_v45  ;;  %v4615_v52 = vsel %vm2241_vm10, %v4614_v22, %v4607_v28  ;;  %1739 = vmatmul.bf16.gmra.mxu1 %v8369_v31  ;;  %v1502_v32 = vpop.f32.mrf.mxu0  ;;  %v1551_v59 = vpop.f32.mrf.mxu1  ;;  %v7216_v29 = vld [vmem:[#allocation8 + $0x74] sm:$0xf]  ;;  %v6871_v45 = vld [vmem:[#allocation8 + $0x88] sm:$0xf0] }
 0x25c   : > { %v4619_v57 = vperm.slane %v4615_v52, %v8424_v19  ;;  %v4952_v63 = vshrl.u32 %v4602_v8, 16  ;;  %v1552_v33 = vadd.f32 %v1551_v59, %v1502_v32  ;;  %1867 = vmatpush.bf16.msra.mxu0 %v6894_v46  ;;  %1916 = vmatpush.bf16.msra.mxu1 %v7086_v34  ;;  %v6874_v22 = vor.u32 %v7216_v29, %v6871_v45 }
 0x25d   : > { %v2076_v15 = vmul.f32 0.088388346, %v1648_v18 }
 0x25e   : > { %v4950_v5 = vpack.i.b16 %v4619_v57, %v4602_v8  ;;  %v4953_v38 = vshrl.u32 %v4619_v57, 16  ;;  %v2077_v23 = vmul.f32 0.088388346, %v1552_v33  ;;  %v7264_v8 = vld [vmem:[#allocation8 + $0x1f4] sm:$0xf]  ;;  %1966 = vmatpush.bf16.msra.mxu2 %v6874_v22 }
 0x25f   : > { %v2099_v62 = vpack.c.bf16 %v2076_v15, %v2075_v24 }
 0x260   : > { %v4954_v55 = vpack.i.b16 %v4953_v38, %v4952_v63  ;;  %5027 = vst [vmem:[%s8575_s5 + $0x1c] sm:$0xf] %v4950_v5 }
 0x261   : > { %v2131_v36 = vrot.slane %v2099_v62, 4  ;;  %v2190_v30 = vshrl.u32 %v2099_v62, 16 }
 0x262   : > { %v1600_v39 = vpop.f32.mrf.mxu2  ;;  %v1649_v54 = vpop.f32.mrf.mxu3  ;;  %5043 = vst [vmem:[%s8575_s5 + $0x5c] sm:$0xf] %v4954_v55 }
 0x263   : > { %v2189_v26 = vpack.i.b16 %v2131_v36, %v2099_v62  ;;  %v2191_v42 = vshrl.u32 %v2131_v36, 16  ;;  %v1650_v61 = vadd.f32 %v1649_v54, %v1600_v39  ;;  %v7063_v62 = vld [vmem:[#allocation8 + $0x208] sm:$0xf0] }
 0x264   : > { %v7066_v32 = vor.u32 %v7264_v8, %v7063_v62 }
 0x265   : > { %v2192_v25 = vpack.i.b16 %v2191_v42, %v2190_v30  ;;  %v2544_v41 = vperm.slane %v2189_v26, %v8416_v27  ;;  %v2078_v40 = vmul.f32 0.088388346, %v1650_v61 }
 0x266   : > { %2015 = vmatpush.bf16.msra.mxu3 %v7066_v32 }
 0x267   : > { %v2545_v7 = vrot.slane %v2544_v41, 4  ;;  %v2550_v50 = vperm.slane %v2544_v41, %v8424_v19  ;;  %v2563_v60 = vperm.slane %v2192_v25, %v8416_v27  ;;  %v2100_v49 = vpack.c.bf16 %v2078_v40, %v2077_v23  ;;  %1793 = vmatmul.bf16.gmra.mxu2 %v8390_v10 }
 0x269   : > { %v2546_v48 = vsel %vm2241_vm10, 0, %v2545_v7  ;;  %v2564_v16 = vrot.slane %v2563_v60, 4  ;;  %v2569_v17 = vperm.slane %v2563_v60, %v8424_v19  ;;  %v2555_v44 = vrot.slane %v2550_v50, 4  ;;  %1842 = vmatmul.bf16.gmra.mxu3 %v8392_v53 }
 0x26a   : > { %v2554_v3 = vperm.slane %v2546_v48, %v8424_v19  ;;  %v2132_v20 = vrot.slane %v2100_v49, 4  ;;  %v2196_v28 = vshrl.u32 %v2100_v49, 16  ;;  %1695 = vmatmul.bf16.gmra.mxu0 %v8390_v10 }
 0x26b   : > { %v2565_v18 = vsel %vm2241_vm10, 0, %v2564_v16  ;;  %v2574_v37 = vrot.slane %v2569_v17, 4  ;;  %1744 = vmatmul.bf16.gmra.mxu1 %v8392_v53  ;;  %v2556_v9 = vsel %vm2241_vm10, 0, %v2555_v44 }
 0x26c   : > { %v2557_v24 = vrot.slane %v2554_v3, 4  ;;  %v2573_v15 = vperm.slane %v2565_v18, %v8424_v19  ;;  %v2195_v52 = vpack.i.b16 %v2132_v20, %v2100_v49  ;;  %v2197_v57 = vshrl.u32 %v2132_v20, 16 }
 0x26d   : > { %v2575_v14 = vsel %vm2241_vm10, 0, %v2574_v37 }
 0x26e   : > { %v2558_v59 = vsel %vm2241_vm10, 0, %v2557_v24  ;;  %v2576_v6 = vrot.slane %v2573_v15, 4  ;;  %v2198_v11 = vpack.i.b16 %v2197_v57, %v2196_v28  ;;  %v2582_v46 = vperm.slane %v2195_v52, %v8416_v27  ;;  %v1505_v36 = vpop.f32.mrf.mxu0  ;;  %v1554_v54 = vpop.f32.mrf.mxu1 }
 0x26f   : > { %v4625_v63 = vrot.slane %v2558_v59, 4  ;;  %v4620_v33 = vsel %vm2241_vm10, %v2557_v24, %v2550_v50  ;;  %v1555_v16 = vadd.f32 %v1554_v54, %v1505_v36 }
 0x270   : > { %v2577_v5 = vsel %vm2241_vm10, 0, %v2576_v6  ;;  %v2601_v38 = vperm.slane %v2198_v11, %v8416_v27  ;;  %v2583_v39 = vrot.slane %v2582_v46, 4  ;;  %v4637_v26 = vsel %vm2241_vm10, %v2576_v6, %v2569_v17 }
 0x271   : > { %v4626_v30 = vsel %vm2241_vm10, %v4625_v63, %v2556_v9  ;;  %v4642_v34 = vrot.slane %v2577_v5, 4  ;;  %v2588_v42 = vperm.slane %v2582_v46, %v8424_v19  ;;  %v4624_v23 = vperm.slane %v4620_v33, %v8416_v27 }
 0x272   : > { %v4630_v55 = vperm.slane %v4626_v30, %v8416_v27  ;;  %v2602_v61 = vrot.slane %v2601_v38, 4  ;;  %v2584_v41 = vsel %vm2241_vm10, 0, %v2583_v39  ;;  %v4641_v60 = vperm.slane %v4637_v26, %v8416_v27 }
 0x273   : > { %v4643_v25 = vsel %vm2241_vm10, %v4642_v34, %v2575_v14  ;;  %v2592_v50 = vperm.slane %v2584_v41, %v8424_v19  ;;  %v2607_v48 = vperm.slane %v2601_v38, %v8424_v19  ;;  %v2593_v44 = vrot.slane %v2588_v42, 4  ;;  %v6869_v41 = vld [vmem:[#allocation8 + $0x70] sm:$0xf] }
 0x274   : > { %v4631_v40 = vrot.slane %v4630_v55, 4  ;;  %v4647_v7 = vperm.slane %v4643_v25, %v8416_v27  ;;  %v2603_v49 = vsel %vm2241_vm10, 0, %v2602_v61  ;;  %v2079_v59 = vmul.f32 0.088388346, %v1555_v16 }
 0x275   : > { %v2595_v20 = vrot.slane %v2592_v50, 4  ;;  %v2611_v45 = vperm.slane %v2603_v49, %v8424_v19  ;;  %v1603_v18 = vpop.f32.mrf.mxu2  ;;  %v1652_v22 = vpop.f32.mrf.mxu3  ;;  %v2612_v15 = vrot.slane %v2607_v48, 4  ;;  %v2594_v62 = vsel %vm2241_vm10, 0, %v2593_v44  ;;  %v7061_v49 = vld [vmem:[#allocation8 + $0x1f0] sm:$0xf] }
 0x276   : > { %v4632_v17 = vsel %vm2241_vm10, %v4631_v40, %v4624_v23  ;;  %v4648_v3 = vrot.slane %v4647_v7, 4  ;;  %v1507_v8 = vpop.f32.mrf.mxu0  ;;  %v1556_v57 = vpop.f32.mrf.mxu1  ;;  %v1653_v6 = vadd.f32 %v1652_v22, %v1603_v18  ;;  %v7267_v44 = vld [vmem:[#allocation8 + $0x204] sm:$0xf0] }
 0x277   : > { %v4636_v29 = vperm.slane %v4632_v17, %v8424_v19  ;;  %v2596_v28 = vsel %vm2241_vm10, 0, %v2595_v20  ;;  %v2614_v52 = vrot.slane %v2611_v45, 4  ;;  %1798 = vmatmul.bf16.gmra.mxu2 %v8484_v21  ;;  %v4654_v14 = vsel %vm2241_vm10, %v2595_v20, %v2588_v42 }
 0x278   : > { %v4649_v37 = vsel %vm2241_vm10, %v4648_v3, %v4641_v60  ;;  %v4659_v32 = vrot.slane %v2596_v28, 4  ;;  %v2080_v36 = vmul.f32 0.088388346, %v1653_v6  ;;  %v2613_v30 = vsel %vm2241_vm10, 0, %v2612_v15  ;;  %v7219_v60 = vld [vmem:[#allocation8 + $0x84] sm:$0xf0] }
 0x279   : > { %v4653_v24 = vperm.slane %v4649_v37, %v8424_v19  ;;  %v4960_v63 = vshrl.u32 %v4636_v29, 16  ;;  %v2615_v9 = vsel %vm2241_vm10, 0, %v2614_v52  ;;  %1847 = vmatmul.bf16.gmra.mxu3 %v8486_v4  ;;  %v4671_v39 = vsel %vm2241_vm10, %v2614_v52, %v2607_v48 }
 0x27a   : > { %v4660_v5 = vsel %vm2241_vm10, %v4659_v32, %v2594_v62  ;;  %v4676_v38 = vrot.slane %v2615_v9, 4  ;;  %1700 = vmatmul.bf16.gmra.mxu0 %v8484_v21  ;;  %v2101_v55 = vpack.c.bf16 %v2080_v36, %v2079_v59  ;;  %v4658_v26 = vperm.slane %v4654_v14, %v8416_v27 }
 0x27b   : > { %v4958_v11 = vpack.i.b16 %v4653_v24, %v4636_v29  ;;  %v4961_v46 = vshrl.u32 %v4653_v24, 16  ;;  %v4664_v34 = vperm.slane %v4660_v5, %v8416_v27  ;;  %1749 = vmatmul.bf16.gmra.mxu1 %v8486_v4  ;;  %v1557_v25 = vadd.f32 %v1556_v57, %v1507_v8 }
 0x27c   : > { %v4677_v54 = vsel %vm2241_vm10, %v4676_v38, %v2613_v30  ;;  %v4675_v40 = vperm.slane %v4671_v39, %v8416_v27  ;;  %v2133_v7 = vrot.slane %v2101_v55, 4  ;;  %v2202_v50 = vshrl.u32 %v2101_v55, 16 }
 0x27d   : > { %v4962_v33 = vpack.i.b16 %v4961_v46, %v4960_v63  ;;  %5028 = vst [vmem:[%s8575_s5 + $0x20] sm:$0xf] %v4958_v11  ;;  %v4665_v42 = vrot.slane %v4664_v34, 4  ;;  %v4681_v61 = vperm.slane %v4677_v54, %v8416_v27  ;;  %v1605_v23 = vpop.f32.mrf.mxu2  ;;  %v1654_v48 = vpop.f32.mrf.mxu3  ;;  %v6870_v3 = vor.u32 %v7219_v60, %v6869_v41  ;;  %v7210_v34 = vld [vmem:[#allocation8 + $0x44] sm:$0xf] }
 0x27e   : > { %v1655_v20 = vadd.f32 %v1654_v48, %v1605_v23  ;;  %v1510_v29 = vpop.f32.mrf.mxu0  ;;  %v1559_v45 = vpop.f32.mrf.mxu1  ;;  %v2201_v37 = vpack.i.b16 %v2133_v7, %v2101_v55  ;;  %v2203_v28 = vshrl.u32 %v2133_v7, 16  ;;  %v7062_v22 = vor.u32 %v7267_v44, %v7061_v49  ;;  %v7258_v41 = vld [vmem:[#allocation8 + $0x1c4] sm:$0xf] }
 0x27f   : > { %5044 = vst [vmem:[%s8575_s5 + $0x60] sm:$0xf] %v4962_v33  ;;  %v4666_v16 = vsel %vm2241_vm10, %v4665_v42, %v4658_v26  ;;  %v4682_v17 = vrot.slane %v4681_v61, 4  ;;  %v2081_v24 = vmul.f32 0.088388346, %v1557_v25  ;;  %1868 = vmatpush.bf16.msra.mxu0 %v6870_v3  ;;  %v1560_v52 = vadd.f32 %v1559_v45, %v1510_v29 }
 0x280   : > { %v4670_v18 = vperm.slane %v4666_v16, %v8424_v19  ;;  %v2082_v15 = vmul.f32 0.088388346, %v1655_v20  ;;  %v2204_v62 = vpack.i.b16 %v2203_v28, %v2202_v50  ;;  %v2620_v32 = vperm.slane %v2201_v37, %v8416_v27  ;;  %1917 = vmatpush.bf16.msra.mxu1 %v7062_v22  ;;  %v6847_v25 = vld [vmem:[#allocation8 + $0x58] sm:$0xf0] }
 0x281   : > { %v4683_v8 = vsel %vm2241_vm10, %v4682_v17, %v4675_v40  ;;  %v2083_v38 = vmul.f32 0.088388346, %v1560_v52  ;;  %v6850_v7 = vor.u32 %v7210_v34, %v6847_v25  ;;  %v7039_v50 = vld [vmem:[#allocation8 + $0x1d8] sm:$0xf0] }
 0x282   : > { %v4687_v57 = vperm.slane %v4683_v8, %v8424_v19  ;;  %v4968_v59 = vshrl.u32 %v4670_v18, 16  ;;  %v2102_v6 = vpack.c.bf16 %v2082_v15, %v2081_v24  ;;  %v2621_v46 = vrot.slane %v2620_v32, 4 }
 0x283   : > { %v2626_v9 = vperm.slane %v2620_v32, %v8424_v19  ;;  %v2639_v14 = vperm.slane %v2204_v62, %v8416_v27  ;;  %v7042_v29 = vor.u32 %v7258_v41, %v7039_v50  ;;  %1967 = vmatpush.bf16.msra.mxu2 %v6850_v7 }
 0x284   : > { %v4966_v11 = vpack.i.b16 %v4687_v57, %v4670_v18  ;;  %v4969_v63 = vshrl.u32 %v4687_v57, 16  ;;  %v2134_v5 = vrot.slane %v2102_v6, 4  ;;  %v2622_v33 = vsel %vm2241_vm10, 0, %v2621_v46 }
 0x285   : > { %v2631_v30 = vrot.slane %v2626_v9, 4  ;;  %v1608_v39 = vpop.f32.mrf.mxu2  ;;  %v1657_v54 = vpop.f32.mrf.mxu3  ;;  %v2630_v55 = vperm.slane %v2622_v33, %v8424_v19  ;;  %v2640_v26 = vrot.slane %v2639_v14, 4  ;;  %v2645_v42 = vperm.slane %v2639_v14, %v8424_v19  ;;  %2016 = vmatpush.bf16.msra.mxu3 %v7042_v29 }
 0x286   : > { %v4970_v36 = vpack.i.b16 %v4969_v63, %v4968_v59  ;;  %5029 = vst [vmem:[%s8575_s5 + $0x24] sm:$0xf] %v4966_v11  ;;  %v2207_v61 = vpack.i.b16 %v2134_v5, %v2102_v6  ;;  %v2208_v23 = vshrl.u32 %v2102_v6, 16  ;;  %v2209_v40 = vshrl.u32 %v2134_v5, 16  ;;  %v1512_v3 = vpop.f32.mrf.mxu0  ;;  %v1561_v18 = vpop.f32.mrf.mxu1 }
 0x287   : > { %1803 = vmatmul.bf16.gmra.mxu2 %v8511_v2  ;;  %v1658_v60 = vadd.f32 %v1657_v54, %v1608_v39  ;;  %v2633_v49 = vrot.slane %v2630_v55, 4  ;;  %v2641_v48 = vsel %vm2241_vm10, 0, %v2640_v26  ;;  %v2650_v16 = vrot.slane %v2645_v42, 4 }
 0x288   : > { %5045 = vst [vmem:[%s8575_s5 + $0x64] sm:$0xf] %v4970_v36  ;;  %v2658_v17 = vperm.slane %v2207_v61, %v8416_v27  ;;  %v2649_v44 = vperm.slane %v2641_v48, %v8424_v19  ;;  %v2210_v20 = vpack.i.b16 %v2209_v40, %v2208_v23  ;;  %v2632_v37 = vsel %vm2241_vm10, 0, %v2631_v30 }
 0x289   : > { %1852 = vmatmul.bf16.gmra.mxu3 %v8513_v51  ;;  %v2084_v45 = vmul.f32 0.088388346, %v1658_v60  ;;  %v2634_v28 = vsel %vm2241_vm10, 0, %v2633_v49  ;;  %v4688_v22 = vsel %vm2241_vm10, %v2633_v49, %v2626_v9  ;;  %v2651_v24 = vsel %vm2241_vm10, 0, %v2650_v16 }
 0x28a   : > { %1705 = vmatmul.bf16.gmra.mxu0 %v8511_v2  ;;  %v2659_v8 = vrot.slane %v2658_v17, 4  ;;  %v2652_v15 = vrot.slane %v2649_v44, 4  ;;  %v4693_v52 = vrot.slane %v2634_v28, 4  ;;  %v2664_v57 = vperm.slane %v2658_v17, %v8424_v19 }
 0x28b   : > { %1754 = vmatmul.bf16.gmra.mxu1 %v8513_v51  ;;  %v4692_v62 = vperm.slane %v4688_v22, %v8416_v27  ;;  %v2677_v59 = vperm.slane %v2210_v20, %v8416_v27  ;;  %v2103_v6 = vpack.c.bf16 %v2084_v45, %v2083_v38  ;;  %v1562_v33 = vadd.f32 %v1561_v18, %v1512_v3 }
 0x28c   : > { %v2660_v32 = vsel %vm2241_vm10, 0, %v2659_v8  ;;  %v2653_v11 = vsel %vm2241_vm10, 0, %v2652_v15  ;;  %v4694_v63 = vsel %vm2241_vm10, %v4693_v52, %v2632_v37  ;;  %v4705_v46 = vsel %vm2241_vm10, %v2652_v15, %v2645_v42  ;;  %v6845_v52 = vld [vmem:[#allocation8 + $0x40] sm:$0xf] }
 0x28d   : > { %v2668_v9 = vperm.slane %v2660_v32, %v8424_v19  ;;  %v4698_v14 = vperm.slane %v4694_v63, %v8416_v27  ;;  %v4710_v5 = vrot.slane %v2653_v11, 4  ;;  %v2669_v36 = vrot.slane %v2664_v57, 4  ;;  %v8895_v42 = vpop.f32.mrf.mxu2  ;;  %v8897_v25 = vpop.f32.mrf.mxu3 }
 0x28e   : > { %v4709_v30 = vperm.slane %v4705_v46, %v8416_v27  ;;  %v2678_v39 = vrot.slane %v2677_v59, 4  ;;  %v2683_v54 = vperm.slane %v2677_v59, %v8424_v19  ;;  %v2135_v61 = vrot.slane %v2103_v6, 4  ;;  %v8905_v16 = vpop.f32.mrf.mxu0  ;;  %v8909_v29 = vpop.f32.mrf.mxu1 }
 0x28f   : > { %v2671_v34 = vrot.slane %v2668_v9, 4  ;;  %v4699_v38 = vrot.slane %v4698_v14, 4  ;;  %v4711_v55 = vsel %vm2241_vm10, %v4710_v5, %v2651_v24  ;;  %v2670_v26 = vsel %vm2241_vm10, 0, %v2669_v36 }
 0x290   : > { %v4715_v41 = vperm.slane %v4711_v55, %v8416_v27  ;;  %v2679_v40 = vsel %vm2241_vm10, 0, %v2678_v39  ;;  %v2688_v7 = vrot.slane %v2683_v54, 4  ;;  %v2214_v20 = vshrl.u32 %v2103_v6, 16  ;;  %v7261_v39 = vld [vmem:[#allocation8 + $0x1d4] sm:$0xf0] }
 0x291   : > { %v2672_v23 = vsel %vm2241_vm10, 0, %v2671_v34  ;;  %v4700_v50 = vsel %vm2241_vm10, %v4699_v38, %v4692_v62  ;;  %v2687_v60 = vperm.slane %v2679_v40, %v8424_v19  ;;  %v4722_v49 = vsel %vm2241_vm10, %v2671_v34, %v2664_v57  ;;  %v7213_v57 = vld [vmem:[#allocation8 + $0x54] sm:$0xf0]  ;;  %v7037_v34 = vld [vmem:[#allocation8 + $0x1c0] sm:$0xf] }
 0x292   : > { %v4727_v48 = vrot.slane %v2672_v23, 4  ;;  %v4704_v17 = vperm.slane %v4700_v50, %v8424_v19  ;;  %v4716_v3 = vrot.slane %v4715_v41, 4  ;;  %v2689_v44 = vsel %vm2241_vm10, 0, %v2688_v7 }
 0x293   : > { %v2690_v45 = vrot.slane %v2687_v60, 4  ;;  %v2213_v37 = vpack.i.b16 %v2135_v61, %v2103_v6  ;;  %v2215_v28 = vshrl.u32 %v2135_v61, 16  ;;  %v4726_v24 = vperm.slane %v4722_v49, %v8416_v27 }
 0x294   : > { %v4728_v18 = vsel %vm2241_vm10, %v4727_v48, %v2670_v26  ;;  %v4717_v22 = vsel %vm2241_vm10, %v4716_v3, %v4709_v30  ;;  %v4976_v8 = vshrl.u32 %v4704_v17, 16  ;;  %v8917_v11 = vmul.f32 0.088388346, %v1562_v33  ;;  %v6823_v3 = vld [vmem:[#allocation8 + $0x28] sm:$0xf0] }
 0x295   : > { %v4732_v15 = vperm.slane %v4728_v18, %v8416_v27  ;;  %v4721_v62 = vperm.slane %v4717_v22, %v8424_v19  ;;  %v2691_v32 = vsel %vm2241_vm10, 0, %v2690_v45  ;;  %v2216_v59 = vpack.i.b16 %v2215_v28, %v2214_v20  ;;  %v1613_v40 = vpop.f32.mrf.mxu2  ;;  %v1662_v7 = vpop.f32.mrf.mxu3 }
 0x296   : > { %v4739_v6 = vsel %vm2241_vm10, %v2690_v45, %v2683_v54  ;;  %v4744_v46 = vrot.slane %v2691_v32, 4  ;;  %v2696_v9 = vperm.slane %v2213_v37, %v8416_v27  ;;  %v6846_v30 = vor.u32 %v7213_v57, %v6845_v52  ;;  %v1517_v37 = vpop.f32.mrf.mxu0  ;;  %v7015_v52 = vld [vmem:[#allocation8 + $0x1a8] sm:$0xf0]  ;;  %v1566_v57 = vpop.f32.mrf.mxu1 }
 0x297   : > { %v4733_v63 = vrot.slane %v4732_v15, 4  ;;  %1808 = vmatmul.bf16.gmra.mxu2 %v8536_v56  ;;  %v4974_v14 = vpack.i.b16 %v4721_v62, %v4704_v17  ;;  %v4977_v5 = vshrl.u32 %v4721_v62, 16  ;;  %v2715_v36 = vperm.slane %v2216_v59, %v8416_v27  ;;  %v7204_v17 = vld [vmem:[#allocation8 + $0x14] sm:$0xf] }
 0x298   : > { %v4745_v33 = vsel %vm2241_vm10, %v4744_v46, %v2689_v44  ;;  %v2697_v55 = vrot.slane %v2696_v9, 4  ;;  %v2702_v54 = vperm.slane %v2696_v9, %v8424_v19  ;;  %1869 = vmatpush.bf16.msra.mxu0 %v6846_v30  ;;  %v7038_v48 = vor.u32 %v7261_v39, %v7037_v34  ;;  %v7252_v15 = vld [vmem:[#allocation8 + $0x194] sm:$0xf] }
 0x299   : > { %v4734_v38 = vsel %vm2241_vm10, %v4733_v63, %v4726_v24  ;;  %1857 = vmatmul.bf16.gmra.mxu3 %v8538_v47  ;;  %v4978_v26 = vpack.i.b16 %v4977_v5, %v4976_v8  ;;  %5030 = vst [vmem:[%s8575_s5 + $0x28] sm:$0xf] %v4974_v14  ;;  %v4749_v41 = vperm.slane %v4745_v33, %v8416_v27  ;;  %v2716_v23 = vrot.slane %v2715_v36, 4 }
 0x29a   : > { %1710 = vmatmul.bf16.gmra.mxu0 %v8536_v56  ;;  %v4738_v61 = vperm.slane %v4734_v38, %v8424_v19  ;;  %v2698_v50 = vsel %vm2241_vm10, 0, %v2697_v55  ;;  %v2707_v60 = vrot.slane %v2702_v54, 4  ;;  %v2721_v49 = vperm.slane %v2715_v36, %v8424_v19  ;;  %1918 = vmatpush.bf16.msra.mxu1 %v7038_v48  ;;  %v7255_v48 = vld [vmem:[#allocation8 + $0x1a4] sm:$0xf0] }
 0x29b   : > { %1759 = vmatmul.bf16.gmra.mxu1 %v8538_v47  ;;  %5046 = vst [vmem:[%s8575_s5 + $0x68] sm:$0xf] %v4978_v26  ;;  %v4743_v44 = vperm.slane %v4739_v6, %v8416_v27  ;;  %v4750_v20 = vrot.slane %v4749_v41, 4  ;;  %v2706_v45 = vperm.slane %v2698_v50, %v8424_v19  ;;  %v2717_v18 = vsel %vm2241_vm10, 0, %v2716_v23  ;;  %v6821_v26 = vld [vmem:[#allocation8 + $0x10] sm:$0xf] }
 0x29c   : > { %v4984_v28 = vshrl.u32 %v4738_v61, 16  ;;  %v2725_v22 = vperm.slane %v2717_v18, %v8424_v19  ;;  %v2726_v8 = vrot.slane %v2721_v49, 4  ;;  %v1660_v24 = vadd.f32 %v8897_v25, %v8895_v42  ;;  %v7207_v41 = vld [vmem:[#allocation8 + $0x24] sm:$0xf0] }
 0x29d   : > { %v4751_v62 = vsel %vm2241_vm10, %v4750_v20, %v4743_v44  ;;  %v2709_v32 = vrot.slane %v2706_v45, 4  ;;  %v1565_v59 = vadd.f32 %v8909_v29, %v8905_v16  ;;  %v6826_v63 = vor.u32 %v7204_v17, %v6823_v3  ;;  %v1664_v20 = vpop.f32.mrf.mxu3 }
 0x29e   : > { %v4755_v6 = vperm.slane %v4751_v62, %v8424_v19  ;;  %v2708_v46 = vsel %vm2241_vm10, 0, %v2707_v60  ;;  %v2728_v9 = vrot.slane %v2725_v22, 4  ;;  %v2086_v14 = vmul.f32 0.088388346, %v1660_v24  ;;  %v7013_v60 = vld [vmem:[#allocation8 + $0x190] sm:$0xf] }
 0x29f   : > { %v2710_v5 = vsel %vm2241_vm10, 0, %v2709_v32  ;;  %v2727_v42 = vsel %vm2241_vm10, 0, %v2726_v8  ;;  %v4756_v25 = vsel %vm2241_vm10, %v2709_v32, %v2702_v54  ;;  %1968 = vmatpush.bf16.msra.mxu2 %v6826_v63  ;;  %v7018_v36 = vor.u32 %v7252_v15, %v7015_v52 }
 0x2a0   : > { %v4982_v30 = vpack.i.b16 %v4755_v6, %v4738_v61  ;;  %v4985_v34 = vshrl.u32 %v4755_v6, 16  ;;  %v2729_v16 = vsel %vm2241_vm10, 0, %v2728_v9  ;;  %v2087_v29 = vmul.f32 0.088388346, %v1565_v59 }
 0x2a1   : > { %v4761_v39 = vrot.slane %v2710_v5, 4  ;;  %v4773_v38 = vsel %vm2241_vm10, %v2728_v9, %v2721_v49  ;;  %v4778_v33 = vrot.slane %v2729_v16, 4  ;;  %v2104_v55 = vpack.c.bf16 %v2086_v14, %v8917_v11  ;;  %2017 = vmatpush.bf16.msra.mxu3 %v7018_v36  ;;  %v1615_v11 = vpop.f32.mrf.mxu2 }
 0x2a2   : > { %v4986_v23 = vpack.i.b16 %v4985_v34, %v4984_v28  ;;  %5031 = vst [vmem:[%s8575_s5 + $0x2c] sm:$0xf] %v4982_v30  ;;  %v4760_v54 = vperm.slane %v4756_v25, %v8416_v27  ;;  %v4777_v61 = vperm.slane %v4773_v38, %v8416_v27  ;;  %v1663_v50 = vadd.f32 %v1662_v7, %v1613_v40 }
 0x2a3   : > { %v4762_v17 = vsel %vm2241_vm10, %v4761_v39, %v2708_v46  ;;  %v4779_v49 = vsel %vm2241_vm10, %v4778_v33, %v2727_v42  ;;  %v2136_v3 = vrot.slane %v2104_v55, 4  ;;  %v1567_v44 = vadd.f32 %v1566_v57, %v1517_v37 }
 0x2a4   : > { %5047 = vst [vmem:[%s8575_s5 + $0x6c] sm:$0xf] %v4986_v23  ;;  %v4766_v45 = vperm.slane %v4762_v17, %v8416_v27  ;;  %v4783_v18 = vperm.slane %v4779_v49, %v8416_v27  ;;  %v2220_v28 = vshrl.u32 %v2104_v55, 16  ;;  %v2088_v22 = vmul.f32 0.088388346, %v1663_v50 }
 0x2a5   : > { %v2219_v8 = vpack.i.b16 %v2136_v3, %v2104_v55  ;;  %v2221_v24 = vshrl.u32 %v2136_v3, 16  ;;  %v6822_v40 = vor.u32 %v7207_v41, %v6821_v26  ;;  %v7014_v7 = vor.u32 %v7255_v48, %v7013_v60 }
 0x2a6   : > { %v4767_v52 = vrot.slane %v4766_v45, 4  ;;  %v4784_v62 = vrot.slane %v4783_v18, 4  ;;  %v2105_v32 = vpack.c.bf16 %v2088_v22, %v2087_v29  ;;  %v1665_v59 = vadd.f32 %v1664_v20, %v1615_v11 }
 0x2a7   : > { %v1676_v15 = vpop.f32.mrf.mxu0  ;;  %1969 = vmatmul.bf16.vlgmr.msra.gmra.mxu2 %v8207_v1  ;;  %v2222_v37 = vpack.i.b16 %v2221_v24, %v2220_v28  ;;  %v2734_v57 = vperm.slane %v2219_v8, %v8416_v27  ;;  %v2089_v6 = vmul.f32 0.088388346, %v1567_v44  ;;  %1870 = vmatpush.bf16.msra.mxu0 %v6822_v40 }
 0x2a8   : > { %v1725_v63 = vpop.f32.mrf.mxu1  ;;  %1919 = vmatpush.bf16.msra.mxu1 %v7014_v7  ;;  %v4768_v9 = vsel %vm2241_vm10, %v4767_v52, %v4760_v54  ;;  %v4785_v14 = vsel %vm2241_vm10, %v4784_v62, %v4777_v61  ;;  %v2137_v5 = vrot.slane %v2105_v32, 4  ;;  %v2226_v42 = vshrl.u32 %v2105_v32, 16 }
 0x2a9   : > { %v8962_v46 = vadd.f32 %v1725_v63, %v1676_v15  ;;  %2018 = vmatmul.bf16.vlgmr.msra.gmra.mxu3 %v8209_v35  ;;  %v4772_v25 = vperm.slane %v4768_v9, %v8424_v19  ;;  %v4789_v36 = vperm.slane %v4785_v14, %v8424_v19  ;;  %v2735_v30 = vrot.slane %v2734_v57, 4 }
 0x2aa   : > { %v2740_v34 = vperm.slane %v2734_v57, %v8424_v19  ;;  %v2753_v16 = vperm.slane %v2222_v37, %v8416_v27  ;;  %v2225_v29 = vpack.i.b16 %v2137_v5, %v2105_v32  ;;  %v2227_v39 = vshrl.u32 %v2137_v5, 16  ;;  %1871 = vmatmul.bf16.vlgmr.msra.gmra.mxu0 %v8207_v1  ;;  %v1774_v40 = vpop.f32.mrf.mxu2 }
 0x2ab   : > { %v2090_v38 = vmul.f32 0.088388346, %v1665_v59  ;;  %1920 = vmatmul.bf16.vlgmr.msra.gmra.mxu1 %v8209_v35  ;;  %v4990_v33 = vpack.i.b16 %v4789_v36, %v4772_v25  ;;  %v4992_v55 = vshrl.u32 %v4772_v25, 16  ;;  %v4993_v26 = vshrl.u32 %v4789_v36, 16 }
 0x2ac   : > { %v2736_v41 = vsel %vm2241_vm10, 0, %v2735_v30  ;;  %v2745_v54 = vrot.slane %v2740_v34, 4  ;;  %v2754_v61 = vrot.slane %v2753_v16, 4  ;;  %v2759_v50 = vperm.slane %v2753_v16, %v8424_v19  ;;  %v1823_v7 = vpop.f32.mrf.mxu3 }
 0x2ad   : > { %v2744_v23 = vperm.slane %v2736_v41, %v8424_v19  ;;  %v4994_v60 = vpack.i.b16 %v4993_v26, %v4992_v55  ;;  %5032 = vst [vmem:[%s8575_s5 + $0x30] sm:$0xf] %v4990_v33  ;;  %v2228_v48 = vpack.i.b16 %v2227_v39, %v2226_v42  ;;  %v2772_v17 = vperm.slane %v2225_v29, %v8416_v27 }
 0x2ae   : > { %v2106_v1 = vpack.c.bf16 %v2090_v38, %v2089_v6  ;;  %v2746_v35 = vsel %vm2241_vm10, 0, %v2745_v54  ;;  %v2755_v3 = vsel %vm2241_vm10, 0, %v2754_v61  ;;  %v2764_v44 = vrot.slane %v2759_v50, 4 }
 0x2af   : > { %v2747_v49 = vrot.slane %v2744_v23, 4  ;;  %5048 = vst [vmem:[%s8575_s5 + $0x70] sm:$0xf] %v4994_v60  ;;  %v2763_v11 = vperm.slane %v2755_v3, %v8424_v19  ;;  %v2773_v20 = vrot.slane %v2772_v17, 4  ;;  %v2778_v45 = vperm.slane %v2772_v17, %v8424_v19  ;;  %v1678_v42 = vpop.f32.mrf.mxu0 }
 0x2b0   : > { %v2791_v18 = vperm.slane %v2228_v48, %v8416_v27  ;;  %v2765_v22 = vsel %vm2241_vm10, 0, %v2764_v44  ;;  %v2138_v24 = vrot.slane %v2106_v1, 4  ;;  %v1727_v25 = vpop.f32.mrf.mxu1  ;;  %v2232_v33 = vshrl.u32 %v2106_v1, 16 }
 0x2b1   : > { %v2748_v28 = vsel %vm2241_vm10, 0, %v2747_v49  ;;  %v4790_v8 = vsel %vm2241_vm10, %v2747_v49, %v2740_v34  ;;  %v2766_v15 = vrot.slane %v2763_v11, 4  ;;  %v2774_v32 = vsel %vm2241_vm10, 0, %v2773_v20 }
 0x2b2   : > { %v4794_v52 = vperm.slane %v4790_v8, %v8416_v27  ;;  %v4795_v62 = vrot.slane %v2748_v28, 4  ;;  %v2782_v59 = vperm.slane %v2774_v32, %v8424_v19  ;;  %v2783_v63 = vrot.slane %v2778_v45, 4 }
 0x2b3   : > { %v2792_v37 = vrot.slane %v2791_v18, 4  ;;  %v2797_v57 = vperm.slane %v2791_v18, %v8424_v19  ;;  %v2767_v6 = vsel %vm2241_vm10, 0, %v2766_v15  ;;  %v4807_v14 = vsel %vm2241_vm10, %v2766_v15, %v2759_v50 }
 0x2b4   : > { %v4796_v9 = vsel %vm2241_vm10, %v4795_v62, %v2746_v35  ;;  %v2231_v5 = vpack.i.b16 %v2138_v24, %v2106_v1  ;;  %v4811_v30 = vperm.slane %v4807_v14, %v8416_v27  ;;  %v4812_v34 = vrot.slane %v2767_v6, 4  ;;  %v1825_v8 = vpop.f32.mrf.mxu3 }
 0x2b5   : > { %v4800_v36 = vperm.slane %v4796_v9, %v8416_v27  ;;  %v2784_v16 = vsel %vm2241_vm10, 0, %v2783_v63  ;;  %v2785_v29 = vrot.slane %v2782_v59, 4  ;;  %v2793_v39 = vsel %vm2241_vm10, 0, %v2792_v37 }
 0x2b6   : > { %v2802_v38 = vrot.slane %v2797_v57, 4  ;;  %v4813_v26 = vsel %vm2241_vm10, %v4812_v34, %v2765_v22  ;;  %v2801_v41 = vperm.slane %v2793_v39, %v8424_v19  ;;  %v2233_v23 = vshrl.u32 %v2138_v24, 16  ;;  %v1776_v22 = vpop.f32.mrf.mxu2 }
 0x2b7   : > { %v4801_v55 = vrot.slane %v4800_v36, 4  ;;  %1974 = vmatmul.bf16.gmra.mxu2 %v8305_v13  ;;  %v4817_v54 = vperm.slane %v4813_v26, %v8416_v27  ;;  %v2786_v61 = vsel %vm2241_vm10, 0, %v2785_v29  ;;  %v4824_v60 = vsel %vm2241_vm10, %v2785_v29, %v2778_v45 }
 0x2b8   : > { %v2803_v50 = vsel %vm2241_vm10, 0, %v2802_v38  ;;  %v2804_v17 = vrot.slane %v2801_v41, 4  ;;  %v4828_v1 = vperm.slane %v4824_v60, %v8416_v27  ;;  %v4829_v35 = vrot.slane %v2786_v61, 4  ;;  %v1730_v6 = vpop.f32.mrf.mxu1 }
 0x2b9   : > { %v4802_v48 = vsel %vm2241_vm10, %v4801_v55, %v4794_v52  ;;  %2023 = vmatmul.bf16.gmra.mxu3 %v8307_v58  ;;  %v4818_v3 = vrot.slane %v4817_v54, 4  ;;  %v2234_v44 = vpack.i.b16 %v2233_v23, %v2232_v33  ;;  %v2810_v11 = vperm.slane %v2231_v5, %v8416_v27 }
 0x2ba   : > { %v4806_v49 = vperm.slane %v4802_v48, %v8424_v19  ;;  %v2805_v20 = vsel %vm2241_vm10, 0, %v2804_v17  ;;  %v4830_v18 = vsel %vm2241_vm10, %v4829_v35, %v2784_v16  ;;  %v4841_v45 = vsel %vm2241_vm10, %v2804_v17, %v2797_v57  ;;  %1876 = vmatmul.bf16.gmra.mxu0 %v8305_v13  ;;  %v1681_v57 = vpop.f32.mrf.mxu0 }
 0x2bb   : > { %v1824_v28 = vadd.f32 %v1823_v7, %v1774_v40  ;;  %1925 = vmatmul.bf16.gmra.mxu1 %v8307_v58  ;;  %v4819_v24 = vsel %vm2241_vm10, %v4818_v3, %v4811_v30  ;;  %v4834_v52 = vperm.slane %v4830_v18, %v8416_v27  ;;  %v4845_v62 = vperm.slane %v4841_v45, %v8416_v27 }
 0x2bc   : > { %v5000_v15 = vshrl.u32 %v4806_v49, 16  ;;  %v4823_v32 = vperm.slane %v4819_v24, %v8424_v19  ;;  %v4846_v59 = vrot.slane %v2805_v20, 4  ;;  %v2811_v63 = vrot.slane %v2810_v11, 4 }
 0x2bd   : > { %v2816_v37 = vperm.slane %v2810_v11, %v8424_v19  ;;  %v4835_v40 = vrot.slane %v4834_v52, 4  ;;  %v2829_v7 = vperm.slane %v2234_v44, %v8416_v27  ;;  %v2844_v13 = vpack.c.bf16 %v1824_v28, %v8962_v46  ;;  %v1828_v11 = vpop.f32.mrf.mxu3 }
 0x2be   : > { %v1728_v58 = vadd.f32 %v1727_v25, %v1678_v42  ;;  %v4998_v9 = vpack.i.b16 %v4823_v32, %v4806_v49  ;;  %v5001_v14 = vshrl.u32 %v4823_v32, 16  ;;  %v4847_v5 = vsel %vm2241_vm10, %v4846_v59, %v2803_v50  ;;  %v1779_v44 = vpop.f32.mrf.mxu2 }
 0x2bf   : > { %v2812_v36 = vsel %vm2241_vm10, 0, %v2811_v63  ;;  %v4836_v30 = vsel %vm2241_vm10, %v4835_v40, %v4828_v1  ;;  %v4851_v34 = vperm.slane %v4847_v5, %v8416_v27  ;;  %v2821_v29 = vrot.slane %v2816_v37, 4 }
 0x2c0   : > { %v2820_v16 = vperm.slane %v2812_v36, %v8424_v19  ;;  %v5002_v39 = vpack.i.b16 %v5001_v14, %v5000_v15  ;;  %5033 = vst [vmem:[%s8575_s5 + $0x34] sm:$0xf] %v4998_v9  ;;  %v4840_v46 = vperm.slane %v4836_v30, %v8424_v19  ;;  %v2830_v42 = vrot.slane %v2829_v7, 4 }
 0x2c1   : > { %v2835_v25 = vperm.slane %v2829_v7, %v8424_v19  ;;  %v4852_v38 = vrot.slane %v4851_v34, 4  ;;  %v2822_v33 = vsel %vm2241_vm10, 0, %v2821_v29  ;;  %v2876_v26 = vrot.slane %v2844_v13, 4  ;;  %v1732_v7 = vpop.f32.mrf.mxu1 }
 0x2c2   : > { %v2823_v55 = vrot.slane %v2820_v16, 4  ;;  %5049 = vst [vmem:[%s8575_s5 + $0x74] sm:$0xf] %v5002_v39  ;;  %v5008_v41 = vshrl.u32 %v4840_v46, 16  ;;  %v2831_v23 = vsel %vm2241_vm10, 0, %v2830_v42  ;;  %v2895_v61 = vshrl.u32 %v2844_v13, 16  ;;  %v1683_v40 = vpop.f32.mrf.mxu0 }
 0x2c3   : > { %v2840_v54 = vrot.slane %v2835_v25, 4  ;;  %v4853_v50 = vsel %vm2241_vm10, %v4852_v38, %v4845_v62  ;;  %v2839_v48 = vperm.slane %v2831_v23, %v8424_v19  ;;  %v2894_v18 = vpack.i.b16 %v2876_v26, %v2844_v13 }
 0x2c4   : > { %v2824_v60 = vsel %vm2241_vm10, 0, %v2823_v55  ;;  %v4858_v17 = vsel %vm2241_vm10, %v2823_v55, %v2816_v37  ;;  %v4857_v1 = vperm.slane %v4853_v50, %v8424_v19  ;;  %v2896_v45 = vshrl.u32 %v2876_v26, 16 }
 0x2c5   : > { %v2841_v35 = vsel %vm2241_vm10, 0, %v2840_v54  ;;  %v4862_v49 = vperm.slane %v4858_v17, %v8416_v27  ;;  %v4863_v3 = vrot.slane %v2824_v60, 4  ;;  %v2842_v20 = vrot.slane %v2839_v48, 4 }
 0x2c6   : > { %v1826_v28 = vadd.f32 %v1825_v8, %v1776_v22  ;;  %v5006_v24 = vpack.i.b16 %v4857_v1, %v4840_v46  ;;  %v5009_v15 = vshrl.u32 %v4857_v1, 16  ;;  %v1731_v62 = vadd.f32 %v1730_v6, %v1681_v57  ;;  %v1781_v60 = vpop.f32.mrf.mxu2 }
 0x2c7   : > { %v4864_v52 = vsel %vm2241_vm10, %v4863_v3, %v2822_v33  ;;  %1979 = vmatmul.bf16.gmra.mxu2 %v8343_v43  ;;  %v2843_v32 = vsel %vm2241_vm10, 0, %v2842_v20  ;;  %v4875_v63 = vsel %vm2241_vm10, %v2842_v20, %v2835_v25  ;;  %v2897_v37 = vpack.i.b16 %v2896_v45, %v2895_v61 }
 0x2c8   : > { %v4868_v59 = vperm.slane %v4864_v52, %v8416_v27  ;;  %v5010_v13 = vpack.i.b16 %v5009_v15, %v5008_v41  ;;  %5034 = vst [vmem:[%s8575_s5 + $0x38] sm:$0xf] %v5006_v24  ;;  %v4879_v22 = vperm.slane %v4875_v63, %v8416_v27  ;;  %v4880_v8 = vrot.slane %v2843_v32, 4 }
 0x2c9   : > { %v2992_v9 = vperm.slane %v2894_v18, %v8416_v27  ;;  %2028 = vmatmul.bf16.gmra.mxu3 %v8347_v12  ;;  %v3011_v6 = vperm.slane %v2897_v37, %v8416_v27  ;;  %v2845_v14 = vpack.c.bf16 %v1826_v28, %v1728_v58  ;;  %v1829_v5 = vadd.f32 %v1828_v11, %v1779_v44 }
 0x2ca   : > { %v4869_v57 = vrot.slane %v4868_v59, 4  ;;  %5050 = vst [vmem:[%s8575_s5 + $0x78] sm:$0xf] %v5010_v13  ;;  %v4881_v36 = vsel %vm2241_vm10, %v4880_v8, %v2841_v35  ;;  %v9053_v16 = vadd.f32 %v1732_v7, %v1683_v40  ;;  %1881 = vmatmul.bf16.gmra.mxu0 %v8343_v43 }
 0x2cb   : > { %v2993_v30 = vrot.slane %v2992_v9, 4  ;;  %v2998_v34 = vperm.slane %v2992_v9, %v8424_v19  ;;  %v4885_v39 = vperm.slane %v4881_v36, %v8416_v27  ;;  %v3012_v46 = vrot.slane %v3011_v6, 4  ;;  %1930 = vmatmul.bf16.gmra.mxu1 %v8347_v12  ;;  %v1830_v12 = vpop.f32.mrf.mxu3 }
 0x2cc   : > { %v4870_v29 = vsel %vm2241_vm10, %v4869_v57, %v4862_v49  ;;  %v3017_v42 = vperm.slane %v3011_v6, %v8424_v19  ;;  %v2877_v33 = vrot.slane %v2845_v14, 4  ;;  %v2901_v35 = vshrl.u32 %v2845_v14, 16 }
 0x2cd   : > { %v4874_v58 = vperm.slane %v4870_v29, %v8424_v19  ;;  %v2994_v25 = vsel %vm2241_vm10, 0, %v2993_v30  ;;  %v3003_v38 = vrot.slane %v2998_v34, 4  ;;  %v4886_v55 = vrot.slane %v4885_v39, 4 }
 0x2ce   : > { %v3002_v26 = vperm.slane %v2994_v25, %v8424_v19  ;;  %v3013_v43 = vsel %vm2241_vm10, 0, %v3012_v46  ;;  %v3022_v41 = vrot.slane %v3017_v42, 4  ;;  %v2900_v50 = vpack.i.b16 %v2877_v33, %v2845_v14 }
 0x2cf   : > { %v5016_v23 = vshrl.u32 %v4874_v58, 16  ;;  %v3004_v54 = vsel %vm2241_vm10, 0, %v3003_v38  ;;  %v3021_v61 = vperm.slane %v3013_v43, %v8424_v19  ;;  %v4887_v48 = vsel %vm2241_vm10, %v4886_v55, %v4879_v22 }
 0x2d0   : > { %v3005_v17 = vrot.slane %v3002_v26, 4  ;;  %v3023_v1 = vsel %vm2241_vm10, 0, %v3022_v41  ;;  %v4891_v49 = vperm.slane %v4887_v48, %v8424_v19  ;;  %v2902_v44 = vshrl.u32 %v2877_v33, 16 }
 0x2d1   : > { %v3024_v3 = vrot.slane %v3021_v61, 4  ;;  %v3030_v11 = vperm.slane %v2900_v50, %v8416_v27  ;;  %v2846_v45 = vpack.c.bf16 %v1829_v5, %v1731_v62  ;;  %v9072_v28 = vadd.f32 %v1830_v12, %v1781_v60 }
 0x2d2   : > { %v3006_v20 = vsel %vm2241_vm10, 0, %v3005_v17  ;;  %v5052_v18 = vsel %vm2241_vm10, %v3005_v17, %v2998_v34  ;;  %v5014_v24 = vpack.i.b16 %v4891_v49, %v4874_v58  ;;  %v5017_v15 = vshrl.u32 %v4891_v49, 16  ;;  %v1686_v17 = vpop.f32.mrf.mxu0 }
 0x2d3   : > { %v3025_v52 = vsel %vm2241_vm10, 0, %v3024_v3  ;;  %v5056_v32 = vperm.slane %v5052_v18, %v8416_v27  ;;  %v5057_v59 = vrot.slane %v3006_v20, 4  ;;  %v5069_v63 = vsel %vm2241_vm10, %v3024_v3, %v3017_v42 }
 0x2d4   : > { %v5074_v37 = vrot.slane %v3025_v52, 4  ;;  %v2903_v40 = vpack.i.b16 %v2902_v44, %v2901_v35  ;;  %v5018_v7 = vpack.i.b16 %v5017_v15, %v5016_v23  ;;  %5035 = vst [vmem:[%s8575_s5 + $0x3c] sm:$0xf] %v5014_v24  ;;  %v5073_v13 = vperm.slane %v5069_v63, %v8416_v27 }
 0x2d5   : > { %v3031_v22 = vrot.slane %v3030_v11, 4  ;;  %v3036_v62 = vperm.slane %v3030_v11, %v8424_v19  ;;  %v5058_v8 = vsel %vm2241_vm10, %v5057_v59, %v3004_v54  ;;  %v2878_v6 = vrot.slane %v2846_v45, 4 }
 0x2d6   : > { %v5075_v9 = vsel %vm2241_vm10, %v5074_v37, %v3023_v1  ;;  %v3049_v57 = vperm.slane %v2903_v40, %v8416_v27  ;;  %5051 = vst [vmem:[%s8575_s5 + $0x7c] sm:$0xf] %v5018_v7  ;;  %v5062_v14 = vperm.slane %v5058_v8, %v8416_v27  ;;  %v2907_v38 = vshrl.u32 %v2846_v45, 16  ;;  %v1735_v1 = vpop.f32.mrf.mxu1 }
 0x2d7   : > { %v5079_v5 = vperm.slane %v5075_v9, %v8416_v27  ;;  %v3032_v36 = vsel %vm2241_vm10, 0, %v3031_v22  ;;  %v3041_v30 = vrot.slane %v3036_v62, 4  ;;  %1984 = vmatmul.bf16.gmra.mxu2 %v8367_v0  ;;  %v2906_v46 = vpack.i.b16 %v2878_v6, %v2846_v45 }
 0x2d8   : > { %v3040_v34 = vperm.slane %v3032_v36, %v8424_v19  ;;  %v3050_v29 = vrot.slane %v3049_v57, 4  ;;  %v3055_v39 = vperm.slane %v3049_v57, %v8424_v19  ;;  %v5063_v42 = vrot.slane %v5062_v14, 4 }
 0x2d9   : > { %v5080_v58 = vrot.slane %v5079_v5, 4  ;;  %v3042_v25 = vsel %vm2241_vm10, 0, %v3041_v30  ;;  %2033 = vmatmul.bf16.gmra.mxu3 %v8369_v31  ;;  %v2908_v43 = vshrl.u32 %v2878_v6, 16  ;;  %v3068_v61 = vperm.slane %v2906_v46, %v8416_v27 }
 0x2da   : > { %v3043_v33 = vrot.slane %v3040_v34, 4  ;;  %v3051_v55 = vsel %vm2241_vm10, 0, %v3050_v29  ;;  %v3060_v26 = vrot.slane %v3055_v39, 4  ;;  %v5064_v41 = vsel %vm2241_vm10, %v5063_v42, %v5056_v32  ;;  %1886 = vmatmul.bf16.gmra.mxu0 %v8367_v0  ;;  %v1784_v42 = vpop.f32.mrf.mxu2 }
 0x2db   : > { %v5081_v23 = vsel %vm2241_vm10, %v5080_v58, %v5073_v13  ;;  %v3059_v54 = vperm.slane %v3051_v55, %v8424_v19  ;;  %v5068_v50 = vperm.slane %v5064_v41, %v8424_v19  ;;  %1935 = vmatmul.bf16.gmra.mxu1 %v8369_v31  ;;  %v2909_v44 = vpack.i.b16 %v2908_v43, %v2907_v38  ;;  %v1833_v58 = vpop.f32.mrf.mxu3 }
 0x2dc   : > { %v5085_v60 = vperm.slane %v5081_v23, %v8424_v19  ;;  %v3044_v12 = vsel %vm2241_vm10, 0, %v3043_v33  ;;  %v3061_v48 = vsel %vm2241_vm10, 0, %v3060_v26  ;;  %v5086_v49 = vsel %vm2241_vm10, %v3043_v33, %v3036_v62  ;;  %v1688_v26 = vpop.f32.mrf.mxu0 }
 0x2dd   : > { %v3062_v35 = vrot.slane %v3059_v54, 4  ;;  %v5091_v3 = vrot.slane %v3044_v12, 4  ;;  %v5600_v0 = vshrl.u32 %v5068_v50, 16  ;;  %v5090_v18 = vperm.slane %v5086_v49, %v8416_v27 }
 0x2de   : > { %v5598_v11 = vpack.i.b16 %v5085_v60, %v5068_v50  ;;  %v5601_v20 = vshrl.u32 %v5085_v60, 16  ;;  %v3069_v52 = vrot.slane %v3068_v61, 4  ;;  %v3074_v40 = vperm.slane %v3068_v61, %v8424_v19  ;;  %v1737_v43 = vpop.f32.mrf.mxu1 }
 0x2df   : > { %v3063_v45 = vsel %vm2241_vm10, 0, %v3062_v35  ;;  %v5092_v24 = vsel %vm2241_vm10, %v5091_v3, %v3042_v25  ;;  %v5103_v15 = vsel %vm2241_vm10, %v3062_v35, %v3055_v39  ;;  %v3087_v7 = vperm.slane %v2909_v44, %v8416_v27 }
 0x2e0   : > { %v5602_v32 = vpack.i.b16 %v5601_v20, %v5600_v0  ;;  %5724 = vst [vmem:[%s9109_s6] sm:$0xf] %v5598_v11  ;;  %v5096_v31 = vperm.slane %v5092_v24, %v8416_v27  ;;  %v5107_v59 = vperm.slane %v5103_v15, %v8416_v27  ;;  %v5108_v63 = vrot.slane %v3063_v45, 4 }
 0x2e1   : > { %v3070_v37 = vsel %vm2241_vm10, 0, %v3069_v52  ;;  %v2847_v13 = vpack.c.bf16 %v9072_v28, %v9053_v16  ;;  %v1736_v9 = vadd.f32 %v1735_v1, %v1686_v17  ;;  %v3079_v6 = vrot.slane %v3074_v40, 4 }
 0x2e2   : > { %5740 = vst [vmem:[%s9109_s6 + $0x40] sm:$0xf] %v5602_v32  ;;  %v5097_v22 = vrot.slane %v5096_v31, 4  ;;  %v5109_v62 = vsel %vm2241_vm10, %v5108_v63, %v3061_v48  ;;  %v3078_v8 = vperm.slane %v3070_v37, %v8424_v19  ;;  %v3088_v14 = vrot.slane %v3087_v7, 4 }
 0x2e3   : > { %v5113_v57 = vperm.slane %v5109_v62, %v8416_v27  ;;  %v3093_v5 = vperm.slane %v3087_v7, %v8424_v19  ;;  %v2879_v34 = vrot.slane %v2847_v13, 4  ;;  %v2913_v29 = vshrl.u32 %v2847_v13, 16 }
 0x2e4   : > { %v5098_v36 = vsel %vm2241_vm10, %v5097_v22, %v5090_v18  ;;  %v3081_v30 = vrot.slane %v3078_v8, 4  ;;  %v3080_v39 = vsel %vm2241_vm10, 0, %v3079_v6  ;;  %v3089_v46 = vsel %vm2241_vm10, 0, %v3088_v14  ;;  %v1835_v6 = vpop.f32.mrf.mxu3 }
 0x2e5   : > { %v5102_v16 = vperm.slane %v5098_v36, %v8424_v19  ;;  %v5114_v28 = vrot.slane %v5113_v57, 4  ;;  %v3097_v38 = vperm.slane %v3089_v46, %v8424_v19  ;;  %v3098_v33 = vrot.slane %v3093_v5, 4  ;;  %v1786_v57 = vpop.f32.mrf.mxu2 }
 0x2e6   : > { %v3082_v25 = vsel %vm2241_vm10, 0, %v3081_v30  ;;  %v5120_v55 = vsel %vm2241_vm10, %v3081_v30, %v3074_v40  ;;  %v2912_v48 = vpack.i.b16 %v2879_v34, %v2847_v13  ;;  %v2914_v1 = vshrl.u32 %v2879_v34, 16 }
 0x2e7   : > { %v5115_v41 = vsel %vm2241_vm10, %v5114_v28, %v5107_v59  ;;  %v5608_v23 = vshrl.u32 %v5102_v16, 16  ;;  %v5124_v54 = vperm.slane %v5120_v55, %v8416_v27  ;;  %v5125_v61 = vrot.slane %v3082_v25, 4  ;;  %1989 = vmatmul.bf16.gmra.mxu2 %v8390_v10 }
 0x2e8   : > { %v5119_v50 = vperm.slane %v5115_v41, %v8424_v19  ;;  %v3099_v60 = vsel %vm2241_vm10, 0, %v3098_v33  ;;  %v3100_v12 = vrot.slane %v3097_v38, 4  ;;  %v1834_v35 = vadd.f32 %v1833_v58, %v1784_v42 }
 0x2e9   : > { %v5126_v17 = vsel %vm2241_vm10, %v5125_v61, %v3080_v39  ;;  %v9137_v49 = vadd.f32 %v1737_v43, %v1688_v26  ;;  %2038 = vmatmul.bf16.gmra.mxu3 %v8392_v53  ;;  %v2915_v45 = vpack.i.b16 %v2914_v1, %v2913_v29  ;;  %v3106_v24 = vperm.slane %v2912_v48, %v8416_v27 }
 0x2ea   : > { %v5606_v3 = vpack.i.b16 %v5119_v50, %v5102_v16  ;;  %v5609_v44 = vshrl.u32 %v5119_v50, 16  ;;  %v3101_v11 = vsel %vm2241_vm10, 0, %v3100_v12  ;;  %v5130_v0 = vperm.slane %v5126_v17, %v8416_v27  ;;  %1891 = vmatmul.bf16.gmra.mxu0 %v8390_v10 }
 0x2eb   : > { %v5137_v20 = vsel %vm2241_vm10, %v3100_v12, %v3093_v5  ;;  %v5142_v18 = vrot.slane %v3101_v11, 4  ;;  %v2848_v31 = vpack.c.bf16 %v1834_v35, %v1736_v9  ;;  %1940 = vmatmul.bf16.gmra.mxu1 %v8392_v53  ;;  %v3107_v63 = vrot.slane %v3106_v24, 4  ;;  %v1691_v35 = vpop.f32.mrf.mxu0 }
 0x2ec   : > { %v5610_v15 = vpack.i.b16 %v5609_v44, %v5608_v23  ;;  %5725 = vst [vmem:[%s9109_s6 + $0x4] sm:$0xf] %v5606_v3  ;;  %v5131_v52 = vrot.slane %v5130_v0, 4  ;;  %v5141_v32 = vperm.slane %v5137_v20, %v8416_v27  ;;  %v3112_v37 = vperm.slane %v3106_v24, %v8424_v19  ;;  %v1740_v3 = vpop.f32.mrf.mxu1 }
 0x2ed   : > { %v5143_v59 = vsel %vm2241_vm10, %v5142_v18, %v3099_v60  ;;  %v3125_v40 = vperm.slane %v2915_v45, %v8416_v27  ;;  %v2880_v13 = vrot.slane %v2848_v31, 4  ;;  %v2919_v22 = vshrl.u32 %v2848_v31, 16 }
 0x2ee   : > { %5741 = vst [vmem:[%s9109_s6 + $0x44] sm:$0xf] %v5610_v15  ;;  %v5132_v7 = vsel %vm2241_vm10, %v5131_v52, %v5124_v54  ;;  %v5147_v10 = vperm.slane %v5143_v59, %v8416_v27  ;;  %v3108_v8 = vsel %vm2241_vm10, 0, %v3107_v63  ;;  %v3117_v9 = vrot.slane %v3112_v37, 4  ;;  %v1789_v63 = vpop.f32.mrf.mxu2 }
 0x2ef   : > { %v5136_v62 = vperm.slane %v5132_v7, %v8424_v19  ;;  %v3126_v53 = vrot.slane %v3125_v40, 4  ;;  %v3116_v5 = vperm.slane %v3108_v8, %v8424_v19  ;;  %v3131_v36 = vperm.slane %v3125_v40, %v8424_v19 }
 0x2f0   : > { %v5148_v14 = vrot.slane %v5147_v10, 4  ;;  %v2918_v30 = vpack.i.b16 %v2880_v13, %v2848_v31  ;;  %v3118_v29 = vsel %vm2241_vm10, 0, %v3117_v9  ;;  %v2920_v28 = vshrl.u32 %v2880_v13, 16 }
 0x2f1   : > { %v5616_v34 = vshrl.u32 %v5136_v62, 16  ;;  %v3127_v16 = vsel %vm2241_vm10, 0, %v3126_v53  ;;  %v3119_v46 = vrot.slane %v3116_v5, 4  ;;  %v3136_v58 = vrot.slane %v3131_v36, 4 }
 0x2f2   : > { %v5149_v39 = vsel %vm2241_vm10, %v5148_v14, %v5141_v32  ;;  %v3135_v42 = vperm.slane %v3127_v16, %v8424_v19  ;;  %v2921_v38 = vpack.i.b16 %v2920_v28, %v2919_v22  ;;  %v3144_v33 = vperm.slane %v2918_v30, %v8416_v27 }
 0x2f3   : > { %v5153_v25 = vperm.slane %v5149_v39, %v8424_v19  ;;  %v1836_v55 = vadd.f32 %v1835_v6, %v1786_v57  ;;  %v3120_v26 = vsel %vm2241_vm10, 0, %v3119_v46  ;;  %v3137_v43 = vsel %vm2241_vm10, 0, %v3136_v58 }
 0x2f4   : > { %v3138_v41 = vrot.slane %v3135_v42, 4  ;;  %v5154_v23 = vsel %vm2241_vm10, %v3119_v46, %v3112_v37  ;;  %v5159_v60 = vrot.slane %v3120_v26, 4  ;;  %v3145_v17 = vrot.slane %v3144_v33, 4  ;;  %v1838_v37 = vpop.f32.mrf.mxu3 }
 0x2f5   : > { %v5614_v54 = vpack.i.b16 %v5153_v25, %v5136_v62  ;;  %v5617_v61 = vshrl.u32 %v5153_v25, 16  ;;  %v5158_v50 = vperm.slane %v5154_v23, %v8416_v27  ;;  %v3150_v1 = vperm.slane %v3144_v33, %v8424_v19  ;;  %v1742_v23 = vpop.f32.mrf.mxu1 }
 0x2f6   : > { %v3139_v12 = vsel %vm2241_vm10, 0, %v3138_v41  ;;  %v5171_v48 = vsel %vm2241_vm10, %v3138_v41, %v3131_v36  ;;  %v5160_v11 = vsel %vm2241_vm10, %v5159_v60, %v3118_v29  ;;  %v3146_v45 = vsel %vm2241_vm10, 0, %v3145_v17  ;;  %v1693_v41 = vpop.f32.mrf.mxu0 }
 0x2f7   : > { %v5618_v44 = vpack.i.b16 %v5617_v61, %v5616_v34  ;;  %5726 = vst [vmem:[%s9109_s6 + $0x8] sm:$0xf] %v5614_v54  ;;  %v5175_v0 = vperm.slane %v5171_v48, %v8416_v27  ;;  %v5176_v20 = vrot.slane %v3139_v12, 4  ;;  %1994 = vmatmul.bf16.gmra.mxu2 %v8484_v21  ;;  %v5164_v18 = vperm.slane %v5160_v11, %v8416_v27 }
 0x2f8   : > { %v3155_v24 = vrot.slane %v3150_v1, 4  ;;  %v3163_v15 = vperm.slane %v2921_v38, %v8416_v27  ;;  %v3154_v32 = vperm.slane %v3146_v45, %v8424_v19  ;;  %v2849_v31 = vpack.c.bf16 %v1836_v55, %v9137_v49 }
 0x2f9   : > { %5742 = vst [vmem:[%s9109_s6 + $0x48] sm:$0xf] %v5618_v44  ;;  %v5177_v52 = vsel %vm2241_vm10, %v5176_v20, %v3137_v43  ;;  %v1741_v59 = vadd.f32 %v1740_v3, %v1691_v35  ;;  %v5165_v40 = vrot.slane %v5164_v18, 4  ;;  %2043 = vmatmul.bf16.gmra.mxu3 %v8486_v4  ;;  %v1839_v6 = vadd.f32 %v1838_v37, %v1789_v63  ;;  %v1791_v35 = vpop.f32.mrf.mxu2 }
 0x2fa   : > { %v5181_v7 = vperm.slane %v5177_v52, %v8416_v27  ;;  %v3156_v10 = vsel %vm2241_vm10, 0, %v3155_v24  ;;  %v3164_v13 = vrot.slane %v3163_v15, 4  ;;  %v3157_v22 = vrot.slane %v3154_v32, 4  ;;  %1896 = vmatmul.bf16.gmra.mxu0 %v8484_v21 }
 0x2fb   : > { %v3169_v62 = vperm.slane %v3163_v15, %v8424_v19  ;;  %v2881_v8 = vrot.slane %v2849_v31, 4  ;;  %v2925_v9 = vshrl.u32 %v2849_v31, 16  ;;  %v5166_v49 = vsel %vm2241_vm10, %v5165_v40, %v5158_v50  ;;  %1945 = vmatmul.bf16.gmra.mxu1 %v8486_v4 }
 0x2fc   : > { %v5182_v53 = vrot.slane %v5181_v7, 4  ;;  %v3165_v57 = vsel %vm2241_vm10, 0, %v3164_v13  ;;  %v5170_v14 = vperm.slane %v5166_v49, %v8424_v19  ;;  %v3158_v5 = vsel %vm2241_vm10, 0, %v3157_v22  ;;  %v1840_v3 = vpop.f32.mrf.mxu3 }
 0x2fd   : > { %v3173_v36 = vperm.slane %v3165_v57, %v8424_v19  ;;  %v3174_v30 = vrot.slane %v3169_v62, 4  ;;  %v5188_v29 = vsel %vm2241_vm10, %v3157_v22, %v3150_v1  ;;  %v5193_v21 = vrot.slane %v3158_v5, 4 }
 0x2fe   : > { %v5183_v34 = vsel %vm2241_vm10, %v5182_v53, %v5175_v0  ;;  %v2924_v16 = vpack.i.b16 %v2881_v8, %v2849_v31  ;;  %v5624_v39 = vshrl.u32 %v5170_v14, 16  ;;  %v5192_v4 = vperm.slane %v5188_v29, %v8416_v27 }
 0x2ff   : > { %v5187_v28 = vperm.slane %v5183_v34, %v8424_v19  ;;  %v3175_v46 = vsel %vm2241_vm10, 0, %v3174_v30  ;;  %v3176_v42 = vrot.slane %v3173_v36, 4  ;;  %v5194_v58 = vsel %vm2241_vm10, %v5193_v21, %v3156_v10  ;;  %v1696_v21 = vpop.f32.mrf.mxu0 }
 0x300   : > { %v2926_v25 = vshrl.u32 %v2881_v8, 16  ;;  %v3182_v38 = vperm.slane %v2924_v16, %v8416_v27  ;;  %v5198_v43 = vperm.slane %v5194_v58, %v8416_v27  ;;  %v2850_v20 = vpack.c.bf16 %v1839_v6, %v1741_v59  ;;  %v1745_v16 = vpop.f32.mrf.mxu1 }
 0x301   : > { %v5622_v33 = vpack.i.b16 %v5187_v28, %v5170_v14  ;;  %v5625_v55 = vshrl.u32 %v5187_v28, 16  ;;  %v3177_v26 = vsel %vm2241_vm10, 0, %v3176_v42  ;;  %v5205_v54 = vsel %vm2241_vm10, %v3176_v42, %v3169_v62 }
 0x302   : > { %v5210_v61 = vrot.slane %v3177_v26, 4  ;;  %v2927_v50 = vpack.i.b16 %v2926_v25, %v2925_v9  ;;  %v3183_v60 = vrot.slane %v3182_v38, 4  ;;  %v5199_v48 = vrot.slane %v5198_v43, 4 }
 0x303   : > { %v5626_v12 = vpack.i.b16 %v5625_v55, %v5624_v39  ;;  %5727 = vst [vmem:[%s9109_s6 + $0xc] sm:$0xf] %v5622_v33  ;;  %v5209_v17 = vperm.slane %v5205_v54, %v8416_v27  ;;  %v3188_v1 = vperm.slane %v3182_v38, %v8424_v19  ;;  %v2882_v63 = vrot.slane %v2850_v20, 4  ;;  %v1794_v33 = vpop.f32.mrf.mxu2 }
 0x304   : > { %v5211_v44 = vsel %vm2241_vm10, %v5210_v61, %v3175_v46  ;;  %v3184_v11 = vsel %vm2241_vm10, 0, %v3183_v60  ;;  %v3201_v0 = vperm.slane %v2927_v50, %v8416_v27  ;;  %v5200_v18 = vsel %vm2241_vm10, %v5199_v48, %v5192_v4  ;;  %v1843_v55 = vpop.f32.mrf.mxu3 }
 0x305   : > { %5743 = vst [vmem:[%s9109_s6 + $0x4c] sm:$0xf] %v5626_v12  ;;  %v5215_v45 = vperm.slane %v5211_v44, %v8416_v27  ;;  %v3192_v24 = vperm.slane %v3184_v11, %v8424_v19  ;;  %v3193_v15 = vrot.slane %v3188_v1, 4  ;;  %v5204_v52 = vperm.slane %v5200_v18, %v8424_v19 }
 0x306   : > { %v3202_v32 = vrot.slane %v3201_v0, 4  ;;  %v3207_v31 = vperm.slane %v3201_v0, %v8424_v19  ;;  %v2931_v10 = vshrl.u32 %v2850_v20, 16  ;;  %v2930_v62 = vpack.i.b16 %v2882_v63, %v2850_v20 }
 0x307   : > { %v5216_v37 = vrot.slane %v5215_v45, 4  ;;  %v3194_v40 = vsel %vm2241_vm10, 0, %v3193_v15  ;;  %v3195_v7 = vrot.slane %v3192_v24, 4  ;;  %1999 = vmatmul.bf16.gmra.mxu2 %v8511_v2  ;;  %v5632_v59 = vshrl.u32 %v5204_v52, 16 }
 0x308   : > { %v3203_v13 = vsel %vm2241_vm10, 0, %v3202_v32  ;;  %v3212_v22 = vrot.slane %v3207_v31, 4  ;;  %v2932_v30 = vshrl.u32 %v2882_v63, 16  ;;  %v3220_v34 = vperm.slane %v2930_v62, %v8416_v27 }
 0x309   : > { %v5217_v8 = vsel %vm2241_vm10, %v5216_v37, %v5209_v17  ;;  %v3196_v9 = vsel %vm2241_vm10, 0, %v3195_v7  ;;  %v3211_v49 = vperm.slane %v3203_v13, %v8424_v19  ;;  %v5222_v53 = vsel %vm2241_vm10, %v3195_v7, %v3188_v1  ;;  %2048 = vmatmul.bf16.gmra.mxu3 %v8513_v51  ;;  %v1747_v13 = vpop.f32.mrf.mxu1 }
 0x30a   : > { %v5221_v57 = vperm.slane %v5217_v8, %v8424_v19  ;;  %v3213_v6 = vsel %vm2241_vm10, 0, %v3212_v22  ;;  %v5226_v14 = vperm.slane %v5222_v53, %v8416_v27  ;;  %v5227_v5 = vrot.slane %v3196_v9, 4  ;;  %1901 = vmatmul.bf16.gmra.mxu0 %v8511_v2 }
 0x30b   : > { %v3214_v36 = vrot.slane %v3211_v49, 4  ;;  %v1743_v29 = vadd.f32 %v1742_v23, %v1693_v41  ;;  %v1841_v42 = vadd.f32 %v1840_v3, %v1791_v35  ;;  %1950 = vmatmul.bf16.gmra.mxu1 %v8513_v51  ;;  %v2933_v38 = vpack.i.b16 %v2932_v30, %v2931_v10 }
 0x30c   : > { %v5630_v28 = vpack.i.b16 %v5221_v57, %v5204_v52  ;;  %v5633_v39 = vshrl.u32 %v5221_v57, 16  ;;  %v5228_v46 = vsel %vm2241_vm10, %v5227_v5, %v3194_v40  ;;  %v3221_v41 = vrot.slane %v3220_v34, 4 }
 0x30d   : > { %v3215_v4 = vsel %vm2241_vm10, 0, %v3214_v36  ;;  %v5232_v58 = vperm.slane %v5228_v46, %v8416_v27  ;;  %v5239_v25 = vsel %vm2241_vm10, %v3214_v36, %v3207_v31  ;;  %v3226_v54 = vperm.slane %v3220_v34, %v8424_v19 }
 0x30e   : > { %v5634_v26 = vpack.i.b16 %v5633_v39, %v5632_v59  ;;  %5728 = vst [vmem:[%s9109_s6 + $0x10] sm:$0xf] %v5630_v28  ;;  %v5243_v2 = vperm.slane %v5239_v25, %v8416_v27  ;;  %v5244_v43 = vrot.slane %v3215_v4, 4  ;;  %v3239_v51 = vperm.slane %v2933_v38, %v8416_v27  ;;  %v1698_v59 = vpop.f32.mrf.mxu0  ;;  %v1796_v28 = vpop.f32.mrf.mxu2 }
 0x30f   : > { %v5233_v23 = vrot.slane %v5232_v58, 4  ;;  %v2851_v61 = vpack.c.bf16 %v1841_v42, %v1743_v29  ;;  %v3222_v60 = vsel %vm2241_vm10, 0, %v3221_v41  ;;  %v1746_v12 = vadd.f32 %v1745_v16, %v1696_v21  ;;  %v1845_v39 = vpop.f32.mrf.mxu3 }
 0x310   : > { %5744 = vst [vmem:[%s9109_s6 + $0x50] sm:$0xf] %v5634_v26  ;;  %v5245_v50 = vsel %vm2241_vm10, %v5244_v43, %v3213_v6  ;;  %v1844_v48 = vadd.f32 %v1843_v55, %v1794_v33  ;;  %v3230_v35 = vperm.slane %v3222_v60, %v8424_v19  ;;  %v3231_v3 = vrot.slane %v3226_v54, 4 }
 0x311   : > { %v5234_v17 = vsel %vm2241_vm10, %v5233_v23, %v5226_v14  ;;  %v5249_v1 = vperm.slane %v5245_v50, %v8416_v27  ;;  %v3240_v11 = vrot.slane %v3239_v51, 4  ;;  %v3245_v0 = vperm.slane %v3239_v51, %v8424_v19 }
 0x312   : > { %v5238_v44 = vperm.slane %v5234_v17, %v8424_v19  ;;  %v2883_v20 = vrot.slane %v2851_v61, 4  ;;  %v3232_v45 = vsel %vm2241_vm10, 0, %v3231_v3  ;;  %v3233_v24 = vrot.slane %v3230_v35, 4 }
 0x313   : > { %v5250_v18 = vrot.slane %v5249_v1, 4  ;;  %v2937_v15 = vshrl.u32 %v2851_v61, 16  ;;  %v3241_v32 = vsel %vm2241_vm10, 0, %v3240_v11  ;;  %v3250_v31 = vrot.slane %v3245_v0, 4 }
 0x314   : > { %v5640_v52 = vshrl.u32 %v5238_v44, 16  ;;  %v2936_v63 = vpack.i.b16 %v2883_v20, %v2851_v61  ;;  %v3234_v40 = vsel %vm2241_vm10, 0, %v3233_v24  ;;  %v3249_v7 = vperm.slane %v3241_v32, %v8424_v19 }
 0x315   : > { %v5251_v37 = vsel %vm2241_vm10, %v5250_v18, %v5243_v2  ;;  %v5256_v10 = vsel %vm2241_vm10, %v3233_v24, %v3226_v54  ;;  %v3251_v62 = vsel %vm2241_vm10, 0, %v3250_v31  ;;  %v5261_v9 = vrot.slane %v3234_v40, 4 }
 0x316   : > { %v5255_v22 = vperm.slane %v5251_v37, %v8424_v19  ;;  %v5260_v8 = vperm.slane %v5256_v10, %v8416_v27  ;;  %v3252_v49 = vrot.slane %v3249_v7, 4  ;;  %v2938_v53 = vshrl.u32 %v2883_v20, 16  ;;  %v1701_v31 = vpop.f32.mrf.mxu0 }
 0x317   : > { %v3258_v57 = vperm.slane %v2936_v63, %v8416_v27  ;;  %v2852_v6 = vpack.c.bf16 %v1844_v48, %v1746_v12  ;;  %2004 = vmatmul.bf16.gmra.mxu2 %v8536_v56  ;;  %v5262_v36 = vsel %vm2241_vm10, %v5261_v9, %v3232_v45  ;;  %v1748_v30 = vadd.f32 %v1747_v13, %v1698_v59  ;;  %v1750_v63 = vpop.f32.mrf.mxu1 }
 0x318   : > { %v5638_v14 = vpack.i.b16 %v5255_v22, %v5238_v44  ;;  %v5641_v5 = vshrl.u32 %v5255_v22, 16  ;;  %v3253_v34 = vsel %vm2241_vm10, 0, %v3252_v49  ;;  %v5266_v29 = vperm.slane %v5262_v36, %v8416_v27 }
 0x319   : > { %v5273_v21 = vsel %vm2241_vm10, %v3252_v49, %v3245_v0  ;;  %v2939_v16 = vpack.i.b16 %v2938_v53, %v2937_v15  ;;  %v5278_v4 = vrot.slane %v3253_v34, 4  ;;  %v3259_v58 = vrot.slane %v3258_v57, 4  ;;  %2053 = vmatmul.bf16.gmra.mxu3 %v8538_v47 }
 0x31a   : > { %v5642_v46 = vpack.i.b16 %v5641_v5, %v5640_v52  ;;  %5729 = vst [vmem:[%s9109_s6 + $0x14] sm:$0xf] %v5638_v14  ;;  %v5277_v42 = vperm.slane %v5273_v21, %v8416_v27  ;;  %v5267_v25 = vrot.slane %v5266_v29, 4  ;;  %v3264_v38 = vperm.slane %v3258_v57, %v8424_v19  ;;  %1906 = vmatmul.bf16.gmra.mxu0 %v8536_v56 }
 0x31b   : > { %v3277_v33 = vperm.slane %v2939_v16, %v8416_v27  ;;  %v2884_v55 = vrot.slane %v2852_v6, 4  ;;  %v5279_v26 = vsel %vm2241_vm10, %v5278_v4, %v3251_v62  ;;  %v3260_v2 = vsel %vm2241_vm10, 0, %v3259_v58  ;;  %1955 = vmatmul.bf16.gmra.mxu1 %v8538_v47 }
 0x31c   : > { %5745 = vst [vmem:[%s9109_s6 + $0x54] sm:$0xf] %v5642_v46  ;;  %v2943_v43 = vshrl.u32 %v2852_v6, 16  ;;  %v1846_v41 = vadd.f32 %v1845_v39, %v1796_v28  ;;  %v5268_v23 = vsel %vm2241_vm10, %v5267_v25, %v5260_v8  ;;  %v5283_v54 = vperm.slane %v5279_v26, %v8416_v27  ;;  %v1799_v46 = vpop.f32.mrf.mxu2 }
 0x31d   : > { %v3268_v51 = vperm.slane %v3260_v2, %v8424_v19  ;;  %v3269_v61 = vrot.slane %v3264_v38, 4  ;;  %v5272_v50 = vperm.slane %v5268_v23, %v8424_v19  ;;  %v3278_v60 = vrot.slane %v3277_v33, 4 }
 0x31e   : > { %v3283_v56 = vperm.slane %v3277_v33, %v8424_v19  ;;  %v2942_v12 = vpack.i.b16 %v2884_v55, %v2852_v6  ;;  %v5284_v48 = vrot.slane %v5283_v54, 4  ;;  %v2944_v35 = vshrl.u32 %v2884_v55, 16 }
 0x31f   : > { %v3270_v17 = vsel %vm2241_vm10, 0, %v3269_v61  ;;  %v3271_v1 = vrot.slane %v3268_v51, 4  ;;  %v5648_v3 = vshrl.u32 %v5272_v50, 16  ;;  %v3279_v47 = vsel %vm2241_vm10, 0, %v3278_v60 }
 0x320   : > { %v3288_v44 = vrot.slane %v3283_v56, 4  ;;  %v3296_v11 = vperm.slane %v2942_v12, %v8416_v27  ;;  %v5285_v0 = vsel %vm2241_vm10, %v5284_v48, %v5277_v42  ;;  %v3287_v18 = vperm.slane %v3279_v47, %v8424_v19  ;;  %v1848_v42 = vpop.f32.mrf.mxu3  ;;  %v1752_v12 = vpop.f32.mrf.mxu1 }
 0x321   : > { %v3272_v20 = vsel %vm2241_vm10, 0, %v3271_v1  ;;  %v5290_v45 = vsel %vm2241_vm10, %v3271_v1, %v3264_v38  ;;  %v5289_v24 = vperm.slane %v5285_v0, %v8424_v19  ;;  %v2945_v40 = vpack.i.b16 %v2944_v35, %v2943_v43 }
 0x322   : > { %v3289_v15 = vsel %vm2241_vm10, 0, %v3288_v44  ;;  %v5294_v52 = vperm.slane %v5290_v45, %v8416_v27  ;;  %v5295_v32 = vrot.slane %v3272_v20, 4  ;;  %v3290_v37 = vrot.slane %v3287_v18, 4 }
 0x323   : > { %v3297_v7 = vrot.slane %v3296_v11, 4  ;;  %v3302_v10 = vperm.slane %v3296_v11, %v8424_v19  ;;  %v5646_v59 = vpack.i.b16 %v5289_v24, %v5272_v50  ;;  %v5649_v13 = vshrl.u32 %v5289_v24, 16 }
 0x324   : > { %v5296_v22 = vsel %vm2241_vm10, %v5295_v32, %v3270_v17  ;;  %v2853_v62 = vpack.c.bf16 %v1846_v41, %v1748_v30  ;;  %v3291_v8 = vsel %vm2241_vm10, 0, %v3290_v37  ;;  %v5307_v49 = vsel %vm2241_vm10, %v3290_v37, %v3283_v56  ;;  %v1703_v56 = vpop.f32.mrf.mxu0 }
 0x325   : > { %v5300_v9 = vperm.slane %v5296_v22, %v8416_v27  ;;  %v3298_v53 = vsel %vm2241_vm10, 0, %v3297_v7  ;;  %v5650_v57 = vpack.i.b16 %v5649_v13, %v5648_v3  ;;  %5730 = vst [vmem:[%s9109_s6 + $0x18] sm:$0xf] %v5646_v59  ;;  %v5311_v6 = vperm.slane %v5307_v49, %v8416_v27  ;;  %v1801_v22 = vpop.f32.mrf.mxu2 }
 0x326   : > { %v5312_v14 = vrot.slane %v3291_v8, 4  ;;  %v3306_v5 = vperm.slane %v3298_v53, %v8424_v19  ;;  %v3307_v34 = vrot.slane %v3302_v10, 4  ;;  %v3315_v29 = vperm.slane %v2945_v40, %v8416_v27 }
 0x327   : > { %v5301_v36 = vrot.slane %v5300_v9, 4  ;;  %v2885_v30 = vrot.slane %v2853_v62, 4  ;;  %5746 = vst [vmem:[%s9109_s6 + $0x58] sm:$0xf] %v5650_v57  ;;  %v2949_v28 = vshrl.u32 %v2853_v62, 16  ;;  %v1751_v39 = vadd.f32 %v1750_v63, %v1701_v31 }
 0x328   : > { %v5313_v21 = vsel %vm2241_vm10, %v5312_v14, %v3289_v15  ;;  %v3309_v16 = vrot.slane %v3306_v5, 4  ;;  %v3308_v25 = vsel %vm2241_vm10, 0, %v3307_v34  ;;  %v3316_v38 = vrot.slane %v3315_v29, 4 }
 0x329   : > { %v5302_v4 = vsel %vm2241_vm10, %v5301_v36, %v5294_v52  ;;  %v5317_v58 = vperm.slane %v5313_v21, %v8416_v27  ;;  %v3321_v26 = vperm.slane %v3315_v29, %v8424_v19  ;;  %v2948_v60 = vpack.i.b16 %v2885_v30, %v2853_v62  ;;  %v1850_v62 = vpop.f32.mrf.mxu3 }
 0x32a   : > { %v5306_v33 = vperm.slane %v5302_v4, %v8424_v19  ;;  %v3310_v55 = vsel %vm2241_vm10, 0, %v3309_v16  ;;  %v5324_v2 = vsel %vm2241_vm10, %v3309_v16, %v3302_v10  ;;  %v3317_v41 = vsel %vm2241_vm10, 0, %v3316_v38  ;;  %v1755_v38 = vpop.f32.mrf.mxu1 }
 0x32b   : > { %v5318_v43 = vrot.slane %v5317_v58, 4  ;;  %v5328_v23 = vperm.slane %v5324_v2, %v8416_v27  ;;  %v5329_v54 = vrot.slane %v3310_v55, 4  ;;  %v3325_v61 = vperm.slane %v3317_v41, %v8424_v19 }
 0x32c   : > { %v5656_v51 = vshrl.u32 %v5306_v33, 16  ;;  %v3326_v50 = vrot.slane %v3321_v26, 4  ;;  %v2950_v1 = vshrl.u32 %v2885_v30, 16  ;;  %v1849_v35 = vadd.f32 %v1848_v42, %v1799_v46 }
 0x32d   : > { %v5319_v48 = vsel %vm2241_vm10, %v5318_v43, %v5311_v6  ;;  %v5330_v17 = vsel %vm2241_vm10, %v5329_v54, %v3308_v25  ;;  %v3328_v44 = vrot.slane %v3325_v61, 4  ;;  %v3334_v20 = vperm.slane %v2948_v60, %v8416_v27  ;;  %v1706_v25 = vpop.f32.mrf.mxu0 }
 0x32e   : > { %v5323_v3 = vperm.slane %v5319_v48, %v8424_v19  ;;  %v3327_v47 = vsel %vm2241_vm10, 0, %v3326_v50  ;;  %v5334_v11 = vperm.slane %v5330_v17, %v8416_v27  ;;  %v2951_v0 = vpack.i.b16 %v2950_v1, %v2949_v28 }
 0x32f   : > { %v2854_v18 = vpack.c.bf16 %v1849_v35, %v1751_v39  ;;  %v1753_v45 = vadd.f32 %v1752_v12, %v1703_v56  ;;  %v3329_v52 = vsel %vm2241_vm10, 0, %v3328_v44  ;;  %v5341_v31 = vsel %vm2241_vm10, %v3328_v44, %v3321_v26  ;;  %v1804_v44 = vpop.f32.mrf.mxu2 }
 0x330   : > { %v5654_v24 = vpack.i.b16 %v5323_v3, %v5306_v33  ;;  %v5657_v15 = vshrl.u32 %v5323_v3, 16  ;;  %v5335_v32 = vrot.slane %v5334_v11, 4  ;;  %v5346_v63 = vrot.slane %v3329_v52, 4 }
 0x331   : > { %v3335_v37 = vrot.slane %v3334_v20, 4  ;;  %v3340_v40 = vperm.slane %v3334_v20, %v8424_v19  ;;  %v5345_v59 = vperm.slane %v5341_v31, %v8416_v27  ;;  %v3353_v13 = vperm.slane %v2951_v0, %v8416_v27  ;;  %v1853_v11 = vpop.f32.mrf.mxu3 }
 0x332   : > { %v5658_v7 = vpack.i.b16 %v5657_v15, %v5656_v51  ;;  %5731 = vst [vmem:[%s9109_s6 + $0x1c] sm:$0xf] %v5654_v24  ;;  %v5336_v10 = vsel %vm2241_vm10, %v5335_v32, %v5328_v23  ;;  %v5347_v9 = vsel %vm2241_vm10, %v5346_v63, %v3327_v47  ;;  %v2886_v29 = vrot.slane %v2854_v18, 4 }
 0x333   : > { %v5340_v8 = vperm.slane %v5336_v10, %v8424_v19  ;;  %v3336_v49 = vsel %vm2241_vm10, 0, %v3335_v37  ;;  %v3345_v53 = vrot.slane %v3340_v40, 4  ;;  %v5351_v57 = vperm.slane %v5347_v9, %v8416_v27 }
 0x334   : > { %5747 = vst [vmem:[%s9109_s6 + $0x5c] sm:$0xf] %v5658_v7  ;;  %v3344_v6 = vperm.slane %v3336_v49, %v8424_v19  ;;  %v3354_v14 = vrot.slane %v3353_v13, 4  ;;  %v3359_v5 = vperm.slane %v3353_v13, %v8424_v19  ;;  %v2955_v30 = vshrl.u32 %v2854_v18, 16 }
 0x335   : > { %v5664_v36 = vshrl.u32 %v5340_v8, 16  ;;  %v3346_v34 = vsel %vm2241_vm10, 0, %v3345_v53  ;;  %v5352_v21 = vrot.slane %v5351_v57, 4  ;;  %v2954_v42 = vpack.i.b16 %v2886_v29, %v2854_v18 }
 0x336   : > { %v3347_v16 = vrot.slane %v3344_v6, 4  ;;  %v3355_v28 = vsel %vm2241_vm10, 0, %v3354_v14  ;;  %v3364_v39 = vrot.slane %v3359_v5, 4  ;;  %v2956_v4 = vshrl.u32 %v2886_v29, 16  ;;  %v1708_v14 = vpop.f32.mrf.mxu0 }
 0x337   : > { %v3363_v46 = vperm.slane %v3355_v28, %v8424_v19  ;;  %v1851_v58 = vadd.f32 %v1850_v62, %v1801_v22  ;;  %v5353_v33 = vsel %vm2241_vm10, %v5352_v21, %v5345_v59  ;;  %v3372_v61 = vperm.slane %v2954_v42, %v8416_v27 }
 0x338   : > { %v3348_v55 = vsel %vm2241_vm10, 0, %v3347_v16  ;;  %v3365_v26 = vsel %vm2241_vm10, 0, %v3364_v39  ;;  %v5358_v2 = vsel %vm2241_vm10, %v3347_v16, %v3340_v40  ;;  %v5357_v43 = vperm.slane %v5353_v33, %v8424_v19 }
 0x339   : > { %v3366_v41 = vrot.slane %v3363_v46, 4  ;;  %v5362_v23 = vperm.slane %v5358_v2, %v8416_v27  ;;  %v5363_v54 = vrot.slane %v3348_v55, 4  ;;  %v2957_v51 = vpack.i.b16 %v2956_v4, %v2955_v30  ;;  %v1855_v2 = vpop.f32.mrf.mxu3 }
 0x33a   : > { %v2855_v50 = vpack.c.bf16 %v1851_v58, %v1753_v45  ;;  %v9337_v60 = vadd.f32 %v1755_v38, %v1706_v25  ;;  %v5662_v56 = vpack.i.b16 %v5357_v43, %v5340_v8  ;;  %v5665_v12 = vshrl.u32 %v5357_v43, 16 }
 0x33b   : > { %v3367_v48 = vsel %vm2241_vm10, 0, %v3366_v41  ;;  %v5364_v17 = vsel %vm2241_vm10, %v5363_v54, %v3346_v34  ;;  %v5375_v35 = vsel %vm2241_vm10, %v3366_v41, %v3359_v5  ;;  %v3373_v47 = vrot.slane %v3372_v61, 4  ;;  %v1757_v5 = vpop.f32.mrf.mxu1 }
 0x33c   : > { %v5368_v1 = vperm.slane %v5364_v17, %v8416_v27  ;;  %v5380_v3 = vrot.slane %v3367_v48, 4  ;;  %v5666_v0 = vpack.i.b16 %v5665_v12, %v5664_v36  ;;  %5732 = vst [vmem:[%s9109_s6 + $0x20] sm:$0xf] %v5662_v56  ;;  %v5379_v20 = vperm.slane %v5375_v35, %v8416_v27 }
 0x33d   : > { %v3378_v18 = vperm.slane %v3372_v61, %v8424_v19  ;;  %v3391_v45 = vperm.slane %v2957_v51, %v8416_v27  ;;  %v3374_v52 = vsel %vm2241_vm10, 0, %v3373_v47  ;;  %v2887_v32 = vrot.slane %v2855_v50, 4 }
 0x33e   : > { %v5369_v24 = vrot.slane %v5368_v1, 4  ;;  %v5381_v15 = vsel %vm2241_vm10, %v5380_v3, %v3365_v26  ;;  %5748 = vst [vmem:[%s9109_s6 + $0x60] sm:$0xf] %v5666_v0  ;;  %v3382_v63 = vperm.slane %v3374_v52, %v8424_v19  ;;  %v2961_v13 = vshrl.u32 %v2855_v50, 16  ;;  %v1806_v26 = vpop.f32.mrf.mxu2 }
 0x33f   : > { %v5385_v31 = vperm.slane %v5381_v15, %v8416_v27  ;;  %v3383_v37 = vrot.slane %v3378_v18, 4  ;;  %v3392_v40 = vrot.slane %v3391_v45, 4  ;;  %v3397_v10 = vperm.slane %v3391_v45, %v8424_v19 }
 0x340   : > { %v5370_v7 = vsel %vm2241_vm10, %v5369_v24, %v5362_v23  ;;  %v2960_v59 = vpack.i.b16 %v2887_v32, %v2855_v50  ;;  %v3385_v9 = vrot.slane %v3382_v63, 4  ;;  %v2962_v57 = vshrl.u32 %v2887_v32, 16 }
 0x341   : > { %v5374_v22 = vperm.slane %v5370_v7, %v8424_v19  ;;  %v5386_v62 = vrot.slane %v5385_v31, 4  ;;  %v3384_v8 = vsel %vm2241_vm10, 0, %v3383_v37  ;;  %v3393_v49 = vsel %vm2241_vm10, 0, %v3392_v40 }
 0x342   : > { %v3402_v53 = vrot.slane %v3397_v10, 4  ;;  %v3410_v6 = vperm.slane %v2960_v59, %v8416_v27  ;;  %v3386_v29 = vsel %vm2241_vm10, 0, %v3385_v9  ;;  %v3401_v30 = vperm.slane %v3393_v49, %v8424_v19 }
 0x343   : > { %v5387_v36 = vsel %vm2241_vm10, %v5386_v62, %v5379_v20  ;;  %v5672_v34 = vshrl.u32 %v5374_v22, 16  ;;  %v5392_v28 = vsel %vm2241_vm10, %v3385_v9, %v3378_v18  ;;  %v5397_v39 = vrot.slane %v3386_v29, 4  ;;  %v1760_v31 = vpop.f32.mrf.mxu1 }
 0x344   : > { %v5391_v21 = vperm.slane %v5387_v36, %v8424_v19  ;;  %v3403_v16 = vsel %vm2241_vm10, 0, %v3402_v53  ;;  %v3404_v46 = vrot.slane %v3401_v30, 4  ;;  %v5396_v42 = vperm.slane %v5392_v28, %v8416_v27  ;;  %v1858_v36 = vpop.f32.mrf.mxu3 }
 0x345   : > { %v2963_v4 = vpack.i.b16 %v2962_v57, %v2961_v13  ;;  %v3411_v58 = vrot.slane %v3410_v6, 4  ;;  %v5398_v33 = vsel %vm2241_vm10, %v5397_v39, %v3384_v8  ;;  %v3416_v55 = vperm.slane %v3410_v6, %v8424_v19 }
 0x346   : > { %v5670_v25 = vpack.i.b16 %v5391_v21, %v5374_v22  ;;  %v5673_v38 = vshrl.u32 %v5391_v21, 16  ;;  %v3405_v43 = vsel %vm2241_vm10, 0, %v3404_v46  ;;  %v5402_v41 = vperm.slane %v5398_v33, %v8416_v27 }
 0x347   : > { %v5409_v23 = vsel %vm2241_vm10, %v3404_v46, %v3397_v10  ;;  %v3412_v54 = vsel %vm2241_vm10, 0, %v3411_v58  ;;  %v5414_v50 = vrot.slane %v3405_v43, 4  ;;  %v3421_v48 = vrot.slane %v3416_v55, 4 }
 0x348   : > { %v5674_v51 = vpack.i.b16 %v5673_v38, %v5672_v34  ;;  %5733 = vst [vmem:[%s9109_s6 + $0x24] sm:$0xf] %v5670_v25  ;;  %v5413_v61 = vperm.slane %v5409_v23, %v8416_v27  ;;  %v3420_v56 = vperm.slane %v3412_v54, %v8424_v19  ;;  %v5403_v12 = vrot.slane %v5402_v41, 4 }
 0x349   : > { %v3429_v17 = vperm.slane %v2963_v4, %v8416_v27  ;;  %v1854_v1 = vadd.f32 %v1853_v11, %v1804_v44  ;;  %v5415_v35 = vsel %vm2241_vm10, %v5414_v50, %v3403_v16  ;;  %v1758_v47 = vadd.f32 %v1757_v5, %v1708_v14  ;;  %v1711_v11 = vpop.f32.mrf.mxu0  ;;  %v1809_v5 = vpop.f32.mrf.mxu2 }
 0x34a   : > { %5749 = vst [vmem:[%s9109_s6 + $0x64] sm:$0xf] %v5674_v51  ;;  %v3423_v3 = vrot.slane %v3420_v56, 4  ;;  %v1856_v0 = vadd.f32 %v1855_v2, %v1806_v26  ;;  %v5404_v20 = vsel %vm2241_vm10, %v5403_v12, %v5396_v42  ;;  %v5419_v18 = vperm.slane %v5415_v35, %v8416_v27 }
 0x34b   : > { %v3422_v45 = vsel %vm2241_vm10, 0, %v3421_v48  ;;  %v3430_v24 = vrot.slane %v3429_v17, 4  ;;  %v5408_v15 = vperm.slane %v5404_v20, %v8424_v19  ;;  %v3435_v32 = vperm.slane %v3429_v17, %v8424_v19 }
 0x34c   : > { %v3424_v52 = vsel %vm2241_vm10, 0, %v3423_v3  ;;  %v5426_v44 = vsel %vm2241_vm10, %v3423_v3, %v3416_v55  ;;  %v5420_v63 = vrot.slane %v5419_v18, 4  ;;  %v2856_v22 = vpack.c.bf16 %v1854_v1, %v9337_v60 }
 0x34d   : > { %v3431_v37 = vsel %vm2241_vm10, 0, %v3430_v24  ;;  %v5430_v40 = vperm.slane %v5426_v44, %v8416_v27  ;;  %v5431_v7 = vrot.slane %v3424_v52, 4  ;;  %v5680_v10 = vshrl.u32 %v5408_v15, 16  ;;  %v1762_v24 = vpop.f32.mrf.mxu1 }
 0x34e   : > { %v3439_v59 = vperm.slane %v3431_v37, %v8424_v19  ;;  %v3440_v13 = vrot.slane %v3435_v32, 4  ;;  %v5421_v62 = vsel %vm2241_vm10, %v5420_v63, %v5413_v61  ;;  %v2857_v9 = vpack.c.bf16 %v1856_v0, %v1758_v47 }
 0x34f   : > { %v5432_v8 = vsel %vm2241_vm10, %v5431_v7, %v3422_v45  ;;  %v9390_v49 = vadd.f32 %v1760_v31, %v1711_v11  ;;  %v5425_v53 = vperm.slane %v5421_v62, %v8424_v19  ;;  %v2888_v34 = vrot.slane %v2856_v22, 4  ;;  %v9416_v31 = vpop.f32.mrf.mxu3 }
 0x350   : > { %v3441_v57 = vsel %vm2241_vm10, 0, %v3440_v13  ;;  %v3442_v6 = vrot.slane %v3439_v59, 4  ;;  %v5436_v14 = vperm.slane %v5432_v8, %v8416_v27  ;;  %v2967_v29 = vshrl.u32 %v2856_v22, 16 }
 0x351   : > { %v2889_v60 = vrot.slane %v2857_v9, 4  ;;  %v2973_v30 = vshrl.u32 %v2857_v9, 16  ;;  %v5678_v21 = vpack.i.b16 %v5425_v53, %v5408_v15  ;;  %v5681_v16 = vshrl.u32 %v5425_v53, 16  ;;  %v1713_v45 = vpop.f32.mrf.mxu0  ;;  %v9414_v11 = vpop.f32.mrf.mxu2 }
 0x352   : > { %v3443_v28 = vsel %vm2241_vm10, 0, %v3442_v6  ;;  %v5437_v39 = vrot.slane %v5436_v14, 4  ;;  %v5443_v46 = vsel %vm2241_vm10, %v3442_v6, %v3435_v32  ;;  %v2966_v4 = vpack.i.b16 %v2888_v34, %v2856_v22 }
 0x353   : > { %v5448_v42 = vrot.slane %v3443_v28, 4  ;;  %v2968_v58 = vshrl.u32 %v2888_v34, 16  ;;  %v5682_v25 = vpack.i.b16 %v5681_v16, %v5680_v10  ;;  %5734 = vst [vmem:[%s9109_s6 + $0x28] sm:$0xf] %v5678_v21  ;;  %v5447_v33 = vperm.slane %v5443_v46, %v8416_v27 }
 0x354   : > { %v5438_v38 = vsel %vm2241_vm10, %v5437_v39, %v5430_v40  ;;  %v2972_v55 = vpack.i.b16 %v2889_v60, %v2857_v9  ;;  %v3448_v41 = vperm.slane %v2966_v4, %v8416_v27  ;;  %v2974_v54 = vshrl.u32 %v2889_v60, 16 }
 0x355   : > { %v5442_v26 = vperm.slane %v5438_v38, %v8424_v19  ;;  %v5449_v2 = vsel %vm2241_vm10, %v5448_v42, %v3441_v57  ;;  %v2969_v43 = vpack.i.b16 %v2968_v58, %v2967_v29  ;;  %5750 = vst [vmem:[%s9109_s6 + $0x68] sm:$0xf] %v5682_v25  ;;  %v1859_v61 = vadd.f32 %v1858_v36, %v1809_v5 }
 0x356   : > { %v5453_v23 = vperm.slane %v5449_v2, %v8416_v27  ;;  %v3486_v51 = vperm.slane %v2972_v55, %v8416_v27  ;;  %v3449_v56 = vrot.slane %v3448_v41, 4  ;;  %v3454_v12 = vperm.slane %v3448_v41, %v8424_v19 }
 0x357   : > { %v5688_v50 = vshrl.u32 %v5442_v26, 16  ;;  %v3467_v48 = vperm.slane %v2969_v43, %v8416_v27  ;;  %v2975_v1 = vpack.i.b16 %v2974_v54, %v2973_v30  ;;  %v2858_v43 = vpack.c.bf16 %v1859_v61, %v9390_v49 }
 0x358   : > { %v5454_v17 = vrot.slane %v5453_v23, 4  ;;  %v3487_v35 = vrot.slane %v3486_v51, 4  ;;  %v3492_v3 = vperm.slane %v3486_v51, %v8424_v19  ;;  %v3450_v47 = vsel %vm2241_vm10, 0, %v3449_v56  ;;  %v1921_v23 = vpop.f32.mrf.mxu1 }
 0x359   : > { %v3459_v0 = vrot.slane %v3454_v12, 4  ;;  %v3468_v20 = vrot.slane %v3467_v48, 4  ;;  %v3473_v18 = vperm.slane %v3467_v48, %v8424_v19  ;;  %v3458_v52 = vperm.slane %v3450_v47, %v8424_v19  ;;  %v1872_v41 = vpop.f32.mrf.mxu0  ;;  %v2019_v48 = vpop.f32.mrf.mxu3 }
 0x35a   : > { %v5455_v15 = vsel %vm2241_vm10, %v5454_v17, %v5447_v33  ;;  %v3488_v32 = vsel %vm2241_vm10, 0, %v3487_v35  ;;  %v3497_v44 = vrot.slane %v3492_v3, 4  ;;  %v3505_v53 = vperm.slane %v2975_v1, %v8416_v27 }
 0x35b   : > { %v5459_v63 = vperm.slane %v5455_v15, %v8424_v19  ;;  %v3460_v37 = vsel %vm2241_vm10, 0, %v3459_v0  ;;  %v3469_v40 = vsel %vm2241_vm10, 0, %v3468_v20  ;;  %v3478_v7 = vrot.slane %v3473_v18, 4 }
 0x35c   : > { %v3461_v10 = vrot.slane %v3458_v52, 4  ;;  %v3477_v59 = vperm.slane %v3469_v40, %v8424_v19  ;;  %v3496_v13 = vperm.slane %v3488_v32, %v8424_v19  ;;  %v3498_v22 = vsel %vm2241_vm10, 0, %v3497_v44 }
 0x35d   : > { %v5686_v62 = vpack.i.b16 %v5459_v63, %v5442_v26  ;;  %v5689_v8 = vshrl.u32 %v5459_v63, 16  ;;  %v3479_v9 = vsel %vm2241_vm10, 0, %v3478_v7  ;;  %v3506_v60 = vrot.slane %v3505_v53, 4 }
 0x35e   : > { %v3462_v57 = vsel %vm2241_vm10, 0, %v3461_v10  ;;  %v3480_v6 = vrot.slane %v3477_v59, 4  ;;  %v5460_v14 = vsel %vm2241_vm10, %v3461_v10, %v3454_v12  ;;  %v3499_v5 = vrot.slane %v3496_v13, 4  ;;  %v1970_v12 = vpop.f32.mrf.mxu2 }
 0x35f   : > { %v5690_v36 = vpack.i.b16 %v5689_v8, %v5688_v50  ;;  %5735 = vst [vmem:[%s9109_s6 + $0x2c] sm:$0xf] %v5686_v62  ;;  %v5464_v34 = vperm.slane %v5460_v14, %v8416_v27  ;;  %v5465_v29 = vrot.slane %v3462_v57, 4  ;;  %v3511_v28 = vperm.slane %v3505_v53, %v8424_v19 }
 0x360   : > { %v3481_v30 = vsel %vm2241_vm10, 0, %v3480_v6  ;;  %v5477_v21 = vsel %vm2241_vm10, %v3480_v6, %v3473_v18  ;;  %v3500_v16 = vsel %vm2241_vm10, 0, %v3499_v5  ;;  %v3507_v4 = vsel %vm2241_vm10, 0, %v3506_v60 }
 0x361   : > { %5751 = vst [vmem:[%s9109_s6 + $0x6c] sm:$0xf] %v5690_v36  ;;  %v5466_v39 = vsel %vm2241_vm10, %v5465_v29, %v3460_v37  ;;  %v5481_v46 = vperm.slane %v5477_v21, %v8416_v27  ;;  %v5482_v42 = vrot.slane %v3481_v30, 4  ;;  %v3515_v25 = vperm.slane %v3507_v4, %v8424_v19  ;;  %v1874_v30 = vpop.f32.mrf.mxu0 }
 0x362   : > { %v5470_v58 = vperm.slane %v5466_v39, %v8416_v27  ;;  %v3516_v38 = vrot.slane %v3511_v28, 4  ;;  %v5494_v33 = vsel %vm2241_vm10, %v3499_v5, %v3492_v3  ;;  %v5499_v2 = vrot.slane %v3500_v16, 4 }
 0x363   : > { %v5483_v55 = vsel %vm2241_vm10, %v5482_v42, %v3479_v9  ;;  %v5498_v26 = vperm.slane %v5494_v33, %v8416_v27  ;;  %v3518_v56 = vrot.slane %v3515_v25, 4  ;;  %v2890_v1 = vrot.slane %v2858_v43, 4 }
 0x364   : > { %v5471_v54 = vrot.slane %v5470_v58, 4  ;;  %v5487_v51 = vperm.slane %v5483_v55, %v8416_v27  ;;  %v3517_v50 = vsel %vm2241_vm10, 0, %v3516_v38  ;;  %v5500_v17 = vsel %vm2241_vm10, %v5499_v2, %v3498_v22 }
 0x365   : > { %v2979_v35 = vshrl.u32 %v2858_v43, 16  ;;  %v1763_v3 = vadd.f32 %v1762_v24, %v1713_v45  ;;  %v3519_v49 = vsel %vm2241_vm10, 0, %v3518_v56  ;;  %v5504_v61 = vperm.slane %v5500_v17, %v8416_v27 }
 0x366   : > { %v5472_v47 = vsel %vm2241_vm10, %v5471_v54, %v5464_v34  ;;  %v5488_v0 = vrot.slane %v5487_v51, 4  ;;  %v5511_v18 = vsel %vm2241_vm10, %v3518_v56, %v3511_v28  ;;  %v5516_v15 = vrot.slane %v3519_v49, 4  ;;  %v1972_v39 = vpop.f32.mrf.mxu2 }
 0x367   : > { %v5476_v20 = vperm.slane %v5472_v47, %v8424_v19  ;;  %v2978_v52 = vpack.i.b16 %v2890_v1, %v2858_v43  ;;  %v5505_v44 = vrot.slane %v5504_v61, 4  ;;  %v5515_v63 = vperm.slane %v5511_v18, %v8416_v27 }
 0x368   : > { %v5489_v32 = vsel %vm2241_vm10, %v5488_v0, %v5481_v46  ;;  %v2980_v37 = vshrl.u32 %v2890_v1, 16  ;;  %v5517_v40 = vsel %vm2241_vm10, %v5516_v15, %v3517_v50  ;;  %v1861_v22 = vadd.f32 %v9416_v31, %v9414_v11  ;;  %v1923_v11 = vpop.f32.mrf.mxu1  ;;  %v2021_v46 = vpop.f32.mrf.mxu3 }
 0x369   : > { %v5493_v45 = vperm.slane %v5489_v32, %v8424_v19  ;;  %v5696_v24 = vshrl.u32 %v5476_v20, 16  ;;  %v3524_v7 = vperm.slane %v2978_v52, %v8416_v27  ;;  %v5506_v10 = vsel %vm2241_vm10, %v5505_v44, %v5498_v26 }
 0x36a   : > { %v5521_v59 = vperm.slane %v5517_v40, %v8416_v27  ;;  %v2981_v13 = vpack.i.b16 %v2980_v37, %v2979_v35  ;;  %v5510_v9 = vperm.slane %v5506_v10, %v8424_v19  ;;  %v2859_v5 = vpack.c.bf16 %v1861_v22, %v1763_v3  ;;  %v9488_v40 = vpop.f32.mrf.mxu0 }
 0x36b   : > { %v5694_v62 = vpack.i.b16 %v5493_v45, %v5476_v20  ;;  %v5697_v8 = vshrl.u32 %v5493_v45, 16  ;;  %v3525_v53 = vrot.slane %v3524_v7, 4  ;;  %v3530_v6 = vperm.slane %v3524_v7, %v8424_v19 }
 0x36c   : > { %v5522_v57 = vrot.slane %v5521_v59, 4  ;;  %v3543_v14 = vperm.slane %v2981_v13, %v8416_v27  ;;  %v5704_v34 = vshrl.u32 %v5510_v9, 16  ;;  %v1922_v60 = vadd.f32 %v1921_v23, %v1872_v41 }
 0x36d   : > { %v5698_v36 = vpack.i.b16 %v5697_v8, %v5696_v24  ;;  %5736 = vst [vmem:[%s9109_s6 + $0x30] sm:$0xf] %v5694_v62  ;;  %v3526_v29 = vsel %vm2241_vm10, 0, %v3525_v53  ;;  %v3535_v16 = vrot.slane %v3530_v6, 4  ;;  %v2891_v58 = vrot.slane %v2859_v5, 4 }
 0x36e   : > { %v5523_v31 = vsel %vm2241_vm10, %v5522_v57, %v5515_v63  ;;  %v3534_v21 = vperm.slane %v3526_v29, %v8424_v19  ;;  %v3544_v28 = vrot.slane %v3543_v14, 4  ;;  %v3549_v4 = vperm.slane %v3543_v14, %v8424_v19  ;;  %v9496_v62 = vpop.f32.mrf.mxu2 }
 0x36f   : > { %5752 = vst [vmem:[%s9109_s6 + $0x70] sm:$0xf] %v5698_v36  ;;  %v5527_v42 = vperm.slane %v5523_v31, %v8424_v19  ;;  %v2985_v25 = vshrl.u32 %v2859_v5, 16  ;;  %v3536_v38 = vsel %vm2241_vm10, 0, %v3535_v16  ;;  %v2020_v26 = vadd.f32 %v2019_v48, %v1970_v12 }
 0x370   : > { %v3537_v33 = vrot.slane %v3534_v21, 4  ;;  %v3545_v55 = vsel %vm2241_vm10, 0, %v3544_v28  ;;  %v3554_v23 = vrot.slane %v3549_v4, 4  ;;  %v2984_v50 = vpack.i.b16 %v2891_v58, %v2859_v5  ;;  %v9490_v7 = vpop.f32.mrf.mxu1  ;;  %v9498_v8 = vpop.f32.mrf.mxu3 }
 0x371   : > { %v5702_v2 = vpack.i.b16 %v5527_v42, %v5510_v9  ;;  %v5705_v43 = vshrl.u32 %v5527_v42, 16  ;;  %v3553_v41 = vperm.slane %v3545_v55, %v8424_v19  ;;  %v2986_v56 = vshrl.u32 %v2891_v58, 16 }
 0x372   : > { %v3538_v54 = vsel %vm2241_vm10, 0, %v3537_v33  ;;  %v5528_v51 = vsel %vm2241_vm10, %v3537_v33, %v3530_v6  ;;  %v3555_v1 = vsel %vm2241_vm10, 0, %v3554_v23  ;;  %v3562_v47 = vperm.slane %v2984_v50, %v8416_v27 }
 0x373   : > { %v5706_v17 = vpack.i.b16 %v5705_v43, %v5704_v34  ;;  %5737 = vst [vmem:[%s9109_s6 + $0x34] sm:$0xf] %v5702_v2  ;;  %v3556_v35 = vrot.slane %v3553_v41, 4  ;;  %v5532_v3 = vperm.slane %v5528_v51, %v8416_v27  ;;  %v5533_v12 = vrot.slane %v3538_v54, 4 }
 0x374   : > { %v2987_v48 = vpack.i.b16 %v2986_v56, %v2985_v25  ;;  %v3596_v0 = vpack.c.bf16 %v2020_v26, %v1922_v60  ;;  %v1924_v20 = vadd.f32 %v1923_v11, %v1874_v30  ;;  %v2022_v18 = vadd.f32 %v2021_v46, %v1972_v39 }
 0x375   : > { %5753 = vst [vmem:[%s9109_s6 + $0x74] sm:$0xf] %v5706_v17  ;;  %v3557_v49 = vsel %vm2241_vm10, 0, %v3556_v35  ;;  %v5545_v61 = vsel %vm2241_vm10, %v3556_v35, %v3549_v4  ;;  %v5534_v15 = vsel %vm2241_vm10, %v5533_v12, %v3536_v38  ;;  %v3563_v44 = vrot.slane %v3562_v47, 4  ;;  %v9521_v35 = vpop.f32.mrf.mxu0 }
 0x376   : > { %v5549_v52 = vperm.slane %v5545_v61, %v8416_v27  ;;  %v5550_v32 = vrot.slane %v3557_v49, 4  ;;  %v5538_v63 = vperm.slane %v5534_v15, %v8416_v27  ;;  %v3568_v37 = vperm.slane %v3562_v47, %v8424_v19  ;;  %v9528_v49 = vpop.f32.mrf.mxu2 }
 0x377   : > { %v3581_v45 = vperm.slane %v2987_v48, %v8416_v27  ;;  %v3628_v24 = vrot.slane %v3596_v0, 4  ;;  %v3564_v59 = vsel %vm2241_vm10, 0, %v3563_v44  ;;  %v3647_v13 = vshrl.u32 %v3596_v0, 16 }
 0x378   : > { %v5551_v10 = vsel %vm2241_vm10, %v5550_v32, %v3555_v1  ;;  %v9494_v22 = vpack.c.bf16 %v2022_v18, %v1924_v20  ;;  %v5539_v9 = vrot.slane %v5538_v63, 4  ;;  %v3572_v57 = vperm.slane %v3564_v59, %v8424_v19  ;;  %v9530_v61 = vpop.f32.mrf.mxu3 }
 0x379   : > { %v5555_v53 = vperm.slane %v5551_v10, %v8416_v27  ;;  %v3573_v6 = vrot.slane %v3568_v37, 4  ;;  %v3582_v14 = vrot.slane %v3581_v45, 4  ;;  %v3587_v5 = vperm.slane %v3581_v45, %v8424_v19 }
 0x37a   : > { %v3646_v36 = vpack.i.b16 %v3628_v24, %v3596_v0  ;;  %v3648_v34 = vshrl.u32 %v3628_v24, 16  ;;  %v5540_v29 = vsel %vm2241_vm10, %v5539_v9, %v5532_v3  ;;  %v3575_v11 = vrot.slane %v3572_v57, 4  ;;  %v9523_v3 = vpop.f32.mrf.mxu1 }
 0x37b   : > { %v5556_v60 = vrot.slane %v5555_v53, 4  ;;  %v3574_v30 = vsel %vm2241_vm10, 0, %v3573_v6  ;;  %v5544_v31 = vperm.slane %v5540_v29, %v8424_v19  ;;  %v3583_v21 = vsel %vm2241_vm10, 0, %v3582_v14 }
 0x37c   : > { %v3592_v16 = vrot.slane %v3587_v5, 4  ;;  %v3649_v28 = vpack.i.b16 %v3648_v34, %v3647_v13  ;;  %v3576_v46 = vsel %vm2241_vm10, 0, %v3575_v11  ;;  %v3591_v42 = vperm.slane %v3583_v21, %v8424_v19 }
 0x37d   : > { %v5557_v39 = vsel %vm2241_vm10, %v5556_v60, %v5549_v52  ;;  %v5562_v4 = vsel %vm2241_vm10, %v3575_v11, %v3568_v37  ;;  %v5712_v25 = vshrl.u32 %v5544_v31, 16  ;;  %v5567_v26 = vrot.slane %v3576_v46, 4 }
 0x37e   : > { %v5561_v58 = vperm.slane %v5557_v39, %v8424_v19  ;;  %v3593_v38 = vsel %vm2241_vm10, 0, %v3592_v16  ;;  %v5566_v33 = vperm.slane %v5562_v4, %v8416_v27  ;;  %v3594_v55 = vrot.slane %v3591_v42, 4 }
 0x37f   : > { %v3744_v2 = vperm.slane %v3646_v36, %v8416_v27  ;;  %v3763_v43 = vperm.slane %v3649_v28, %v8416_v27  ;;  %v3629_v54 = vrot.slane %v9494_v22, 4  ;;  %v3653_v51 = vshrl.u32 %v9494_v22, 16 }
 0x380   : > { %v5710_v41 = vpack.i.b16 %v5561_v58, %v5544_v31  ;;  %v5713_v23 = vshrl.u32 %v5561_v58, 16  ;;  %v3595_v50 = vsel %vm2241_vm10, 0, %v3594_v55  ;;  %v5568_v56 = vsel %vm2241_vm10, %v5567_v26, %v3574_v30 }
 0x381   : > { %v5579_v17 = vsel %vm2241_vm10, %v3594_v55, %v3587_v5  ;;  %v3745_v1 = vrot.slane %v3744_v2, 4  ;;  %v5572_v48 = vperm.slane %v5568_v56, %v8416_v27  ;;  %v5584_v0 = vrot.slane %v3595_v50, 4 }
 0x382   : > { %v5714_v12 = vpack.i.b16 %v5713_v23, %v5712_v25  ;;  %5738 = vst [vmem:[%s9109_s6 + $0x38] sm:$0xf] %v5710_v41  ;;  %v5583_v47 = vperm.slane %v5579_v17, %v8416_v27  ;;  %v3750_v18 = vperm.slane %v3744_v2, %v8424_v19  ;;  %v3764_v15 = vrot.slane %v3763_v43, 4  ;;  %v1980_v41 = vpop.f32.mrf.mxu2  ;;  %v2029_v23 = vpop.f32.mrf.mxu3 }
 0x383   : > { %v3746_v20 = vsel %vm2241_vm10, 0, %v3745_v1  ;;  %v3769_v52 = vperm.slane %v3763_v43, %v8424_v19  ;;  %v5573_v32 = vrot.slane %v5572_v48, 4  ;;  %v5585_v44 = vsel %vm2241_vm10, %v5584_v0, %v3593_v38  ;;  %v1882_v38 = vpop.f32.mrf.mxu0 }
 0x384   : > { %5754 = vst [vmem:[%s9109_s6 + $0x78] sm:$0xf] %v5714_v12  ;;  %v3754_v63 = vperm.slane %v3746_v20, %v8424_v19  ;;  %v3652_v37 = vpack.i.b16 %v3629_v54, %v9494_v22  ;;  %v5589_v45 = vperm.slane %v5585_v44, %v8416_v27  ;;  %v3755_v24 = vrot.slane %v3750_v18, 4 }
 0x385   : > { %v3765_v10 = vsel %vm2241_vm10, 0, %v3764_v15  ;;  %v3774_v59 = vrot.slane %v3769_v52, 4  ;;  %v5574_v13 = vsel %vm2241_vm10, %v5573_v32, %v5566_v33  ;;  %v3654_v57 = vshrl.u32 %v3629_v54, 16  ;;  %v1931_v33 = vpop.f32.mrf.mxu1 }
 0x386   : > { %v3757_v9 = vrot.slane %v3754_v63, 4  ;;  %v3773_v53 = vperm.slane %v3765_v10, %v8424_v19  ;;  %v5578_v6 = vperm.slane %v5574_v13, %v8424_v19  ;;  %v5590_v14 = vrot.slane %v5589_v45, 4 }
 0x387   : > { %v3756_v5 = vsel %vm2241_vm10, 0, %v3755_v24  ;;  %v3775_v36 = vsel %vm2241_vm10, 0, %v3774_v59  ;;  %v3655_v60 = vpack.i.b16 %v3654_v57, %v3653_v51  ;;  %v3782_v46 = vperm.slane %v3652_v37, %v8416_v27 }
 0x388   : > { %v3758_v22 = vsel %vm2241_vm10, 0, %v3757_v9  ;;  %v3776_v34 = vrot.slane %v3773_v53, 4  ;;  %v5756_v29 = vsel %vm2241_vm10, %v3757_v9, %v3750_v18  ;;  %v5591_v30 = vsel %vm2241_vm10, %v5590_v14, %v5583_v47 }
 0x389   : > { %v5720_v11 = vshrl.u32 %v5578_v6, 16  ;;  %v5760_v31 = vperm.slane %v5756_v29, %v8416_v27  ;;  %v5761_v21 = vrot.slane %v3758_v22, 4  ;;  %v5595_v16 = vperm.slane %v5591_v30, %v8424_v19 }
 0x38a   : > { %v3777_v28 = vsel %vm2241_vm10, 0, %v3776_v34  ;;  %v5773_v39 = vsel %vm2241_vm10, %v3776_v34, %v3769_v52  ;;  %v3801_v25 = vperm.slane %v3655_v60, %v8416_v27  ;;  %v3783_v43 = vrot.slane %v3782_v46, 4 }
 0x38b   : > { %v5762_v42 = vsel %vm2241_vm10, %v5761_v21, %v3756_v5  ;;  %v5777_v4 = vperm.slane %v5773_v39, %v8416_v27  ;;  %v5778_v58 = vrot.slane %v3777_v28, 4  ;;  %v5718_v55 = vpack.i.b16 %v5595_v16, %v5578_v6  ;;  %v2031_v21 = vpop.f32.mrf.mxu3 }
 0x38c   : > { %v5721_v26 = vshrl.u32 %v5595_v16, 16  ;;  %v5766_v2 = vperm.slane %v5762_v42, %v8416_v27  ;;  %v3788_v51 = vperm.slane %v3782_v46, %v8424_v19  ;;  %v3802_v50 = vrot.slane %v3801_v25, 4 }
 0x38d   : > { %v5779_v54 = vsel %vm2241_vm10, %v5778_v58, %v3775_v36  ;;  %v3807_v56 = vperm.slane %v3801_v25, %v8424_v19  ;;  %5739 = vst [vmem:[%s9109_s6 + $0x3c] sm:$0xf] %v5718_v55  ;;  %v3784_v48 = vsel %vm2241_vm10, 0, %v3783_v43  ;;  %v1927_v44 = vadd.f32 %v9490_v7, %v9488_v40  ;;  %v1933_v34 = vpop.f32.mrf.mxu1 }
 0x38e   : > { %v5722_v17 = vpack.i.b16 %v5721_v26, %v5720_v11  ;;  %v5767_v1 = vrot.slane %v5766_v2, 4  ;;  %v5783_v12 = vperm.slane %v5779_v54, %v8416_v27  ;;  %v3792_v47 = vperm.slane %v3784_v48, %v8424_v19 }
 0x38f   : > { %v3793_v0 = vrot.slane %v3788_v51, 4  ;;  %v3803_v20 = vsel %vm2241_vm10, 0, %v3802_v50  ;;  %v3812_v18 = vrot.slane %v3807_v56, 4  ;;  %v2025_v13 = vadd.f32 %v9498_v8, %v9496_v62 }
 0x390   : > { %5755 = vst [vmem:[%s9109_s6 + $0x7c] sm:$0xf] %v5722_v17  ;;  %v5768_v15 = vsel %vm2241_vm10, %v5767_v1, %v5760_v31  ;;  %v5784_v52 = vrot.slane %v5783_v12, 4  ;;  %v3811_v32 = vperm.slane %v3803_v20, %v8424_v19  ;;  %v3795_v45 = vrot.slane %v3792_v47, 4  ;;  %v1982_v31 = vpop.f32.mrf.mxu2 }
 0x391   : > { %v5772_v63 = vperm.slane %v5768_v15, %v8424_v19  ;;  %v3794_v37 = vsel %vm2241_vm10, 0, %v3793_v0  ;;  %v3813_v24 = vsel %vm2241_vm10, 0, %v3812_v18  ;;  %v1929_v9 = vadd.f32 %v9523_v3, %v9521_v35  ;;  %v1884_v3 = vpop.f32.mrf.mxu0 }
 0x392   : > { %v5785_v10 = vsel %vm2241_vm10, %v5784_v52, %v5777_v4  ;;  %v3814_v59 = vrot.slane %v3811_v32, 4  ;;  %v3796_v40 = vsel %vm2241_vm10, 0, %v3795_v45  ;;  %v5790_v7 = vsel %vm2241_vm10, %v3795_v45, %v3788_v51 }
 0x393   : > { %v5789_v53 = vperm.slane %v5785_v10, %v8424_v19  ;;  %v6304_v57 = vshrl.u32 %v5772_v63, 16  ;;  %v5794_v14 = vperm.slane %v5790_v7, %v8416_v27  ;;  %v5795_v5 = vrot.slane %v3796_v40, 4 }
 0x394   : > { %v3815_v6 = vsel %vm2241_vm10, 0, %v3814_v59  ;;  %v5807_v36 = vsel %vm2241_vm10, %v3814_v59, %v3807_v56  ;;  %v3598_v60 = vpack.c.bf16 %v2025_v13, %v1927_v44  ;;  %v2027_v30 = vadd.f32 %v9530_v61, %v9528_v49 }
 0x395   : > { %v6302_v22 = vpack.i.b16 %v5789_v53, %v5772_v63  ;;  %v6305_v62 = vshrl.u32 %v5789_v53, 16  ;;  %v5811_v8 = vperm.slane %v5807_v36, %v8416_v27  ;;  %v5812_v35 = vrot.slane %v3815_v6, 4 }
 0x396   : > { %v5796_v29 = vsel %vm2241_vm10, %v5795_v5, %v3794_v37  ;;  %v1932_v11 = vadd.f32 %v1931_v33, %v1882_v38  ;;  %v2030_v46 = vadd.f32 %v2029_v23, %v1980_v41  ;;  %v3630_v4 = vrot.slane %v3598_v60, 4 }
 0x397   : > { %v6306_v16 = vpack.i.b16 %v6305_v62, %v6304_v57  ;;  %6428 = vst [vmem:[%s9590_s21] sm:$0xf] %v6302_v22  ;;  %v5800_v28 = vperm.slane %v5796_v29, %v8416_v27  ;;  %v5813_v39 = vsel %vm2241_vm10, %v5812_v35, %v3813_v24  ;;  %v3659_v58 = vshrl.u32 %v3598_v60, 16 }
 0x398   : > { %v5817_v42 = vperm.slane %v5813_v39, %v8416_v27  ;;  %v3599_v25 = vpack.c.bf16 %v2027_v30, %v1929_v9  ;;  %v9597_v61 = vpack.c.bf16 %v2030_v46, %v1932_v11  ;;  %v9599_v38 = vadd.f32 %v1933_v34, %v1884_v3 }
 0x399   : > { %6444 = vst [vmem:[%s9590_s21 + $0x40] sm:$0xf] %v6306_v16  ;;  %v5801_v49 = vrot.slane %v5800_v28, 4  ;;  %v9601_v33 = vadd.f32 %v2031_v21, %v1982_v31  ;;  %v3658_v26 = vpack.i.b16 %v3630_v4, %v3598_v60  ;;  %v3660_v2 = vshrl.u32 %v3630_v4, 16 }
 0x39a   : > { %v5818_v55 = vrot.slane %v5817_v42, 4  ;;  %v3631_v43 = vrot.slane %v3599_v25, 4  ;;  %v3665_v41 = vshrl.u32 %v3599_v25, 16  ;;  %v3632_v23 = vrot.slane %v9597_v61, 4 }
 0x39b   : > { %v5802_v54 = vsel %vm2241_vm10, %v5801_v49, %v5794_v14  ;;  %v3671_v51 = vshrl.u32 %v9597_v61, 16  ;;  %v3661_v17 = vpack.i.b16 %v3660_v2, %v3659_v58  ;;  %v3820_v1 = vperm.slane %v3658_v26, %v8416_v27 }
 0x39c   : > { %v5806_v50 = vperm.slane %v5802_v54, %v8424_v19  ;;  %v5819_v56 = vsel %vm2241_vm10, %v5818_v55, %v5811_v8  ;;  %v3664_v48 = vpack.i.b16 %v3631_v43, %v3599_v25  ;;  %v3666_v47 = vshrl.u32 %v3631_v43, 16 }
 0x39d   : > { %v5823_v12 = vperm.slane %v5819_v56, %v8424_v19  ;;  %v9611_v0 = vpack.i.b16 %v3632_v23, %v9597_v61  ;;  %v3821_v18 = vrot.slane %v3820_v1, 4  ;;  %v3826_v15 = vperm.slane %v3820_v1, %v8424_v19 }
 0x39e   : > { %v6312_v20 = vshrl.u32 %v5806_v50, 16  ;;  %v3839_v52 = vperm.slane %v3661_v17, %v8416_v27  ;;  %v3667_v63 = vpack.i.b16 %v3666_v47, %v3665_v41  ;;  %v3858_v37 = vperm.slane %v3664_v48, %v8416_v27 }
 0x39f   : > { %v6310_v32 = vpack.i.b16 %v5823_v12, %v5806_v50  ;;  %v6313_v44 = vshrl.u32 %v5823_v12, 16  ;;  %v3822_v45 = vsel %vm2241_vm10, 0, %v3821_v18  ;;  %v3831_v24 = vrot.slane %v3826_v15, 4 }
 0x3a0   : > { %v3840_v10 = vrot.slane %v3839_v52, 4  ;;  %v3845_v59 = vperm.slane %v3839_v52, %v8424_v19  ;;  %v3830_v9 = vperm.slane %v3822_v45, %v8424_v19  ;;  %v3859_v53 = vrot.slane %v3858_v37, 4 }
 0x3a1   : > { %v6314_v13 = vpack.i.b16 %v6313_v44, %v6312_v20  ;;  %6429 = vst [vmem:[%s9590_s21 + $0x4] sm:$0xf] %v6310_v32  ;;  %v3864_v57 = vperm.slane %v3858_v37, %v8424_v19  ;;  %v3832_v40 = vsel %vm2241_vm10, 0, %v3831_v24  ;;  %v3877_v14 = vperm.slane %v3667_v63, %v8416_v27 }
 0x3a2   : > { %v3841_v7 = vsel %vm2241_vm10, 0, %v3840_v10  ;;  %v3850_v6 = vrot.slane %v3845_v59, 4  ;;  %v3833_v5 = vrot.slane %v3830_v9, 4  ;;  %v3860_v22 = vsel %vm2241_vm10, 0, %v3859_v53  ;;  %v1887_v9 = vpop.f32.mrf.mxu0  ;;  %v1936_v53 = vpop.f32.mrf.mxu1 }
 0x3a3   : > { %6445 = vst [vmem:[%s9590_s21 + $0x44] sm:$0xf] %v6314_v13  ;;  %v3849_v36 = vperm.slane %v3841_v7, %v8424_v19  ;;  %v3869_v62 = vrot.slane %v3864_v57, 4  ;;  %v3868_v35 = vperm.slane %v3860_v22, %v8424_v19  ;;  %v3878_v3 = vrot.slane %v3877_v14, 4 }
 0x3a4   : > { %v3851_v8 = vsel %vm2241_vm10, 0, %v3850_v6  ;;  %v3883_v34 = vperm.slane %v3877_v14, %v8424_v19  ;;  %v3834_v29 = vsel %vm2241_vm10, 0, %v3833_v5  ;;  %v5824_v30 = vsel %vm2241_vm10, %v3833_v5, %v3826_v15 }
 0x3a5   : > { %v3852_v60 = vrot.slane %v3849_v36, 4  ;;  %v3870_v11 = vsel %vm2241_vm10, 0, %v3869_v62  ;;  %v5828_v31 = vperm.slane %v5824_v30, %v8416_v27  ;;  %v5829_v21 = vrot.slane %v3834_v29, 4 }
 0x3a6   : > { %v3871_v16 = vrot.slane %v3868_v35, 4  ;;  %v3879_v28 = vsel %vm2241_vm10, 0, %v3878_v3  ;;  %v3888_v4 = vrot.slane %v3883_v34, 4  ;;  %v3672_v17 = vshrl.u32 %v3632_v23, 16  ;;  %v2034_v35 = vpop.f32.mrf.mxu3 }
 0x3a7   : > { %v3853_v39 = vsel %vm2241_vm10, 0, %v3852_v60  ;;  %v5841_v46 = vsel %vm2241_vm10, %v3852_v60, %v3845_v59  ;;  %v3887_v42 = vperm.slane %v3879_v28, %v8424_v19  ;;  %v5830_v58 = vsel %vm2241_vm10, %v5829_v21, %v3832_v40 }
 0x3a8   : > { %v5845_v25 = vperm.slane %v5841_v46, %v8416_v27  ;;  %v5846_v49 = vrot.slane %v3853_v39, 4  ;;  %v3872_v55 = vsel %vm2241_vm10, 0, %v3871_v16  ;;  %v5834_v26 = vperm.slane %v5830_v58, %v8416_v27 }
 0x3a9   : > { %v3889_v2 = vsel %vm2241_vm10, 0, %v3888_v4  ;;  %v3890_v43 = vrot.slane %v3887_v42, 4  ;;  %v5858_v54 = vsel %vm2241_vm10, %v3871_v16, %v3864_v57  ;;  %v5863_v56 = vrot.slane %v3872_v55, 4 }
 0x3aa   : > { %v5847_v41 = vsel %vm2241_vm10, %v5846_v49, %v3851_v8  ;;  %v5862_v50 = vperm.slane %v5858_v54, %v8416_v27  ;;  %v5835_v1 = vrot.slane %v5834_v26, 4  ;;  %v3673_v52 = vpack.i.b16 %v3672_v17, %v3671_v51  ;;  %v1985_v8 = vpop.f32.mrf.mxu2 }
 0x3ab   : > { %v5851_v12 = vperm.slane %v5847_v41, %v8416_v27  ;;  %v3891_v48 = vsel %vm2241_vm10, 0, %v3890_v43  ;;  %v5875_v47 = vsel %vm2241_vm10, %v3890_v43, %v3883_v34  ;;  %v5864_v20 = vsel %vm2241_vm10, %v5863_v56, %v3870_v11 }
 0x3ac   : > { %v5879_v18 = vperm.slane %v5875_v47, %v8416_v27  ;;  %v5880_v15 = vrot.slane %v3891_v48, 4  ;;  %v5836_v32 = vsel %vm2241_vm10, %v5835_v1, %v5828_v31  ;;  %v5868_v23 = vperm.slane %v5864_v20, %v8416_v27  ;;  %v1938_v48 = vpop.f32.mrf.mxu1 }
 0x3ad   : > { %v5852_v44 = vrot.slane %v5851_v12, 4  ;;  %v3896_v63 = vperm.slane %v9611_v0, %v8416_v27  ;;  %v5840_v37 = vperm.slane %v5836_v32, %v8424_v19  ;;  %v3915_v24 = vperm.slane %v3673_v52, %v8416_v27  ;;  %v1889_v12 = vpop.f32.mrf.mxu0 }
 0x3ae   : > { %v5881_v45 = vsel %vm2241_vm10, %v5880_v15, %v3889_v2  ;;  %v3601_v10 = vpack.c.bf16 %v9601_v33, %v9599_v38  ;;  %v5869_v51 = vrot.slane %v5868_v23, 4  ;;  %v1937_v15 = vadd.f32 %v1936_v53, %v1887_v9 }
 0x3af   : > { %v5853_v61 = vsel %vm2241_vm10, %v5852_v44, %v5845_v25  ;;  %v5885_v59 = vperm.slane %v5881_v45, %v8416_v27  ;;  %v3897_v13 = vrot.slane %v3896_v63, 4  ;;  %v6320_v0 = vshrl.u32 %v5840_v37, 16 }
 0x3b0   : > { %v5857_v57 = vperm.slane %v5853_v61, %v8424_v19  ;;  %v3902_v40 = vperm.slane %v3896_v63, %v8424_v19  ;;  %v3916_v7 = vrot.slane %v3915_v24, 4  ;;  %v5870_v6 = vsel %vm2241_vm10, %v5869_v51, %v5862_v50  ;;  %v2036_v61 = vpop.f32.mrf.mxu3 }
 0x3b1   : > { %v5886_v14 = vrot.slane %v5885_v59, 4  ;;  %v3898_v38 = vsel %vm2241_vm10, 0, %v3897_v13  ;;  %v3921_v33 = vperm.slane %v3915_v24, %v8424_v19  ;;  %v5874_v22 = vperm.slane %v5870_v6, %v8424_v19 }
 0x3b2   : > { %v6318_v5 = vpack.i.b16 %v5857_v57, %v5840_v37  ;;  %v6321_v36 = vshrl.u32 %v5857_v57, 16  ;;  %v3906_v62 = vperm.slane %v3898_v38, %v8424_v19  ;;  %v3907_v34 = vrot.slane %v3902_v40, 4 }
 0x3b3   : > { %v5887_v3 = vsel %vm2241_vm10, %v5886_v14, %v5879_v18  ;;  %v3917_v29 = vsel %vm2241_vm10, 0, %v3916_v7  ;;  %v3926_v60 = vrot.slane %v3921_v33, 4  ;;  %v6328_v21 = vshrl.u32 %v5874_v22, 16 }
 0x3b4   : > { %v6322_v30 = vpack.i.b16 %v6321_v36, %v6320_v0  ;;  %6430 = vst [vmem:[%s9590_s21 + $0x8] sm:$0xf] %v6318_v5  ;;  %v5891_v11 = vperm.slane %v5887_v3, %v8424_v19  ;;  %v3909_v31 = vrot.slane %v3906_v62, 4  ;;  %v3908_v16 = vsel %vm2241_vm10, 0, %v3907_v34 }
 0x3b5   : > { %v3925_v28 = vperm.slane %v3917_v29, %v8424_v19  ;;  %v3633_v39 = vrot.slane %v3601_v10, 4  ;;  %v3927_v25 = vsel %vm2241_vm10, 0, %v3926_v60  ;;  %v3677_v54 = vshrl.u32 %v3601_v10, 16 }
 0x3b6   : > { %6446 = vst [vmem:[%s9590_s21 + $0x48] sm:$0xf] %v6322_v30  ;;  %v6326_v46 = vpack.i.b16 %v5891_v11, %v5874_v22  ;;  %v6329_v42 = vshrl.u32 %v5891_v11, 16  ;;  %v3910_v4 = vsel %vm2241_vm10, 0, %v3909_v31  ;;  %v5892_v58 = vsel %vm2241_vm10, %v3909_v31, %v3902_v40 }
 0x3b7   : > { %v3928_v49 = vrot.slane %v3925_v28, 4  ;;  %v5897_v55 = vrot.slane %v3910_v4, 4  ;;  %v3676_v26 = vpack.i.b16 %v3633_v39, %v3601_v10  ;;  %v5896_v43 = vperm.slane %v5892_v58, %v8416_v27  ;;  %v1987_v10 = vpop.f32.mrf.mxu2 }
 0x3b8   : > { %v6330_v2 = vpack.i.b16 %v6329_v42, %v6328_v21  ;;  %6431 = vst [vmem:[%s9590_s21 + $0xc] sm:$0xf] %v6326_v46  ;;  %v3678_v41 = vshrl.u32 %v3633_v39, 16  ;;  %v2035_v23 = vadd.f32 %v2034_v35, %v1985_v8  ;;  %v1939_v24 = vadd.f32 %v1938_v48, %v1889_v12 }
 0x3b9   : > { %v3929_v50 = vsel %vm2241_vm10, 0, %v3928_v49  ;;  %v5898_v56 = vsel %vm2241_vm10, %v5897_v55, %v3908_v16  ;;  %v5909_v17 = vsel %vm2241_vm10, %v3928_v49, %v3921_v33  ;;  %v3934_v1 = vperm.slane %v3676_v26, %v8416_v27  ;;  %v1892_v55 = vpop.f32.mrf.mxu0  ;;  %v1941_v26 = vpop.f32.mrf.mxu1 }
 0x3ba   : > { %6447 = vst [vmem:[%s9590_s21 + $0x4c] sm:$0xf] %v6330_v2  ;;  %v5902_v47 = vperm.slane %v5898_v56, %v8416_v27  ;;  %v5914_v20 = vrot.slane %v3929_v50, 4  ;;  %v3679_v18 = vpack.i.b16 %v3678_v41, %v3677_v54  ;;  %v5913_v52 = vperm.slane %v5909_v17, %v8416_v27 }
 0x3bb   : > { %v3935_v32 = vrot.slane %v3934_v1, 4  ;;  %v3940_v44 = vperm.slane %v3934_v1, %v8424_v19  ;;  %v3602_v9 = vpack.c.bf16 %v2035_v23, %v1937_v15  ;;  %v2037_v38 = vadd.f32 %v2036_v61, %v1987_v10  ;;  %v2039_v15 = vpop.f32.mrf.mxu3 }
 0x3bc   : > { %v5903_v63 = vrot.slane %v5902_v47, 4  ;;  %v5915_v37 = vsel %vm2241_vm10, %v5914_v20, %v3927_v25  ;;  %v3953_v45 = vperm.slane %v3679_v18, %v8416_v27 }
 0x3bd   : > { %v5919_v51 = vperm.slane %v5915_v37, %v8416_v27  ;;  %v3936_v59 = vsel %vm2241_vm10, 0, %v3935_v32  ;;  %v3945_v13 = vrot.slane %v3940_v44, 4  ;;  %v3634_v14 = vrot.slane %v3602_v9, 4 }
 0x3be   : > { %v5904_v53 = vsel %vm2241_vm10, %v5903_v63, %v5896_v43  ;;  %v3944_v57 = vperm.slane %v3936_v59, %v8424_v19  ;;  %v3954_v0 = vrot.slane %v3953_v45, 4  ;;  %v3959_v40 = vperm.slane %v3953_v45, %v8424_v19 }
 0x3bf   : > { %v5908_v7 = vperm.slane %v5904_v53, %v8424_v19  ;;  %v5920_v6 = vrot.slane %v5919_v51, 4  ;;  %v3946_v33 = vsel %vm2241_vm10, 0, %v3945_v13  ;;  %v3682_v35 = vpack.i.b16 %v3634_v14, %v3602_v9  ;;  %v1990_v18 = vpop.f32.mrf.mxu2 }
 0x3c0   : > { %v3947_v5 = vrot.slane %v3944_v57, 4  ;;  %v3955_v36 = vsel %vm2241_vm10, 0, %v3954_v0  ;;  %v3964_v22 = vrot.slane %v3959_v40, 4  ;;  %v3683_v3 = vshrl.u32 %v3602_v9, 16 }
 0x3c1   : > { %v5921_v62 = vsel %vm2241_vm10, %v5920_v6, %v5913_v52  ;;  %v3963_v8 = vperm.slane %v3955_v36, %v8424_v19  ;;  %v6336_v29 = vshrl.u32 %v5908_v7, 16  ;;  %v3684_v16 = vshrl.u32 %v3634_v14, 16 }
 0x3c2   : > { %v5925_v34 = vperm.slane %v5921_v62, %v8424_v19  ;;  %v3948_v60 = vsel %vm2241_vm10, 0, %v3947_v5  ;;  %v3965_v30 = vsel %vm2241_vm10, 0, %v3964_v22  ;;  %v5926_v31 = vsel %vm2241_vm10, %v3947_v5, %v3940_v44 }
 0x3c3   : > { %v3966_v11 = vrot.slane %v3963_v8, 4  ;;  %v5931_v21 = vrot.slane %v3948_v60, 4  ;;  %v3972_v46 = vperm.slane %v3682_v35, %v8416_v27  ;;  %v3603_v42 = vpack.c.bf16 %v2037_v38, %v1939_v24  ;;  %v1894_v35 = vpop.f32.mrf.mxu0 }
 0x3c4   : > { %v6334_v28 = vpack.i.b16 %v5925_v34, %v5908_v7  ;;  %v6337_v39 = vshrl.u32 %v5925_v34, 16  ;;  %v3685_v49 = vpack.i.b16 %v3684_v16, %v3683_v3  ;;  %v5930_v43 = vperm.slane %v5926_v31, %v8416_v27  ;;  %v1943_v3 = vpop.f32.mrf.mxu1 }
 0x3c5   : > { %v3967_v4 = vsel %vm2241_vm10, 0, %v3966_v11  ;;  %v5932_v58 = vsel %vm2241_vm10, %v5931_v21, %v3946_v33  ;;  %v5943_v25 = vsel %vm2241_vm10, %v3966_v11, %v3959_v40  ;;  %v3973_v50 = vrot.slane %v3972_v46, 4 }
 0x3c6   : > { %v6338_v2 = vpack.i.b16 %v6337_v39, %v6336_v29  ;;  %6432 = vst [vmem:[%s9590_s21 + $0x10] sm:$0xf] %v6334_v28  ;;  %v5936_v54 = vperm.slane %v5932_v58, %v8416_v27  ;;  %v5948_v41 = vrot.slane %v3967_v4, 4  ;;  %v3978_v56 = vperm.slane %v3972_v46, %v8424_v19  ;;  %v2041_v58 = vpop.f32.mrf.mxu3 }
 0x3c7   : > { %v3991_v17 = vperm.slane %v3685_v49, %v8416_v27  ;;  %v3635_v1 = vrot.slane %v3603_v42, 4  ;;  %v5947_v48 = vperm.slane %v5943_v25, %v8416_v27  ;;  %v3689_v20 = vshrl.u32 %v3603_v42, 16  ;;  %v1992_v4 = vpop.f32.mrf.mxu2 }
 0x3c8   : > { %6448 = vst [vmem:[%s9590_s21 + $0x50] sm:$0xf] %v6338_v2  ;;  %v5937_v12 = vrot.slane %v5936_v54, 4  ;;  %v5949_v47 = vsel %vm2241_vm10, %v5948_v41, %v3965_v30  ;;  %v3974_v32 = vsel %vm2241_vm10, 0, %v3973_v50  ;;  %v3983_v44 = vrot.slane %v3978_v56, 4 }
 0x3c9   : > { %v5953_v52 = vperm.slane %v5949_v47, %v8416_v27  ;;  %v3992_v23 = vrot.slane %v3991_v17, 4  ;;  %v3982_v37 = vperm.slane %v3974_v32, %v8424_v19  ;;  %v3997_v45 = vperm.slane %v3991_v17, %v8424_v19 }
 0x3ca   : > { %v5938_v63 = vsel %vm2241_vm10, %v5937_v12, %v5930_v43  ;;  %v3688_v24 = vpack.i.b16 %v3635_v1, %v3603_v42  ;;  %v1942_v59 = vadd.f32 %v1941_v26, %v1892_v55  ;;  %v3690_v57 = vshrl.u32 %v3635_v1, 16 }
 0x3cb   : > { %v5942_v10 = vperm.slane %v5938_v63, %v8424_v19  ;;  %v5954_v61 = vrot.slane %v5953_v52, 4  ;;  %v3993_v51 = vsel %vm2241_vm10, 0, %v3992_v23  ;;  %v3985_v13 = vrot.slane %v3982_v37, 4 }
 0x3cc   : > { %v4001_v9 = vperm.slane %v3993_v51, %v8424_v19  ;;  %v4002_v53 = vrot.slane %v3997_v45, 4  ;;  %v3984_v7 = vsel %vm2241_vm10, 0, %v3983_v44  ;;  %v4010_v6 = vperm.slane %v3688_v24, %v8416_v27  ;;  %v1897_v51 = vpop.f32.mrf.mxu0 }
 0x3cd   : > { %v5955_v0 = vsel %vm2241_vm10, %v5954_v61, %v5947_v48  ;;  %v6344_v40 = vshrl.u32 %v5942_v10, 16  ;;  %v3986_v38 = vsel %vm2241_vm10, 0, %v3985_v13  ;;  %v2040_v5 = vadd.f32 %v2039_v15, %v1990_v18 }
 0x3ce   : > { %v5959_v14 = vperm.slane %v5955_v0, %v8424_v19  ;;  %v4004_v33 = vrot.slane %v4001_v9, 4  ;;  %v5960_v36 = vsel %vm2241_vm10, %v3985_v13, %v3978_v56  ;;  %v5965_v22 = vrot.slane %v3986_v38, 4 }
 0x3cf   : > { %v3691_v62 = vpack.i.b16 %v3690_v57, %v3689_v20  ;;  %v4011_v8 = vrot.slane %v4010_v6, 4  ;;  %v4003_v60 = vsel %vm2241_vm10, 0, %v4002_v53  ;;  %v5964_v39 = vperm.slane %v5960_v36, %v8416_v27  ;;  %v1995_v36 = vpop.f32.mrf.mxu2 }
 0x3d0   : > { %v6342_v34 = vpack.i.b16 %v5959_v14, %v5942_v10  ;;  %v6345_v29 = vshrl.u32 %v5959_v14, 16  ;;  %v4005_v30 = vsel %vm2241_vm10, 0, %v4004_v33  ;;  %v5966_v11 = vsel %vm2241_vm10, %v5965_v22, %v3984_v7  ;;  %v2044_v22 = vpop.f32.mrf.mxu3 }
 0x3d1   : > { %v5977_v31 = vsel %vm2241_vm10, %v4004_v33, %v3997_v45  ;;  %v5982_v21 = vrot.slane %v4005_v30, 4  ;;  %v4012_v16 = vsel %vm2241_vm10, 0, %v4011_v8  ;;  %v5970_v46 = vperm.slane %v5966_v11, %v8416_v27 }
 0x3d2   : > { %v6346_v28 = vpack.i.b16 %v6345_v29, %v6344_v40  ;;  %6433 = vst [vmem:[%s9590_s21 + $0x14] sm:$0xf] %v6342_v34  ;;  %v4016_v42 = vperm.slane %v4010_v6, %v8424_v19  ;;  %v4020_v49 = vperm.slane %v4012_v16, %v8424_v19  ;;  %v4029_v55 = vperm.slane %v3691_v62, %v8416_v27 }
 0x3d3   : > { %v5983_v25 = vsel %vm2241_vm10, %v5982_v21, %v4003_v60  ;;  %v3604_v26 = vpack.c.bf16 %v2040_v5, %v1942_v59  ;;  %v5971_v2 = vrot.slane %v5970_v46, 4  ;;  %v5981_v43 = vperm.slane %v5977_v31, %v8416_v27  ;;  %v1946_v59 = vpop.f32.mrf.mxu1 }
 0x3d4   : > { %6449 = vst [vmem:[%s9590_s21 + $0x54] sm:$0xf] %v6346_v28  ;;  %v5987_v54 = vperm.slane %v5983_v25, %v8416_v27  ;;  %v4021_v41 = vrot.slane %v4016_v42, 4  ;;  %v4023_v50 = vrot.slane %v4020_v49, 4  ;;  %v4030_v56 = vrot.slane %v4029_v55, 4 }
 0x3d5   : > { %v4035_v17 = vperm.slane %v4029_v55, %v8424_v19  ;;  %v1944_v1 = vadd.f32 %v1943_v3, %v1894_v35  ;;  %v5972_v12 = vsel %vm2241_vm10, %v5971_v2, %v5964_v39  ;;  %v3636_v20 = vrot.slane %v3604_v26, 4 }
 0x3d6   : > { %v5988_v48 = vrot.slane %v5987_v54, 4  ;;  %v4022_v47 = vsel %vm2241_vm10, 0, %v4021_v41  ;;  %v5976_v18 = vperm.slane %v5972_v12, %v8424_v19  ;;  %v4024_v15 = vsel %vm2241_vm10, 0, %v4023_v50 }
 0x3d7   : > { %v4031_v52 = vsel %vm2241_vm10, 0, %v4030_v56  ;;  %v4040_v32 = vrot.slane %v4035_v17, 4  ;;  %v5999_v63 = vrot.slane %v4024_v15, 4  ;;  %v3695_v37 = vshrl.u32 %v3604_v26, 16 }
 0x3d8   : > { %v5989_v44 = vsel %vm2241_vm10, %v5988_v48, %v5981_v43  ;;  %v4039_v23 = vperm.slane %v4031_v52, %v8424_v19  ;;  %v6352_v24 = vshrl.u32 %v5976_v18, 16  ;;  %v5994_v61 = vsel %vm2241_vm10, %v4023_v50, %v4016_v42 }
 0x3d9   : > { %v5993_v45 = vperm.slane %v5989_v44, %v8424_v19  ;;  %v4041_v10 = vsel %vm2241_vm10, 0, %v4040_v32  ;;  %v6000_v9 = vsel %vm2241_vm10, %v5999_v63, %v4022_v47  ;;  %v3694_v53 = vpack.i.b16 %v3636_v20, %v3604_v26 }
 0x3da   : > { %v4042_v13 = vrot.slane %v4039_v23, 4  ;;  %v3696_v57 = vshrl.u32 %v3636_v20, 16  ;;  %v6004_v7 = vperm.slane %v6000_v9, %v8416_v27  ;;  %v2042_v6 = vadd.f32 %v2041_v58, %v1992_v4 }
 0x3db   : > { %v6350_v0 = vpack.i.b16 %v5993_v45, %v5976_v18  ;;  %v6353_v40 = vshrl.u32 %v5993_v45, 16  ;;  %v4048_v5 = vperm.slane %v3694_v53, %v8416_v27  ;;  %v5998_v8 = vperm.slane %v5994_v61, %v8416_v27 }
 0x3dc   : > { %v4043_v14 = vsel %vm2241_vm10, 0, %v4042_v13  ;;  %v6011_v38 = vsel %vm2241_vm10, %v4042_v13, %v4035_v17  ;;  %v3697_v33 = vpack.i.b16 %v3696_v57, %v3695_v37  ;;  %v6005_v35 = vrot.slane %v6004_v7, 4  ;;  %v9779_v17 = vpop.f32.mrf.mxu0  ;;  %v9798_v7 = vpop.f32.mrf.mxu2 }
 0x3dd   : > { %v6354_v62 = vpack.i.b16 %v6353_v40, %v6352_v24  ;;  %6434 = vst [vmem:[%s9590_s21 + $0x18] sm:$0xf] %v6350_v0  ;;  %v6016_v3 = vrot.slane %v4043_v14, 4  ;;  %v4049_v34 = vrot.slane %v4048_v5, 4  ;;  %v4054_v29 = vperm.slane %v4048_v5, %v8424_v19 }
 0x3de   : > { %v4067_v60 = vperm.slane %v3697_v33, %v8416_v27  ;;  %v3605_v30 = vpack.c.bf16 %v2042_v6, %v1944_v1  ;;  %v6006_v11 = vsel %vm2241_vm10, %v6005_v35, %v5998_v8  ;;  %v6015_v31 = vperm.slane %v6011_v38, %v8416_v27  ;;  %v9781_v1 = vpop.f32.mrf.mxu1  ;;  %v9800_v6 = vpop.f32.mrf.mxu3 }
 0x3df   : > { %6450 = vst [vmem:[%s9590_s21 + $0x58] sm:$0xf] %v6354_v62  ;;  %v6017_v21 = vsel %vm2241_vm10, %v6016_v3, %v4041_v10  ;;  %v2045_v16 = vadd.f32 %v2044_v22, %v1995_v36  ;;  %v6010_v28 = vperm.slane %v6006_v11, %v8424_v19  ;;  %v4050_v46 = vsel %vm2241_vm10, 0, %v4049_v34 }
 0x3e0   : > { %v6021_v39 = vperm.slane %v6017_v21, %v8416_v27  ;;  %v4059_v42 = vrot.slane %v4054_v29, 4  ;;  %v4058_v4 = vperm.slane %v4050_v46, %v8424_v19  ;;  %v4068_v58 = vrot.slane %v4067_v60, 4 }
 0x3e1   : > { %v4073_v25 = vperm.slane %v4067_v60, %v8424_v19  ;;  %v3637_v49 = vrot.slane %v3605_v30, 4  ;;  %v6360_v26 = vshrl.u32 %v6010_v28, 16  ;;  %v3701_v2 = vshrl.u32 %v3605_v30, 16 }
 0x3e2   : > { %v6022_v55 = vrot.slane %v6021_v39, 4  ;;  %v1947_v43 = vadd.f32 %v1946_v59, %v1897_v51  ;;  %v4061_v54 = vrot.slane %v4058_v4, 4  ;;  %v4069_v41 = vsel %vm2241_vm10, 0, %v4068_v58 }
 0x3e3   : > { %v4078_v50 = vrot.slane %v4073_v25, 4  ;;  %v3700_v56 = vpack.i.b16 %v3637_v49, %v3605_v30  ;;  %v4077_v48 = vperm.slane %v4069_v41, %v8424_v19  ;;  %v3702_v47 = vshrl.u32 %v3637_v49, 16 }
 0x3e4   : > { %v6023_v12 = vsel %vm2241_vm10, %v6022_v55, %v6015_v31  ;;  %v3606_v20 = vpack.c.bf16 %v2045_v16, %v1947_v43  ;;  %v4060_v15 = vsel %vm2241_vm10, 0, %v4059_v42  ;;  %v4062_v52 = vsel %vm2241_vm10, 0, %v4061_v54  ;;  %v1902_v21 = vpop.f32.mrf.mxu0 }
 0x3e5   : > { %v6027_v18 = vperm.slane %v6023_v12, %v8424_v19  ;;  %v4079_v32 = vsel %vm2241_vm10, 0, %v4078_v50  ;;  %v4080_v44 = vrot.slane %v4077_v48, 4  ;;  %v6028_v23 = vsel %vm2241_vm10, %v4061_v54, %v4054_v29 }
 0x3e6   : > { %v6033_v63 = vrot.slane %v4062_v52, 4  ;;  %v3703_v37 = vpack.i.b16 %v3702_v47, %v3701_v2  ;;  %v4086_v10 = vperm.slane %v3700_v56, %v8416_v27  ;;  %v3638_v61 = vrot.slane %v3606_v20, 4  ;;  %v1951_v16 = vpop.f32.mrf.mxu1 }
 0x3e7   : > { %v6358_v45 = vpack.i.b16 %v6027_v18, %v6010_v28  ;;  %v6361_v24 = vshrl.u32 %v6027_v18, 16  ;;  %v4081_v51 = vsel %vm2241_vm10, 0, %v4080_v44  ;;  %v6045_v13 = vsel %vm2241_vm10, %v4080_v44, %v4073_v25  ;;  %v2000_v44 = vpop.f32.mrf.mxu2 }
 0x3e8   : > { %v6034_v59 = vsel %vm2241_vm10, %v6033_v63, %v4060_v15  ;;  %v4105_v9 = vperm.slane %v3703_v37, %v8416_v27  ;;  %v6032_v57 = vperm.slane %v6028_v23, %v8416_v27  ;;  %v6050_v40 = vrot.slane %v4081_v51, 4  ;;  %v2049_v23 = vpop.f32.mrf.mxu3 }
 0x3e9   : > { %v6362_v53 = vpack.i.b16 %v6361_v24, %v6360_v26  ;;  %6435 = vst [vmem:[%s9590_s21 + $0x1c] sm:$0xf] %v6358_v45  ;;  %v6038_v0 = vperm.slane %v6034_v59, %v8416_v27  ;;  %v4087_v14 = vrot.slane %v4086_v10, 4  ;;  %v4092_v38 = vperm.slane %v4086_v10, %v8424_v19 }
 0x3ea   : > { %v4106_v33 = vrot.slane %v4105_v9, 4  ;;  %v4111_v5 = vperm.slane %v4105_v9, %v8424_v19  ;;  %v6049_v22 = vperm.slane %v6045_v13, %v8416_v27  ;;  %v6051_v62 = vsel %vm2241_vm10, %v6050_v40, %v4079_v32 }
 0x3eb   : > { %6451 = vst [vmem:[%s9590_s21 + $0x5c] sm:$0xf] %v6362_v53  ;;  %v6039_v36 = vrot.slane %v6038_v0, 4  ;;  %v3706_v8 = vpack.i.b16 %v3638_v61, %v3606_v20  ;;  %v6055_v35 = vperm.slane %v6051_v62, %v8416_v27  ;;  %v4088_v3 = vsel %vm2241_vm10, 0, %v4087_v14 }
 0x3ec   : > { %v4097_v34 = vrot.slane %v4092_v38, 4  ;;  %v4107_v29 = vsel %vm2241_vm10, 0, %v4106_v33  ;;  %v4096_v30 = vperm.slane %v4088_v3, %v8424_v19  ;;  %v4116_v31 = vrot.slane %v4111_v5, 4  ;;  %v1904_v14 = vpop.f32.mrf.mxu0 }
 0x3ed   : > { %v6040_v60 = vsel %vm2241_vm10, %v6039_v36, %v6032_v57  ;;  %v4115_v11 = vperm.slane %v4107_v29, %v8424_v19  ;;  %v6056_v39 = vrot.slane %v6055_v35, 4  ;;  %v3707_v46 = vshrl.u32 %v3606_v20, 16 }
 0x3ee   : > { %v6044_v28 = vperm.slane %v6040_v60, %v8424_v19  ;;  %v3708_v42 = vshrl.u32 %v3638_v61, 16  ;;  %v4098_v4 = vsel %vm2241_vm10, 0, %v4097_v34  ;;  %v4099_v58 = vrot.slane %v4096_v30, 4 }
 0x3ef   : > { %v4118_v25 = vrot.slane %v4115_v11, 4  ;;  %v4124_v49 = vperm.slane %v3706_v8, %v8416_v27  ;;  %v6057_v55 = vsel %vm2241_vm10, %v6056_v39, %v6049_v22  ;;  %v4117_v2 = vsel %vm2241_vm10, 0, %v4116_v31 }
 0x3f0   : > { %v6368_v26 = vshrl.u32 %v6044_v28, 16  ;;  %v3709_v43 = vpack.i.b16 %v3708_v42, %v3707_v46  ;;  %v6061_v54 = vperm.slane %v6057_v55, %v8424_v19  ;;  %v4100_v41 = vsel %vm2241_vm10, 0, %v4099_v58 }
 0x3f1   : > { %v4119_v50 = vsel %vm2241_vm10, 0, %v4118_v25  ;;  %v6062_v56 = vsel %vm2241_vm10, %v4099_v58, %v4092_v38  ;;  %v6067_v48 = vrot.slane %v4100_v41, 4  ;;  %v1949_v20 = vadd.f32 %v9781_v1, %v9779_v17  ;;  %v1953_v38 = vpop.f32.mrf.mxu1 }
 0x3f2   : > { %v6066_v12 = vperm.slane %v6062_v56, %v8416_v27  ;;  %v6084_v47 = vrot.slane %v4119_v50, 4  ;;  %v6366_v18 = vpack.i.b16 %v6061_v54, %v6044_v28  ;;  %v6369_v15 = vshrl.u32 %v6061_v54, 16 }
 0x3f3   : > { %v6079_v52 = vsel %vm2241_vm10, %v4118_v25, %v4111_v5  ;;  %v4125_v32 = vrot.slane %v4124_v49, 4  ;;  %v6068_v63 = vsel %vm2241_vm10, %v6067_v48, %v4098_v4  ;;  %v4130_v45 = vperm.slane %v4124_v49, %v8424_v19  ;;  %v2002_v25 = vpop.f32.mrf.mxu2  ;;  %v2051_v49 = vpop.f32.mrf.mxu3 }
 0x3f4   : > { %v6085_v37 = vsel %vm2241_vm10, %v6084_v47, %v4117_v2  ;;  %v4143_v24 = vperm.slane %v3709_v43, %v8416_v27  ;;  %v6370_v10 = vpack.i.b16 %v6369_v15, %v6368_v26  ;;  %6436 = vst [vmem:[%s9590_s21 + $0x20] sm:$0xf] %v6366_v18  ;;  %v6072_v17 = vperm.slane %v6068_v63, %v8416_v27  ;;  %v1907_v63 = vpop.f32.mrf.mxu0 }
 0x3f5   : > { %v6089_v1 = vperm.slane %v6085_v37, %v8416_v27  ;;  %v4126_v61 = vsel %vm2241_vm10, 0, %v4125_v32  ;;  %v4135_v59 = vrot.slane %v4130_v45, 4  ;;  %v6083_v57 = vperm.slane %v6079_v52, %v8416_v27 }
 0x3f6   : > { %v4134_v51 = vperm.slane %v4126_v61, %v8424_v19  ;;  %v4144_v13 = vrot.slane %v4143_v24, 4  ;;  %v4149_v9 = vperm.slane %v4143_v24, %v8424_v19  ;;  %6452 = vst [vmem:[%s9590_s21 + $0x60] sm:$0xf] %v6370_v10  ;;  %v6073_v53 = vrot.slane %v6072_v17, 4 }
 0x3f7   : > { %v6090_v0 = vrot.slane %v6089_v1, 4  ;;  %v2047_v40 = vadd.f32 %v9800_v6, %v9798_v7  ;;  %v1952_v22 = vadd.f32 %v1951_v16, %v1902_v21  ;;  %v4136_v7 = vsel %vm2241_vm10, 0, %v4135_v59 }
 0x3f8   : > { %v4137_v33 = vrot.slane %v4134_v51, 4  ;;  %v4145_v5 = vsel %vm2241_vm10, 0, %v4144_v13  ;;  %v4154_v36 = vrot.slane %v4149_v9, 4  ;;  %v6074_v62 = vsel %vm2241_vm10, %v6073_v53, %v6066_v12 }
 0x3f9   : > { %v6091_v8 = vsel %vm2241_vm10, %v6090_v0, %v6083_v57  ;;  %v4153_v35 = vperm.slane %v4145_v5, %v8424_v19  ;;  %v3607_v3 = vpack.c.bf16 %v2047_v40, %v1949_v20  ;;  %v6078_v34 = vperm.slane %v6074_v62, %v8424_v19  ;;  %v1956_v37 = vpop.f32.mrf.mxu1 }
 0x3fa   : > { %v6095_v29 = vperm.slane %v6091_v8, %v8424_v19  ;;  %v4138_v6 = vsel %vm2241_vm10, 0, %v4137_v33  ;;  %v6096_v30 = vsel %vm2241_vm10, %v4137_v33, %v4130_v45  ;;  %v4155_v39 = vsel %vm2241_vm10, 0, %v4154_v36 }
 0x3fb   : > { %v4156_v60 = vrot.slane %v4153_v35, 4  ;;  %v6101_v11 = vrot.slane %v4138_v6, 4  ;;  %v3639_v31 = vrot.slane %v3607_v3, 4  ;;  %v6376_v16 = vshrl.u32 %v6078_v34, 16 }
 0x3fc   : > { %v6374_v21 = vpack.i.b16 %v6095_v29, %v6078_v34  ;;  %v6377_v28 = vshrl.u32 %v6095_v29, 16  ;;  %v6100_v42 = vperm.slane %v6096_v30, %v8416_v27  ;;  %v3713_v54 = vshrl.u32 %v3607_v3, 16 }
 0x3fd   : > { %v4157_v46 = vsel %vm2241_vm10, 0, %v4156_v60  ;;  %v6102_v4 = vsel %vm2241_vm10, %v6101_v11, %v4136_v7  ;;  %v3712_v58 = vpack.i.b16 %v3639_v31, %v3607_v3  ;;  %v6113_v2 = vsel %vm2241_vm10, %v4156_v60, %v4149_v9 }
 0x3fe   : > { %v6378_v55 = vpack.i.b16 %v6377_v28, %v6376_v16  ;;  %6437 = vst [vmem:[%s9590_s21 + $0x24] sm:$0xf] %v6374_v21  ;;  %v6106_v26 = vperm.slane %v6102_v4, %v8416_v27  ;;  %v6118_v43 = vrot.slane %v4157_v46, 4  ;;  %v3714_v41 = vshrl.u32 %v3639_v31, 16 }
 0x3ff   : > { %v4162_v50 = vperm.slane %v3712_v58, %v8416_v27  ;;  %v2050_v56 = vadd.f32 %v2049_v23, %v2000_v44  ;;  %v1954_v47 = vadd.f32 %v1953_v38, %v1904_v14  ;;  %v2052_v20 = vadd.f32 %v2051_v49, %v2002_v25 }
 0x400   : > { %6453 = vst [vmem:[%s9590_s21 + $0x64] sm:$0xf] %v6378_v55  ;;  %v6107_v12 = vrot.slane %v6106_v26, 4  ;;  %v6119_v48 = vsel %vm2241_vm10, %v6118_v43, %v4155_v39  ;;  %v3715_v15 = vpack.i.b16 %v3714_v41, %v3713_v54  ;;  %v6117_v24 = vperm.slane %v6113_v2, %v8416_v27 }
 0x401   : > { %v6123_v18 = vperm.slane %v6119_v48, %v8416_v27  ;;  %v4163_v52 = vrot.slane %v4162_v50, 4  ;;  %v4168_v32 = vperm.slane %v4162_v50, %v8424_v19  ;;  %v3608_v10 = vpack.c.bf16 %v2050_v56, %v1952_v22 }
 0x402   : > { %v6108_v45 = vsel %vm2241_vm10, %v6107_v12, %v6100_v42  ;;  %v3609_v44 = vpack.c.bf16 %v2052_v20, %v1954_v47  ;;  %v4181_v59 = vperm.slane %v3715_v15, %v8416_v27  ;;  %v9867_v9 = vadd.f32 %v1956_v37, %v1907_v63 }
 0x403   : > { %v6112_v23 = vperm.slane %v6108_v45, %v8424_v19  ;;  %v6124_v17 = vrot.slane %v6123_v18, 4  ;;  %v4164_v1 = vsel %vm2241_vm10, 0, %v4163_v52  ;;  %v4173_v61 = vrot.slane %v4168_v32, 4 }
 0x404   : > { %v4172_v51 = vperm.slane %v4164_v1, %v8424_v19  ;;  %v3640_v13 = vrot.slane %v3608_v10, 4  ;;  %v3719_v0 = vshrl.u32 %v3608_v10, 16  ;;  %v3641_v40 = vrot.slane %v3609_v44, 4 }
 0x405   : > { %v6125_v53 = vsel %vm2241_vm10, %v6124_v17, %v6117_v24  ;;  %v6384_v57 = vshrl.u32 %v6112_v23, 16  ;;  %v4182_v33 = vrot.slane %v4181_v59, 4  ;;  %v4187_v5 = vperm.slane %v4181_v59, %v8424_v19 }
 0x406   : > { %v6129_v14 = vperm.slane %v6125_v53, %v8424_v19  ;;  %v4175_v38 = vrot.slane %v4172_v51, 4  ;;  %v4174_v36 = vsel %vm2241_vm10, 0, %v4173_v61  ;;  %v3718_v22 = vpack.i.b16 %v3640_v13, %v3608_v10  ;;  %v2005_v10 = vpop.f32.mrf.mxu2 }
 0x407   : > { %v3720_v62 = vshrl.u32 %v3640_v13, 16  ;;  %v3724_v8 = vpack.i.b16 %v3641_v40, %v3609_v44  ;;  %v4183_v29 = vsel %vm2241_vm10, 0, %v4182_v33  ;;  %v4192_v6 = vrot.slane %v4187_v5, 4 }
 0x408   : > { %v6382_v35 = vpack.i.b16 %v6129_v14, %v6112_v23  ;;  %v6385_v3 = vshrl.u32 %v6129_v14, 16  ;;  %v4176_v34 = vsel %vm2241_vm10, 0, %v4175_v38  ;;  %v4191_v7 = vperm.slane %v4183_v29, %v8424_v19 }
 0x409   : > { %v6130_v60 = vsel %vm2241_vm10, %v4175_v38, %v4168_v32  ;;  %v6135_v30 = vrot.slane %v4176_v34, 4  ;;  %v3721_v31 = vpack.i.b16 %v3720_v62, %v3719_v0  ;;  %v4200_v21 = vperm.slane %v3718_v22, %v8416_v27 }
 0x40a   : > { %v6386_v11 = vpack.i.b16 %v6385_v3, %v6384_v57  ;;  %6438 = vst [vmem:[%s9590_s21 + $0x28] sm:$0xf] %v6382_v35  ;;  %v3725_v16 = vshrl.u32 %v3609_v44, 16  ;;  %v4194_v28 = vrot.slane %v4191_v7, 4  ;;  %v6134_v39 = vperm.slane %v6130_v60, %v8416_v27  ;;  %v2054_v44 = vpop.f32.mrf.mxu3 }
 0x40b   : > { %v6136_v46 = vsel %vm2241_vm10, %v6135_v30, %v4174_v36  ;;  %v3726_v42 = vshrl.u32 %v3641_v40, 16  ;;  %v4201_v58 = vrot.slane %v4200_v21, 4  ;;  %v4206_v25 = vperm.slane %v4200_v21, %v8424_v19 }
 0x40c   : > { %6454 = vst [vmem:[%s9590_s21 + $0x68] sm:$0xf] %v6386_v11  ;;  %v6140_v4 = vperm.slane %v6136_v46, %v8416_v27  ;;  %v4219_v49 = vperm.slane %v3721_v31, %v8416_v27  ;;  %v4193_v55 = vsel %vm2241_vm10, 0, %v4192_v6  ;;  %v4195_v26 = vsel %vm2241_vm10, 0, %v4194_v28 }
 0x40d   : > { %v6147_v2 = vsel %vm2241_vm10, %v4194_v28, %v4187_v5  ;;  %v4238_v43 = vperm.slane %v3724_v8, %v8416_v27  ;;  %v6152_v41 = vrot.slane %v4195_v26, 4  ;;  %v4202_v50 = vsel %vm2241_vm10, 0, %v4201_v58  ;;  %v1909_v58 = vpop.f32.mrf.mxu0 }
 0x40e   : > { %v6141_v54 = vrot.slane %v6140_v4, 4  ;;  %v3727_v56 = vpack.i.b16 %v3726_v42, %v3725_v16  ;;  %v4210_v12 = vperm.slane %v4202_v50, %v8424_v19  ;;  %v4211_v48 = vrot.slane %v4206_v25, 4 }
 0x40f   : > { %v4220_v47 = vrot.slane %v4219_v49, 4  ;;  %v4225_v20 = vperm.slane %v4219_v49, %v8424_v19  ;;  %v6153_v15 = vsel %vm2241_vm10, %v6152_v41, %v4193_v55  ;;  %v4239_v52 = vrot.slane %v4238_v43, 4 }
 0x410   : > { %v6142_v18 = vsel %vm2241_vm10, %v6141_v54, %v6134_v39  ;;  %v4244_v32 = vperm.slane %v4238_v43, %v8424_v19  ;;  %v6151_v37 = vperm.slane %v6147_v2, %v8416_v27  ;;  %v6157_v45 = vperm.slane %v6153_v15, %v8416_v27  ;;  %v2007_v43 = vpop.f32.mrf.mxu2 }
 0x411   : > { %v6146_v63 = vperm.slane %v6142_v18, %v8424_v19  ;;  %v4213_v24 = vrot.slane %v4210_v12, 4  ;;  %v4212_v23 = vsel %vm2241_vm10, 0, %v4211_v48  ;;  %v4221_v17 = vsel %vm2241_vm10, 0, %v4220_v47 }
 0x412   : > { %v4230_v1 = vrot.slane %v4225_v20, 4  ;;  %v4240_v61 = vsel %vm2241_vm10, 0, %v4239_v52  ;;  %v6158_v51 = vrot.slane %v6157_v45, 4  ;;  %v4229_v13 = vperm.slane %v4221_v17, %v8424_v19  ;;  %v2056_v54 = vpop.f32.mrf.mxu3 }
 0x413   : > { %v4214_v59 = vsel %vm2241_vm10, 0, %v4213_v24  ;;  %v4249_v53 = vrot.slane %v4244_v32, 4  ;;  %v6392_v57 = vshrl.u32 %v6146_v63, 16  ;;  %v6164_v0 = vsel %vm2241_vm10, %v4213_v24, %v4206_v25  ;;  %v1958_v25 = vpop.f32.mrf.mxu1 }
 0x414   : > { %v6169_v40 = vrot.slane %v4214_v59, 4  ;;  %v4248_v14 = vperm.slane %v4240_v61, %v8424_v19  ;;  %v6159_v38 = vsel %vm2241_vm10, %v6158_v51, %v6151_v37  ;;  %v4231_v33 = vsel %vm2241_vm10, 0, %v4230_v1 }
 0x415   : > { %v4232_v5 = vrot.slane %v4229_v13, 4  ;;  %v6168_v36 = vperm.slane %v6164_v0, %v8416_v27  ;;  %v6163_v22 = vperm.slane %v6159_v38, %v8424_v19  ;;  %v4257_v35 = vperm.slane %v3727_v56, %v8416_v27 }
 0x416   : > { %v6170_v62 = vsel %vm2241_vm10, %v6169_v40, %v4212_v23  ;;  %v4251_v8 = vrot.slane %v4248_v14, 4  ;;  %v4250_v7 = vsel %vm2241_vm10, 0, %v4249_v53  ;;  %v2055_v11 = vadd.f32 %v2054_v44, %v2005_v10 }
 0x417   : > { %v4233_v3 = vsel %vm2241_vm10, 0, %v4232_v5  ;;  %v6174_v34 = vperm.slane %v6170_v62, %v8416_v27  ;;  %v6181_v29 = vsel %vm2241_vm10, %v4232_v5, %v4225_v20  ;;  %v6390_v6 = vpack.i.b16 %v6163_v22, %v6146_v63 }
 0x418   : > { %v6393_v60 = vshrl.u32 %v6163_v22, 16  ;;  %v6186_v30 = vrot.slane %v4233_v3, 4  ;;  %v4252_v21 = vsel %vm2241_vm10, 0, %v4251_v8  ;;  %v4258_v16 = vrot.slane %v4257_v35, 4 }
 0x419   : > { %v6175_v31 = vrot.slane %v6174_v34, 4  ;;  %v4263_v28 = vperm.slane %v4257_v35, %v8424_v19  ;;  %6439 = vst [vmem:[%s9590_s21 + $0x2c] sm:$0xf] %v6390_v6  ;;  %v6198_v42 = vsel %vm2241_vm10, %v4251_v8, %v4244_v32  ;;  %v6203_v4 = vrot.slane %v4252_v21, 4 }
 0x41a   : > { %v6394_v39 = vpack.i.b16 %v6393_v60, %v6392_v57  ;;  %v6187_v46 = vsel %vm2241_vm10, %v6186_v30, %v4231_v33  ;;  %v4259_v26 = vsel %vm2241_vm10, 0, %v4258_v16  ;;  %v6185_v12 = vperm.slane %v6181_v29, %v8416_v27 }
 0x41b   : > { %v6176_v49 = vsel %vm2241_vm10, %v6175_v31, %v6168_v36  ;;  %v6191_v55 = vperm.slane %v6187_v46, %v8416_v27  ;;  %v4268_v2 = vrot.slane %v4263_v28, 4  ;;  %v4267_v50 = vperm.slane %v4259_v26, %v8424_v19 }
 0x41c   : > { %6455 = vst [vmem:[%s9590_s21 + $0x6c] sm:$0xf] %v6394_v39  ;;  %v6180_v41 = vperm.slane %v6176_v49, %v8424_v19  ;;  %v6204_v56 = vsel %vm2241_vm10, %v6203_v4, %v4250_v7  ;;  %v3610_v20 = vpack.c.bf16 %v2055_v11, %v9867_v9  ;;  %v6202_v15 = vperm.slane %v6198_v42, %v8416_v27 }
 0x41d   : > { %v6192_v48 = vrot.slane %v6191_v55, 4  ;;  %v6208_v47 = vperm.slane %v6204_v56, %v8416_v27  ;;  %v4270_v18 = vrot.slane %v4267_v50, 4  ;;  %v1959_v52 = vadd.f32 %v1958_v25, %v1909_v58 }
 0x41e   : > { %v2057_v32 = vadd.f32 %v2056_v54, %v2007_v43  ;;  %v4269_v37 = vsel %vm2241_vm10, 0, %v4268_v2  ;;  %v3642_v24 = vrot.slane %v3610_v20, 4  ;;  %v6400_v44 = vshrl.u32 %v6180_v41, 16 }
 0x41f   : > { %v6193_v63 = vsel %vm2241_vm10, %v6192_v48, %v6185_v12  ;;  %v6209_v45 = vrot.slane %v6208_v47, 4  ;;  %v4271_v23 = vsel %vm2241_vm10, 0, %v4270_v18  ;;  %v3731_v51 = vshrl.u32 %v3610_v20, 16 }
 0x420   : > { %v6197_v10 = vperm.slane %v6193_v63, %v8424_v19  ;;  %v3611_v17 = vpack.c.bf16 %v2057_v32, %v1959_v52  ;;  %v6220_v1 = vrot.slane %v4271_v23, 4  ;;  %v3730_v61 = vpack.i.b16 %v3642_v24, %v3610_v20 }
 0x421   : > { %v6210_v9 = vsel %vm2241_vm10, %v6209_v45, %v6202_v15  ;;  %v6215_v53 = vsel %vm2241_vm10, %v4270_v18, %v4263_v28  ;;  %v3732_v57 = vshrl.u32 %v3642_v24, 16 }
 0x422   : > { %v6398_v59 = vpack.i.b16 %v6197_v10, %v6180_v41  ;;  %v6401_v13 = vshrl.u32 %v6197_v10, 16  ;;  %v6214_v0 = vperm.slane %v6210_v9, %v8424_v19  ;;  %v6221_v40 = vsel %vm2241_vm10, %v6220_v1, %v4269_v37 }
 0x423   : > { %v4276_v14 = vperm.slane %v3730_v61, %v8416_v27  ;;  %v3643_v38 = vrot.slane %v3611_v17, 4  ;;  %v6225_v5 = vperm.slane %v6221_v40, %v8416_v27  ;;  %v3733_v36 = vpack.i.b16 %v3732_v57, %v3731_v51 }
 0x424   : > { %v6402_v33 = vpack.i.b16 %v6401_v13, %v6400_v44  ;;  %6440 = vst [vmem:[%s9590_s21 + $0x30] sm:$0xf] %v6398_v59  ;;  %v3737_v22 = vshrl.u32 %v3611_v17, 16  ;;  %v6219_v34 = vperm.slane %v6215_v53, %v8416_v27  ;;  %v6408_v31 = vshrl.u32 %v6214_v0, 16 }
 0x425   : > { %v4277_v62 = vrot.slane %v4276_v14, 4  ;;  %v4282_v8 = vperm.slane %v4276_v14, %v8424_v19  ;;  %v3736_v35 = vpack.i.b16 %v3643_v38, %v3611_v17  ;;  %v3738_v3 = vshrl.u32 %v3643_v38, 16 }
 0x426   : > { %6456 = vst [vmem:[%s9590_s21 + $0x70] sm:$0xf] %v6402_v33  ;;  %v6226_v29 = vrot.slane %v6225_v5, 4  ;;  %v4295_v7 = vperm.slane %v3733_v36, %v8416_v27 }
 0x427   : > { %v4278_v6 = vsel %vm2241_vm10, 0, %v4277_v62  ;;  %v3739_v60 = vpack.i.b16 %v3738_v3, %v3737_v22  ;;  %v4314_v30 = vperm.slane %v3736_v35, %v8416_v27  ;;  %v4287_v39 = vrot.slane %v4282_v8, 4 }
 0x428   : > { %v6227_v11 = vsel %vm2241_vm10, %v6226_v29, %v6219_v34  ;;  %v4286_v21 = vperm.slane %v4278_v6, %v8424_v19  ;;  %v4296_v16 = vrot.slane %v4295_v7, 4  ;;  %v4301_v46 = vperm.slane %v4295_v7, %v8424_v19 }
 0x429   : > { %v6231_v28 = vperm.slane %v6227_v11, %v8424_v19  ;;  %v4315_v42 = vrot.slane %v4314_v30, 4  ;;  %v4320_v25 = vperm.slane %v4314_v30, %v8424_v19  ;;  %v4333_v49 = vperm.slane %v3739_v60, %v8416_v27 }
 0x42a   : > { %v4289_v4 = vrot.slane %v4286_v21, 4  ;;  %v4297_v58 = vsel %vm2241_vm10, 0, %v4296_v16  ;;  %v4306_v56 = vrot.slane %v4301_v46, 4  ;;  %v4288_v47 = vsel %vm2241_vm10, 0, %v4287_v39 }
 0x42b   : > { %v6406_v55 = vpack.i.b16 %v6231_v28, %v6214_v0  ;;  %v6409_v26 = vshrl.u32 %v6231_v28, 16  ;;  %v4305_v2 = vperm.slane %v4297_v58, %v8424_v19  ;;  %v4316_v43 = vsel %vm2241_vm10, 0, %v4315_v42 }
 0x42c   : > { %v4290_v54 = vsel %vm2241_vm10, 0, %v4289_v4  ;;  %v4324_v41 = vperm.slane %v4316_v43, %v8424_v19  ;;  %v4334_v18 = vrot.slane %v4333_v49, 4  ;;  %v6232_v52 = vsel %vm2241_vm10, %v4289_v4, %v4282_v8 }
 0x42d   : > { %v6410_v50 = vpack.i.b16 %v6409_v26, %v6408_v31  ;;  %6441 = vst [vmem:[%s9590_s21 + $0x34] sm:$0xf] %v6406_v55  ;;  %v4308_v12 = vrot.slane %v4305_v2, 4  ;;  %v6237_v48 = vrot.slane %v4290_v54, 4  ;;  %v4325_v63 = vrot.slane %v4320_v25, 4 }
 0x42e   : > { %v4327_v20 = vrot.slane %v4324_v41, 4  ;;  %v4339_v10 = vperm.slane %v4333_v49, %v8424_v19  ;;  %v4307_v44 = vsel %vm2241_vm10, 0, %v4306_v56  ;;  %v4335_v17 = vsel %vm2241_vm10, 0, %v4334_v18 }
 0x42f   : > { %6457 = vst [vmem:[%s9590_s21 + $0x74] sm:$0xf] %v6410_v50  ;;  %v4309_v15 = vsel %vm2241_vm10, 0, %v4308_v12  ;;  %v6238_v32 = vsel %vm2241_vm10, %v6237_v48, %v4288_v47  ;;  %v6249_v45 = vsel %vm2241_vm10, %v4308_v12, %v4301_v46  ;;  %v6236_v9 = vperm.slane %v6232_v52, %v8416_v27 }
 0x430   : > { %v6242_v37 = vperm.slane %v6238_v32, %v8416_v27  ;;  %v6254_v24 = vrot.slane %v4309_v15, 4  ;;  %v4328_v23 = vsel %vm2241_vm10, 0, %v4327_v20  ;;  %v4343_v51 = vperm.slane %v4335_v17, %v8424_v19 }
 0x431   : > { %v6253_v59 = vperm.slane %v6249_v45, %v8416_v27  ;;  %v6271_v53 = vrot.slane %v4328_v23, 4  ;;  %v4326_v0 = vsel %vm2241_vm10, 0, %v4325_v63  ;;  %v4344_v40 = vrot.slane %v4339_v10, 4 }
 0x432   : > { %v6243_v1 = vrot.slane %v6242_v37, 4  ;;  %v6255_v61 = vsel %vm2241_vm10, %v6254_v24, %v4307_v44  ;;  %v4346_v14 = vrot.slane %v4343_v51, 4  ;;  %v6266_v5 = vsel %vm2241_vm10, %v4327_v20, %v4320_v25 }
 0x433   : > { %v6259_v13 = vperm.slane %v6255_v61, %v8416_v27  ;;  %v6272_v36 = vsel %vm2241_vm10, %v6271_v53, %v4326_v0  ;;  %v4345_v34 = vsel %vm2241_vm10, 0, %v4344_v40  ;;  %v6270_v29 = vperm.slane %v6266_v5, %v8416_v27 }
 0x434   : > { %v6244_v57 = vsel %vm2241_vm10, %v6243_v1, %v6236_v9  ;;  %v4347_v22 = vsel %vm2241_vm10, 0, %v4346_v14  ;;  %v6276_v62 = vperm.slane %v6272_v36, %v8416_v27  ;;  %v6283_v60 = vsel %vm2241_vm10, %v4346_v14, %v4339_v10 }
 0x435   : > { %v6248_v38 = vperm.slane %v6244_v57, %v8424_v19  ;;  %v6260_v33 = vrot.slane %v6259_v13, 4  ;;  %v6288_v35 = vrot.slane %v4347_v22, 4  ;;  %v6287_v39 = vperm.slane %v6283_v60, %v8416_v27 }
 0x436   : > { %v6277_v7 = vrot.slane %v6276_v62, 4 }
 0x437   : > { %v6261_v8 = vsel %vm2241_vm10, %v6260_v33, %v6253_v59  ;;  %v6416_v6 = vshrl.u32 %v6248_v38, 16  ;;  %v6289_v30 = vsel %vm2241_vm10, %v6288_v35, %v4345_v34 }
 0x438   : > { %v6265_v3 = vperm.slane %v6261_v8, %v8424_v19  ;;  %v6278_v21 = vsel %vm2241_vm10, %v6277_v7, %v6270_v29  ;;  %v6293_v16 = vperm.slane %v6289_v30, %v8416_v27 }
 0x439   : > { %v6282_v42 = vperm.slane %v6278_v21, %v8424_v19 }
 0x43a   : > { %v6414_v11 = vpack.i.b16 %v6265_v3, %v6248_v38  ;;  %v6417_v31 = vshrl.u32 %v6265_v3, 16  ;;  %v6294_v46 = vrot.slane %v6293_v16, 4 }
 0x43b   : > { %v6424_v49 = vshrl.u32 %v6282_v42, 16 }
 0x43c   : > { %v6418_v28 = vpack.i.b16 %v6417_v31, %v6416_v6  ;;  %6442 = vst [vmem:[%s9590_s21 + $0x38] sm:$0xf] %v6414_v11  ;;  %v6295_v4 = vsel %vm2241_vm10, %v6294_v46, %v6287_v39 }
 0x43d   : > { %v6299_v58 = vperm.slane %v6295_v4, %v8424_v19 }
 0x43e   : > { %6458 = vst [vmem:[%s9590_s21 + $0x78] sm:$0xf] %v6418_v28 }
 0x43f   : > { %v6422_v25 = vpack.i.b16 %v6299_v58, %v6282_v42  ;;  %v6425_v55 = vshrl.u32 %v6299_v58, 16 }
 0x441   : > { %v6426_v26 = vpack.i.b16 %v6425_v55, %v6424_v49  ;;  %6443 = vst [vmem:[%s9590_s21 + $0x3c] sm:$0xf] %v6422_v25 }
 0x443   : > { %6459 = vst [vmem:[%s9590_s21 + $0x7c] sm:$0xf] %v6426_v26 }
 0x444   : > { %s7190_s12 = sshll.u32 %s7683_s24, 4  ;;  %s7191_s9 = sshll.u32 %s7687_s25, 7 }
 0x445   : > { %s6482_s13 = sadd.s32 %s7191_s9, %s7190_s12  ;;  %s6495_s15 = sshll.u32 %s8575_s5, 4  ;;  %s6496_s15 = int_to_ptr.vmem [resolvable:$true] %s6495_s15 }
 0x446   : > { %s10007_s20 = sshll.u32 %s6482_s13, 2  ;;  %s7711_s1 = smov 1024  }
 0x447   : > { %s6484_s16 = scalar_lea.hbm %s10101_s4, %s10007_s20  ;;  %7312 = sst [smem:[#allocation15]] (%p7869_p3), %s7711_s1 }
 0x448   : > { %s6497_s19 = sshll.u32 %s6484_s16, 4  ;;  %s7712_s24 = smov 4096   ;;  %s6498_s19 = int_to_ptr.hbm [resolvable:$true] %s6497_s19 }
 0x449   : > { %7313 = sst [smem:[#allocation15 + $0x1]] (%p7869_p3), %s7712_s24  ;;  %s7713_s25 = smov 16  }
 0x44a   : > { %7314 = sst [smem:[#allocation15 + $0x2]] (%p7869_p3), %s7713_s25  ;;  %s7714_s30 = smov 64  }
 0x44b   : > { %7315 = sst [smem:[#allocation15 + $0x3]] (%p7869_p3), %s7714_s30  ;;  %s7715_s10 = smov 4  }
 0x44c   : > { %7316 = sst [smem:[#allocation15 + $0x4]] (%p7869_p3), %s7714_s30  ;;  %s7716_s14 = smov [#allocation14]  }
 0x44d   : > { %7317 = sst [smem:[#allocation15 + $0x5]] (%p7869_p3), %s7715_s10  ;;  %s7717_s2 = smov 0  }
 0x44e   : > { %7318 = dma.general (%p7869_p3), %s6496_s15, 2048, %s6498_s19, %s6461_s7, %s7716_s14, [#allocation15], %s7717_s2, 0  }
 0x44f   : > { %s10129_s12 = sld [smem:[#allocation32_spill]]  ;;  %s6537_s13 = sshll.u32 %s9109_s6, 4  ;;  %s6538_s13 = int_to_ptr.vmem [resolvable:$true] %s6537_s13 }
 0x450   : > { %s7718_s17 = smov 1024   ;;  %s7719_s7 = smov 4096  }
 0x451   : > { %7319 = sst [smem:[#allocation17]] (%p7869_p3), %s7718_s17  ;;  %s7720_s15 = smov 16  }
 0x452   : > { %7320 = sst [smem:[#allocation17 + $0x1]] (%p7869_p3), %s7719_s7  ;;  %s7721_s16 = smov 64  }
 0x453   : > { %7321 = sst [smem:[#allocation17 + $0x2]] (%p7869_p3), %s7720_s15  ;;  %s7722_s6 = smov 4  }
 0x454   : > { %7322 = sst [smem:[#allocation17 + $0x3]] (%p7869_p3), %s7721_s16  ;;  %s7723_s19 = smov [#allocation16]  }
 0x455   : > { %s6526_s9 = scalar_lea.hbm %s10129_s12, %s10007_s20  ;;  %7323 = sst [smem:[#allocation17 + $0x4]] (%p7869_p3), %s7721_s16 }
 0x456   : > { %s6539_s29 = sshll.u32 %s6526_s9, 4  ;;  %7324 = sst [smem:[#allocation17 + $0x5]] (%p7869_p3), %s7722_s6  ;;  %s6540_s29 = int_to_ptr.hbm [resolvable:$true] %s6539_s29 }
 0x457   : > { %s7724_s1 = smov 0  }
 0x458   : > { %7325 = dma.general (%p7869_p3), %s6538_s13, 2048, %s6540_s29, %s10002_s8, %s7723_s19, [#allocation17], %s7724_s1, 0  }
 0x459   : > { %s10130_s30 = sld [smem:[#allocation33_spill]]  ;;  %s6579_s14 = sshll.u32 %s9590_s21, 4  ;;  %s6580_s14 = int_to_ptr.vmem [resolvable:$true] %s6579_s14 }
 0x45a   : > { %s7725_s5 = smov 1024   ;;  %s7726_s26 = smov 4096  }
 0x45b   : > { %7326 = sst [smem:[#allocation19]] (%p7869_p3), %s7725_s5  ;;  %s7727_s12 = smov 16  }
 0x45c   : > { %7327 = sst [smem:[#allocation19 + $0x1]] (%p7869_p3), %s7726_s26  ;;  %s7728_s9 = smov 64  }
 0x45d   : > { %7328 = sst [smem:[#allocation19 + $0x2]] (%p7869_p3), %s7727_s12  ;;  %s7729_s21 = smov 4  }
 0x45e   : > { %7329 = sst [smem:[#allocation19 + $0x3]] (%p7869_p3), %s7728_s9  ;;  %s7731_s13 = smov 0  }
 0x45f   : > { %s6568_s10 = scalar_lea.hbm %s10130_s30, %s10007_s20  ;;  %7330 = sst [smem:[#allocation19 + $0x4]] (%p7869_p3), %s7728_s9 }
 0x460   : > { %s6581_s2 = sshll.u32 %s6568_s10, 4  ;;  %7331 = sst [smem:[#allocation19 + $0x5]] (%p7869_p3), %s7729_s21  ;;  %s6582_s2 = int_to_ptr.hbm [resolvable:$true] %s6581_s2 }
 0x461   : > { %s7730_s20 = smov [#allocation18]  }
 0x462   : > { %7332 = dma.general (%p7869_p3), %s6580_s14, 2048, %s6582_s2, %s10002_s8, %s7730_s20, [#allocation19], %s7731_s13, 0  }
 0x463 PF: > { %s10131_s29 = sld [smem:[#allocation25_spill]]  ;;  %p7367_p1 = scmp.ge.s32.totalorder %s7699_s28, 2 }
 0x465   : > { %p7351_p4 = pnand %p7367_p1, %p7824_p6 }
 0x467   : > { %p7352_p8 = pneg %p7351_p4 }
 0x469   : > { %s6609_s7 = sand.u32 1, %s10131_s29  }
 0x46a   : > { %s6610_s15 = scalar_lea.sflag [#allocation4], %s6609_s7 }
 0x46b   : > { %7662 = dma.done.wait (%p7352_p8), %s6610_s15, 2048  }
 0x46c   : > { %7664 = vsyncadd (%p7352_p8), %s6610_s15, 4294965248  ;;  %s10133_s16 = sadd.s32 4294967294, %s7699_s28  }
 0x46d   : > { %s6619_s6 = sand.u32 1, %s10133_s16  }
 0x46e   : > { %s6620_s19 = scalar_lea.sflag [#allocation12], %s6619_s6 }
 0x46f   : > { %7666 = dma.done.wait (%p7352_p8), %s6620_s19, 4096  }
 0x470   : > { %7668 = vsyncadd (%p7352_p8), %s6620_s19, 4294963200  ;;  %s28_s28 = sadd.s32 1, %s7699_s28   ;;  %s10134_s24 = sld [smem:[#allocation26_spill]] }
 0x471   : > { %p25_p10 = scmp.ge.s32.totalorder %s28_s28, 10   ;;  %s10135_s26 = sld [smem:[#allocation28_spill]] }
 0x472   : > { %s10136_s21 = smov %s7675_s22  ;;  %s10137_s22 = smov %s7679_s23 }
 0x473   : > { %s10138_s23 = smov %s7886_s3  ;;  %s10139_s25 = smov %s7695_s27 }
 0x474   : > { %s10140_s27 = smov %s10146_s11  ;;  %27 = sbr.rel (!%p25_p10) target bundleno = 17 (0x11), region = 140 }
 0x479   :  { %6636 = vsyncpa [#allocation3], 1 }
 0x47a   :  { %6638 = vsyncpa [#allocation3 + $0x1], 1 }
 0x47b   :  { %6639 = vsyncpa [#allocation6], 1 }
 0x47c   :  { %6640 = vsyncpa [#allocation9], 1 }
 0x47d   :  { %6641 = vsyncpa [#allocation4], 1 }
 0x47e   :  { %6643 = vsyncpa [#allocation4 + $0x1], 1 }
 0x47f   :  { %6644 = vsyncpa [#allocation12], 1 }
 0x480   :  { %6646 = vsyncpa [#allocation12 + $0x1], 1 }

// kernel: tpu_custom_call.1
= control target key start
LH: loop header
LB: loop body
LE: loop exit
PB: predicated region body
PF: predicated region fallthrough
CT: control target
= control target key end

     0   :  { %s10097_s0 = inlined_call_operand.hbm [shape: f32[2,512,256], index: 0, kind: input, shape index: {}]   ;;  %s10098_s1 = inlined_call_operand.hbm [shape: f32[1,256], index: 1, kind: input, shape index: {}]   ;;  %s10099_s2 = inlined_call_operand.hbm [shape: f32[1,256], index: 2, kind: input, shape index: {}]   ;;  %s10100_s3 = inlined_call_operand.hbm [shape: bf16[256,768], index: 3, kind: input, shape index: {}]   ;;  %s10101_s4 = inlined_call_operand.hbm [shape: bf16[2,2,512,128], index: 4, kind: output, shape index: {0}]   ;;  %s10102_s5 = inlined_call_operand.hbm [shape: bf16[2,2,512,128], index: 5, kind: output, shape index: {1}]   ;;  %s10103_s6 = inlined_call_operand.hbm [shape: bf16[2,2,512,128], index: 6, kind: output, shape index: {2}]  }
   0x1   :  { %10109 = sst [smem:[#allocation29_spill]] %s10098_s1 }
   0x2   :  { %10110 = sst [smem:[#allocation30_spill]] %s10099_s2 }
   0x3   :  { %10111 = sst [smem:[#allocation31_spill]] %s10100_s3 }
   0x4   :  { %10112 = sst [smem:[#allocation32_spill]] %s10102_s5 }
   0x5   :  { %10113 = sst [smem:[#allocation33_spill]] %s10103_s6 }
   0x6   :  { %12 = vsyncpa [#allocation3], 0 }
   0x7   :  { %14 = vsyncpa [#allocation3 + $0x1], 0 }
   0x8   :  { %15 = vsyncpa [#allocation6], 0 }
   0x9   :  { %16 = vsyncpa [#allocation9], 0 }
   0xa   :  { %17 = vsyncpa [#allocation4], 0 }
   0xb   :  { %19 = vsyncpa [#allocation4 + $0x1], 0 }
   0xc   :  { %20 = vsyncpa [#allocation12], 0 }
   0xd   :  { %22 = vsyncpa [#allocation12 + $0x1], 0  ;;  %s7767_s21 = smov 0   ;;  %s7769_s22 = smov 0  }
   0xe   :  { %s7771_s23 = smov 0   ;;  %s7773_s24 = smov 0  }
   0xf   :  { %s7775_s25 = smov 0   ;;  %s7777_s26 = smov 0  }
  0x10   :  { %s7779_s27 = smov 0   ;;  %s7781_s28 = smov 0  }
  0x11 LB: > { %10114 = sst [smem:[#allocation25_spill]] %s7671_s21  ;;  %s7808_s29 = sadd.s32 4294967295, %s7699_s28   ;;  %s7699_s28 = sphi %s7781_s28, %s28_s28   ;;  %s7695_s27 = sphi %s7779_s27, %s10140_s27   ;;  %s7691_s26 = sphi %s7777_s26, %s10135_s26   ;;  %s7687_s25 = sphi %s7775_s25, %s10139_s25   ;;  %s7683_s24 = sphi %s7773_s24, %s10134_s24   ;;  %s7679_s23 = sphi %s7771_s23, %s10138_s23   ;;  %s7675_s22 = sphi %s7769_s22, %s10137_s22   ;;  %s7671_s21 = sphi %s7767_s21, %s10136_s21  }
  0x12   : > { %10115 = sst [smem:[#allocation26_spill]] %s7691_s26  ;;  %s10104_s30 = sadd.s32 4294967294, %s7699_s28  }
  0x13   : > { %p62_p0 = scmp.ne.s32.totalorder %s7675_s22, %s7671_s21  ;;  %p63_p1 = scmp.eq.s32.totalorder %s7808_s29, 0 }
  0x14   : > { %p151_p2 = scmp.eq.s32.totalorder %s7808_s29, 7  ;;  %p157_p3 = scmp.eq.s32.totalorder %s10104_s30, 7 }
  0x15   : > { %p7819_p4 = por %p63_p1, %p62_p0  ;;  %p6785_p5 = scmp.ge.s32.totalorder %s7699_s28, 1 }
  0x16   : > { %p7824_p6 = por %p157_p3, %p62_p0  ;;  %p220_p7 = scmp.lt.s32.totalorder %s7699_s28, 9 }
  0x17   : > { %s10119_s1 = sld [smem:[#allocation29_spill]]  ;;  %s7701_s13 = smov [#allocation5]  }
  0x18   : > { %s10117_s8 = scalar_select %p7824_p6, 1, 0 }
  0x19   : > { %p7832_p8 = pnand %p6785_p5, %p220_p7  ;;  %s234_s14 = sshll.u32 %s7701_s13, 4  ;;  %s235_s14 = int_to_ptr.vmem [resolvable:$true] %s234_s14 }
  0x1a   : > { %10118 = sst [smem:[#allocation27_spill]] %s10117_s8  ;;  %s7702_s10 = smov [#allocation7]  }
  0x1b   : > { %p7336_p9 = pneg %p7832_p8  ;;  %s10121_s2 = sld [smem:[#allocation30_spill]] }
  0x1c   : > { %s10123_s3 = sld [smem:[#allocation31_spill]]  ;;  %s246_s13 = sshll.u32 %s7702_s10, 4  ;;  %s247_s13 = int_to_ptr.vmem [resolvable:$true] %s246_s13 }
  0x1d   : > { %s232_s11 = sshll.u32 %s10119_s1, 4  ;;  %p7843_p10 = pnand %p7336_p9, %p63_p1  ;;  %s233_s11 = int_to_ptr.hbm [resolvable:$true] %s232_s11 }
  0x1e   : > { %s7703_s15 = smov [#allocation8]   ;;  %s7704_s19 = smov 384  }
  0x1f   : > { %7339 = dma.hbm_to_vmem [thread:$0]  (!%p7843_p10), %s233_s11, 32, %s235_s14, [#allocation6]  }
  0x20   : > { %s257_s16 = sshll.u32 %s7703_s15, 4  ;;  %s7705_s20 = smov 24   ;;  %s258_s16 = int_to_ptr.vmem [resolvable:$true] %s257_s16 }
  0x21   : > { %s244_s17 = sshll.u32 %s10121_s2, 4  ;;  %s37_s10 = sadd.s32 1, %s7691_s26  ;;  %s245_s17 = int_to_ptr.hbm [resolvable:$true] %s244_s17 }
  0x22   : > { %s255_s9 = sshll.u32 %s10123_s3, 4  ;;  %p38_p11 = scmp.ge.s32.totalorder %s37_s10, 4  ;;  %s256_s9 = int_to_ptr.hbm [resolvable:$true] %s255_s9 }
  0x23   : > { %7342 = dma.hbm_to_vmem [thread:$0]  (!%p7843_p10), %s245_s17, 32, %s247_s13, [#allocation6]  }
  0x24   : > { %7345 = dma.hbm_to_vmem [thread:$0]  (!%p7843_p10), %s256_s9, 12288, %s258_s16, [#allocation9], %s7704_s19, %s7704_s19, %s7705_s20  }
  0x25   : > { %s40_s11 = sadd.s32 1, %s7695_s27  ;;  %s49_s14 = sadd.s32 1, %s7679_s23 }
  0x26   : > { %p56_p12 = scmp.ne.s32.totalorder %s7679_s23, %s7675_s22  ;;  %s10142_s10 = smov (%p38_p11, %s37_s10), 0 }
  0x27   : > { %10124 = sst [smem:[#allocation28_spill]] %s10142_s10  ;;  %s10144_s11 = smov (!%p38_p11, %s40_s11), %s7695_s27 }
  0x28   : > { %s45_s17 = ssub.s32 %s7691_s26, %s10142_s10  ;;  %p57_p13 = scmp.eq.s32.totalorder %s7699_s28, 0 }
  0x29   : > { %p42_p0 = scmp.ge.s32.totalorder %s10144_s11, 2  ;;  %p7869_p3 = por %p151_p2, %p56_p12 }
  0x2a   : > { %p7873_p5 = por %p57_p13, %p56_p12  ;;  %p7363_p7 = scmp.lt.s32.totalorder %s7699_s28, 8 }
  0x2b   : > { %s10146_s11 = smov (%p42_p0, %s10144_s11), 0  ;;  %s271_s13 = sand.u32 1, %s7679_s23  }
  0x2c   : > { %s7201_s15 = sshll.u32 %s7691_s26, 5  ;;  %s44_s16 = ssub.s32 %s7695_s27, %s10146_s11 }
  0x2d   : > { %s46_s19 = sor.u32 %s45_s17, %s44_s16  ;;  %s6790_s20 = sshll.u32 %s271_s13, 8 }
  0x2e   : > { %p47_p9 = scmp.eq.s32.totalorder %s46_s19, 0  ;;  %s6793_s30 = sshll.u32 %s7695_s27, 7 }
  0x2f   : > { %s275_s1 = scalar_lea.vmem [#allocation2], %s6790_s20  ;;  %s281_s10 = sadd.s32 %s7201_s15, %s6793_s30 }
  0x30   : > { %s286_s2 = sshll.u32 %s275_s1, 4  ;;  %s6794_s8 = sshll.u32 %s281_s10, 3  ;;  %s287_s2 = int_to_ptr.vmem [resolvable:$true] %s286_s2 }
  0x31   : > { %s7886_s3 = scalar_select %p47_p9, %s7679_s23, %s49_s14  }
  0x32   : > { %p7347_p2 = pnand %p7363_p7, %p7873_p5  ;;  %s283_s5 = scalar_lea.hbm %s10097_s0, %s6794_s8 }
  0x33   : > { %s284_s26 = sshll.u32 %s283_s5, 4  ;;  %s272_s17 = scalar_lea.sflag [#allocation3], %s271_s13  ;;  %s285_s26 = int_to_ptr.hbm [resolvable:$true] %s284_s26 }
  0x34   : > { %s7706_s16 = smov 256   ;;  %s7707_s19 = smov 16  }
  0x35   : > { %7349 = dma.hbm_to_vmem [thread:$0]  (!%p7347_p2), %s285_s26, 4096, %s287_s2, %s272_s17, %s7706_s16, %s7706_s16, %s7707_s19  }
  0x36   : > { %298 = sbr.rel (%p7832_p8) target bundleno = 1123 (0x463), region = 36  ;;  %s7898_s1 = sand.u32 (!%p7832_p8), 1, %s7675_s22  }
  0x37   : > { %s6796_s30 = sshll.u32 (!%p7832_p8), %s7898_s1, 8  ;;  %s301_s10 = scalar_lea.sflag (!%p7832_p8), [#allocation3], %s7898_s1 }
  0x38   : > { %s7902_s14 = scalar_lea.vmem (!%p7832_p8), [#allocation2], %s6796_s30 }
  0x3b   : > { %7650 = dma.done.wait (%p7819_p4), %s301_s10, 4096  }
  0x3c   : > { %7652 = vsyncadd (%p7819_p4), %s301_s10, 4294963200 }
  0x3d   : > { %7654 = dma.done.wait (%p63_p1), [#allocation6], 64  }
  0x3e   : > { %7656 = vsyncadd (%p63_p1), [#allocation6], 4294967232 }
  0x3f   : > { %7658 = dma.done.wait (%p63_p1), [#allocation9], 12288  }
  0x40   : > { %7660 = vsyncadd (%p63_p1), [#allocation9], 4294955008  ;;  %v7917_v0 = vld [vmem:[%s7902_s14 + $0x20] sm:$0xff]  ;;  %v7920_v1 = vld [vmem:[%s7902_s14 + $0x28] sm:$0xff]  ;;  %v7708_v27 = vmov 256.0   ;;  %s8553_s2 = sshll.u32 %s7898_s1, 7 }
  0x41   : > { %v364_v2 = vld [vmem:[%s7902_s14] sm:$0xff]  ;;  %v404_v3 = vadd.f32 %v7920_v1, %v7917_v0  ;;  %v365_v4 = vld [vmem:[%s7902_s14 + $0x8] sm:$0xff]  ;;  %v370_v8 = vld [vmem:[%s7902_s14 + $0x30] sm:$0xff]  ;;  %7463 = vrcp.f32 %v7708_v27  ;;  %s8575_s5 = scalar_lea.vmem [#allocation10], %s8553_s2  ;;  %s9109_s6 = scalar_lea.vmem [#allocation11], %s8553_s2 }
  0x42   : > { %v398_v5 = vadd.f32 %v365_v4, %v364_v2  ;;  %v372_v6 = vld [vmem:[%s7902_s14 + $0x40] sm:$0xff]  ;;  %v373_v7 = vld [vmem:[%s7902_s14 + $0x48] sm:$0xff]  ;;  %v371_v9 = vld [vmem:[%s7902_s14 + $0x38] sm:$0xff]  ;;  %s9590_s21 = scalar_lea.vmem [#allocation13], %s8553_s2  ;;  %s6465_s26 = sand.u32 1, %s7808_s29  }
  0x43   : > { %405 = vadd.xlane.f32.xlu1 %v404_v3  ;;  %v410_v10 = vadd.f32 %v373_v7, %v372_v6  ;;  %v366_v11 = vld [vmem:[%s7902_s14 + $0x10] sm:$0xff]  ;;  %v367_v12 = vld [vmem:[%s7902_s14 + $0x18] sm:$0xff]  ;;  %v407_v13 = vadd.f32 %v371_v9, %v370_v8  ;;  %v7947_v20 = vld [vmem:[%s7902_s14 + $0x60] sm:$0xff]  ;;  %s6461_s7 = scalar_lea.sflag [#allocation4], %s7898_s1  ;;  %s10002_s8 = scalar_lea.sflag [#allocation12], %s6465_s26 }
  0x44   : > { %399 = vadd.xlane.f32.xlu0 %v398_v5  ;;  %v7933_v14 = vld [vmem:[%s7902_s14 + $0x50] sm:$0xff]  ;;  %v7936_v15 = vld [vmem:[%s7902_s14 + $0x58] sm:$0xff]  ;;  %v401_v16 = vadd.f32 %v367_v12, %v366_v11  ;;  %v7950_v21 = vld [vmem:[%s7902_s14 + $0x68] sm:$0xff] }
  0x45   : > { %411 = vadd.xlane.f32.xlu2 %v410_v10  ;;  %v413_v17 = vadd.f32 %v7936_v15, %v7933_v14  ;;  %v7941_v18 = vld [vmem:[%s7902_s14 + $0x70] sm:$0xff]  ;;  %v7944_v19 = vld [vmem:[%s7902_s14 + $0x78] sm:$0xff]  ;;  %v416_v23 = vadd.f32 %v7950_v21, %v7947_v20  ;;  %v7957_v24 = vld [vmem:[%s7902_s14 + $0x80] sm:$0xff] }
  0x46   : > { %v419_v22 = vadd.f32 %v7944_v19, %v7941_v18  ;;  %v7960_v25 = vld [vmem:[%s7902_s14 + $0x88] sm:$0xff]  ;;  %v7978_v47 = vld [vmem:[%s7902_s14 + $0x90] sm:$0xff]  ;;  %v7981_v48 = vld [vmem:[%s7902_s14 + $0x98] sm:$0xff] }
  0x47   : > { %v422_v26 = vadd.f32 %v7960_v25, %v7957_v24  ;;  %v7464_v28 = vpop.eup %7463  ;;  %v425_v55 = vadd.f32 %v7981_v48, %v7978_v47  ;;  %v8048_v27 = vld [vmem:[%s7902_s14 + $0xb0] sm:$0xff] }
  0x48   : > { %v447_v29 = vmul.f32 256.0, %v7464_v28  ;;  %vm451_vm0 = vweird.f32 %v7464_v28 }
  0x4a   : > { %v448_v30 = vsub.f32 1.0, %v447_v29 }
  0x4b   : > { %408 = vadd.xlane.f32.xlu1 %v407_v13 }
  0x4c   : > { %402 = vadd.xlane.f32.xlu0 %v401_v16  ;;  %v449_v31 = vmul.f32 %v7464_v28, %v448_v30 }
  0x4d   : > { %414 = vadd.xlane.f32.xlu2 %v413_v17 }
  0x4e   : > { %v450_v32 = vadd.f32 %v7464_v28, %v449_v31 }
  0x50   : > { %v7964_v33 = vsel %vm451_vm0, %v7464_v28, %v450_v32  ;;  %v8051_v28 = vld [vmem:[%s7902_s14 + $0xb8] sm:$0xff] }
  0x53   : > { %420 = vadd.xlane.f32.xlu1 %v419_v22 }
  0x54   : > { %417 = vadd.xlane.f32.xlu0 %v416_v23  ;;  %v8038_v23 = vld [vmem:[%s7902_s14 + $0xd0] sm:$0xff] }
  0x5b   : > { %423 = vadd.xlane.f32.xlu1 %v422_v26  ;;  %v8041_v26 = vld [vmem:[%s7902_s14 + $0xd8] sm:$0xff] }
  0x5c   : > { %v437_v29 = vadd.f32 %v8041_v26, %v8038_v23 }
  0xb6   : > { %v406_v34 = vpop.xlane.xlu1 %405 }
  0xb7   : > { %v400_v35 = vpop.xlane.xlu0 %399  ;;  %v455_v49 = vmul.f32 %v7964_v33, %v406_v34 }
  0xb8   : > { %v453_v36 = vmul.f32 %v7964_v33, %v400_v35  ;;  %v412_v39 = vpop.xlane.xlu2 %411  ;;  %v431_v35 = vadd.f32 %v8051_v28, %v8048_v27 }
  0xb9   : > { %v457_v46 = vmul.f32 %v7964_v33, %v412_v39  ;;  %v8004_v60 = vsub.f32 %v7917_v0, %v455_v49  ;;  %v8007_v61 = vsub.f32 %v7920_v1, %v455_v49  ;;  %v8065_v39 = vld [vmem:[%s7902_s14 + $0xe0] sm:$0xff] }
  0xba   : > { %v7967_v37 = vsub.f32 %v364_v2, %v453_v36  ;;  %v7969_v38 = vsub.f32 %v365_v4, %v453_v36 }
  0xbb   : > { %v7995_v56 = vsub.f32 %v372_v6, %v457_v46  ;;  %v7997_v57 = vsub.f32 %v373_v7, %v457_v46  ;;  %v505_v6 = vmul.f32 %v8004_v60, %v8004_v60  ;;  %v506_v7 = vmul.f32 %v8007_v61, %v8007_v61 }
  0xbc   : > { %v501_v40 = vmul.f32 %v7967_v37, %v7967_v37  ;;  %v502_v41 = vmul.f32 %v7969_v38, %v7969_v38 }
  0xbd   : > { %v509_v5 = vmul.f32 %v7995_v56, %v7995_v56  ;;  %v510_v0 = vmul.f32 %v7997_v57, %v7997_v57  ;;  %v539_v16 = vadd.f32 %v506_v7, %v505_v6  ;;  %v7165_v6 = vld [vmem:[#allocation8 + $0x2d0] sm:$0xf] }
  0xbe   : > { %v409_v42 = vpop.xlane.xlu1 %408  ;;  %v533_v43 = vadd.f32 %v502_v41, %v501_v40  ;;  %v8068_v40 = vld [vmem:[%s7902_s14 + $0xe8] sm:$0xff]  ;;  %v8075_v41 = vld [vmem:[%s7902_s14 + $0xc0] sm:$0xff] }
  0xbf   : > { %v456_v44 = vmul.f32 %v7964_v33, %v409_v42  ;;  %v403_v45 = vpop.xlane.xlu0 %402  ;;  %v545_v10 = vadd.f32 %v510_v0, %v509_v5  ;;  %v8078_v42 = vld [vmem:[%s7902_s14 + $0xc8] sm:$0xff] }
  0xc0   : > { %v454_v50 = vmul.f32 %v7964_v33, %v403_v45  ;;  %534 = vadd.xlane.f32.xlu2 %v533_v43  ;;  %v415_v3 = vpop.xlane.xlu2 %414  ;;  %v440_v43 = vadd.f32 %v8068_v40, %v8065_v39  ;;  %v434_v46 = vadd.f32 %v8078_v42, %v8075_v41 }
  0xc1   : > { %v7985_v51 = vsub.f32 %v370_v8, %v456_v44  ;;  %v7987_v52 = vsub.f32 %v371_v9, %v456_v44  ;;  %v458_v1 = vmul.f32 %v7964_v33, %v415_v3  ;;  %v8023_v8 = vld [vmem:[%s7902_s14 + $0xa0] sm:$0xff]  ;;  %v8026_v9 = vld [vmem:[%s7902_s14 + $0xa8] sm:$0xff] }
  0xc2   : > { %v7989_v53 = vsub.f32 %v366_v11, %v454_v50  ;;  %v7991_v54 = vsub.f32 %v367_v12, %v454_v50  ;;  %v428_v13 = vadd.f32 %v8026_v9, %v8023_v8 }
  0xc3   : > { %v507_v58 = vmul.f32 %v7985_v51, %v7985_v51  ;;  %v508_v59 = vmul.f32 %v7987_v52, %v7987_v52  ;;  %v8029_v11 = vsub.f32 %v7933_v14, %v458_v1  ;;  %v8032_v12 = vsub.f32 %v7936_v15, %v458_v1  ;;  %v6973_v1 = vld [vmem:[#allocation8 + $0x150] sm:$0xf] }
  0xc4   : > { %v503_v62 = vmul.f32 %v7989_v53, %v7989_v53  ;;  %v504_v63 = vmul.f32 %v7991_v54, %v7991_v54 }
  0xc5   : > { %v542_v2 = vadd.f32 %v508_v59, %v507_v58  ;;  %v511_v14 = vmul.f32 %v8029_v11, %v8029_v11  ;;  %v512_v15 = vmul.f32 %v8032_v12, %v8032_v12  ;;  %v8096_v59 = vld [vmem:[%s7902_s14 + $0xf0] sm:$0xff] }
  0xc6   : > { %v536_v4 = vadd.f32 %v504_v63, %v503_v62  ;;  %v421_v30 = vpop.xlane.xlu1 %420 }
  0xc7   : > { %543 = vadd.xlane.f32.xlu1 %v542_v2  ;;  %v418_v17 = vpop.xlane.xlu0 %417  ;;  %v548_v34 = vadd.f32 %v512_v15, %v511_v14  ;;  %v460_v36 = vmul.f32 %v7964_v33, %v421_v30  ;;  %v7167_v14 = vld [vmem:[#allocation8 + $0x2e8] sm:$0xf0]  ;;  %v7241_v30 = vld [vmem:[#allocation8 + $0x134] sm:$0xf0] }
  0xc8   : > { %426 = vadd.xlane.f32.xlu2 %v425_v55  ;;  %537 = vadd.xlane.f32.xlu0 %v536_v4  ;;  %v459_v22 = vmul.f32 %v7964_v33, %v418_v17 }
  0xc9   : > { %v8083_v44 = vsub.f32 %v7941_v18, %v460_v36  ;;  %v8086_v45 = vsub.f32 %v7944_v19, %v460_v36  ;;  %v8099_v19 = vld [vmem:[%s7902_s14 + $0xf8] sm:$0xff] }
  0xca   : > { %v8056_v31 = vsub.f32 %v7947_v20, %v459_v22  ;;  %v8059_v32 = vsub.f32 %v7950_v21, %v459_v22  ;;  %v443_v3 = vadd.f32 %v8099_v19, %v8096_v59  ;;  %v7292_v22 = vld [vmem:[#allocation8 + $0x2d4] sm:$0xf]  ;;  %v7289_v36 = vld [vmem:[#allocation8 + $0x2b4] sm:$0xf0] }
  0xcb   : > { %v515_v58 = vmul.f32 %v8083_v44, %v8083_v44  ;;  %v516_v18 = vmul.f32 %v8086_v45, %v8086_v45  ;;  %v7170_v15 = vor.u32 %v7292_v22, %v7167_v14  ;;  %v7277_v22 = vld [vmem:[#allocation8 + $0x254] sm:$0xf0]  ;;  %v7226_v14 = vld [vmem:[#allocation8 + $0xc4] sm:$0xf] }
  0xcc   : > { %v513_v20 = vmul.f32 %v8056_v31, %v8056_v31  ;;  %v514_v21 = vmul.f32 %v8059_v32, %v8059_v32 }
  0xcd   : > { %v554_v2 = vadd.f32 %v516_v18, %v515_v58  ;;  %1618 = vmatpush.bf16.msra.mxu3 %v7170_v15  ;;  %v6925_v58 = vld [vmem:[#allocation8 + $0xf0] sm:$0xf]  ;;  %v7235_v18 = vld [vmem:[#allocation8 + $0x104] sm:$0xf0]  ;;  %v6903_v15 = vld [vmem:[#allocation8 + $0xd8] sm:$0xf0] }
  0xce   : > { %v551_v49 = vadd.f32 %v514_v21, %v513_v20  ;;  %v424_v50 = vpop.xlane.xlu1 %423  ;;  %v7238_v20 = vld [vmem:[#allocation8 + $0x124] sm:$0xf]  ;;  %v6951_v21 = vld [vmem:[#allocation8 + $0x138] sm:$0xf0] }
  0xcf   : > { %546 = vadd.xlane.f32.xlu1 %v545_v10  ;;  %v461_v55 = vmul.f32 %v7964_v33, %v424_v50  ;;  %v7244_v10 = vld [vmem:[#allocation8 + $0x154] sm:$0xf]  ;;  %v7143_v50 = vld [vmem:[#allocation8 + $0x2b8] sm:$0xf0] }
  0xd0   : > { %429 = vadd.xlane.f32.xlu2 %v428_v13  ;;  %540 = vadd.xlane.f32.xlu0 %v539_v16  ;;  %v6975_v13 = vld [vmem:[#allocation8 + $0x168] sm:$0xf0] }
  0xd1   : > { %v8102_v62 = vsub.f32 %v7957_v24, %v461_v55  ;;  %v8105_v63 = vsub.f32 %v7960_v25, %v461_v55  ;;  %v7247_v24 = vld [vmem:[#allocation8 + $0x164] sm:$0xf0]  ;;  %v6978_v17 = vor.u32 %v7244_v10, %v6975_v13  ;;  %v6901_v10 = vld [vmem:[#allocation8 + $0xc0] sm:$0xf]  ;;  %v7229_v13 = vld [vmem:[#allocation8 + $0xd4] sm:$0xf0] }
  0xd2   : > { %v6974_v7 = vor.u32 %v7247_v24, %v6973_v1  ;;  %v7295_v25 = vld [vmem:[#allocation8 + $0x2e4] sm:$0xf0] }
  0xd3   : > { %v517_v4 = vmul.f32 %v8102_v62, %v8102_v62  ;;  %v518_v5 = vmul.f32 %v8105_v63, %v8105_v63  ;;  %v7166_v16 = vor.u32 %v7295_v25, %v7165_v6  ;;  %1569 = vmatpush.bf16.msra.mxu2 %v6978_v17  ;;  %v7280_v6 = vld [vmem:[#allocation8 + $0x274] sm:$0xf]  ;;  %v6902_v17 = vor.u32 %v7229_v13, %v6901_v10 }
  0xd4   : > { %1471 = vmatpush.bf16.msra.mxu0 %v6974_v7  ;;  %v7119_v7 = vld [vmem:[#allocation8 + $0x288] sm:$0xf0] }
  0xd5   : > { %v557_v0 = vadd.f32 %v518_v5, %v517_v4  ;;  %1520 = vmatpush.bf16.msra.mxu1 %v7166_v16  ;;  %v7283_v4 = vld [vmem:[#allocation8 + $0x284] sm:$0xf0]  ;;  %v7232_v5 = vld [vmem:[#allocation8 + $0xf4] sm:$0xf]  ;;  %v7122_v25 = vor.u32 %v7280_v6, %v7119_v7  ;;  %v7093_v16 = vld [vmem:[#allocation8 + $0x240] sm:$0xf] }
  0xd6   : > { %v7265_v6 = vld [vmem:[#allocation8 + $0x1f4] sm:$0xf0]  ;;  %v7214_v7 = vld [vmem:[#allocation8 + $0x64] sm:$0xf] }
  0xd7   : > { %438 = vadd.xlane.f32.xlu1 %v437_v29  ;;  %v6949_v29 = vld [vmem:[#allocation8 + $0x120] sm:$0xf] }
  0xd8   : > { %549 = vadd.xlane.f32.xlu2 %v548_v34  ;;  %432 = vadd.xlane.f32.xlu0 %v431_v35  ;;  %v7141_v34 = vld [vmem:[#allocation8 + $0x2a0] sm:$0xf]  ;;  %v6950_v35 = vor.u32 %v7241_v30, %v6949_v29  ;;  %v7094_v29 = vor.u32 %v7277_v22, %v7093_v16  ;;  %v6906_v30 = vor.u32 %v7226_v14, %v6903_v15  ;;  %v7262_v16 = vld [vmem:[#allocation8 + $0x1e4] sm:$0xf]  ;;  %v6829_v15 = vld [vmem:[#allocation8 + $0x30] sm:$0xf] }
  0xda   : > { %1472 = vmatpush.bf16.msra.mxu0 %v6950_v35  ;;  %v7095_v35 = vld [vmem:[#allocation8 + $0x258] sm:$0xf0] }
  0xdf   : > { %441 = vadd.xlane.f32.xlu1 %v440_v43  ;;  %v7142_v43 = vor.u32 %v7289_v36, %v7141_v34  ;;  %v7274_v34 = vld [vmem:[#allocation8 + $0x244] sm:$0xf] }
  0xe0   : > { %435 = vadd.xlane.f32.xlu0 %v434_v46  ;;  %552 = vadd.xlane.f32.xlu2 %v551_v49  ;;  %v6954_v46 = vor.u32 %v7238_v20, %v6951_v21  ;;  %v7286_v49 = vld [vmem:[#allocation8 + $0x2a4] sm:$0xf]  ;;  %v7098_v36 = vor.u32 %v7274_v34, %v7095_v35  ;;  %v6877_v20 = vld [vmem:[#allocation8 + $0x90] sm:$0xf]  ;;  %v7223_v21 = vld [vmem:[#allocation8 + $0xa4] sm:$0xf0] }
  0xe1   : > { %v7146_v55 = vor.u32 %v7286_v49, %v7143_v50  ;;  %1521 = vmatpush.bf16.msra.mxu1 %v7142_v43  ;;  %v7069_v43 = vld [vmem:[#allocation8 + $0x210] sm:$0xf]  ;;  %v7271_v49 = vld [vmem:[#allocation8 + $0x224] sm:$0xf0]  ;;  %v7220_v50 = vld [vmem:[#allocation8 + $0x94] sm:$0xf] }
  0xe2   : > { %1570 = vmatpush.bf16.msra.mxu2 %v6954_v46  ;;  %v6878_v46 = vor.u32 %v7223_v21, %v6877_v20  ;;  %v7208_v20 = vld [vmem:[#allocation8 + $0x34] sm:$0xf]  ;;  %v6831_v21 = vld [vmem:[#allocation8 + $0x48] sm:$0xf0] }
  0xe3   : > { %1619 = vmatpush.bf16.msra.mxu3 %v7146_v55  ;;  %v6879_v55 = vld [vmem:[#allocation8 + $0xa8] sm:$0xf0] }
  0xe7   : > { %1620 = vmatpush.bf16.msra.mxu3 %v7122_v25  ;;  %v6855_v25 = vld [vmem:[#allocation8 + $0x78] sm:$0xf0] }
  0xe8   : > { %555 = vadd.xlane.f32.xlu0 %v554_v2  ;;  %444 = vadd.xlane.f32.xlu2 %v443_v3  ;;  %v7117_v2 = vld [vmem:[#allocation8 + $0x270] sm:$0xf]  ;;  %v6926_v3 = vor.u32 %v7235_v18, %v6925_v58  ;;  %v7070_v58 = vor.u32 %v7271_v49, %v7069_v43  ;;  %v6882_v18 = vor.u32 %v7220_v50, %v6879_v55  ;;  %v7256_v49 = vld [vmem:[#allocation8 + $0x1b4] sm:$0xf]  ;;  %v7023_v50 = vld [vmem:[#allocation8 + $0x1c8] sm:$0xf0] }
  0xe9   : > { %v7118_v1 = vor.u32 %v7283_v4, %v7117_v2  ;;  %v7268_v2 = vld [vmem:[#allocation8 + $0x214] sm:$0xf]  ;;  %v6858_v13 = vor.u32 %v7214_v7, %v6855_v25 }
  0xea   : > { %1473 = vmatpush.bf16.msra.mxu0 %v6926_v3  ;;  %v7071_v3 = vld [vmem:[#allocation8 + $0x228] sm:$0xf0] }
  0xeb   : > { %1522 = vmatpush.bf16.msra.mxu1 %v7118_v1  ;;  %1621 = vmatpush.bf16.msra.mxu3 %v7098_v36  ;;  %v7074_v4 = vor.u32 %v7268_v2, %v7071_v3  ;;  %v7045_v1 = vld [vmem:[#allocation8 + $0x1e0] sm:$0xf]  ;;  %v7259_v36 = vld [vmem:[#allocation8 + $0x1c4] sm:$0xf0] }
  0xec   : > { %v7046_v10 = vor.u32 %v7265_v6, %v7045_v1 }
  0xee   : > { %1474 = vmatpush.bf16.msra.mxu0 %v6902_v17  ;;  %v7047_v17 = vld [vmem:[#allocation8 + $0x1f8] sm:$0xf0] }
  0xef   : > { %1523 = vmatpush.bf16.msra.mxu1 %v7094_v29  ;;  %1622 = vmatpush.bf16.msra.mxu3 %v7074_v4  ;;  %v7050_v22 = vor.u32 %v7262_v16, %v7047_v17  ;;  %v7211_v29 = vld [vmem:[#allocation8 + $0x44] sm:$0xf0] }
  0xf0   : > { %558 = vadd.xlane.f32.xlu0 %v557_v0  ;;  %v6927_v0 = vld [vmem:[#allocation8 + $0x108] sm:$0xf0]  ;;  %v6830_v35 = vor.u32 %v7211_v29, %v6829_v15 }
  0xf1   : > { %v6930_v24 = vor.u32 %v7232_v5, %v6927_v0  ;;  %v6853_v5 = vld [vmem:[#allocation8 + $0x60] sm:$0xf]  ;;  %v7217_v0 = vld [vmem:[#allocation8 + $0x74] sm:$0xf0] }
  0xf2   : > { %1475 = vmatpush.bf16.msra.mxu0 %v6878_v46  ;;  %v6834_v46 = vor.u32 %v7208_v20, %v6831_v21 }
  0xf3   : > { %1571 = vmatpush.bf16.msra.mxu2 %v6930_v24  ;;  %1524 = vmatpush.bf16.msra.mxu1 %v7070_v58  ;;  %v6854_v24 = vor.u32 %v7217_v0, %v6853_v5  ;;  %v7026_v58 = vor.u32 %v7256_v49, %v7023_v50  ;;  %v7250_v50 = vld [vmem:[#allocation8 + $0x184] sm:$0xf] }
  0xf4   : > { %1623 = vmatpush.bf16.msra.mxu3 %v7050_v22  ;;  %v7205_v22 = vld [vmem:[#allocation8 + $0x14] sm:$0xf0] }
  0xf6   : > { %1476 = vmatpush.bf16.msra.mxu0 %v6854_v24 }
  0xf7   : > { %1572 = vmatpush.bf16.msra.mxu2 %v6906_v30  ;;  %1525 = vmatpush.bf16.msra.mxu1 %v7046_v10  ;;  %v7021_v30 = vld [vmem:[#allocation8 + $0x1b0] sm:$0xf] }
  0xf8   : > { %v7022_v43 = vor.u32 %v7259_v36, %v7021_v30  ;;  %1624 = vmatpush.bf16.msra.mxu3 %v7026_v58  ;;  %v7253_v30 = vld [vmem:[#allocation8 + $0x194] sm:$0xf0]  ;;  %v6999_v58 = vld [vmem:[#allocation8 + $0x198] sm:$0xf0] }
  0xfa   : > { %1477 = vmatpush.bf16.msra.mxu0 %v6830_v35  ;;  %v6807_v35 = vld [vmem:[#allocation8 + $0x18] sm:$0xf0] }
  0xfb   : > { %1573 = vmatpush.bf16.msra.mxu2 %v6882_v18  ;;  %1526 = vmatpush.bf16.msra.mxu1 %v7022_v43 }
  0xff   : > { %1574 = vmatpush.bf16.msra.mxu2 %v6858_v13 }
 0x103   : > { %1575 = vmatpush.bf16.msra.mxu2 %v6834_v46 }
 0x133   : > { %v535_v14 = vpop.xlane.xlu2 %534 }
 0x134   : > { %v581_v34 = vmul.f32 %v535_v14, %v7964_v33  ;;  %v6997_v14 = vld [vmem:[#allocation8 + $0x180] sm:$0xf] }
 0x135   : > { %v6998_v46 = vor.u32 %v7253_v30, %v6997_v14 }
 0x136   : > { %v8114_v55 = vadd.f32 1e-05, %v581_v34  ;;  %v7202_v34 = vld [vmem:[#allocation8 + $0x4] sm:$0xf] }
 0x137   : > { %v6810_v49 = vor.u32 %v7202_v34, %v6807_v35  ;;  %1527 = vmatpush.bf16.msra.mxu1 %v6998_v46  ;;  %v397_v46 = vld [vmem:[#allocation7] sm:$0x3] }
 0x138   : > { %7465 = vrsqrt.f32 %v8114_v55  ;;  %vm619_vm2 = vweird.f32 %v8114_v55 }
 0x139   : > { %1576 = vmatpush.bf16.msra.mxu2 %v6810_v49 }
 0x13a   : > { %v544_v18 = vpop.xlane.xlu1 %543 }
 0x13b   : > { %v584_v2 = vmul.f32 %v544_v18, %v7964_v33  ;;  %v427_v3 = vpop.xlane.xlu2 %426  ;;  %v538_v4 = vpop.xlane.xlu0 %537 }
 0x13c   : > { %v462_v5 = vmul.f32 %v7964_v33, %v427_v3  ;;  %v582_v0 = vmul.f32 %v538_v4, %v7964_v33  ;;  %v7002_v3 = vor.u32 %v7250_v50, %v6999_v58 }
 0x13d   : > { %v8120_v1 = vadd.f32 1e-05, %v584_v2 }
 0x13e   : > { %v7466_v24 = vpop.eup %7465  ;;  %v8123_v6 = vsub.f32 %v7978_v47, %v462_v5  ;;  %v8126_v7 = vsub.f32 %v7981_v48, %v462_v5  ;;  %v8128_v25 = vadd.f32 1e-05, %v582_v0  ;;  %v6805_v47 = vld [vmem:[#allocation8] sm:$0xf]  ;;  %1625 = vmatpush.bf16.msra.mxu3 %v7002_v3 }
 0x13f   : > { %v614_v10 = vmul.f32 %v7466_v24, %v8114_v55  ;;  %7467 = vrsqrt.f32 %v8120_v1  ;;  %v6806_v29 = vor.u32 %v7205_v22, %v6805_v47  ;;  %vm620_vm1 = vweird.f32 %v7466_v24 }
 0x140   : > { %7469 = vrsqrt.f32 %v8128_v25  ;;  %v519_v13 = vmul.f32 %v8123_v6, %v8123_v6  ;;  %v520_v16 = vmul.f32 %v8126_v7, %v8126_v7  ;;  %vm621_vm3 = vmor %vm619_vm2, %vm620_vm1  ;;  %vm629_vm5 = vweird.f32 %v8128_v25 }
 0x141   : > { %v615_v17 = vmul.f32 %v7466_v24, %v614_v10  ;;  %1478 = vmatpush.bf16.msra.mxu0 %v6806_v29  ;;  %vm649_vm6 = vweird.f32 %v8120_v1 }
 0x142   : > { %v547_v48 = vpop.xlane.xlu1 %546  ;;  %v560_v15 = vadd.f32 %v520_v16, %v519_v13 }
 0x143   : > { %v616_v36 = vmul.f32 0.5, %v615_v17  ;;  %v585_v20 = vmul.f32 %v547_v48, %v7964_v33  ;;  %v430_v21 = vpop.xlane.xlu2 %429  ;;  %v541_v43 = vpop.xlane.xlu0 %540 }
 0x144   : > { %v463_v18 = vmul.f32 %v7964_v33, %v430_v21  ;;  %v583_v2 = vmul.f32 %v541_v43, %v7964_v33  ;;  %561 = vadd.xlane.f32.xlu1 %v560_v15 }
 0x145   : > { %v8140_v4 = vpop.eup %7467  ;;  %v617_v5 = vsub.f32 1.5, %v616_v36  ;;  %v8142_v0 = vadd.f32 1e-05, %v585_v20 }
 0x146   : > { %v7470_v10 = vpop.eup %7469  ;;  %v644_v13 = vmul.f32 %v8140_v4, %v8120_v1  ;;  %v8147_v16 = vsub.f32 %v8023_v8, %v463_v18  ;;  %v8150_v17 = vsub.f32 %v8026_v9, %v463_v18  ;;  %v8155_v48 = vadd.f32 1e-05, %v583_v2  ;;  %v396_v9 = vld [vmem:[#allocation5] sm:$0x3] }
 0x147   : > { %v618_v47 = vmul.f32 %v7466_v24, %v617_v5  ;;  %v624_v22 = vmul.f32 %v7470_v10, %v8128_v25  ;;  %7471 = vrsqrt.f32 %v8142_v0  ;;  %v8164_v49 = vperm.slane %v396_v9, 0 }
 0x148   : > { %v645_v14 = vmul.f32 %v8140_v4, %v644_v13  ;;  %v521_v15 = vmul.f32 %v8147_v16, %v8147_v16  ;;  %v522_v8 = vmul.f32 %v8150_v17, %v8150_v17  ;;  %7473 = vrsqrt.f32 %v8155_v48 }
 0x149   : > { %v625_v29 = vmul.f32 %v7470_v10, %v624_v22  ;;  %v622_v30 = vsel %vm621_vm3, %v7466_v24, %v618_v47  ;;  %vm630_vm4 = vweird.f32 %v7470_v10  ;;  %v8167_v18 = vperm.slane %v396_v9, 1 }
 0x14a   : > { %v563_v36 = vadd.f32 %v522_v8, %v521_v15  ;;  %v646_v20 = vmul.f32 0.5, %v645_v14  ;;  %v439_v21 = vpop.xlane.xlu1 %438  ;;  %v773_v50 = vmul.f32 %v622_v30, %v7967_v37  ;;  %v774_v24 = vmul.f32 %v622_v30, %v7969_v38  ;;  %vm631_vm7 = vmor %vm629_vm5, %vm630_vm4 }
 0x14b   : > { %v626_v34 = vmul.f32 0.5, %v625_v29  ;;  %v550_v55 = vpop.xlane.xlu2 %549  ;;  %v433_v35 = vpop.xlane.xlu0 %432  ;;  %v8175_v47 = vperm.slane %v397_v46, 0  ;;  %v8177_v22 = vperm.slane %v397_v46, 1  ;;  %v466_v29 = vmul.f32 %v7964_v33, %v439_v21 }
 0x14c   : > { %v586_v43 = vmul.f32 %v550_v55, %v7964_v33  ;;  %564 = vadd.xlane.f32.xlu2 %v563_v36  ;;  %v647_v37 = vsub.f32 1.5, %v646_v20  ;;  %v810_v14 = vmul.f32 %v8164_v49, %v773_v50  ;;  %v811_v25 = vmul.f32 %v8167_v18, %v774_v24 }
 0x14d   : > { %v627_v58 = vsub.f32 1.5, %v626_v34  ;;  %v8170_v2 = vpop.eup %7471  ;;  %vm650_vm8 = vweird.f32 %v8140_v4  ;;  %v464_v46 = vmul.f32 %v7964_v33, %v433_v35  ;;  %vm639_vm10 = vweird.f32 %v8155_v48 }
 0x14e   : > { %v8173_v5 = vadd.f32 1e-05, %v586_v43  ;;  %v7474_v13 = vpop.eup %7473  ;;  %v654_v30 = vmul.f32 %v8170_v2, %v8142_v0  ;;  %v648_v36 = vmul.f32 %v8140_v4, %v647_v37  ;;  %v847_v43 = vadd.f32 %v8175_v47, %v810_v14  ;;  %vm651_vm9 = vmor %vm649_vm6, %vm650_vm8 }
 0x14f   : > { %v628_v3 = vmul.f32 %v7470_v10, %v627_v58  ;;  %v634_v38 = vmul.f32 %v7474_v13, %v8155_v48  ;;  %v848_v50 = vadd.f32 %v8177_v22, %v811_v25  ;;  %vm640_vm11 = vweird.f32 %v7474_v13 }
 0x150   : > { %7475 = vrsqrt.f32 %v8173_v5  ;;  %v655_v14 = vmul.f32 %v8170_v2, %v654_v30  ;;  %v8220_v30 = vsub.f32 %v8051_v28, %v464_v46  ;;  %vm641_vm12 = vmor %vm639_vm10, %vm640_vm11  ;;  %vm669_vm13 = vweird.f32 %v8173_v5 }
 0x151   : > { %v632_v15 = vsel %vm631_vm7, %v7470_v10, %v628_v3  ;;  %v635_v34 = vmul.f32 %v7474_v13, %v634_v38  ;;  %v8212_v38 = vsub.f32 %v8041_v26, %v466_v29  ;;  %vm659_vm15 = vweird.f32 %v8142_v0 }
 0x152   : > { %v775_v8 = vmul.f32 %v632_v15, %v7989_v53  ;;  %v776_v9 = vmul.f32 %v632_v15, %v7991_v54  ;;  %v8197_v54 = vsub.f32 %v8038_v23, %v466_v29  ;;  %v442_v3 = vpop.xlane.xlu1 %441  ;;  %v652_v23 = vsel %vm651_vm9, %v8140_v4, %v648_v36 }
 0x153   : > { %v553_v55 = vpop.xlane.xlu2 %552  ;;  %v436_v10 = vpop.xlane.xlu0 %435  ;;  %v636_v53 = vmul.f32 0.5, %v635_v34  ;;  %v467_v48 = vmul.f32 %v7964_v33, %v442_v3  ;;  %v780_v28 = vmul.f32 %v652_v23, %v7987_v52  ;;  %vm660_vm0 = vweird.f32 %v8170_v2 }
 0x154   : > { %v812_v20 = vmul.f32 %v8164_v49, %v775_v8  ;;  %v813_v21 = vmul.f32 %v8167_v18, %v776_v9  ;;  %v587_v37 = vmul.f32 %v553_v55, %v7964_v33  ;;  %v8217_v9 = vsub.f32 %v8048_v27, %v464_v46  ;;  %vm661_vm2 = vmor %vm659_vm15, %vm660_vm0 }
 0x155   : > { %v637_v15 = vsub.f32 1.5, %v636_v53  ;;  %v465_v26 = vmul.f32 %v7964_v33, %v436_v10  ;;  %v527_v29 = vmul.f32 %v8197_v54, %v8197_v54  ;;  %v779_v27 = vmul.f32 %v652_v23, %v7985_v51 }
 0x156   : > { %v849_v58 = vadd.f32 %v8175_v47, %v812_v20  ;;  %v850_v24 = vadd.f32 %v8177_v22, %v813_v21  ;;  %v8214_v25 = vpop.eup %7475  ;;  %v8225_v34 = vadd.f32 1e-05, %v587_v37  ;;  %v656_v55 = vmul.f32 0.5, %v655_v14 }
 0x157   : > { %v638_v8 = vmul.f32 %v7474_v13, %v637_v15  ;;  %v664_v4 = vmul.f32 %v8214_v25, %v8173_v5  ;;  %v8242_v51 = vsub.f32 %v8065_v39, %v467_v48  ;;  %v8245_v52 = vsub.f32 %v8068_v40, %v467_v48 }
 0x158   : > { %v8207_v1 = vpack.c.bf16 %v849_v58, %v847_v43  ;;  %v8209_v35 = vpack.c.bf16 %v850_v24, %v848_v50  ;;  %v528_v43 = vmul.f32 %v8212_v38, %v8212_v38  ;;  %7477 = vrsqrt.f32 %v8225_v34 }
 0x159   : > { %v642_v36 = vsel %vm641_vm12, %v7474_v13, %v638_v8  ;;  %v665_v10 = vmul.f32 %v8214_v25, %v664_v4  ;;  %v8253_v50 = vsub.f32 %v8075_v41, %v465_v26  ;;  %v8256_v24 = vsub.f32 %v8078_v42, %v465_v26 }
 0x15a   : > { %1479 = vmatmul.bf16.vlgmr.msra.gmra.mxu0 %v8207_v1  ;;  %1528 = vmatmul.bf16.vlgmr.msra.gmra.mxu1 %v8209_v35  ;;  %v777_v20 = vmul.f32 %v642_v36, %v8004_v60  ;;  %v778_v21 = vmul.f32 %v642_v36, %v8007_v61  ;;  %v523_v60 = vmul.f32 %v8217_v9, %v8217_v9  ;;  %v657_v48 = vsub.f32 1.5, %v656_v55 }
 0x15b   : > { %1577 = vmatmul.bf16.vlgmr.msra.gmra.mxu2 %v8207_v1  ;;  %1626 = vmatmul.bf16.vlgmr.msra.gmra.mxu3 %v8209_v35  ;;  %v445_v53 = vpop.xlane.xlu2 %444  ;;  %v556_v46 = vpop.xlane.xlu0 %555  ;;  %v524_v61 = vmul.f32 %v8220_v30, %v8220_v30  ;;  %v666_v13 = vmul.f32 0.5, %v665_v10  ;;  %v572_v58 = vadd.f32 %v528_v43, %v527_v29  ;;  %v816_v37 = vmul.f32 %v8164_v49, %v779_v27 }
 0x15c   : > { %v468_v40 = vmul.f32 %v7964_v33, %v445_v53  ;;  %v588_v3 = vmul.f32 %v556_v46, %v7964_v33  ;;  %v814_v14 = vmul.f32 %v8164_v49, %v777_v20  ;;  %v815_v15 = vmul.f32 %v8167_v18, %v778_v21 }
 0x15d   : > { %v566_v39 = vadd.f32 %v524_v61, %v523_v60  ;;  %573 = vadd.xlane.f32.xlu2 %v572_v58  ;;  %v817_v23 = vmul.f32 %v8167_v18, %v780_v28  ;;  %v667_v41 = vsub.f32 1.5, %v666_v13  ;;  %v529_v42 = vmul.f32 %v8242_v51, %v8242_v51 }
 0x15e   : > { %v530_v8 = vmul.f32 %v8245_v52, %v8245_v52  ;;  %vm670_vm14 = vweird.f32 %v8214_v25  ;;  %v8270_v4 = vadd.f32 1e-05, %v588_v3  ;;  %v8273_v26 = vsub.f32 %v8096_v59, %v468_v40  ;;  %v8282_v36 = vpop.eup %7477 }
 0x15f   : > { %567 = vadd.xlane.f32.xlu0 %v566_v39  ;;  %v8276_v29 = vsub.f32 %v8099_v19, %v468_v40  ;;  %v525_v27 = vmul.f32 %v8253_v50, %v8253_v50  ;;  %v526_v28 = vmul.f32 %v8256_v24, %v8256_v24  ;;  %v851_v55 = vadd.f32 %v8175_v47, %v814_v14  ;;  %vm671_vm1 = vmor %vm669_vm13, %vm670_vm14 }
 0x160   : > { %v852_v20 = vadd.f32 %v8177_v22, %v815_v15  ;;  %7479 = vrsqrt.f32 %v8270_v4  ;;  %v668_v59 = vmul.f32 %v8214_v25, %v667_v41  ;;  %v575_v19 = vadd.f32 %v530_v8, %v529_v42  ;;  %v6983_v15 = vld [vmem:[#allocation8 + $0x170] sm:$0xf0] }
 0x161   : > { %v569_v21 = vadd.f32 %v526_v28, %v525_v27  ;;  %v853_v10 = vadd.f32 %v8175_v47, %v816_v37  ;;  %v854_v43 = vadd.f32 %v8177_v22, %v817_v23  ;;  %v658_v53 = vmul.f32 %v8170_v2, %v657_v48  ;;  %v7293_v23 = vld [vmem:[#allocation8 + $0x2dc] sm:$0xf]  ;;  %v7175_v8 = vld [vmem:[#allocation8 + $0x2f0] sm:$0xf0]  ;;  %v6981_v48 = vld [vmem:[#allocation8 + $0x158] sm:$0xf] }
 0x162   : > { %v674_v46 = vmul.f32 %v8282_v36, %v8225_v34  ;;  %v531_v60 = vmul.f32 %v8273_v26, %v8273_v26  ;;  %v532_v61 = vmul.f32 %v8276_v29, %v8276_v29  ;;  %v672_v5 = vsel %vm671_vm1, %v8214_v25, %v668_v59  ;;  %v7245_v25 = vld [vmem:[#allocation8 + $0x15c] sm:$0xf]  ;;  %v7173_v59 = vld [vmem:[#allocation8 + $0x2d8] sm:$0xf] }
 0x163   : > { %570 = vadd.xlane.f32.xlu1 %v569_v21  ;;  %v8305_v13 = vpack.c.bf16 %v853_v10, %v851_v55  ;;  %v8307_v58 = vpack.c.bf16 %v854_v43, %v852_v20  ;;  %v662_v40 = vsel %vm661_vm2, %v8170_v2, %v658_v53  ;;  %v783_v14 = vmul.f32 %v672_v5, %v8029_v11  ;;  %v7248_v20 = vld [vmem:[#allocation8 + $0x16c] sm:$0xf0]  ;;  %v7239_v43 = vld [vmem:[#allocation8 + $0x12c] sm:$0xf] }
 0x164   : > { %v675_v3 = vmul.f32 %v8282_v36, %v674_v46  ;;  %v578_v37 = vadd.f32 %v532_v61, %v531_v60  ;;  %v784_v41 = vmul.f32 %v672_v5, %v8032_v12  ;;  %v6986_v2 = vor.u32 %v7245_v25, %v6983_v15  ;;  %v7296_v11 = vld [vmem:[#allocation8 + $0x2ec] sm:$0xf0]  ;;  %v6959_v12 = vld [vmem:[#allocation8 + $0x140] sm:$0xf0]  ;;  %v7287_v61 = vld [vmem:[#allocation8 + $0x2ac] sm:$0xf] }
 0x165   : > { %v781_v27 = vmul.f32 %v662_v40, %v7995_v56  ;;  %v782_v28 = vmul.f32 %v662_v40, %v7997_v57  ;;  %v7178_v55 = vor.u32 %v7293_v23, %v7175_v8  ;;  %v6982_v10 = vor.u32 %v7248_v20, %v6981_v48  ;;  %v7151_v56 = vld [vmem:[#allocation8 + $0x2c0] sm:$0xf0]  ;;  %v7149_v23 = vld [vmem:[#allocation8 + $0x2a8] sm:$0xf]  ;;  %v6935_v8 = vld [vmem:[#allocation8 + $0x110] sm:$0xf0] }
 0x166   : > { %v8310_v39 = vpop.eup %7479  ;;  %1765 = vmatpush.bf16.msrb.mxu2 %v6986_v2  ;;  %v820_v53 = vmul.f32 %v8164_v49, %v783_v14  ;;  %v7174_v46 = vor.u32 %v7296_v11, %v7173_v59  ;;  %v6962_v60 = vor.u32 %v7239_v43, %v6959_v12  ;;  %v821_v57 = vmul.f32 %v8167_v18, %v784_v41  ;;  %v7290_v14 = vld [vmem:[#allocation8 + $0x2bc] sm:$0xf0]  ;;  %v7281_v48 = vld [vmem:[#allocation8 + $0x27c] sm:$0xf] }
 0x167   : > { %576 = vadd.xlane.f32.xlu0 %v575_v19  ;;  %v684_v0 = vmul.f32 %v8310_v39, %v8270_v4  ;;  %v676_v19 = vmul.f32 0.5, %v675_v3  ;;  %1814 = vmatpush.bf16.msrb.mxu3 %v7178_v55  ;;  %v7154_v40 = vor.u32 %v7287_v61, %v7151_v56  ;;  %v7242_v3 = vld [vmem:[#allocation8 + $0x13c] sm:$0xf0]  ;;  %v819_v25 = vmul.f32 %v8167_v18, %v782_v28  ;;  %v7127_v28 = vld [vmem:[#allocation8 + $0x290] sm:$0xf0] }
 0x168   : > { %1667 = vmatpush.bf16.msrb.mxu0 %v6982_v10  ;;  %1716 = vmatpush.bf16.msrb.mxu1 %v7174_v46  ;;  %vm689_vm3 = vweird.f32 %v8270_v4  ;;  %vm690_vm4 = vweird.f32 %v8310_v39  ;;  %v7150_v41 = vor.u32 %v7290_v14, %v7149_v23  ;;  %v857_v55 = vadd.f32 %v8175_v47, %v820_v53  ;;  %v6933_v23 = vld [vmem:[#allocation8 + $0xf8] sm:$0xf]  ;;  %v7236_v14 = vld [vmem:[#allocation8 + $0x10c] sm:$0xf0] }
 0x169   : > { %v685_v42 = vmul.f32 %v8310_v39, %v684_v0  ;;  %v6957_v0 = vld [vmem:[#allocation8 + $0x128] sm:$0xf]  ;;  %v677_v2 = vsub.f32 1.5, %v676_v19  ;;  %vm679_vm5 = vweird.f32 %v8225_v34  ;;  %v858_v20 = vadd.f32 %v8177_v22, %v821_v57  ;;  %vm691_vm7 = vmor %vm689_vm3, %vm690_vm4 }
 0x16a   : > { %1484 = vmatmul.bf16.gmra.mxu0 %v8305_v13  ;;  %1533 = vmatmul.bf16.gmra.mxu1 %v8307_v58  ;;  %v6958_v15 = vor.u32 %v7242_v3, %v6957_v0  ;;  %vm680_vm6 = vweird.f32 %v8282_v36  ;;  %v7130_v11 = vor.u32 %v7281_v48, %v7127_v28 }
 0x16b   : > { %1582 = vmatmul.bf16.gmra.mxu2 %v8305_v13  ;;  %1631 = vmatmul.bf16.gmra.mxu3 %v8307_v58  ;;  %v686_v21 = vmul.f32 0.5, %v685_v42  ;;  %v7233_v42 = vld [vmem:[#allocation8 + $0xfc] sm:$0xf]  ;;  %v678_v10 = vmul.f32 %v8282_v36, %v677_v2  ;;  %vm681_vm8 = vmor %vm679_vm5, %vm680_vm6  ;;  %v6934_v2 = vor.u32 %v7236_v14, %v6933_v23 }
 0x16c   : > { %579 = vadd.xlane.f32.xlu1 %v578_v37  ;;  %v818_v37 = vmul.f32 %v8164_v49, %v781_v27  ;;  %1766 = vmatpush.bf16.msrb.mxu2 %v6962_v60  ;;  %v6938_v27 = vor.u32 %v7233_v42, %v6935_v8  ;;  %v7125_v42 = vld [vmem:[#allocation8 + $0x278] sm:$0xf] }
 0x16d   : > { %v687_v5 = vsub.f32 1.5, %v686_v21  ;;  %1815 = vmatpush.bf16.msrb.mxu3 %v7154_v40  ;;  %1668 = vmatpush.bf16.msrb.mxu0 %v6958_v15  ;;  %v856_v21 = vadd.f32 %v8177_v22, %v819_v25  ;;  %v682_v4 = vsel %vm681_vm8, %v8282_v36, %v678_v10  ;;  %v7103_v10 = vld [vmem:[#allocation8 + $0x260] sm:$0xf0] }
 0x16e   : > { %v855_v19 = vadd.f32 %v8175_v47, %v818_v37  ;;  %1717 = vmatpush.bf16.msrb.mxu1 %v7150_v41  ;;  %v785_v60 = vmul.f32 %v682_v4, %v8056_v31  ;;  %v786_v61 = vmul.f32 %v682_v4, %v8059_v32  ;;  %v559_v32 = vpop.xlane.xlu0 %558  ;;  %v7284_v41 = vld [vmem:[#allocation8 + $0x28c] sm:$0xf0] }
 0x16f   : > { %v688_v59 = vmul.f32 %v8310_v39, %v687_v5  ;;  %v8347_v12 = vpack.c.bf16 %v858_v20, %v856_v21  ;;  %v589_v3 = vmul.f32 %v559_v32, %v7964_v33  ;;  %v7126_v48 = vor.u32 %v7284_v41, %v7125_v42 }
 0x170   : > { %1767 = vmatpush.bf16.msrb.mxu2 %v6938_v27  ;;  %v8343_v43 = vpack.c.bf16 %v857_v55, %v855_v19  ;;  %v822_v36 = vmul.f32 %v8164_v49, %v785_v60  ;;  %v823_v57 = vmul.f32 %v8167_v18, %v786_v61  ;;  %v7275_v19 = vld [vmem:[#allocation8 + $0x24c] sm:$0xf] }
 0x171   : > { %1816 = vmatpush.bf16.msrb.mxu3 %v7130_v11  ;;  %v692_v53 = vsel %vm691_vm7, %v8310_v39, %v688_v59  ;;  %v605_v37 = vadd.f32 1e-05, %v589_v3  ;;  %1669 = vmatpush.bf16.msrb.mxu0 %v6934_v2  ;;  %v7227_v59 = vld [vmem:[#allocation8 + $0xcc] sm:$0xf]  ;;  %v6911_v11 = vld [vmem:[#allocation8 + $0xe0] sm:$0xf0] }
 0x172   : > { %v787_v46 = vmul.f32 %v692_v53, %v8083_v44  ;;  %v788_v34 = vmul.f32 %v692_v53, %v8086_v45  ;;  %v859_v40 = vadd.f32 %v8175_v47, %v822_v36  ;;  %v860_v45 = vadd.f32 %v8177_v22, %v823_v57  ;;  %1718 = vmatpush.bf16.msrb.mxu1 %v7126_v48 }
 0x173   : > { %7481 = vrsqrt.f32 %v605_v37  ;;  %v6914_v21 = vor.u32 %v7227_v59, %v6911_v11  ;;  %v7106_v53 = vor.u32 %v7275_v19, %v7103_v10  ;;  %vm699_vm9 = vweird.f32 %v605_v37 }
 0x174   : > { %v824_v39 = vmul.f32 %v8164_v49, %v787_v46  ;;  %v825_v56 = vmul.f32 %v8167_v18, %v788_v34 }
 0x175   : > { %1768 = vmatpush.bf16.msrb.mxu2 %v6914_v21  ;;  %1817 = vmatpush.bf16.msrb.mxu3 %v7106_v53 }
 0x176   : > { %v861_v5 = vadd.f32 %v8175_v47, %v824_v39  ;;  %v862_v44 = vadd.f32 %v8177_v22, %v825_v56 }
 0x178   : > { %v8367_v0 = vpack.c.bf16 %v861_v5, %v859_v40  ;;  %v8369_v31 = vpack.c.bf16 %v862_v44, %v860_v45 }
 0x179   : > { %v7482_v25 = vpop.eup %7481 }
 0x17a   : > { %1489 = vmatmul.bf16.gmra.mxu0 %v8343_v43  ;;  %1538 = vmatmul.bf16.gmra.mxu1 %v8347_v12  ;;  %v694_v15 = vmul.f32 %v7482_v25, %v605_v37  ;;  %vm700_vm10 = vweird.f32 %v7482_v25 }
 0x17b   : > { %1587 = vmatmul.bf16.gmra.mxu2 %v8343_v43  ;;  %1636 = vmatmul.bf16.gmra.mxu3 %v8347_v12  ;;  %vm701_vm11 = vmor %vm699_vm9, %vm700_vm10  ;;  %vm2241_vm10 = vcmask 1047556  }
 0x17c   : > { %v695_v8 = vmul.f32 %v7482_v25, %v694_v15 }
 0x17e   : > { %v696_v28 = vmul.f32 0.5, %v695_v8 }
 0x180   : > { %v697_v4 = vsub.f32 1.5, %v696_v28  ;;  %v7101_v28 = vld [vmem:[#allocation8 + $0x248] sm:$0xf] }
 0x182   : > { %v698_v61 = vmul.f32 %v7482_v25, %v697_v4 }
 0x184   : > { %v702_v57 = vsel %vm701_vm11, %v7482_v25, %v698_v61 }
 0x185   : > { %v789_v44 = vmul.f32 %v702_v57, %v8102_v62  ;;  %v790_v40 = vmul.f32 %v702_v57, %v8105_v63 }
 0x187   : > { %v826_v15 = vmul.f32 %v8164_v49, %v789_v44  ;;  %v827_v23 = vmul.f32 %v8167_v18, %v790_v40  ;;  %v7221_v44 = vld [vmem:[#allocation8 + $0x9c] sm:$0xf]  ;;  %v6887_v40 = vld [vmem:[#allocation8 + $0xb0] sm:$0xf0] }
 0x189   : > { %v863_v8 = vadd.f32 %v8175_v47, %v826_v15  ;;  %v864_v48 = vadd.f32 %v8177_v22, %v827_v23  ;;  %v7709_v15 = vmov 1983009808  }
 0x18a   : > { %1494 = vmatmul.bf16.gmra.mxu0 %v8367_v0  ;;  %1543 = vmatmul.bf16.gmra.mxu1 %v8369_v31  ;;  %v2237_v23 = vunpack.c.l.s4 %v7709_v15 }
 0x18b   : > { %1592 = vmatmul.bf16.gmra.mxu2 %v8367_v0  ;;  %1641 = vmatmul.bf16.gmra.mxu3 %v8369_v31 }
 0x1b7   : > { %v562_v55 = vpop.xlane.xlu1 %561 }
 0x1b8   : > { %v590_v27 = vmul.f32 %v562_v55, %v7964_v33  ;;  %v6909_v55 = vld [vmem:[#allocation8 + $0xc8] sm:$0xf] }
 0x1ba   : > { %v606_v20 = vadd.f32 1e-05, %v590_v27  ;;  %v7230_v27 = vld [vmem:[#allocation8 + $0xdc] sm:$0xf0] }
 0x1bb   : > { %v6910_v11 = vor.u32 %v7230_v27, %v6909_v55  ;;  %v8416_v27 = vunpack.c.0.s8 %v2237_v23 }
 0x1bc   : > { %7483 = vrsqrt.f32 %v606_v20  ;;  %vm709_vm13 = vweird.f32 %v606_v20 }
 0x1bd   : > { %1670 = vmatpush.bf16.msrb.mxu0 %v6910_v11  ;;  %v7077_v11 = vld [vmem:[#allocation8 + $0x218] sm:$0xf] }
 0x1bf   : > { %v565_v46 = vpop.xlane.xlu2 %564 }
 0x1c0   : > { %v591_v34 = vmul.f32 %v565_v46, %v7964_v33 }
 0x1c2   : > { %v7484_v60 = vpop.eup %7483  ;;  %v607_v56 = vadd.f32 1e-05, %v591_v34 }
 0x1c3   : > { %v704_v39 = vmul.f32 %v7484_v60, %v606_v20  ;;  %vm710_vm12 = vweird.f32 %v7484_v60 }
 0x1c4   : > { %7485 = vrsqrt.f32 %v607_v56  ;;  %vm711_vm14 = vmor %vm709_vm13, %vm710_vm12  ;;  %vm719_vm15 = vweird.f32 %v607_v56 }
 0x1c5   : > { %v705_v36 = vmul.f32 %v7484_v60, %v704_v39 }
 0x1c7   : > { %v706_v5 = vmul.f32 0.5, %v705_v36 }
 0x1c9   : > { %v707_v45 = vsub.f32 1.5, %v706_v5 }
 0x1ca   : > { %v7486_v32 = vpop.eup %7485 }
 0x1cb   : > { %v708_v3 = vmul.f32 %v7484_v60, %v707_v45  ;;  %v714_v37 = vmul.f32 %v7486_v32, %v607_v56  ;;  %vm720_vm0 = vweird.f32 %v7486_v32  ;;  %v7269_v45 = vld [vmem:[#allocation8 + $0x21c] sm:$0xf]  ;;  %v7079_v56 = vld [vmem:[#allocation8 + $0x230] sm:$0xf0] }
 0x1cc   : > { %vm721_vm1 = vmor %vm719_vm15, %vm720_vm0 }
 0x1cd   : > { %v712_v14 = vsel %vm711_vm14, %v7484_v60, %v708_v3  ;;  %v715_v2 = vmul.f32 %v7486_v32, %v714_v37  ;;  %v6890_v37 = vor.u32 %v7221_v44, %v6887_v40 }
 0x1ce   : > { %v791_v42 = vmul.f32 %v712_v14, %v8123_v6  ;;  %v792_v25 = vmul.f32 %v712_v14, %v8126_v7  ;;  %v7278_v7 = vld [vmem:[#allocation8 + $0x25c] sm:$0xf0] }
 0x1cf   : > { %v716_v41 = vmul.f32 0.5, %v715_v2  ;;  %v7102_v21 = vor.u32 %v7278_v7, %v7101_v28  ;;  %v7710_v2 = vmov 1934713408   ;;  %1769 = vmatpush.bf16.msrb.mxu2 %v6890_v37 }
 0x1d0   : > { %v828_v62 = vmul.f32 %v8164_v49, %v791_v42  ;;  %v829_v63 = vmul.f32 %v8167_v18, %v792_v25  ;;  %v574_v19 = vpop.xlane.xlu2 %573  ;;  %v7082_v25 = vor.u32 %v7269_v45, %v7079_v56 }
 0x1d1   : > { %v717_v6 = vsub.f32 1.5, %v716_v41  ;;  %v594_v46 = vmul.f32 %v574_v19, %v7964_v33  ;;  %1719 = vmatpush.bf16.msrb.mxu1 %v7102_v21 }
 0x1d2   : > { %v865_v20 = vadd.f32 %v8175_v47, %v828_v62  ;;  %v866_v59 = vadd.f32 %v8177_v22, %v829_v63  ;;  %v568_v34 = vpop.xlane.xlu0 %567  ;;  %v2244_v62 = vunpack.c.l.s4 %v7710_v2  ;;  %1818 = vmatpush.bf16.msrb.mxu3 %v7082_v25 }
 0x1d3   : > { %v718_v4 = vmul.f32 %v7486_v32, %v717_v6  ;;  %v592_v60 = vmul.f32 %v568_v34, %v7964_v33  ;;  %v8396_v61 = vadd.f32 1e-05, %v594_v46  ;;  %v7224_v6 = vld [vmem:[#allocation8 + $0xac] sm:$0xf0] }
 0x1d4   : > { %v8390_v10 = vpack.c.bf16 %v865_v20, %v863_v8  ;;  %v8392_v53 = vpack.c.bf16 %v866_v59, %v864_v48  ;;  %v6885_v59 = vld [vmem:[#allocation8 + $0x98] sm:$0xf]  ;;  %v8424_v19 = vunpack.c.0.s8 %v2244_v62 }
 0x1d5   : > { %v8401_v39 = vadd.f32 1e-05, %v592_v60  ;;  %v722_v5 = vsel %vm721_vm1, %v7486_v32, %v718_v4  ;;  %7487 = vrsqrt.f32 %v8396_v61  ;;  %vm749_vm2 = vweird.f32 %v8396_v61 }
 0x1d6   : > { %1499 = vmatmul.bf16.gmra.mxu0 %v8390_v10  ;;  %1548 = vmatmul.bf16.gmra.mxu1 %v8392_v53  ;;  %v571_v3 = vpop.xlane.xlu1 %570  ;;  %v793_v14 = vmul.f32 %v722_v5, %v8147_v16  ;;  %v794_v32 = vmul.f32 %v722_v5, %v8150_v17  ;;  %v6886_v60 = vor.u32 %v7224_v6, %v6885_v59 }
 0x1d7   : > { %1597 = vmatmul.bf16.gmra.mxu2 %v8390_v10  ;;  %1646 = vmatmul.bf16.gmra.mxu3 %v8392_v53  ;;  %v1480_v36 = vpop.f32.mrf.mxu0  ;;  %v1529_v57 = vpop.f32.mrf.mxu1  ;;  %7489 = vrsqrt.f32 %v8401_v39  ;;  %v593_v42 = vmul.f32 %v571_v3, %v7964_v33  ;;  %vm729_vm3 = vweird.f32 %v8401_v39 }
 0x1d8   : > { %v1530_v55 = vadd.f32 %v1529_v57, %v1480_v36  ;;  %v830_v20 = vmul.f32 %v8164_v49, %v793_v14  ;;  %v831_v4 = vmul.f32 %v8167_v18, %v794_v32  ;;  %v7272_v36 = vld [vmem:[#allocation8 + $0x22c] sm:$0xf0]  ;;  %1671 = vmatpush.bf16.msrb.mxu0 %v6886_v60 }
 0x1d9   : > { %v8410_v41 = vadd.f32 1e-05, %v593_v42  ;;  %v7078_v44 = vor.u32 %v7272_v36, %v7077_v11 }
 0x1da   : > { %v577_v63 = vpop.xlane.xlu0 %576  ;;  %v2059_v3 = vmul.f32 0.088388346, %v1530_v55  ;;  %v867_v42 = vadd.f32 %v8175_v47, %v830_v20  ;;  %v868_v25 = vadd.f32 %v8177_v22, %v831_v4 }
 0x1db   : > { %v595_v8 = vmul.f32 %v577_v63, %v7964_v33  ;;  %v8413_v48 = vpop.eup %7487  ;;  %7491 = vrsqrt.f32 %v8410_v41  ;;  %1720 = vmatpush.bf16.msrb.mxu1 %v7078_v44  ;;  %vm739_vm5 = vweird.f32 %v8410_v41 }
 0x1dc   : > { %v744_v17 = vmul.f32 %v8413_v48, %v8396_v61  ;;  %vm750_vm4 = vweird.f32 %v8413_v48 }
 0x1dd   : > { %v8418_v28 = vpop.eup %7489  ;;  %v8429_v34 = vadd.f32 1e-05, %v595_v8  ;;  %vm8445_vm7 = vmor %vm749_vm2, %vm750_vm4 }
 0x1de   : > { %v1578_v16 = vpop.f32.mrf.mxu2  ;;  %v1627_v7 = vpop.f32.mrf.mxu3  ;;  %v724_v46 = vmul.f32 %v8418_v28, %v8401_v39  ;;  %v745_v5 = vmul.f32 %v8413_v48, %v744_v17  ;;  %vm730_vm6 = vweird.f32 %v8418_v28 }
 0x1df   : > { %v1482_v21 = vpop.f32.mrf.mxu0  ;;  %v1531_v57 = vpop.f32.mrf.mxu1  ;;  %v1628_v40 = vadd.f32 %v1627_v7, %v1578_v16  ;;  %7493 = vrsqrt.f32 %v8429_v34  ;;  %vm759_vm8 = vweird.f32 %v8429_v34  ;;  %vm731_vm11 = vmor %vm729_vm3, %vm730_vm6 }
 0x1e0   : > { %v725_v45 = vmul.f32 %v8418_v28, %v724_v46  ;;  %v580_v37 = vpop.xlane.xlu1 %579  ;;  %v1532_v56 = vadd.f32 %v1531_v57, %v1482_v21  ;;  %v746_v15 = vmul.f32 0.5, %v745_v5 }
 0x1e1   : > { %v596_v23 = vmul.f32 %v580_v37, %v7964_v33  ;;  %v2060_v14 = vmul.f32 0.088388346, %v1628_v40  ;;  %v7492_v62 = vpop.eup %7491 }
 0x1e2   : > { %v726_v2 = vmul.f32 0.5, %v725_v45  ;;  %v747_v32 = vsub.f32 1.5, %v746_v15  ;;  %v734_v16 = vmul.f32 %v7492_v62, %v8410_v41  ;;  %v8451_v20 = vmul.f32 0.088388346, %v1532_v56 }
 0x1e3   : > { %v8441_v63 = vadd.f32 1e-05, %v596_v23  ;;  %v2091_v8 = vpack.c.bf16 %v2060_v14, %v2059_v3  ;;  %vm740_vm9 = vweird.f32 %v7492_v62 }
 0x1e4   : > { %v727_v55 = vsub.f32 1.5, %v726_v2  ;;  %v748_v59 = vmul.f32 %v8413_v48, %v747_v32  ;;  %v735_v21 = vmul.f32 %v7492_v62, %v734_v16  ;;  %vm741_vm14 = vmor %vm739_vm5, %vm740_vm9 }
 0x1e5   : > { %7495 = vrsqrt.f32 %v8441_v63  ;;  %v2123_v6 = vrot.slane %v2091_v8, 4  ;;  %v7494_v11 = vpop.eup %7493  ;;  %v2142_v4 = vshrl.u32 %v2091_v8, 16  ;;  %vm769_vm13 = vweird.f32 %v8441_v63 }
 0x1e6   : > { %v1580_v17 = vpop.f32.mrf.mxu2  ;;  %v1629_v61 = vpop.f32.mrf.mxu3  ;;  %v728_v7 = vmul.f32 %v8418_v28, %v727_v55  ;;  %v752_v60 = vsel %vm8445_vm7, %v8413_v48, %v748_v59  ;;  %v754_v36 = vmul.f32 %v7494_v11, %v8429_v34  ;;  %vm760_vm12 = vweird.f32 %v7494_v11 }
 0x1e7   : > { %v1630_v46 = vadd.f32 %v1629_v61, %v1580_v17  ;;  %v2141_v57 = vpack.i.b16 %v2123_v6, %v2091_v8  ;;  %v799_v5 = vmul.f32 %v752_v60, %v8197_v54  ;;  %v800_v44 = vmul.f32 %v752_v60, %v8212_v38  ;;  %vm761_vm0 = vmor %vm759_vm8, %vm760_vm12 }
 0x1e8   : > { %v732_v40 = vsel %vm731_vm11, %v8418_v28, %v728_v7  ;;  %v736_v45 = vmul.f32 0.5, %v735_v21  ;;  %v755_v37 = vmul.f32 %v7494_v11, %v754_v36  ;;  %v2143_v39 = vshrl.u32 %v2123_v6, 16 }
 0x1e9   : > { %v795_v48 = vmul.f32 %v732_v40, %v8217_v9  ;;  %v796_v3 = vmul.f32 %v732_v40, %v8220_v30  ;;  %v836_v56 = vmul.f32 %v8164_v49, %v799_v5  ;;  %v837_v15 = vmul.f32 %v8167_v18, %v800_v44 }
 0x1ea   : > { %v737_v23 = vsub.f32 1.5, %v736_v45  ;;  %v2239_v54 = vperm.slane %v2141_v57, %v8416_v27  ;;  %v756_v2 = vmul.f32 0.5, %v755_v37  ;;  %v2144_v32 = vpack.i.b16 %v2143_v39, %v2142_v4 }
 0x1eb   : > { %v7496_v14 = vpop.eup %7495  ;;  %v832_v38 = vmul.f32 %v8164_v49, %v795_v48  ;;  %v833_v28 = vmul.f32 %v8167_v18, %v796_v3  ;;  %v873_v9 = vadd.f32 %v8175_v47, %v836_v56  ;;  %v874_v30 = vadd.f32 %v8177_v22, %v837_v15 }
 0x1ec   : > { %v738_v8 = vmul.f32 %v7492_v62, %v737_v23  ;;  %v764_v33 = vmul.f32 %v7496_v14, %v8441_v63  ;;  %v757_v17 = vsub.f32 1.5, %v756_v2  ;;  %vm770_vm15 = vweird.f32 %v7496_v14 }
 0x1ed   : > { %v869_v55 = vadd.f32 %v8175_v47, %v832_v38  ;;  %v870_v16 = vadd.f32 %v8177_v22, %v833_v28  ;;  %v2240_v61 = vrot.slane %v2239_v54, 4  ;;  %v2246_v7 = vperm.slane %v2239_v54, %v8424_v19  ;;  %vm771_vm1 = vmor %vm769_vm13, %vm770_vm15 }
 0x1ee   : > { %v742_v59 = vsel %vm741_vm14, %v7492_v62, %v738_v8  ;;  %v765_v6 = vmul.f32 %v7496_v14, %v764_v33  ;;  %v758_v41 = vmul.f32 %v7494_v11, %v757_v17  ;;  %v2259_v40 = vperm.slane %v2144_v32, %v8416_v27  ;;  %v1583_v38 = vpop.f32.mrf.mxu2  ;;  %v1632_v28 = vpop.f32.mrf.mxu3 }
 0x1ef   : > { %v8484_v21 = vpack.c.bf16 %v869_v55, %v867_v42  ;;  %v8486_v4 = vpack.c.bf16 %v870_v16, %v868_v25  ;;  %v797_v60 = vmul.f32 %v742_v59, %v8253_v50  ;;  %v798_v36 = vmul.f32 %v742_v59, %v8256_v24 }
 0x1f0   : > { %v766_v57 = vmul.f32 0.5, %v765_v6  ;;  %v2242_v62 = vsel %vm2241_vm10, 0, %v2240_v61  ;;  %v2251_v5 = vrot.slane %v2246_v7, 4  ;;  %v762_v50 = vsel %vm761_vm0, %v7494_v11, %v758_v41  ;;  %v1485_v11 = vpop.f32.mrf.mxu0 }
 0x1f1   : > { %v834_v44 = vmul.f32 %v8164_v49, %v797_v60  ;;  %v835_v42 = vmul.f32 %v8167_v18, %v798_v36  ;;  %v2250_v25 = vperm.slane %v2242_v62, %v8424_v19  ;;  %1504 = vmatmul.bf16.gmra.mxu0 %v8484_v21  ;;  %v2062_v45 = vmul.f32 0.088388346, %v1630_v46  ;;  %1553 = vmatmul.bf16.gmra.mxu1 %v8486_v4  ;;  %v1534_v46 = vpop.f32.mrf.mxu1  ;;  %v7215_v60 = vld [vmem:[#allocation8 + $0x6c] sm:$0xf]  ;;  %v6863_v36 = vld [vmem:[#allocation8 + $0x80] sm:$0xf0] }
 0x1f2   : > { %v767_v24 = vsub.f32 1.5, %v766_v57  ;;  %v2252_v34 = vsel %vm2241_vm10, 0, %v2251_v5  ;;  %1602 = vmatmul.bf16.gmra.mxu2 %v8484_v21  ;;  %v801_v37 = vmul.f32 %v762_v50, %v8242_v51  ;;  %v802_v39 = vmul.f32 %v762_v50, %v8245_v52  ;;  %1651 = vmatmul.bf16.gmra.mxu3 %v8486_v4 }
 0x1f3   : > { %v871_v48 = vadd.f32 %v8175_v47, %v834_v44  ;;  %v872_v3 = vadd.f32 %v8177_v22, %v835_v42  ;;  %v2253_v15 = vrot.slane %v2250_v25, 4  ;;  %v2260_v23 = vrot.slane %v2259_v40, 4  ;;  %v7055_v44 = vld [vmem:[#allocation8 + $0x200] sm:$0xf0] }
 0x1f4   : > { %v768_v56 = vmul.f32 %v7496_v14, %v767_v24  ;;  %v2265_v54 = vperm.slane %v2259_v40, %v8424_v19  ;;  %v838_v52 = vmul.f32 %v8164_v49, %v801_v37  ;;  %v839_v63 = vmul.f32 %v8167_v18, %v802_v39  ;;  %v7266_v39 = vld [vmem:[#allocation8 + $0x1fc] sm:$0xf0] }
 0x1f5   : > { %v8511_v2 = vpack.c.bf16 %v873_v9, %v871_v48  ;;  %v8513_v51 = vpack.c.bf16 %v874_v30, %v872_v3  ;;  %v2254_v8 = vsel %vm2241_vm10, 0, %v2253_v15  ;;  %v2261_v33 = vsel %vm2241_vm10, 0, %v2260_v23  ;;  %v6861_v48 = vld [vmem:[#allocation8 + $0x68] sm:$0xf] }
 0x1f6   : > { %v772_v32 = vsel %vm771_vm1, %v7496_v14, %v768_v56  ;;  %v2270_v55 = vrot.slane %v2265_v54, 4  ;;  %v875_v16 = vadd.f32 %v8175_v47, %v838_v52  ;;  %v876_v17 = vadd.f32 %v8177_v22, %v839_v63 }
 0x1f7   : > { %v803_v59 = vmul.f32 %v772_v32, %v8273_v26  ;;  %v804_v9 = vmul.f32 %v772_v32, %v8276_v29  ;;  %v2269_v30 = vperm.slane %v2261_v33, %v8424_v19  ;;  %v4348_v61 = vsel %vm2241_vm10, %v2253_v15, %v2246_v7  ;;  %v7263_v26 = vld [vmem:[#allocation8 + $0x1ec] sm:$0xf] }
 0x1f8   : > { %v2271_v6 = vsel %vm2241_vm10, 0, %v2270_v55  ;;  %v4353_v14 = vrot.slane %v2254_v8, 4  ;;  %v4352_v62 = vperm.slane %v4348_v61, %v8416_v27  ;;  %v2092_v5 = vpack.c.bf16 %v2062_v45, %v8451_v20  ;;  %v1487_v23 = vpop.f32.mrf.mxu0  ;;  %v1634_v55 = vpop.f32.mrf.mxu3 }
 0x1f9   : > { %v840_v41 = vmul.f32 %v8164_v49, %v803_v59  ;;  %v841_v57 = vmul.f32 %v8167_v18, %v804_v9  ;;  %v2272_v29 = vrot.slane %v2269_v30, 4  ;;  %v6866_v25 = vor.u32 %v7215_v60, %v6863_v36  ;;  %v7218_v18 = vld [vmem:[#allocation8 + $0x7c] sm:$0xf0]  ;;  %v1536_v52 = vpop.f32.mrf.mxu1 }
 0x1fa   : > { %v4354_v42 = vsel %vm2241_vm10, %v4353_v14, %v2252_v34  ;;  %v7058_v40 = vor.u32 %v7263_v26, %v7055_v44  ;;  %v2124_v49 = vrot.slane %v2092_v5, 4  ;;  %v2148_v45 = vshrl.u32 %v2092_v5, 16  ;;  %v7053_v34 = vld [vmem:[#allocation8 + $0x1e8] sm:$0xf] }
 0x1fb   : > { %v877_v7 = vadd.f32 %v8175_v47, %v840_v41  ;;  %v878_v50 = vadd.f32 %v8177_v22, %v841_v57  ;;  %v4358_v24 = vperm.slane %v4354_v42, %v8416_v27  ;;  %v2273_v3 = vsel %vm2241_vm10, 0, %v2272_v29  ;;  %1770 = vmatpush.bf16.msrb.mxu2 %v6866_v25 }
 0x1fc   : > { %v4365_v20 = vsel %vm2241_vm10, %v2272_v29, %v2265_v54  ;;  %1819 = vmatpush.bf16.msrb.mxu3 %v7058_v40  ;;  %v1535_v37 = vadd.f32 %v1534_v46, %v1485_v11  ;;  %v4370_v63 = vrot.slane %v2273_v3, 4  ;;  %v2147_v32 = vpack.i.b16 %v2124_v49, %v2092_v5  ;;  %v1585_v54 = vpop.f32.mrf.mxu2 }
 0x1fd   : > { %v8536_v56 = vpack.c.bf16 %v877_v7, %v875_v16  ;;  %v8538_v47 = vpack.c.bf16 %v878_v50, %v876_v17  ;;  %v4359_v22 = vrot.slane %v4358_v24, 4  ;;  %v4369_v15 = vperm.slane %v4365_v20, %v8416_v27 }
 0x1fe   : > { %v2149_v8 = vshrl.u32 %v2124_v49, 16  ;;  %v2063_v33 = vmul.f32 0.088388346, %v1535_v37  ;;  %v6862_v11 = vor.u32 %v7218_v18, %v6861_v48  ;;  %v7054_v46 = vor.u32 %v7266_v39, %v7053_v34 }
 0x1ff   : > { %v4360_v59 = vsel %vm2241_vm10, %v4359_v22, %v4352_v62  ;;  %v1633_v9 = vadd.f32 %v1632_v28, %v1583_v38  ;;  %v4371_v17 = vsel %vm2241_vm10, %v4370_v63, %v2271_v6  ;;  %v2278_v61 = vperm.slane %v2147_v32, %v8416_v27 }
 0x200   : > { %v4364_v16 = vperm.slane %v4360_v59, %v8424_v19  ;;  %v2150_v30 = vpack.i.b16 %v2149_v8, %v2148_v45  ;;  %v4375_v14 = vperm.slane %v4371_v17, %v8416_v27  ;;  %1672 = vmatpush.bf16.msrb.mxu0 %v6862_v11  ;;  %1721 = vmatpush.bf16.msrb.mxu1 %v7054_v46  ;;  %v8563_v22 = vpop.f32.mrf.mxu0 }
 0x201   : > { %v2064_v60 = vmul.f32 0.088388346, %v1633_v9  ;;  %v1537_v36 = vadd.f32 %v1536_v52, %v1487_v23  ;;  %v1635_v41 = vadd.f32 %v1634_v55, %v1585_v54  ;;  %v2279_v62 = vrot.slane %v2278_v61, 4  ;;  %1509 = vmatmul.bf16.gmra.mxu0 %v8511_v2  ;;  %1558 = vmatmul.bf16.gmra.mxu1 %v8513_v51 }
 0x202   : > { %v4896_v57 = vshrl.u32 %v4364_v16, 16  ;;  %v2284_v5 = vperm.slane %v2278_v61, %v8424_v19  ;;  %v2297_v38 = vperm.slane %v2150_v30, %v8416_v27  ;;  %v4376_v28 = vrot.slane %v4375_v14, 4  ;;  %1607 = vmatmul.bf16.gmra.mxu2 %v8511_v2  ;;  %1656 = vmatmul.bf16.gmra.mxu3 %v8513_v51 }
 0x203   : > { %v2093_v6 = vpack.c.bf16 %v2064_v60, %v2063_v33  ;;  %v2065_v26 = vmul.f32 0.088388346, %v1537_v36  ;;  %v2066_v44 = vmul.f32 0.088388346, %v1635_v41  ;;  %v2280_v29 = vsel %vm2241_vm10, 0, %v2279_v62  ;;  %v8570_v33 = vpop.f32.mrf.mxu3 }
 0x204   : > { %v2289_v42 = vrot.slane %v2284_v5, 4  ;;  %v2298_v25 = vrot.slane %v2297_v38, 4  ;;  %v2303_v40 = vperm.slane %v2297_v38, %v8424_v19  ;;  %v4377_v7 = vsel %vm2241_vm10, %v4376_v28, %v4369_v15  ;;  %v8565_v15 = vpop.f32.mrf.mxu1  ;;  %v8568_v8 = vpop.f32.mrf.mxu2 }
 0x205   : > { %v2288_v50 = vperm.slane %v2280_v29, %v8424_v19  ;;  %v2125_v24 = vrot.slane %v2093_v6, 4  ;;  %v2154_v49 = vshrl.u32 %v2093_v6, 16  ;;  %v4381_v48 = vperm.slane %v4377_v7, %v8424_v19 }
 0x206   : > { %v2290_v18 = vsel %vm2241_vm10, 0, %v2289_v42  ;;  %v2299_v3 = vsel %vm2241_vm10, 0, %v2298_v25  ;;  %v2308_v20 = vrot.slane %v2303_v40, 4  ;;  %v2094_v32 = vpack.c.bf16 %v2066_v44, %v2065_v26 }
 0x207   : > { %v2291_v45 = vrot.slane %v2288_v50, 4  ;;  %v2307_v37 = vperm.slane %v2299_v3, %v8424_v19  ;;  %v2153_v34 = vpack.i.b16 %v2125_v24, %v2093_v6  ;;  %v2155_v39 = vshrl.u32 %v2125_v24, 16 }
 0x208   : > { %v4894_v23 = vpack.i.b16 %v4381_v48, %v4364_v16  ;;  %v4897_v52 = vshrl.u32 %v4381_v48, 16  ;;  %v2309_v63 = vsel %vm2241_vm10, 0, %v2308_v20  ;;  %v2126_v60 = vrot.slane %v2094_v32, 4 }
 0x209   : > { %v2292_v54 = vsel %vm2241_vm10, 0, %v2291_v45  ;;  %v2310_v55 = vrot.slane %v2307_v37, 4  ;;  %v4382_v59 = vsel %vm2241_vm10, %v2291_v45, %v2284_v5  ;;  %v2156_v11 = vpack.i.b16 %v2155_v39, %v2154_v49 }
 0x20a   : > { %v4898_v46 = vpack.i.b16 %v4897_v52, %v4896_v57  ;;  %5020 = vst [vmem:[%s8575_s5] sm:$0xf] %v4894_v23  ;;  %v4386_v9 = vperm.slane %v4382_v59, %v8416_v27  ;;  %v4387_v16 = vrot.slane %v2292_v54, 4  ;;  %v2316_v17 = vperm.slane %v2153_v34, %v8416_v27  ;;  %v8597_v34 = vpop.f32.mrf.mxu0 }
 0x20b   : > { %v2311_v30 = vsel %vm2241_vm10, 0, %v2310_v55  ;;  %v4399_v61 = vsel %vm2241_vm10, %v2310_v55, %v2303_v40  ;;  %v2335_v14 = vperm.slane %v2156_v11, %v8416_v27  ;;  %v2159_v29 = vpack.i.b16 %v2126_v60, %v2094_v32  ;;  %v8606_v55 = vpop.f32.mrf.mxu3 }
 0x20c   : > { %5036 = vst [vmem:[%s8575_s5 + $0x40] sm:$0xf] %v4898_v46  ;;  %v4388_v36 = vsel %vm2241_vm10, %v4387_v16, %v2290_v18  ;;  %v4403_v41 = vperm.slane %v4399_v61, %v8416_v27  ;;  %v4404_v57 = vrot.slane %v2311_v30, 4  ;;  %v2317_v62 = vrot.slane %v2316_v17, 4  ;;  %v8599_v39 = vpop.f32.mrf.mxu1  ;;  %v8604_v54 = vpop.f32.mrf.mxu2 }
 0x20d   : > { %v4392_v5 = vperm.slane %v4388_v36, %v8416_v27  ;;  %v2322_v38 = vperm.slane %v2316_v17, %v8424_v19  ;;  %v2336_v28 = vrot.slane %v2335_v14, 4  ;;  %v2341_v6 = vperm.slane %v2335_v14, %v8424_v19 }
 0x20e   : > { %v4405_v26 = vsel %vm2241_vm10, %v4404_v57, %v2309_v63  ;;  %v2318_v44 = vsel %vm2241_vm10, 0, %v2317_v62  ;;  %v2160_v42 = vshrl.u32 %v2094_v32, 16  ;;  %v2161_v48 = vshrl.u32 %v2126_v60, 16 }
 0x20f   : > { %v4393_v25 = vrot.slane %v4392_v5, 4  ;;  %v4409_v40 = vperm.slane %v4405_v26, %v8416_v27  ;;  %v2326_v7 = vperm.slane %v2318_v44, %v8424_v19  ;;  %v2327_v50 = vrot.slane %v2322_v38, 4  ;;  %v6839_v26 = vld [vmem:[#allocation8 + $0x50] sm:$0xf0] }
 0x210   : > { %v2337_v24 = vsel %vm2241_vm10, 0, %v2336_v28  ;;  %v2346_v49 = vrot.slane %v2341_v6, 4  ;;  %v2354_v18 = vperm.slane %v2159_v29, %v8416_v27  ;;  %v2162_v32 = vpack.i.b16 %v2161_v48, %v2160_v42  ;;  %v7209_v28 = vld [vmem:[#allocation8 + $0x3c] sm:$0xf] }
 0x211   : > { %v4394_v3 = vsel %vm2241_vm10, %v4393_v25, %v4386_v9  ;;  %v4410_v20 = vrot.slane %v4409_v40, 4  ;;  %v2328_v45 = vsel %vm2241_vm10, 0, %v2327_v50  ;;  %v2329_v37 = vrot.slane %v2326_v7, 4  ;;  %1514 = vmatmul.bf16.gmra.mxu0 %v8536_v56  ;;  %1563 = vmatmul.bf16.gmra.mxu1 %v8538_v47 }
 0x212   : > { %v4398_v23 = vperm.slane %v4394_v3, %v8424_v19  ;;  %v2345_v52 = vperm.slane %v2337_v24, %v8424_v19  ;;  %v2347_v63 = vsel %vm2241_vm10, 0, %v2346_v49  ;;  %v2355_v9 = vrot.slane %v2354_v18, 4  ;;  %1612 = vmatmul.bf16.gmra.mxu2 %v8536_v56  ;;  %1661 = vmatmul.bf16.gmra.mxu3 %v8538_v47  ;;  %v7257_v3 = vld [vmem:[#allocation8 + $0x1bc] sm:$0xf] }
 0x213   : > { %v4411_v59 = vsel %vm2241_vm10, %v4410_v20, %v4403_v41  ;;  %v2330_v11 = vsel %vm2241_vm10, 0, %v2329_v37  ;;  %v4416_v46 = vsel %vm2241_vm10, %v2329_v37, %v2322_v38  ;;  %v2360_v36 = vperm.slane %v2354_v18, %v8424_v19  ;;  %v7031_v20 = vld [vmem:[#allocation8 + $0x1d0] sm:$0xf0] }
 0x214   : > { %v4415_v16 = vperm.slane %v4411_v59, %v8424_v19  ;;  %v4904_v17 = vshrl.u32 %v4398_v23, 16  ;;  %v2348_v30 = vrot.slane %v2345_v52, 4  ;;  %v4420_v61 = vperm.slane %v4416_v46, %v8416_v27  ;;  %v6837_v46 = vld [vmem:[#allocation8 + $0x38] sm:$0xf] }
 0x215   : > { %v4421_v14 = vrot.slane %v2330_v11, 4  ;;  %v2356_v60 = vsel %vm2241_vm10, 0, %v2355_v9  ;;  %v2373_v41 = vperm.slane %v2162_v32, %v8416_v27  ;;  %v2365_v50 = vrot.slane %v2360_v36, 4  ;;  %v7212_v9 = vld [vmem:[#allocation8 + $0x4c] sm:$0xf0] }
 0x216   : > { %v4902_v57 = vpack.i.b16 %v4415_v16, %v4398_v23  ;;  %v4905_v62 = vshrl.u32 %v4415_v16, 16  ;;  %v2349_v5 = vsel %vm2241_vm10, 0, %v2348_v30  ;;  %v4433_v38 = vsel %vm2241_vm10, %v2348_v30, %v2341_v6  ;;  %v1495_v16 = vpop.f32.mrf.mxu0 }
 0x217   : > { %v4422_v44 = vsel %vm2241_vm10, %v4421_v14, %v2328_v45  ;;  %v4437_v29 = vperm.slane %v4433_v38, %v8416_v27  ;;  %v4438_v42 = vrot.slane %v2349_v5, 4  ;;  %v2364_v25 = vperm.slane %v2356_v60, %v8424_v19 }
 0x218   : > { %v4906_v40 = vpack.i.b16 %v4905_v62, %v4904_v17  ;;  %5021 = vst [vmem:[%s8575_s5 + $0x4] sm:$0xf] %v4902_v57  ;;  %v4426_v7 = vperm.slane %v4422_v44, %v8416_v27  ;;  %v2374_v24 = vrot.slane %v2373_v41, 4  ;;  %v2379_v6 = vperm.slane %v2373_v41, %v8424_v19  ;;  %v1544_v17 = vpop.f32.mrf.mxu1  ;;  %v8638_v57 = vpop.f32.mrf.mxu2  ;;  %v7260_v44 = vld [vmem:[#allocation8 + $0x1cc] sm:$0xf0] }
 0x219   : > { %v4439_v49 = vsel %vm2241_vm10, %v4438_v42, %v2347_v63  ;;  %v2367_v48 = vrot.slane %v2364_v25, 4  ;;  %v6842_v18 = vor.u32 %v7209_v28, %v6839_v26  ;;  %v2366_v23 = vsel %vm2241_vm10, 0, %v2365_v50  ;;  %v8640_v62 = vpop.f32.mrf.mxu3  ;;  %v7029_v26 = vld [vmem:[#allocation8 + $0x1b8] sm:$0xf] }
 0x21a   : > { %5037 = vst [vmem:[%s8575_s5 + $0x44] sm:$0xf] %v4906_v40  ;;  %v4427_v45 = vrot.slane %v4426_v7, 4  ;;  %v4443_v37 = vperm.slane %v4439_v49, %v8416_v27  ;;  %v2375_v52 = vsel %vm2241_vm10, 0, %v2374_v24  ;;  %v2384_v11 = vrot.slane %v2379_v6, 4 }
 0x21b   : > { %v2368_v32 = vsel %vm2241_vm10, 0, %v2367_v48  ;;  %v2383_v59 = vperm.slane %v2375_v52, %v8424_v19  ;;  %v4450_v63 = vsel %vm2241_vm10, %v2367_v48, %v2360_v36  ;;  %1771 = vmatpush.bf16.msrb.mxu2 %v6842_v18  ;;  %v7034_v28 = vor.u32 %v7257_v3, %v7031_v20  ;;  %v7203_v48 = vld [vmem:[#allocation8 + $0xc] sm:$0xf] }
 0x21c   : > { %v4428_v30 = vsel %vm2241_vm10, %v4427_v45, %v4420_v61  ;;  %v4444_v14 = vrot.slane %v4443_v37, 4  ;;  %v4454_v60 = vperm.slane %v4450_v63, %v8416_v27  ;;  %v4455_v41 = vrot.slane %v2368_v32, 4  ;;  %v6815_v45 = vld [vmem:[#allocation8 + $0x20] sm:$0xf0]  ;;  %v7251_v52 = vld [vmem:[#allocation8 + $0x18c] sm:$0xf] }
 0x21d   : > { %v4432_v5 = vperm.slane %v4428_v30, %v8424_v19  ;;  %v2385_v38 = vsel %vm2241_vm10, 0, %v2384_v11  ;;  %v2386_v36 = vrot.slane %v2383_v59, 4  ;;  %v1540_v25 = vadd.f32 %v8565_v15, %v8563_v22  ;;  %1820 = vmatpush.bf16.msrb.mxu3 %v7034_v28  ;;  %v7007_v63 = vld [vmem:[#allocation8 + $0x1a0] sm:$0xf0] }
 0x21e   : > { %v4445_v42 = vsel %vm2241_vm10, %v4444_v14, %v4437_v29  ;;  %v4456_v61 = vsel %vm2241_vm10, %v4455_v41, %v2366_v23  ;;  %v6838_v40 = vor.u32 %v7212_v9, %v6837_v46  ;;  %v7030_v29 = vor.u32 %v7260_v44, %v7029_v26  ;;  %v6813_v46 = vld [vmem:[#allocation8 + $0x8] sm:$0xf]  ;;  %v7206_v9 = vld [vmem:[#allocation8 + $0x1c] sm:$0xf0]  ;;  %v1497_v44 = vpop.f32.mrf.mxu0 }
 0x21f   : > { %v4449_v7 = vperm.slane %v4445_v42, %v8424_v19  ;;  %v4912_v50 = vshrl.u32 %v4432_v5, 16  ;;  %v2387_v24 = vsel %vm2241_vm10, 0, %v2386_v36  ;;  %v4460_v49 = vperm.slane %v4456_v61, %v8416_v27 }
 0x220   : > { %v4467_v18 = vsel %vm2241_vm10, %v2386_v36, %v2379_v6  ;;  %v4472_v3 = vrot.slane %v2387_v24, 4  ;;  %v2067_v20 = vmul.f32 0.088388346, %v1540_v25  ;;  %1673 = vmatpush.bf16.msrb.mxu0 %v6838_v40  ;;  %1722 = vmatpush.bf16.msrb.mxu1 %v7030_v29  ;;  %v1638_v59 = vadd.f32 %v8570_v33, %v8568_v8  ;;  %v7254_v36 = vld [vmem:[#allocation8 + $0x19c] sm:$0xf0]  ;;  %v1546_v42 = vpop.f32.mrf.mxu1  ;;  %v1595_v40 = vpop.f32.mrf.mxu2 }
 0x221   : > { %v4910_v37 = vpack.i.b16 %v4449_v7, %v4432_v5  ;;  %v4913_v22 = vshrl.u32 %v4449_v7, 16  ;;  %v4461_v15 = vrot.slane %v4460_v49, 4  ;;  %v4471_v23 = vperm.slane %v4467_v18, %v8416_v27  ;;  %v1644_v7 = vpop.f32.mrf.mxu3 }
 0x222   : > { %v4473_v32 = vsel %vm2241_vm10, %v4472_v3, %v2385_v38  ;;  %v1542_v6 = vadd.f32 %v8599_v39, %v8597_v34  ;;  %v1640_v11 = vadd.f32 %v8606_v55, %v8604_v54  ;;  %v6818_v5 = vor.u32 %v7203_v48, %v6815_v45  ;;  %v7005_v38 = vld [vmem:[#allocation8 + $0x188] sm:$0xf] }
 0x223   : > { %v4914_v30 = vpack.i.b16 %v4913_v22, %v4912_v50  ;;  %5022 = vst [vmem:[%s8575_s5 + $0x8] sm:$0xf] %v4910_v37  ;;  %v4462_v14 = vsel %vm2241_vm10, %v4461_v15, %v4454_v60  ;;  %v4477_v41 = vperm.slane %v4473_v32, %v8416_v27  ;;  %v2068_v33 = vmul.f32 0.088388346, %v1638_v59 }
 0x224   : > { %v4466_v8 = vperm.slane %v4462_v14, %v8424_v19  ;;  %v2069_v34 = vmul.f32 0.088388346, %v1542_v6  ;;  %v2070_v39 = vmul.f32 0.088388346, %v1640_v11  ;;  %1772 = vmatpush.bf16.msrb.mxu2 %v6818_v5  ;;  %v7010_v54 = vor.u32 %v7251_v52, %v7007_v63 }
 0x225   : > { %5038 = vst [vmem:[%s8575_s5 + $0x48] sm:$0xf] %v4914_v30  ;;  %v4478_v28 = vrot.slane %v4477_v41, 4  ;;  %v1545_v55 = vadd.f32 %v1544_v17, %v1495_v16  ;;  %v6814_v26 = vor.u32 %v7206_v9, %v6813_v46  ;;  %v2095_v61 = vpack.c.bf16 %v2068_v33, %v2067_v20 }
 0x226   : > { %v2096_v60 = vpack.c.bf16 %v2070_v39, %v2069_v34  ;;  %v7006_v25 = vor.u32 %v7254_v36, %v7005_v38  ;;  %v4920_v24 = vshrl.u32 %v4466_v8, 16  ;;  %1821 = vmatpush.bf16.msrb.mxu3 %v7010_v54  ;;  %v1643_v48 = vadd.f32 %v8640_v62, %v8638_v57 }
 0x227   : > { %v4479_v50 = vsel %vm2241_vm10, %v4478_v28, %v4471_v23  ;;  %v2071_v49 = vmul.f32 0.088388346, %v1545_v55  ;;  %1674 = vmatpush.bf16.msrb.mxu0 %v6814_v26  ;;  %v2127_v16 = vrot.slane %v2095_v61, 4  ;;  %v1547_v3 = vadd.f32 %v1546_v42, %v1497_v44  ;;  %1773 = vmatmul.bf16.vlgmr.msrb.gmra.mxu2 %v8207_v1 }
 0x228   : > { %v4483_v18 = vperm.slane %v4479_v50, %v8424_v19  ;;  %v2128_v17 = vrot.slane %v2096_v60, 4  ;;  %1723 = vmatpush.bf16.msrb.mxu1 %v7006_v25  ;;  %v2166_v20 = vshrl.u32 %v2095_v61, 16  ;;  %v2172_v29 = vshrl.u32 %v2096_v60, 16 }
 0x229   : > { %v2072_v45 = vmul.f32 0.088388346, %v1643_v48  ;;  %v1645_v37 = vadd.f32 %v1644_v7, %v1595_v40  ;;  %v2165_v23 = vpack.i.b16 %v2127_v16, %v2095_v61  ;;  %v2167_v52 = vshrl.u32 %v2127_v16, 16  ;;  %1822 = vmatmul.bf16.vlgmr.msrb.gmra.mxu3 %v8209_v35 }
 0x22a   : > { %v4918_v22 = vpack.i.b16 %v4483_v18, %v4466_v8  ;;  %v4921_v15 = vshrl.u32 %v4483_v18, 16  ;;  %1675 = vmatmul.bf16.vlgmr.msrb.gmra.mxu0 %v8207_v1  ;;  %v2171_v57 = vpack.i.b16 %v2128_v17, %v2096_v60  ;;  %v2173_v62 = vshrl.u32 %v2128_v17, 16 }
 0x22b   : > { %v8672_v32 = vpack.c.bf16 %v2072_v45, %v2071_v49  ;;  %v2074_v59 = vmul.f32 0.088388346, %v1645_v37  ;;  %1724 = vmatmul.bf16.vlgmr.msrb.gmra.mxu1 %v8209_v35  ;;  %v2168_v11 = vpack.i.b16 %v2167_v52, %v2166_v20  ;;  %v2392_v63 = vperm.slane %v2165_v23, %v8416_v27 }
 0x22c   : > { %v4922_v6 = vpack.i.b16 %v4921_v15, %v4920_v24  ;;  %5023 = vst [vmem:[%s8575_s5 + $0xc] sm:$0xf] %v4918_v22  ;;  %v2073_v46 = vmul.f32 0.088388346, %v1547_v3  ;;  %v2174_v9 = vpack.i.b16 %v2173_v62, %v2172_v29  ;;  %v2430_v30 = vperm.slane %v2171_v57, %v8416_v27 }
 0x22d   : > { %v2129_v14 = vrot.slane %v8672_v32, 4  ;;  %v2178_v41 = vshrl.u32 %v8672_v32, 16  ;;  %v2393_v5 = vrot.slane %v2392_v63, 4  ;;  %v2398_v38 = vperm.slane %v2392_v63, %v8424_v19 }
 0x22e   : > { %5039 = vst [vmem:[%s8575_s5 + $0x4c] sm:$0xf] %v4922_v6  ;;  %v2411_v36 = vperm.slane %v2168_v11, %v8416_v27  ;;  %v8683_v8 = vpack.c.bf16 %v2074_v59, %v2073_v46  ;;  %v2431_v33 = vrot.slane %v2430_v30, 4  ;;  %v2436_v34 = vperm.slane %v2430_v30, %v8424_v19 }
 0x22f   : > { %v2449_v39 = vperm.slane %v2174_v9, %v8416_v27  ;;  %v2177_v28 = vpack.i.b16 %v2129_v14, %v8672_v32  ;;  %v2394_v54 = vsel %vm2241_vm10, 0, %v2393_v5  ;;  %v2403_v55 = vrot.slane %v2398_v38, 4 }
 0x230   : > { %v2412_v26 = vrot.slane %v2411_v36, 4  ;;  %v2417_v44 = vperm.slane %v2411_v36, %v8424_v19  ;;  %v2402_v42 = vperm.slane %v2394_v54, %v8424_v19  ;;  %v2432_v61 = vsel %vm2241_vm10, 0, %v2431_v33 }
 0x231   : > { %v2441_v60 = vrot.slane %v2436_v34, 4  ;;  %v2450_v25 = vrot.slane %v2449_v39, 4  ;;  %v2404_v40 = vsel %vm2241_vm10, 0, %v2403_v55  ;;  %v2440_v24 = vperm.slane %v2432_v61, %v8424_v19 }
 0x232   : > { %v2413_v7 = vsel %vm2241_vm10, 0, %v2412_v26  ;;  %v2422_v50 = vrot.slane %v2417_v44, 4  ;;  %v2405_v49 = vrot.slane %v2402_v42, 4  ;;  %v2455_v20 = vperm.slane %v2449_v39, %v8424_v19 }
 0x233   : > { %v2421_v48 = vperm.slane %v2413_v7, %v8424_v19  ;;  %v2442_v18 = vsel %vm2241_vm10, 0, %v2441_v60  ;;  %v2451_v16 = vsel %vm2241_vm10, 0, %v2450_v25  ;;  %v2443_v3 = vrot.slane %v2440_v24, 4 }
 0x234   : > { %v2423_v17 = vsel %vm2241_vm10, 0, %v2422_v50  ;;  %v2459_v29 = vperm.slane %v2451_v16, %v8424_v19  ;;  %v2406_v45 = vsel %vm2241_vm10, 0, %v2405_v49  ;;  %v4484_v22 = vsel %vm2241_vm10, %v2405_v49, %v2398_v38 }
 0x235   : > { %v2424_v37 = vrot.slane %v2421_v48, 4  ;;  %v2179_v15 = vshrl.u32 %v2129_v14, 16  ;;  %v4488_v23 = vperm.slane %v4484_v22, %v8416_v27  ;;  %v4489_v52 = vrot.slane %v2406_v45, 4 }
 0x236   : > { %v2444_v57 = vsel %vm2241_vm10, 0, %v2443_v3  ;;  %v2460_v62 = vrot.slane %v2455_v20, 4  ;;  %v2462_v6 = vrot.slane %v2459_v29, 4  ;;  %v4518_v11 = vsel %vm2241_vm10, %v2443_v3, %v2436_v34 }
 0x237   : > { %v2425_v32 = vsel %vm2241_vm10, 0, %v2424_v37  ;;  %v4501_v59 = vsel %vm2241_vm10, %v2424_v37, %v2417_v44  ;;  %v4490_v63 = vsel %vm2241_vm10, %v4489_v52, %v2404_v40  ;;  %1778 = vmatmul.bf16.gmra.mxu2 %v8305_v13  ;;  %v4522_v38 = vperm.slane %v4518_v11, %v8416_v27 }
 0x238   : > { %v4505_v46 = vperm.slane %v4501_v59, %v8416_v27  ;;  %v4506_v9 = vrot.slane %v2425_v32, 4  ;;  %v2461_v30 = vsel %vm2241_vm10, 0, %v2460_v62  ;;  %v4494_v14 = vperm.slane %v4490_v63, %v8416_v27 }
 0x239   : > { %v2463_v5 = vsel %vm2241_vm10, 0, %v2462_v6  ;;  %v4523_v36 = vrot.slane %v2444_v57, 4  ;;  %v4535_v34 = vsel %vm2241_vm10, %v2462_v6, %v2455_v20  ;;  %v2180_v54 = vpack.i.b16 %v2179_v15, %v2178_v41  ;;  %1827 = vmatmul.bf16.gmra.mxu3 %v8307_v58 }
 0x23a   : > { %v4507_v33 = vsel %vm2241_vm10, %v4506_v9, %v2423_v17  ;;  %v4540_v39 = vrot.slane %v2463_v5, 4  ;;  %1680 = vmatmul.bf16.gmra.mxu0 %v8305_v13  ;;  %v4495_v55 = vrot.slane %v4494_v14, 4  ;;  %v4539_v42 = vperm.slane %v4535_v34, %v8416_v27 }
 0x23b   : > { %v4511_v26 = vperm.slane %v4507_v33, %v8416_v27  ;;  %v4524_v44 = vsel %vm2241_vm10, %v4523_v36, %v2442_v18  ;;  %1729 = vmatmul.bf16.gmra.mxu1 %v8307_v58  ;;  %v2468_v25 = vperm.slane %v2177_v28, %v8416_v27  ;;  %v2487_v41 = vperm.slane %v2180_v54, %v8416_v27  ;;  %v7246_v36 = vld [vmem:[#allocation8 + $0x164] sm:$0xf]  ;;  %v6991_v33 = vld [vmem:[#allocation8 + $0x178] sm:$0xf0] }
 0x23c   : > { %v4528_v61 = vperm.slane %v4524_v44, %v8416_v27  ;;  %v4541_v60 = vsel %vm2241_vm10, %v4540_v39, %v2461_v30  ;;  %v4496_v40 = vsel %vm2241_vm10, %v4495_v55, %v4488_v23  ;;  %v2130_v24 = vrot.slane %v8683_v8, 4  ;;  %v7183_v44 = vld [vmem:[#allocation8 + $0x2f8] sm:$0xf0] }
 0x23d   : > { %v4512_v7 = vrot.slane %v4511_v26, 4  ;;  %v4545_v50 = vperm.slane %v4541_v60, %v8416_v27  ;;  %v4500_v49 = vperm.slane %v4496_v40, %v8424_v19  ;;  %v2469_v18 = vrot.slane %v2468_v25, 4  ;;  %v7294_v26 = vld [vmem:[#allocation8 + $0x2e4] sm:$0xf] }
 0x23e   : > { %v4529_v48 = vrot.slane %v4528_v61, 4  ;;  %v2474_v16 = vperm.slane %v2468_v25, %v8424_v19  ;;  %v2488_v20 = vrot.slane %v2487_v41, 4  ;;  %v2493_v28 = vperm.slane %v2487_v41, %v8424_v19  ;;  %v6989_v41 = vld [vmem:[#allocation8 + $0x160] sm:$0xf] }
 0x23f   : > { %v4513_v17 = vsel %vm2241_vm10, %v4512_v7, %v4505_v46  ;;  %v4546_v3 = vrot.slane %v4545_v50, 4  ;;  %v4928_v45 = vshrl.u32 %v4500_v49, 16  ;;  %v2470_v22 = vsel %vm2241_vm10, 0, %v2469_v18 }
 0x240   : > { %v4517_v29 = vperm.slane %v4513_v17, %v8424_v19  ;;  %v4530_v37 = vsel %vm2241_vm10, %v4529_v48, %v4522_v38  ;;  %v2478_v52 = vperm.slane %v2470_v22, %v8424_v19  ;;  %v2479_v57 = vrot.slane %v2474_v16, 4  ;;  %v7297_v22 = vld [vmem:[#allocation8 + $0x2f4] sm:$0xf0] }
 0x241   : > { %v4534_v15 = vperm.slane %v4530_v37, %v8424_v19  ;;  %v4547_v23 = vsel %vm2241_vm10, %v4546_v3, %v4539_v42  ;;  %v2489_v6 = vsel %vm2241_vm10, 0, %v2488_v20  ;;  %v2498_v38 = vrot.slane %v2493_v28, 4  ;;  %v7249_v3 = vld [vmem:[#allocation8 + $0x174] sm:$0xf0] }
 0x242   : > { %v4926_v62 = vpack.i.b16 %v4517_v29, %v4500_v49  ;;  %v4929_v32 = vshrl.u32 %v4517_v29, 16  ;;  %v4551_v59 = vperm.slane %v4547_v23, %v8424_v19  ;;  %v2480_v63 = vsel %vm2241_vm10, 0, %v2479_v57  ;;  %v6967_v57 = vld [vmem:[#allocation8 + $0x148] sm:$0xf0] }
 0x243   : > { %v4936_v11 = vshrl.u32 %v4534_v15, 16  ;;  %v2481_v46 = vrot.slane %v2478_v52, 4  ;;  %v2497_v9 = vperm.slane %v2489_v6, %v8424_v19  ;;  %v2183_v55 = vpack.i.b16 %v2130_v24, %v8683_v8 }
 0x244   : > { %v4930_v30 = vpack.i.b16 %v4929_v32, %v4928_v45  ;;  %5024 = vst [vmem:[%s8575_s5 + $0x10] sm:$0xf] %v4926_v62  ;;  %v4934_v14 = vpack.i.b16 %v4551_v59, %v4534_v15  ;;  %v4937_v5 = vshrl.u32 %v4551_v59, 16  ;;  %v2499_v61 = vsel %vm2241_vm10, 0, %v2498_v38  ;;  %v7288_v62 = vld [vmem:[#allocation8 + $0x2b4] sm:$0xf] }
 0x245   : > { %v2482_v34 = vsel %vm2241_vm10, 0, %v2481_v46  ;;  %v2500_v39 = vrot.slane %v2497_v9, 4  ;;  %v4552_v54 = vsel %vm2241_vm10, %v2481_v46, %v2474_v16  ;;  %v2184_v50 = vshrl.u32 %v8683_v8, 16  ;;  %v7240_v8 = vld [vmem:[#allocation8 + $0x134] sm:$0xf] }
 0x246   : > { %5040 = vst [vmem:[%s8575_s5 + $0x50] sm:$0xf] %v4930_v30  ;;  %v4938_v42 = vpack.i.b16 %v4937_v5, %v4936_v11  ;;  %v4556_v60 = vperm.slane %v4552_v54, %v8416_v27  ;;  %v4557_v25 = vrot.slane %v2482_v34, 4  ;;  %v2185_v49 = vshrl.u32 %v2130_v24, 16  ;;  %v6965_v46 = vld [vmem:[#allocation8 + $0x130] sm:$0xf] }
 0x247   : > { %5025 = vst [vmem:[%s8575_s5 + $0x14] sm:$0xf] %v4934_v14  ;;  %v2501_v40 = vsel %vm2241_vm10, 0, %v2500_v39  ;;  %v4569_v7 = vsel %vm2241_vm10, %v2500_v39, %v2493_v28  ;;  %v2506_v17 = vperm.slane %v2183_v55, %v8416_v27  ;;  %1783 = vmatmul.bf16.gmra.mxu2 %v8343_v43  ;;  %v6994_v45 = vor.u32 %v7246_v36, %v6991_v33  ;;  %v7181_v28 = vld [vmem:[#allocation8 + $0x2e0] sm:$0xf] }
 0x248   : > { %5041 = vst [vmem:[%s8575_s5 + $0x54] sm:$0xf] %v4938_v42  ;;  %v4558_v48 = vsel %vm2241_vm10, %v4557_v25, %v2480_v63  ;;  %v4573_v18 = vperm.slane %v4569_v7, %v8416_v27  ;;  %v4574_v16 = vrot.slane %v2501_v40, 4  ;;  %v2186_v29 = vpack.i.b16 %v2185_v49, %v2184_v50  ;;  %v7159_v63 = vld [vmem:[#allocation8 + $0x2c8] sm:$0xf0] }
 0x249   : > { %v4562_v20 = vperm.slane %v4558_v48, %v8416_v27  ;;  %v7186_v37 = vor.u32 %v7294_v26, %v7183_v44  ;;  %v2507_v15 = vrot.slane %v2506_v17, 4  ;;  %v8763_v23 = vperm.slane %v2506_v17, %v8424_v19  ;;  %1832 = vmatmul.bf16.gmra.mxu3 %v8347_v12  ;;  %1961 = vmatpush.bf16.msra.mxu2 %v6994_v45  ;;  %v7243_v38 = vld [vmem:[#allocation8 + $0x144] sm:$0xf0]  ;;  %v7157_v36 = vld [vmem:[#allocation8 + $0x2b0] sm:$0xf] }
 0x24a   : > { %v4575_v24 = vsel %vm2241_vm10, %v4574_v16, %v2499_v61  ;;  %v6990_v52 = vor.u32 %v7249_v3, %v6989_v41  ;;  %1685 = vmatmul.bf16.gmra.mxu0 %v8343_v43  ;;  %v2525_v6 = vperm.slane %v2186_v29, %v8416_v27  ;;  %v7182_v11 = vor.u32 %v7297_v22, %v7181_v28  ;;  %v7291_v55 = vld [vmem:[#allocation8 + $0x2c4] sm:$0xf0]  ;;  %v7234_v61 = vld [vmem:[#allocation8 + $0x104] sm:$0xf]  ;;  %v6943_v25 = vld [vmem:[#allocation8 + $0x118] sm:$0xf0] }
 0x24b   : > { %v4563_v32 = vrot.slane %v4562_v20, 4  ;;  %v4579_v59 = vperm.slane %v4575_v24, %v8416_v27  ;;  %2010 = vmatpush.bf16.msra.mxu3 %v7186_v37  ;;  %v2508_v9 = vsel %vm2241_vm10, 0, %v2507_v15  ;;  %v2517_v30 = vrot.slane %v8763_v23, 4  ;;  %1734 = vmatmul.bf16.gmra.mxu1 %v8347_v12  ;;  %v7282_v41 = vld [vmem:[#allocation8 + $0x284] sm:$0xf] }
 0x24c   : > { %1863 = vmatpush.bf16.msra.mxu0 %v6990_v52  ;;  %v6970_v14 = vor.u32 %v7240_v8, %v6967_v57  ;;  %v7162_v5 = vor.u32 %v7288_v62, %v7159_v63  ;;  %v2516_v39 = vperm.slane %v2508_v9, %v8424_v19  ;;  %v2526_v54 = vrot.slane %v2525_v6, 4  ;;  %1912 = vmatpush.bf16.msra.mxu1 %v7182_v11  ;;  %v7135_v49 = vld [vmem:[#allocation8 + $0x298] sm:$0xf0]  ;;  %v6941_v17 = vld [vmem:[#allocation8 + $0x100] sm:$0xf] }
 0x24d   : > { %v4564_v33 = vsel %vm2241_vm10, %v4563_v32, %v4556_v60  ;;  %v4580_v34 = vrot.slane %v4579_v59, 4  ;;  %v2531_v44 = vperm.slane %v2525_v6, %v8424_v19  ;;  %v6966_v42 = vor.u32 %v7243_v38, %v6965_v46  ;;  %v7237_v3 = vld [vmem:[#allocation8 + $0x114] sm:$0xf0]  ;;  %v7133_v20 = vld [vmem:[#allocation8 + $0x280] sm:$0xf] }
 0x24e   : > { %v4568_v26 = vperm.slane %v4564_v33, %v8424_v19  ;;  %v2519_v7 = vrot.slane %v2516_v39, 4  ;;  %v2527_v50 = vsel %vm2241_vm10, 0, %v2526_v54  ;;  %1962 = vmatpush.bf16.msra.mxu2 %v6970_v14  ;;  %v7158_v60 = vor.u32 %v7291_v55, %v7157_v36  ;;  %v7285_v28 = vld [vmem:[#allocation8 + $0x294] sm:$0xf0]  ;;  %v7228_v22 = vld [vmem:[#allocation8 + $0xd4] sm:$0xf] }
 0x24f   : > { %v4581_v40 = vsel %vm2241_vm10, %v4580_v34, %v4573_v18  ;;  %2011 = vmatpush.bf16.msra.mxu3 %v7162_v5  ;;  %v2535_v16 = vperm.slane %v2527_v50, %v8424_v19  ;;  %v2536_v45 = vrot.slane %v2531_v44, 4  ;;  %v6946_v18 = vor.u32 %v7234_v61, %v6943_v25  ;;  %v6919_v57 = vld [vmem:[#allocation8 + $0xe8] sm:$0xf0]  ;;  %v7276_v11 = vld [vmem:[#allocation8 + $0x254] sm:$0xf] }
 0x250   : > { %v4585_v48 = vperm.slane %v4581_v40, %v8424_v19  ;;  %1864 = vmatpush.bf16.msra.mxu0 %v6966_v42  ;;  %v2520_v29 = vsel %vm2241_vm10, 0, %v2519_v7  ;;  %1913 = vmatpush.bf16.msra.mxu1 %v7158_v60  ;;  %v7138_v37 = vor.u32 %v7282_v41, %v7135_v49  ;;  %v4944_v24 = vshrl.u32 %v4568_v26, 16  ;;  %v7111_v63 = vld [vmem:[#allocation8 + $0x268] sm:$0xf0]  ;;  %v6917_v33 = vld [vmem:[#allocation8 + $0xd0] sm:$0xf] }
 0x251   : > { %v2538_v52 = vrot.slane %v2535_v16, 4  ;;  %v2518_v62 = vsel %vm2241_vm10, 0, %v2517_v30  ;;  %v4591_v32 = vrot.slane %v2520_v29, 4  ;;  %v6942_v59 = vor.u32 %v7237_v3, %v6941_v17  ;;  %v7231_v55 = vld [vmem:[#allocation8 + $0xe4] sm:$0xf0] }
 0x252   : > { %v4942_v8 = vpack.i.b16 %v4585_v48, %v4568_v26  ;;  %v4945_v15 = vshrl.u32 %v4585_v48, 16  ;;  %1963 = vmatpush.bf16.msra.mxu2 %v6946_v18  ;;  %v7134_v6 = vor.u32 %v7285_v28, %v7133_v20  ;;  %v4586_v38 = vsel %vm2241_vm10, %v2519_v7, %v8763_v23  ;;  %v7109_v26 = vld [vmem:[#allocation8 + $0x250] sm:$0xf]  ;;  %v7279_v41 = vld [vmem:[#allocation8 + $0x264] sm:$0xf0] }
 0x253   : > { %2012 = vmatpush.bf16.msra.mxu3 %v7138_v37  ;;  %v1500_v46 = vpop.f32.mrf.mxu0  ;;  %v1549_v9 = vpop.f32.mrf.mxu1  ;;  %v2539_v5 = vsel %vm2241_vm10, 0, %v2538_v52  ;;  %v6922_v36 = vor.u32 %v7228_v22, %v6919_v57  ;;  %v2537_v30 = vsel %vm2241_vm10, 0, %v2536_v45  ;;  %v4592_v34 = vsel %vm2241_vm10, %v4591_v32, %v2518_v62  ;;  %v7222_v23 = vld [vmem:[#allocation8 + $0xa4] sm:$0xf]  ;;  %v6895_v60 = vld [vmem:[#allocation8 + $0xb8] sm:$0xf0] }
 0x254   : > { %v4946_v14 = vpack.i.b16 %v4945_v15, %v4944_v24  ;;  %5026 = vst [vmem:[%s8575_s5 + $0x18] sm:$0xf] %v4942_v8  ;;  %v4608_v39 = vrot.slane %v2539_v5, 4  ;;  %1865 = vmatpush.bf16.msra.mxu0 %v6942_v59  ;;  %1914 = vmatpush.bf16.msra.mxu1 %v7134_v6  ;;  %v7114_v54 = vor.u32 %v7276_v11, %v7111_v63  ;;  %v7270_v49 = vld [vmem:[#allocation8 + $0x224] sm:$0xf] }
 0x255   : > { %v4596_v42 = vperm.slane %v4592_v34, %v8416_v27  ;;  %v4603_v61 = vsel %vm2241_vm10, %v2538_v52, %v2531_v44  ;;  %v6918_v25 = vor.u32 %v7231_v55, %v6917_v33  ;;  %v7110_v7 = vor.u32 %v7279_v41, %v7109_v26  ;;  %v7087_v48 = vld [vmem:[#allocation8 + $0x238] sm:$0xf0]  ;;  %v6893_v6 = vld [vmem:[#allocation8 + $0xa0] sm:$0xf]  ;;  %v7225_v11 = vld [vmem:[#allocation8 + $0xb4] sm:$0xf0] }
 0x256   : > { %5042 = vst [vmem:[%s8575_s5 + $0x58] sm:$0xf] %v4946_v14  ;;  %v4609_v40 = vsel %vm2241_vm10, %v4608_v39, %v2537_v30  ;;  %1964 = vmatpush.bf16.msra.mxu2 %v6922_v36  ;;  %v1550_v50 = vadd.f32 %v1549_v9, %v1500_v46  ;;  %v4590_v16 = vperm.slane %v4586_v38, %v8416_v27  ;;  %v7085_v9 = vld [vmem:[#allocation8 + $0x220] sm:$0xf]  ;;  %v7273_v14 = vld [vmem:[#allocation8 + $0x234] sm:$0xf0] }
 0x257   : > { %2013 = vmatpush.bf16.msra.mxu3 %v7114_v54  ;;  %v4597_v17 = vrot.slane %v4596_v42, 4  ;;  %v4613_v3 = vperm.slane %v4609_v40, %v8416_v27  ;;  %1788 = vmatmul.bf16.gmra.mxu2 %v8367_v0  ;;  %v6898_v44 = vor.u32 %v7222_v23, %v6895_v60  ;;  %v7090_v45 = vor.u32 %v7270_v49, %v7087_v48 }
 0x258   : > { %1866 = vmatpush.bf16.msra.mxu0 %v6918_v25  ;;  %1915 = vmatpush.bf16.msra.mxu1 %v7110_v7  ;;  %v4607_v28 = vperm.slane %v4603_v61, %v8416_v27  ;;  %v2075_v24 = vmul.f32 0.088388346, %v1550_v50  ;;  %v6894_v46 = vor.u32 %v7225_v11, %v6893_v6  ;;  %v7086_v34 = vor.u32 %v7273_v14, %v7085_v9 }
 0x259   : > { %v4598_v37 = vsel %vm2241_vm10, %v4597_v17, %v4590_v16  ;;  %v4614_v22 = vrot.slane %v4613_v3, 4  ;;  %1837 = vmatmul.bf16.gmra.mxu3 %v8369_v31 }
 0x25a   : > { %v1598_v20 = vpop.f32.mrf.mxu2  ;;  %v1647_v29 = vpop.f32.mrf.mxu3  ;;  %1690 = vmatmul.bf16.gmra.mxu0 %v8367_v0  ;;  %v4602_v8 = vperm.slane %v4598_v37, %v8424_v19  ;;  %1965 = vmatpush.bf16.msra.mxu2 %v6898_v44 }
 0x25b   : > { %v1648_v18 = vadd.f32 %v1647_v29, %v1598_v20  ;;  %2014 = vmatpush.bf16.msra.mxu3 %v7090_v45  ;;  %v4615_v52 = vsel %vm2241_vm10, %v4614_v22, %v4607_v28  ;;  %1739 = vmatmul.bf16.gmra.mxu1 %v8369_v31  ;;  %v1502_v32 = vpop.f32.mrf.mxu0  ;;  %v1551_v59 = vpop.f32.mrf.mxu1  ;;  %v7216_v29 = vld [vmem:[#allocation8 + $0x74] sm:$0xf]  ;;  %v6871_v45 = vld [vmem:[#allocation8 + $0x88] sm:$0xf0] }
 0x25c   : > { %v4619_v57 = vperm.slane %v4615_v52, %v8424_v19  ;;  %v4952_v63 = vshrl.u32 %v4602_v8, 16  ;;  %v1552_v33 = vadd.f32 %v1551_v59, %v1502_v32  ;;  %1867 = vmatpush.bf16.msra.mxu0 %v6894_v46  ;;  %1916 = vmatpush.bf16.msra.mxu1 %v7086_v34  ;;  %v6874_v22 = vor.u32 %v7216_v29, %v6871_v45 }
 0x25d   : > { %v2076_v15 = vmul.f32 0.088388346, %v1648_v18 }
 0x25e   : > { %v4950_v5 = vpack.i.b16 %v4619_v57, %v4602_v8  ;;  %v4953_v38 = vshrl.u32 %v4619_v57, 16  ;;  %v2077_v23 = vmul.f32 0.088388346, %v1552_v33  ;;  %v7264_v8 = vld [vmem:[#allocation8 + $0x1f4] sm:$0xf]  ;;  %1966 = vmatpush.bf16.msra.mxu2 %v6874_v22 }
 0x25f   : > { %v2099_v62 = vpack.c.bf16 %v2076_v15, %v2075_v24 }
 0x260   : > { %v4954_v55 = vpack.i.b16 %v4953_v38, %v4952_v63  ;;  %5027 = vst [vmem:[%s8575_s5 + $0x1c] sm:$0xf] %v4950_v5 }
 0x261   : > { %v2131_v36 = vrot.slane %v2099_v62, 4  ;;  %v2190_v30 = vshrl.u32 %v2099_v62, 16 }
 0x262   : > { %v1600_v39 = vpop.f32.mrf.mxu2  ;;  %v1649_v54 = vpop.f32.mrf.mxu3  ;;  %5043 = vst [vmem:[%s8575_s5 + $0x5c] sm:$0xf] %v4954_v55 }
 0x263   : > { %v2189_v26 = vpack.i.b16 %v2131_v36, %v2099_v62  ;;  %v2191_v42 = vshrl.u32 %v2131_v36, 16  ;;  %v1650_v61 = vadd.f32 %v1649_v54, %v1600_v39  ;;  %v7063_v62 = vld [vmem:[#allocation8 + $0x208] sm:$0xf0] }
 0x264   : > { %v7066_v32 = vor.u32 %v7264_v8, %v7063_v62 }
 0x265   : > { %v2192_v25 = vpack.i.b16 %v2191_v42, %v2190_v30  ;;  %v2544_v41 = vperm.slane %v2189_v26, %v8416_v27  ;;  %v2078_v40 = vmul.f32 0.088388346, %v1650_v61 }
 0x266   : > { %2015 = vmatpush.bf16.msra.mxu3 %v7066_v32 }
 0x267   : > { %v2545_v7 = vrot.slane %v2544_v41, 4  ;;  %v2550_v50 = vperm.slane %v2544_v41, %v8424_v19  ;;  %v2563_v60 = vperm.slane %v2192_v25, %v8416_v27  ;;  %v2100_v49 = vpack.c.bf16 %v2078_v40, %v2077_v23  ;;  %1793 = vmatmul.bf16.gmra.mxu2 %v8390_v10 }
 0x269   : > { %v2546_v48 = vsel %vm2241_vm10, 0, %v2545_v7  ;;  %v2564_v16 = vrot.slane %v2563_v60, 4  ;;  %v2569_v17 = vperm.slane %v2563_v60, %v8424_v19  ;;  %v2555_v44 = vrot.slane %v2550_v50, 4  ;;  %1842 = vmatmul.bf16.gmra.mxu3 %v8392_v53 }
 0x26a   : > { %v2554_v3 = vperm.slane %v2546_v48, %v8424_v19  ;;  %v2132_v20 = vrot.slane %v2100_v49, 4  ;;  %v2196_v28 = vshrl.u32 %v2100_v49, 16  ;;  %1695 = vmatmul.bf16.gmra.mxu0 %v8390_v10 }
 0x26b   : > { %v2565_v18 = vsel %vm2241_vm10, 0, %v2564_v16  ;;  %v2574_v37 = vrot.slane %v2569_v17, 4  ;;  %1744 = vmatmul.bf16.gmra.mxu1 %v8392_v53  ;;  %v2556_v9 = vsel %vm2241_vm10, 0, %v2555_v44 }
 0x26c   : > { %v2557_v24 = vrot.slane %v2554_v3, 4  ;;  %v2573_v15 = vperm.slane %v2565_v18, %v8424_v19  ;;  %v2195_v52 = vpack.i.b16 %v2132_v20, %v2100_v49  ;;  %v2197_v57 = vshrl.u32 %v2132_v20, 16 }
 0x26d   : > { %v2575_v14 = vsel %vm2241_vm10, 0, %v2574_v37 }
 0x26e   : > { %v2558_v59 = vsel %vm2241_vm10, 0, %v2557_v24  ;;  %v2576_v6 = vrot.slane %v2573_v15, 4  ;;  %v2198_v11 = vpack.i.b16 %v2197_v57, %v2196_v28  ;;  %v2582_v46 = vperm.slane %v2195_v52, %v8416_v27  ;;  %v1505_v36 = vpop.f32.mrf.mxu0  ;;  %v1554_v54 = vpop.f32.mrf.mxu1 }
 0x26f   : > { %v4625_v63 = vrot.slane %v2558_v59, 4  ;;  %v4620_v33 = vsel %vm2241_vm10, %v2557_v24, %v2550_v50  ;;  %v1555_v16 = vadd.f32 %v1554_v54, %v1505_v36 }
 0x270   : > { %v2577_v5 = vsel %vm2241_vm10, 0, %v2576_v6  ;;  %v2601_v38 = vperm.slane %v2198_v11, %v8416_v27  ;;  %v2583_v39 = vrot.slane %v2582_v46, 4  ;;  %v4637_v26 = vsel %vm2241_vm10, %v2576_v6, %v2569_v17 }
 0x271   : > { %v4626_v30 = vsel %vm2241_vm10, %v4625_v63, %v2556_v9  ;;  %v4642_v34 = vrot.slane %v2577_v5, 4  ;;  %v2588_v42 = vperm.slane %v2582_v46, %v8424_v19  ;;  %v4624_v23 = vperm.slane %v4620_v33, %v8416_v27 }
 0x272   : > { %v4630_v55 = vperm.slane %v4626_v30, %v8416_v27  ;;  %v2602_v61 = vrot.slane %v2601_v38, 4  ;;  %v2584_v41 = vsel %vm2241_vm10, 0, %v2583_v39  ;;  %v4641_v60 = vperm.slane %v4637_v26, %v8416_v27 }
 0x273   : > { %v4643_v25 = vsel %vm2241_vm10, %v4642_v34, %v2575_v14  ;;  %v2592_v50 = vperm.slane %v2584_v41, %v8424_v19  ;;  %v2607_v48 = vperm.slane %v2601_v38, %v8424_v19  ;;  %v2593_v44 = vrot.slane %v2588_v42, 4  ;;  %v6869_v41 = vld [vmem:[#allocation8 + $0x70] sm:$0xf] }
 0x274   : > { %v4631_v40 = vrot.slane %v4630_v55, 4  ;;  %v4647_v7 = vperm.slane %v4643_v25, %v8416_v27  ;;  %v2603_v49 = vsel %vm2241_vm10, 0, %v2602_v61  ;;  %v2079_v59 = vmul.f32 0.088388346, %v1555_v16 }
 0x275   : > { %v2595_v20 = vrot.slane %v2592_v50, 4  ;;  %v2611_v45 = vperm.slane %v2603_v49, %v8424_v19  ;;  %v1603_v18 = vpop.f32.mrf.mxu2  ;;  %v1652_v22 = vpop.f32.mrf.mxu3  ;;  %v2612_v15 = vrot.slane %v2607_v48, 4  ;;  %v2594_v62 = vsel %vm2241_vm10, 0, %v2593_v44  ;;  %v7061_v49 = vld [vmem:[#allocation8 + $0x1f0] sm:$0xf] }
 0x276   : > { %v4632_v17 = vsel %vm2241_vm10, %v4631_v40, %v4624_v23  ;;  %v4648_v3 = vrot.slane %v4647_v7, 4  ;;  %v1507_v8 = vpop.f32.mrf.mxu0  ;;  %v1556_v57 = vpop.f32.mrf.mxu1  ;;  %v1653_v6 = vadd.f32 %v1652_v22, %v1603_v18  ;;  %v7267_v44 = vld [vmem:[#allocation8 + $0x204] sm:$0xf0] }
 0x277   : > { %v4636_v29 = vperm.slane %v4632_v17, %v8424_v19  ;;  %v2596_v28 = vsel %vm2241_vm10, 0, %v2595_v20  ;;  %v2614_v52 = vrot.slane %v2611_v45, 4  ;;  %1798 = vmatmul.bf16.gmra.mxu2 %v8484_v21  ;;  %v4654_v14 = vsel %vm2241_vm10, %v2595_v20, %v2588_v42 }
 0x278   : > { %v4649_v37 = vsel %vm2241_vm10, %v4648_v3, %v4641_v60  ;;  %v4659_v32 = vrot.slane %v2596_v28, 4  ;;  %v2080_v36 = vmul.f32 0.088388346, %v1653_v6  ;;  %v2613_v30 = vsel %vm2241_vm10, 0, %v2612_v15  ;;  %v7219_v60 = vld [vmem:[#allocation8 + $0x84] sm:$0xf0] }
 0x279   : > { %v4653_v24 = vperm.slane %v4649_v37, %v8424_v19  ;;  %v4960_v63 = vshrl.u32 %v4636_v29, 16  ;;  %v2615_v9 = vsel %vm2241_vm10, 0, %v2614_v52  ;;  %1847 = vmatmul.bf16.gmra.mxu3 %v8486_v4  ;;  %v4671_v39 = vsel %vm2241_vm10, %v2614_v52, %v2607_v48 }
 0x27a   : > { %v4660_v5 = vsel %vm2241_vm10, %v4659_v32, %v2594_v62  ;;  %v4676_v38 = vrot.slane %v2615_v9, 4  ;;  %1700 = vmatmul.bf16.gmra.mxu0 %v8484_v21  ;;  %v2101_v55 = vpack.c.bf16 %v2080_v36, %v2079_v59  ;;  %v4658_v26 = vperm.slane %v4654_v14, %v8416_v27 }
 0x27b   : > { %v4958_v11 = vpack.i.b16 %v4653_v24, %v4636_v29  ;;  %v4961_v46 = vshrl.u32 %v4653_v24, 16  ;;  %v4664_v34 = vperm.slane %v4660_v5, %v8416_v27  ;;  %1749 = vmatmul.bf16.gmra.mxu1 %v8486_v4  ;;  %v1557_v25 = vadd.f32 %v1556_v57, %v1507_v8 }
 0x27c   : > { %v4677_v54 = vsel %vm2241_vm10, %v4676_v38, %v2613_v30  ;;  %v4675_v40 = vperm.slane %v4671_v39, %v8416_v27  ;;  %v2133_v7 = vrot.slane %v2101_v55, 4  ;;  %v2202_v50 = vshrl.u32 %v2101_v55, 16 }
 0x27d   : > { %v4962_v33 = vpack.i.b16 %v4961_v46, %v4960_v63  ;;  %5028 = vst [vmem:[%s8575_s5 + $0x20] sm:$0xf] %v4958_v11  ;;  %v4665_v42 = vrot.slane %v4664_v34, 4  ;;  %v4681_v61 = vperm.slane %v4677_v54, %v8416_v27  ;;  %v1605_v23 = vpop.f32.mrf.mxu2  ;;  %v1654_v48 = vpop.f32.mrf.mxu3  ;;  %v6870_v3 = vor.u32 %v7219_v60, %v6869_v41  ;;  %v7210_v34 = vld [vmem:[#allocation8 + $0x44] sm:$0xf] }
 0x27e   : > { %v1655_v20 = vadd.f32 %v1654_v48, %v1605_v23  ;;  %v1510_v29 = vpop.f32.mrf.mxu0  ;;  %v1559_v45 = vpop.f32.mrf.mxu1  ;;  %v2201_v37 = vpack.i.b16 %v2133_v7, %v2101_v55  ;;  %v2203_v28 = vshrl.u32 %v2133_v7, 16  ;;  %v7062_v22 = vor.u32 %v7267_v44, %v7061_v49  ;;  %v7258_v41 = vld [vmem:[#allocation8 + $0x1c4] sm:$0xf] }
 0x27f   : > { %5044 = vst [vmem:[%s8575_s5 + $0x60] sm:$0xf] %v4962_v33  ;;  %v4666_v16 = vsel %vm2241_vm10, %v4665_v42, %v4658_v26  ;;  %v4682_v17 = vrot.slane %v4681_v61, 4  ;;  %v2081_v24 = vmul.f32 0.088388346, %v1557_v25  ;;  %1868 = vmatpush.bf16.msra.mxu0 %v6870_v3  ;;  %v1560_v52 = vadd.f32 %v1559_v45, %v1510_v29 }
 0x280   : > { %v4670_v18 = vperm.slane %v4666_v16, %v8424_v19  ;;  %v2082_v15 = vmul.f32 0.088388346, %v1655_v20  ;;  %v2204_v62 = vpack.i.b16 %v2203_v28, %v2202_v50  ;;  %v2620_v32 = vperm.slane %v2201_v37, %v8416_v27  ;;  %1917 = vmatpush.bf16.msra.mxu1 %v7062_v22  ;;  %v6847_v25 = vld [vmem:[#allocation8 + $0x58] sm:$0xf0] }
 0x281   : > { %v4683_v8 = vsel %vm2241_vm10, %v4682_v17, %v4675_v40  ;;  %v2083_v38 = vmul.f32 0.088388346, %v1560_v52  ;;  %v6850_v7 = vor.u32 %v7210_v34, %v6847_v25  ;;  %v7039_v50 = vld [vmem:[#allocation8 + $0x1d8] sm:$0xf0] }
 0x282   : > { %v4687_v57 = vperm.slane %v4683_v8, %v8424_v19  ;;  %v4968_v59 = vshrl.u32 %v4670_v18, 16  ;;  %v2102_v6 = vpack.c.bf16 %v2082_v15, %v2081_v24  ;;  %v2621_v46 = vrot.slane %v2620_v32, 4 }
 0x283   : > { %v2626_v9 = vperm.slane %v2620_v32, %v8424_v19  ;;  %v2639_v14 = vperm.slane %v2204_v62, %v8416_v27  ;;  %v7042_v29 = vor.u32 %v7258_v41, %v7039_v50  ;;  %1967 = vmatpush.bf16.msra.mxu2 %v6850_v7 }
 0x284   : > { %v4966_v11 = vpack.i.b16 %v4687_v57, %v4670_v18  ;;  %v4969_v63 = vshrl.u32 %v4687_v57, 16  ;;  %v2134_v5 = vrot.slane %v2102_v6, 4  ;;  %v2622_v33 = vsel %vm2241_vm10, 0, %v2621_v46 }
 0x285   : > { %v2631_v30 = vrot.slane %v2626_v9, 4  ;;  %v1608_v39 = vpop.f32.mrf.mxu2  ;;  %v1657_v54 = vpop.f32.mrf.mxu3  ;;  %v2630_v55 = vperm.slane %v2622_v33, %v8424_v19  ;;  %v2640_v26 = vrot.slane %v2639_v14, 4  ;;  %v2645_v42 = vperm.slane %v2639_v14, %v8424_v19  ;;  %2016 = vmatpush.bf16.msra.mxu3 %v7042_v29 }
 0x286   : > { %v4970_v36 = vpack.i.b16 %v4969_v63, %v4968_v59  ;;  %5029 = vst [vmem:[%s8575_s5 + $0x24] sm:$0xf] %v4966_v11  ;;  %v2207_v61 = vpack.i.b16 %v2134_v5, %v2102_v6  ;;  %v2208_v23 = vshrl.u32 %v2102_v6, 16  ;;  %v2209_v40 = vshrl.u32 %v2134_v5, 16  ;;  %v1512_v3 = vpop.f32.mrf.mxu0  ;;  %v1561_v18 = vpop.f32.mrf.mxu1 }
 0x287   : > { %1803 = vmatmul.bf16.gmra.mxu2 %v8511_v2  ;;  %v1658_v60 = vadd.f32 %v1657_v54, %v1608_v39  ;;  %v2633_v49 = vrot.slane %v2630_v55, 4  ;;  %v2641_v48 = vsel %vm2241_vm10, 0, %v2640_v26  ;;  %v2650_v16 = vrot.slane %v2645_v42, 4 }
 0x288   : > { %5045 = vst [vmem:[%s8575_s5 + $0x64] sm:$0xf] %v4970_v36  ;;  %v2658_v17 = vperm.slane %v2207_v61, %v8416_v27  ;;  %v2649_v44 = vperm.slane %v2641_v48, %v8424_v19  ;;  %v2210_v20 = vpack.i.b16 %v2209_v40, %v2208_v23  ;;  %v2632_v37 = vsel %vm2241_vm10, 0, %v2631_v30 }
 0x289   : > { %1852 = vmatmul.bf16.gmra.mxu3 %v8513_v51  ;;  %v2084_v45 = vmul.f32 0.088388346, %v1658_v60  ;;  %v2634_v28 = vsel %vm2241_vm10, 0, %v2633_v49  ;;  %v4688_v22 = vsel %vm2241_vm10, %v2633_v49, %v2626_v9  ;;  %v2651_v24 = vsel %vm2241_vm10, 0, %v2650_v16 }
 0x28a   : > { %1705 = vmatmul.bf16.gmra.mxu0 %v8511_v2  ;;  %v2659_v8 = vrot.slane %v2658_v17, 4  ;;  %v2652_v15 = vrot.slane %v2649_v44, 4  ;;  %v4693_v52 = vrot.slane %v2634_v28, 4  ;;  %v2664_v57 = vperm.slane %v2658_v17, %v8424_v19 }
 0x28b   : > { %1754 = vmatmul.bf16.gmra.mxu1 %v8513_v51  ;;  %v4692_v62 = vperm.slane %v4688_v22, %v8416_v27  ;;  %v2677_v59 = vperm.slane %v2210_v20, %v8416_v27  ;;  %v2103_v6 = vpack.c.bf16 %v2084_v45, %v2083_v38  ;;  %v1562_v33 = vadd.f32 %v1561_v18, %v1512_v3 }
 0x28c   : > { %v2660_v32 = vsel %vm2241_vm10, 0, %v2659_v8  ;;  %v2653_v11 = vsel %vm2241_vm10, 0, %v2652_v15  ;;  %v4694_v63 = vsel %vm2241_vm10, %v4693_v52, %v2632_v37  ;;  %v4705_v46 = vsel %vm2241_vm10, %v2652_v15, %v2645_v42  ;;  %v6845_v52 = vld [vmem:[#allocation8 + $0x40] sm:$0xf] }
 0x28d   : > { %v2668_v9 = vperm.slane %v2660_v32, %v8424_v19  ;;  %v4698_v14 = vperm.slane %v4694_v63, %v8416_v27  ;;  %v4710_v5 = vrot.slane %v2653_v11, 4  ;;  %v2669_v36 = vrot.slane %v2664_v57, 4  ;;  %v8895_v42 = vpop.f32.mrf.mxu2  ;;  %v8897_v25 = vpop.f32.mrf.mxu3 }
 0x28e   : > { %v4709_v30 = vperm.slane %v4705_v46, %v8416_v27  ;;  %v2678_v39 = vrot.slane %v2677_v59, 4  ;;  %v2683_v54 = vperm.slane %v2677_v59, %v8424_v19  ;;  %v2135_v61 = vrot.slane %v2103_v6, 4  ;;  %v8905_v16 = vpop.f32.mrf.mxu0  ;;  %v8909_v29 = vpop.f32.mrf.mxu1 }
 0x28f   : > { %v2671_v34 = vrot.slane %v2668_v9, 4  ;;  %v4699_v38 = vrot.slane %v4698_v14, 4  ;;  %v4711_v55 = vsel %vm2241_vm10, %v4710_v5, %v2651_v24  ;;  %v2670_v26 = vsel %vm2241_vm10, 0, %v2669_v36 }
 0x290   : > { %v4715_v41 = vperm.slane %v4711_v55, %v8416_v27  ;;  %v2679_v40 = vsel %vm2241_vm10, 0, %v2678_v39  ;;  %v2688_v7 = vrot.slane %v2683_v54, 4  ;;  %v2214_v20 = vshrl.u32 %v2103_v6, 16  ;;  %v7261_v39 = vld [vmem:[#allocation8 + $0x1d4] sm:$0xf0] }
 0x291   : > { %v2672_v23 = vsel %vm2241_vm10, 0, %v2671_v34  ;;  %v4700_v50 = vsel %vm2241_vm10, %v4699_v38, %v4692_v62  ;;  %v2687_v60 = vperm.slane %v2679_v40, %v8424_v19  ;;  %v4722_v49 = vsel %vm2241_vm10, %v2671_v34, %v2664_v57  ;;  %v7213_v57 = vld [vmem:[#allocation8 + $0x54] sm:$0xf0]  ;;  %v7037_v34 = vld [vmem:[#allocation8 + $0x1c0] sm:$0xf] }
 0x292   : > { %v4727_v48 = vrot.slane %v2672_v23, 4  ;;  %v4704_v17 = vperm.slane %v4700_v50, %v8424_v19  ;;  %v4716_v3 = vrot.slane %v4715_v41, 4  ;;  %v2689_v44 = vsel %vm2241_vm10, 0, %v2688_v7 }
 0x293   : > { %v2690_v45 = vrot.slane %v2687_v60, 4  ;;  %v2213_v37 = vpack.i.b16 %v2135_v61, %v2103_v6  ;;  %v2215_v28 = vshrl.u32 %v2135_v61, 16  ;;  %v4726_v24 = vperm.slane %v4722_v49, %v8416_v27 }
 0x294   : > { %v4728_v18 = vsel %vm2241_vm10, %v4727_v48, %v2670_v26  ;;  %v4717_v22 = vsel %vm2241_vm10, %v4716_v3, %v4709_v30  ;;  %v4976_v8 = vshrl.u32 %v4704_v17, 16  ;;  %v8917_v11 = vmul.f32 0.088388346, %v1562_v33  ;;  %v6823_v3 = vld [vmem:[#allocation8 + $0x28] sm:$0xf0] }
 0x295   : > { %v4732_v15 = vperm.slane %v4728_v18, %v8416_v27  ;;  %v4721_v62 = vperm.slane %v4717_v22, %v8424_v19  ;;  %v2691_v32 = vsel %vm2241_vm10, 0, %v2690_v45  ;;  %v2216_v59 = vpack.i.b16 %v2215_v28, %v2214_v20  ;;  %v1613_v40 = vpop.f32.mrf.mxu2  ;;  %v1662_v7 = vpop.f32.mrf.mxu3 }
 0x296   : > { %v4739_v6 = vsel %vm2241_vm10, %v2690_v45, %v2683_v54  ;;  %v4744_v46 = vrot.slane %v2691_v32, 4  ;;  %v2696_v9 = vperm.slane %v2213_v37, %v8416_v27  ;;  %v6846_v30 = vor.u32 %v7213_v57, %v6845_v52  ;;  %v1517_v37 = vpop.f32.mrf.mxu0  ;;  %v7015_v52 = vld [vmem:[#allocation8 + $0x1a8] sm:$0xf0]  ;;  %v1566_v57 = vpop.f32.mrf.mxu1 }
 0x297   : > { %v4733_v63 = vrot.slane %v4732_v15, 4  ;;  %1808 = vmatmul.bf16.gmra.mxu2 %v8536_v56  ;;  %v4974_v14 = vpack.i.b16 %v4721_v62, %v4704_v17  ;;  %v4977_v5 = vshrl.u32 %v4721_v62, 16  ;;  %v2715_v36 = vperm.slane %v2216_v59, %v8416_v27  ;;  %v7204_v17 = vld [vmem:[#allocation8 + $0x14] sm:$0xf] }
 0x298   : > { %v4745_v33 = vsel %vm2241_vm10, %v4744_v46, %v2689_v44  ;;  %v2697_v55 = vrot.slane %v2696_v9, 4  ;;  %v2702_v54 = vperm.slane %v2696_v9, %v8424_v19  ;;  %1869 = vmatpush.bf16.msra.mxu0 %v6846_v30  ;;  %v7038_v48 = vor.u32 %v7261_v39, %v7037_v34  ;;  %v7252_v15 = vld [vmem:[#allocation8 + $0x194] sm:$0xf] }
 0x299   : > { %v4734_v38 = vsel %vm2241_vm10, %v4733_v63, %v4726_v24  ;;  %1857 = vmatmul.bf16.gmra.mxu3 %v8538_v47  ;;  %v4978_v26 = vpack.i.b16 %v4977_v5, %v4976_v8  ;;  %5030 = vst [vmem:[%s8575_s5 + $0x28] sm:$0xf] %v4974_v14  ;;  %v4749_v41 = vperm.slane %v4745_v33, %v8416_v27  ;;  %v2716_v23 = vrot.slane %v2715_v36, 4 }
 0x29a   : > { %1710 = vmatmul.bf16.gmra.mxu0 %v8536_v56  ;;  %v4738_v61 = vperm.slane %v4734_v38, %v8424_v19  ;;  %v2698_v50 = vsel %vm2241_vm10, 0, %v2697_v55  ;;  %v2707_v60 = vrot.slane %v2702_v54, 4  ;;  %v2721_v49 = vperm.slane %v2715_v36, %v8424_v19  ;;  %1918 = vmatpush.bf16.msra.mxu1 %v7038_v48  ;;  %v7255_v48 = vld [vmem:[#allocation8 + $0x1a4] sm:$0xf0] }
 0x29b   : > { %1759 = vmatmul.bf16.gmra.mxu1 %v8538_v47  ;;  %5046 = vst [vmem:[%s8575_s5 + $0x68] sm:$0xf] %v4978_v26  ;;  %v4743_v44 = vperm.slane %v4739_v6, %v8416_v27  ;;  %v4750_v20 = vrot.slane %v4749_v41, 4  ;;  %v2706_v45 = vperm.slane %v2698_v50, %v8424_v19  ;;  %v2717_v18 = vsel %vm2241_vm10, 0, %v2716_v23  ;;  %v6821_v26 = vld [vmem:[#allocation8 + $0x10] sm:$0xf] }
 0x29c   : > { %v4984_v28 = vshrl.u32 %v4738_v61, 16  ;;  %v2725_v22 = vperm.slane %v2717_v18, %v8424_v19  ;;  %v2726_v8 = vrot.slane %v2721_v49, 4  ;;  %v1660_v24 = vadd.f32 %v8897_v25, %v8895_v42  ;;  %v7207_v41 = vld [vmem:[#allocation8 + $0x24] sm:$0xf0] }
 0x29d   : > { %v4751_v62 = vsel %vm2241_vm10, %v4750_v20, %v4743_v44  ;;  %v2709_v32 = vrot.slane %v2706_v45, 4  ;;  %v1565_v59 = vadd.f32 %v8909_v29, %v8905_v16  ;;  %v6826_v63 = vor.u32 %v7204_v17, %v6823_v3  ;;  %v1664_v20 = vpop.f32.mrf.mxu3 }
 0x29e   : > { %v4755_v6 = vperm.slane %v4751_v62, %v8424_v19  ;;  %v2708_v46 = vsel %vm2241_vm10, 0, %v2707_v60  ;;  %v2728_v9 = vrot.slane %v2725_v22, 4  ;;  %v2086_v14 = vmul.f32 0.088388346, %v1660_v24  ;;  %v7013_v60 = vld [vmem:[#allocation8 + $0x190] sm:$0xf] }
 0x29f   : > { %v2710_v5 = vsel %vm2241_vm10, 0, %v2709_v32  ;;  %v2727_v42 = vsel %vm2241_vm10, 0, %v2726_v8  ;;  %v4756_v25 = vsel %vm2241_vm10, %v2709_v32, %v2702_v54  ;;  %1968 = vmatpush.bf16.msra.mxu2 %v6826_v63  ;;  %v7018_v36 = vor.u32 %v7252_v15, %v7015_v52 }
 0x2a0   : > { %v4982_v30 = vpack.i.b16 %v4755_v6, %v4738_v61  ;;  %v4985_v34 = vshrl.u32 %v4755_v6, 16  ;;  %v2729_v16 = vsel %vm2241_vm10, 0, %v2728_v9  ;;  %v2087_v29 = vmul.f32 0.088388346, %v1565_v59 }
 0x2a1   : > { %v4761_v39 = vrot.slane %v2710_v5, 4  ;;  %v4773_v38 = vsel %vm2241_vm10, %v2728_v9, %v2721_v49  ;;  %v4778_v33 = vrot.slane %v2729_v16, 4  ;;  %v2104_v55 = vpack.c.bf16 %v2086_v14, %v8917_v11  ;;  %2017 = vmatpush.bf16.msra.mxu3 %v7018_v36  ;;  %v1615_v11 = vpop.f32.mrf.mxu2 }
 0x2a2   : > { %v4986_v23 = vpack.i.b16 %v4985_v34, %v4984_v28  ;;  %5031 = vst [vmem:[%s8575_s5 + $0x2c] sm:$0xf] %v4982_v30  ;;  %v4760_v54 = vperm.slane %v4756_v25, %v8416_v27  ;;  %v4777_v61 = vperm.slane %v4773_v38, %v8416_v27  ;;  %v1663_v50 = vadd.f32 %v1662_v7, %v1613_v40 }
 0x2a3   : > { %v4762_v17 = vsel %vm2241_vm10, %v4761_v39, %v2708_v46  ;;  %v4779_v49 = vsel %vm2241_vm10, %v4778_v33, %v2727_v42  ;;  %v2136_v3 = vrot.slane %v2104_v55, 4  ;;  %v1567_v44 = vadd.f32 %v1566_v57, %v1517_v37 }
 0x2a4   : > { %5047 = vst [vmem:[%s8575_s5 + $0x6c] sm:$0xf] %v4986_v23  ;;  %v4766_v45 = vperm.slane %v4762_v17, %v8416_v27  ;;  %v4783_v18 = vperm.slane %v4779_v49, %v8416_v27  ;;  %v2220_v28 = vshrl.u32 %v2104_v55, 16  ;;  %v2088_v22 = vmul.f32 0.088388346, %v1663_v50 }
 0x2a5   : > { %v2219_v8 = vpack.i.b16 %v2136_v3, %v2104_v55  ;;  %v2221_v24 = vshrl.u32 %v2136_v3, 16  ;;  %v6822_v40 = vor.u32 %v7207_v41, %v6821_v26  ;;  %v7014_v7 = vor.u32 %v7255_v48, %v7013_v60 }
 0x2a6   : > { %v4767_v52 = vrot.slane %v4766_v45, 4  ;;  %v4784_v62 = vrot.slane %v4783_v18, 4  ;;  %v2105_v32 = vpack.c.bf16 %v2088_v22, %v2087_v29  ;;  %v1665_v59 = vadd.f32 %v1664_v20, %v1615_v11 }
 0x2a7   : > { %v1676_v15 = vpop.f32.mrf.mxu0  ;;  %1969 = vmatmul.bf16.vlgmr.msra.gmra.mxu2 %v8207_v1  ;;  %v2222_v37 = vpack.i.b16 %v2221_v24, %v2220_v28  ;;  %v2734_v57 = vperm.slane %v2219_v8, %v8416_v27  ;;  %v2089_v6 = vmul.f32 0.088388346, %v1567_v44  ;;  %1870 = vmatpush.bf16.msra.mxu0 %v6822_v40 }
 0x2a8   : > { %v1725_v63 = vpop.f32.mrf.mxu1  ;;  %1919 = vmatpush.bf16.msra.mxu1 %v7014_v7  ;;  %v4768_v9 = vsel %vm2241_vm10, %v4767_v52, %v4760_v54  ;;  %v4785_v14 = vsel %vm2241_vm10, %v4784_v62, %v4777_v61  ;;  %v2137_v5 = vrot.slane %v2105_v32, 4  ;;  %v2226_v42 = vshrl.u32 %v2105_v32, 16 }
 0x2a9   : > { %v8962_v46 = vadd.f32 %v1725_v63, %v1676_v15  ;;  %2018 = vmatmul.bf16.vlgmr.msra.gmra.mxu3 %v8209_v35  ;;  %v4772_v25 = vperm.slane %v4768_v9, %v8424_v19  ;;  %v4789_v36 = vperm.slane %v4785_v14, %v8424_v19  ;;  %v2735_v30 = vrot.slane %v2734_v57, 4 }
 0x2aa   : > { %v2740_v34 = vperm.slane %v2734_v57, %v8424_v19  ;;  %v2753_v16 = vperm.slane %v2222_v37, %v8416_v27  ;;  %v2225_v29 = vpack.i.b16 %v2137_v5, %v2105_v32  ;;  %v2227_v39 = vshrl.u32 %v2137_v5, 16  ;;  %1871 = vmatmul.bf16.vlgmr.msra.gmra.mxu0 %v8207_v1  ;;  %v1774_v40 = vpop.f32.mrf.mxu2 }
 0x2ab   : > { %v2090_v38 = vmul.f32 0.088388346, %v1665_v59  ;;  %1920 = vmatmul.bf16.vlgmr.msra.gmra.mxu1 %v8209_v35  ;;  %v4990_v33 = vpack.i.b16 %v4789_v36, %v4772_v25  ;;  %v4992_v55 = vshrl.u32 %v4772_v25, 16  ;;  %v4993_v26 = vshrl.u32 %v4789_v36, 16 }
 0x2ac   : > { %v2736_v41 = vsel %vm2241_vm10, 0, %v2735_v30  ;;  %v2745_v54 = vrot.slane %v2740_v34, 4  ;;  %v2754_v61 = vrot.slane %v2753_v16, 4  ;;  %v2759_v50 = vperm.slane %v2753_v16, %v8424_v19  ;;  %v1823_v7 = vpop.f32.mrf.mxu3 }
 0x2ad   : > { %v2744_v23 = vperm.slane %v2736_v41, %v8424_v19  ;;  %v4994_v60 = vpack.i.b16 %v4993_v26, %v4992_v55  ;;  %5032 = vst [vmem:[%s8575_s5 + $0x30] sm:$0xf] %v4990_v33  ;;  %v2228_v48 = vpack.i.b16 %v2227_v39, %v2226_v42  ;;  %v2772_v17 = vperm.slane %v2225_v29, %v8416_v27 }
 0x2ae   : > { %v2106_v1 = vpack.c.bf16 %v2090_v38, %v2089_v6  ;;  %v2746_v35 = vsel %vm2241_vm10, 0, %v2745_v54  ;;  %v2755_v3 = vsel %vm2241_vm10, 0, %v2754_v61  ;;  %v2764_v44 = vrot.slane %v2759_v50, 4 }
 0x2af   : > { %v2747_v49 = vrot.slane %v2744_v23, 4  ;;  %5048 = vst [vmem:[%s8575_s5 + $0x70] sm:$0xf] %v4994_v60  ;;  %v2763_v11 = vperm.slane %v2755_v3, %v8424_v19  ;;  %v2773_v20 = vrot.slane %v2772_v17, 4  ;;  %v2778_v45 = vperm.slane %v2772_v17, %v8424_v19  ;;  %v1678_v42 = vpop.f32.mrf.mxu0 }
 0x2b0   : > { %v2791_v18 = vperm.slane %v2228_v48, %v8416_v27  ;;  %v2765_v22 = vsel %vm2241_vm10, 0, %v2764_v44  ;;  %v2138_v24 = vrot.slane %v2106_v1, 4  ;;  %v1727_v25 = vpop.f32.mrf.mxu1  ;;  %v2232_v33 = vshrl.u32 %v2106_v1, 16 }
 0x2b1   : > { %v2748_v28 = vsel %vm2241_vm10, 0, %v2747_v49  ;;  %v4790_v8 = vsel %vm2241_vm10, %v2747_v49, %v2740_v34  ;;  %v2766_v15 = vrot.slane %v2763_v11, 4  ;;  %v2774_v32 = vsel %vm2241_vm10, 0, %v2773_v20 }
 0x2b2   : > { %v4794_v52 = vperm.slane %v4790_v8, %v8416_v27  ;;  %v4795_v62 = vrot.slane %v2748_v28, 4  ;;  %v2782_v59 = vperm.slane %v2774_v32, %v8424_v19  ;;  %v2783_v63 = vrot.slane %v2778_v45, 4 }
 0x2b3   : > { %v2792_v37 = vrot.slane %v2791_v18, 4  ;;  %v2797_v57 = vperm.slane %v2791_v18, %v8424_v19  ;;  %v2767_v6 = vsel %vm2241_vm10, 0, %v2766_v15  ;;  %v4807_v14 = vsel %vm2241_vm10, %v2766_v15, %v2759_v50 }
 0x2b4   : > { %v4796_v9 = vsel %vm2241_vm10, %v4795_v62, %v2746_v35  ;;  %v2231_v5 = vpack.i.b16 %v2138_v24, %v2106_v1  ;;  %v4811_v30 = vperm.slane %v4807_v14, %v8416_v27  ;;  %v4812_v34 = vrot.slane %v2767_v6, 4  ;;  %v1825_v8 = vpop.f32.mrf.mxu3 }
 0x2b5   : > { %v4800_v36 = vperm.slane %v4796_v9, %v8416_v27  ;;  %v2784_v16 = vsel %vm2241_vm10, 0, %v2783_v63  ;;  %v2785_v29 = vrot.slane %v2782_v59, 4  ;;  %v2793_v39 = vsel %vm2241_vm10, 0, %v2792_v37 }
 0x2b6   : > { %v2802_v38 = vrot.slane %v2797_v57, 4  ;;  %v4813_v26 = vsel %vm2241_vm10, %v4812_v34, %v2765_v22  ;;  %v2801_v41 = vperm.slane %v2793_v39, %v8424_v19  ;;  %v2233_v23 = vshrl.u32 %v2138_v24, 16  ;;  %v1776_v22 = vpop.f32.mrf.mxu2 }
 0x2b7   : > { %v4801_v55 = vrot.slane %v4800_v36, 4  ;;  %1974 = vmatmul.bf16.gmra.mxu2 %v8305_v13  ;;  %v4817_v54 = vperm.slane %v4813_v26, %v8416_v27  ;;  %v2786_v61 = vsel %vm2241_vm10, 0, %v2785_v29  ;;  %v4824_v60 = vsel %vm2241_vm10, %v2785_v29, %v2778_v45 }
 0x2b8   : > { %v2803_v50 = vsel %vm2241_vm10, 0, %v2802_v38  ;;  %v2804_v17 = vrot.slane %v2801_v41, 4  ;;  %v4828_v1 = vperm.slane %v4824_v60, %v8416_v27  ;;  %v4829_v35 = vrot.slane %v2786_v61, 4  ;;  %v1730_v6 = vpop.f32.mrf.mxu1 }
 0x2b9   : > { %v4802_v48 = vsel %vm2241_vm10, %v4801_v55, %v4794_v52  ;;  %2023 = vmatmul.bf16.gmra.mxu3 %v8307_v58  ;;  %v4818_v3 = vrot.slane %v4817_v54, 4  ;;  %v2234_v44 = vpack.i.b16 %v2233_v23, %v2232_v33  ;;  %v2810_v11 = vperm.slane %v2231_v5, %v8416_v27 }
 0x2ba   : > { %v4806_v49 = vperm.slane %v4802_v48, %v8424_v19  ;;  %v2805_v20 = vsel %vm2241_vm10, 0, %v2804_v17  ;;  %v4830_v18 = vsel %vm2241_vm10, %v4829_v35, %v2784_v16  ;;  %v4841_v45 = vsel %vm2241_vm10, %v2804_v17, %v2797_v57  ;;  %1876 = vmatmul.bf16.gmra.mxu0 %v8305_v13  ;;  %v1681_v57 = vpop.f32.mrf.mxu0 }
 0x2bb   : > { %v1824_v28 = vadd.f32 %v1823_v7, %v1774_v40  ;;  %1925 = vmatmul.bf16.gmra.mxu1 %v8307_v58  ;;  %v4819_v24 = vsel %vm2241_vm10, %v4818_v3, %v4811_v30  ;;  %v4834_v52 = vperm.slane %v4830_v18, %v8416_v27  ;;  %v4845_v62 = vperm.slane %v4841_v45, %v8416_v27 }
 0x2bc   : > { %v5000_v15 = vshrl.u32 %v4806_v49, 16  ;;  %v4823_v32 = vperm.slane %v4819_v24, %v8424_v19  ;;  %v4846_v59 = vrot.slane %v2805_v20, 4  ;;  %v2811_v63 = vrot.slane %v2810_v11, 4 }
 0x2bd   : > { %v2816_v37 = vperm.slane %v2810_v11, %v8424_v19  ;;  %v4835_v40 = vrot.slane %v4834_v52, 4  ;;  %v2829_v7 = vperm.slane %v2234_v44, %v8416_v27  ;;  %v2844_v13 = vpack.c.bf16 %v1824_v28, %v8962_v46  ;;  %v1828_v11 = vpop.f32.mrf.mxu3 }
 0x2be   : > { %v1728_v58 = vadd.f32 %v1727_v25, %v1678_v42  ;;  %v4998_v9 = vpack.i.b16 %v4823_v32, %v4806_v49  ;;  %v5001_v14 = vshrl.u32 %v4823_v32, 16  ;;  %v4847_v5 = vsel %vm2241_vm10, %v4846_v59, %v2803_v50  ;;  %v1779_v44 = vpop.f32.mrf.mxu2 }
 0x2bf   : > { %v2812_v36 = vsel %vm2241_vm10, 0, %v2811_v63  ;;  %v4836_v30 = vsel %vm2241_vm10, %v4835_v40, %v4828_v1  ;;  %v4851_v34 = vperm.slane %v4847_v5, %v8416_v27  ;;  %v2821_v29 = vrot.slane %v2816_v37, 4 }
 0x2c0   : > { %v2820_v16 = vperm.slane %v2812_v36, %v8424_v19  ;;  %v5002_v39 = vpack.i.b16 %v5001_v14, %v5000_v15  ;;  %5033 = vst [vmem:[%s8575_s5 + $0x34] sm:$0xf] %v4998_v9  ;;  %v4840_v46 = vperm.slane %v4836_v30, %v8424_v19  ;;  %v2830_v42 = vrot.slane %v2829_v7, 4 }
 0x2c1   : > { %v2835_v25 = vperm.slane %v2829_v7, %v8424_v19  ;;  %v4852_v38 = vrot.slane %v4851_v34, 4  ;;  %v2822_v33 = vsel %vm2241_vm10, 0, %v2821_v29  ;;  %v2876_v26 = vrot.slane %v2844_v13, 4  ;;  %v1732_v7 = vpop.f32.mrf.mxu1 }
 0x2c2   : > { %v2823_v55 = vrot.slane %v2820_v16, 4  ;;  %5049 = vst [vmem:[%s8575_s5 + $0x74] sm:$0xf] %v5002_v39  ;;  %v5008_v41 = vshrl.u32 %v4840_v46, 16  ;;  %v2831_v23 = vsel %vm2241_vm10, 0, %v2830_v42  ;;  %v2895_v61 = vshrl.u32 %v2844_v13, 16  ;;  %v1683_v40 = vpop.f32.mrf.mxu0 }
 0x2c3   : > { %v2840_v54 = vrot.slane %v2835_v25, 4  ;;  %v4853_v50 = vsel %vm2241_vm10, %v4852_v38, %v4845_v62  ;;  %v2839_v48 = vperm.slane %v2831_v23, %v8424_v19  ;;  %v2894_v18 = vpack.i.b16 %v2876_v26, %v2844_v13 }
 0x2c4   : > { %v2824_v60 = vsel %vm2241_vm10, 0, %v2823_v55  ;;  %v4858_v17 = vsel %vm2241_vm10, %v2823_v55, %v2816_v37  ;;  %v4857_v1 = vperm.slane %v4853_v50, %v8424_v19  ;;  %v2896_v45 = vshrl.u32 %v2876_v26, 16 }
 0x2c5   : > { %v2841_v35 = vsel %vm2241_vm10, 0, %v2840_v54  ;;  %v4862_v49 = vperm.slane %v4858_v17, %v8416_v27  ;;  %v4863_v3 = vrot.slane %v2824_v60, 4  ;;  %v2842_v20 = vrot.slane %v2839_v48, 4 }
 0x2c6   : > { %v1826_v28 = vadd.f32 %v1825_v8, %v1776_v22  ;;  %v5006_v24 = vpack.i.b16 %v4857_v1, %v4840_v46  ;;  %v5009_v15 = vshrl.u32 %v4857_v1, 16  ;;  %v1731_v62 = vadd.f32 %v1730_v6, %v1681_v57  ;;  %v1781_v60 = vpop.f32.mrf.mxu2 }
 0x2c7   : > { %v4864_v52 = vsel %vm2241_vm10, %v4863_v3, %v2822_v33  ;;  %1979 = vmatmul.bf16.gmra.mxu2 %v8343_v43  ;;  %v2843_v32 = vsel %vm2241_vm10, 0, %v2842_v20  ;;  %v4875_v63 = vsel %vm2241_vm10, %v2842_v20, %v2835_v25  ;;  %v2897_v37 = vpack.i.b16 %v2896_v45, %v2895_v61 }
 0x2c8   : > { %v4868_v59 = vperm.slane %v4864_v52, %v8416_v27  ;;  %v5010_v13 = vpack.i.b16 %v5009_v15, %v5008_v41  ;;  %5034 = vst [vmem:[%s8575_s5 + $0x38] sm:$0xf] %v5006_v24  ;;  %v4879_v22 = vperm.slane %v4875_v63, %v8416_v27  ;;  %v4880_v8 = vrot.slane %v2843_v32, 4 }
 0x2c9   : > { %v2992_v9 = vperm.slane %v2894_v18, %v8416_v27  ;;  %2028 = vmatmul.bf16.gmra.mxu3 %v8347_v12  ;;  %v3011_v6 = vperm.slane %v2897_v37, %v8416_v27  ;;  %v2845_v14 = vpack.c.bf16 %v1826_v28, %v1728_v58  ;;  %v1829_v5 = vadd.f32 %v1828_v11, %v1779_v44 }
 0x2ca   : > { %v4869_v57 = vrot.slane %v4868_v59, 4  ;;  %5050 = vst [vmem:[%s8575_s5 + $0x78] sm:$0xf] %v5010_v13  ;;  %v4881_v36 = vsel %vm2241_vm10, %v4880_v8, %v2841_v35  ;;  %v9053_v16 = vadd.f32 %v1732_v7, %v1683_v40  ;;  %1881 = vmatmul.bf16.gmra.mxu0 %v8343_v43 }
 0x2cb   : > { %v2993_v30 = vrot.slane %v2992_v9, 4  ;;  %v2998_v34 = vperm.slane %v2992_v9, %v8424_v19  ;;  %v4885_v39 = vperm.slane %v4881_v36, %v8416_v27  ;;  %v3012_v46 = vrot.slane %v3011_v6, 4  ;;  %1930 = vmatmul.bf16.gmra.mxu1 %v8347_v12  ;;  %v1830_v12 = vpop.f32.mrf.mxu3 }
 0x2cc   : > { %v4870_v29 = vsel %vm2241_vm10, %v4869_v57, %v4862_v49  ;;  %v3017_v42 = vperm.slane %v3011_v6, %v8424_v19  ;;  %v2877_v33 = vrot.slane %v2845_v14, 4  ;;  %v2901_v35 = vshrl.u32 %v2845_v14, 16 }
 0x2cd   : > { %v4874_v58 = vperm.slane %v4870_v29, %v8424_v19  ;;  %v2994_v25 = vsel %vm2241_vm10, 0, %v2993_v30  ;;  %v3003_v38 = vrot.slane %v2998_v34, 4  ;;  %v4886_v55 = vrot.slane %v4885_v39, 4 }
 0x2ce   : > { %v3002_v26 = vperm.slane %v2994_v25, %v8424_v19  ;;  %v3013_v43 = vsel %vm2241_vm10, 0, %v3012_v46  ;;  %v3022_v41 = vrot.slane %v3017_v42, 4  ;;  %v2900_v50 = vpack.i.b16 %v2877_v33, %v2845_v14 }
 0x2cf   : > { %v5016_v23 = vshrl.u32 %v4874_v58, 16  ;;  %v3004_v54 = vsel %vm2241_vm10, 0, %v3003_v38  ;;  %v3021_v61 = vperm.slane %v3013_v43, %v8424_v19  ;;  %v4887_v48 = vsel %vm2241_vm10, %v4886_v55, %v4879_v22 }
 0x2d0   : > { %v3005_v17 = vrot.slane %v3002_v26, 4  ;;  %v3023_v1 = vsel %vm2241_vm10, 0, %v3022_v41  ;;  %v4891_v49 = vperm.slane %v4887_v48, %v8424_v19  ;;  %v2902_v44 = vshrl.u32 %v2877_v33, 16 }
 0x2d1   : > { %v3024_v3 = vrot.slane %v3021_v61, 4  ;;  %v3030_v11 = vperm.slane %v2900_v50, %v8416_v27  ;;  %v2846_v45 = vpack.c.bf16 %v1829_v5, %v1731_v62  ;;  %v9072_v28 = vadd.f32 %v1830_v12, %v1781_v60 }
 0x2d2   : > { %v3006_v20 = vsel %vm2241_vm10, 0, %v3005_v17  ;;  %v5052_v18 = vsel %vm2241_vm10, %v3005_v17, %v2998_v34  ;;  %v5014_v24 = vpack.i.b16 %v4891_v49, %v4874_v58  ;;  %v5017_v15 = vshrl.u32 %v4891_v49, 16  ;;  %v1686_v17 = vpop.f32.mrf.mxu0 }
 0x2d3   : > { %v3025_v52 = vsel %vm2241_vm10, 0, %v3024_v3  ;;  %v5056_v32 = vperm.slane %v5052_v18, %v8416_v27  ;;  %v5057_v59 = vrot.slane %v3006_v20, 4  ;;  %v5069_v63 = vsel %vm2241_vm10, %v3024_v3, %v3017_v42 }
 0x2d4   : > { %v5074_v37 = vrot.slane %v3025_v52, 4  ;;  %v2903_v40 = vpack.i.b16 %v2902_v44, %v2901_v35  ;;  %v5018_v7 = vpack.i.b16 %v5017_v15, %v5016_v23  ;;  %5035 = vst [vmem:[%s8575_s5 + $0x3c] sm:$0xf] %v5014_v24  ;;  %v5073_v13 = vperm.slane %v5069_v63, %v8416_v27 }
 0x2d5   : > { %v3031_v22 = vrot.slane %v3030_v11, 4  ;;  %v3036_v62 = vperm.slane %v3030_v11, %v8424_v19  ;;  %v5058_v8 = vsel %vm2241_vm10, %v5057_v59, %v3004_v54  ;;  %v2878_v6 = vrot.slane %v2846_v45, 4 }
 0x2d6   : > { %v5075_v9 = vsel %vm2241_vm10, %v5074_v37, %v3023_v1  ;;  %v3049_v57 = vperm.slane %v2903_v40, %v8416_v27  ;;  %5051 = vst [vmem:[%s8575_s5 + $0x7c] sm:$0xf] %v5018_v7  ;;  %v5062_v14 = vperm.slane %v5058_v8, %v8416_v27  ;;  %v2907_v38 = vshrl.u32 %v2846_v45, 16  ;;  %v1735_v1 = vpop.f32.mrf.mxu1 }
 0x2d7   : > { %v5079_v5 = vperm.slane %v5075_v9, %v8416_v27  ;;  %v3032_v36 = vsel %vm2241_vm10, 0, %v3031_v22  ;;  %v3041_v30 = vrot.slane %v3036_v62, 4  ;;  %1984 = vmatmul.bf16.gmra.mxu2 %v8367_v0  ;;  %v2906_v46 = vpack.i.b16 %v2878_v6, %v2846_v45 }
 0x2d8   : > { %v3040_v34 = vperm.slane %v3032_v36, %v8424_v19  ;;  %v3050_v29 = vrot.slane %v3049_v57, 4  ;;  %v3055_v39 = vperm.slane %v3049_v57, %v8424_v19  ;;  %v5063_v42 = vrot.slane %v5062_v14, 4 }
 0x2d9   : > { %v5080_v58 = vrot.slane %v5079_v5, 4  ;;  %v3042_v25 = vsel %vm2241_vm10, 0, %v3041_v30  ;;  %2033 = vmatmul.bf16.gmra.mxu3 %v8369_v31  ;;  %v2908_v43 = vshrl.u32 %v2878_v6, 16  ;;  %v3068_v61 = vperm.slane %v2906_v46, %v8416_v27 }
 0x2da   : > { %v3043_v33 = vrot.slane %v3040_v34, 4  ;;  %v3051_v55 = vsel %vm2241_vm10, 0, %v3050_v29  ;;  %v3060_v26 = vrot.slane %v3055_v39, 4  ;;  %v5064_v41 = vsel %vm2241_vm10, %v5063_v42, %v5056_v32  ;;  %1886 = vmatmul.bf16.gmra.mxu0 %v8367_v0  ;;  %v1784_v42 = vpop.f32.mrf.mxu2 }
 0x2db   : > { %v5081_v23 = vsel %vm2241_vm10, %v5080_v58, %v5073_v13  ;;  %v3059_v54 = vperm.slane %v3051_v55, %v8424_v19  ;;  %v5068_v50 = vperm.slane %v5064_v41, %v8424_v19  ;;  %1935 = vmatmul.bf16.gmra.mxu1 %v8369_v31  ;;  %v2909_v44 = vpack.i.b16 %v2908_v43, %v2907_v38  ;;  %v1833_v58 = vpop.f32.mrf.mxu3 }
 0x2dc   : > { %v5085_v60 = vperm.slane %v5081_v23, %v8424_v19  ;;  %v3044_v12 = vsel %vm2241_vm10, 0, %v3043_v33  ;;  %v3061_v48 = vsel %vm2241_vm10, 0, %v3060_v26  ;;  %v5086_v49 = vsel %vm2241_vm10, %v3043_v33, %v3036_v62  ;;  %v1688_v26 = vpop.f32.mrf.mxu0 }
 0x2dd   : > { %v3062_v35 = vrot.slane %v3059_v54, 4  ;;  %v5091_v3 = vrot.slane %v3044_v12, 4  ;;  %v5600_v0 = vshrl.u32 %v5068_v50, 16  ;;  %v5090_v18 = vperm.slane %v5086_v49, %v8416_v27 }
 0x2de   : > { %v5598_v11 = vpack.i.b16 %v5085_v60, %v5068_v50  ;;  %v5601_v20 = vshrl.u32 %v5085_v60, 16  ;;  %v3069_v52 = vrot.slane %v3068_v61, 4  ;;  %v3074_v40 = vperm.slane %v3068_v61, %v8424_v19  ;;  %v1737_v43 = vpop.f32.mrf.mxu1 }
 0x2df   : > { %v3063_v45 = vsel %vm2241_vm10, 0, %v3062_v35  ;;  %v5092_v24 = vsel %vm2241_vm10, %v5091_v3, %v3042_v25  ;;  %v5103_v15 = vsel %vm2241_vm10, %v3062_v35, %v3055_v39  ;;  %v3087_v7 = vperm.slane %v2909_v44, %v8416_v27 }
 0x2e0   : > { %v5602_v32 = vpack.i.b16 %v5601_v20, %v5600_v0  ;;  %5724 = vst [vmem:[%s9109_s6] sm:$0xf] %v5598_v11  ;;  %v5096_v31 = vperm.slane %v5092_v24, %v8416_v27  ;;  %v5107_v59 = vperm.slane %v5103_v15, %v8416_v27  ;;  %v5108_v63 = vrot.slane %v3063_v45, 4 }
 0x2e1   : > { %v3070_v37 = vsel %vm2241_vm10, 0, %v3069_v52  ;;  %v2847_v13 = vpack.c.bf16 %v9072_v28, %v9053_v16  ;;  %v1736_v9 = vadd.f32 %v1735_v1, %v1686_v17  ;;  %v3079_v6 = vrot.slane %v3074_v40, 4 }
 0x2e2   : > { %5740 = vst [vmem:[%s9109_s6 + $0x40] sm:$0xf] %v5602_v32  ;;  %v5097_v22 = vrot.slane %v5096_v31, 4  ;;  %v5109_v62 = vsel %vm2241_vm10, %v5108_v63, %v3061_v48  ;;  %v3078_v8 = vperm.slane %v3070_v37, %v8424_v19  ;;  %v3088_v14 = vrot.slane %v3087_v7, 4 }
 0x2e3   : > { %v5113_v57 = vperm.slane %v5109_v62, %v8416_v27  ;;  %v3093_v5 = vperm.slane %v3087_v7, %v8424_v19  ;;  %v2879_v34 = vrot.slane %v2847_v13, 4  ;;  %v2913_v29 = vshrl.u32 %v2847_v13, 16 }
 0x2e4   : > { %v5098_v36 = vsel %vm2241_vm10, %v5097_v22, %v5090_v18  ;;  %v3081_v30 = vrot.slane %v3078_v8, 4  ;;  %v3080_v39 = vsel %vm2241_vm10, 0, %v3079_v6  ;;  %v3089_v46 = vsel %vm2241_vm10, 0, %v3088_v14  ;;  %v1835_v6 = vpop.f32.mrf.mxu3 }
 0x2e5   : > { %v5102_v16 = vperm.slane %v5098_v36, %v8424_v19  ;;  %v5114_v28 = vrot.slane %v5113_v57, 4  ;;  %v3097_v38 = vperm.slane %v3089_v46, %v8424_v19  ;;  %v3098_v33 = vrot.slane %v3093_v5, 4  ;;  %v1786_v57 = vpop.f32.mrf.mxu2 }
 0x2e6   : > { %v3082_v25 = vsel %vm2241_vm10, 0, %v3081_v30  ;;  %v5120_v55 = vsel %vm2241_vm10, %v3081_v30, %v3074_v40  ;;  %v2912_v48 = vpack.i.b16 %v2879_v34, %v2847_v13  ;;  %v2914_v1 = vshrl.u32 %v2879_v34, 16 }
 0x2e7   : > { %v5115_v41 = vsel %vm2241_vm10, %v5114_v28, %v5107_v59  ;;  %v5608_v23 = vshrl.u32 %v5102_v16, 16  ;;  %v5124_v54 = vperm.slane %v5120_v55, %v8416_v27  ;;  %v5125_v61 = vrot.slane %v3082_v25, 4  ;;  %1989 = vmatmul.bf16.gmra.mxu2 %v8390_v10 }
 0x2e8   : > { %v5119_v50 = vperm.slane %v5115_v41, %v8424_v19  ;;  %v3099_v60 = vsel %vm2241_vm10, 0, %v3098_v33  ;;  %v3100_v12 = vrot.slane %v3097_v38, 4  ;;  %v1834_v35 = vadd.f32 %v1833_v58, %v1784_v42 }
 0x2e9   : > { %v5126_v17 = vsel %vm2241_vm10, %v5125_v61, %v3080_v39  ;;  %v9137_v49 = vadd.f32 %v1737_v43, %v1688_v26  ;;  %2038 = vmatmul.bf16.gmra.mxu3 %v8392_v53  ;;  %v2915_v45 = vpack.i.b16 %v2914_v1, %v2913_v29  ;;  %v3106_v24 = vperm.slane %v2912_v48, %v8416_v27 }
 0x2ea   : > { %v5606_v3 = vpack.i.b16 %v5119_v50, %v5102_v16  ;;  %v5609_v44 = vshrl.u32 %v5119_v50, 16  ;;  %v3101_v11 = vsel %vm2241_vm10, 0, %v3100_v12  ;;  %v5130_v0 = vperm.slane %v5126_v17, %v8416_v27  ;;  %1891 = vmatmul.bf16.gmra.mxu0 %v8390_v10 }
 0x2eb   : > { %v5137_v20 = vsel %vm2241_vm10, %v3100_v12, %v3093_v5  ;;  %v5142_v18 = vrot.slane %v3101_v11, 4  ;;  %v2848_v31 = vpack.c.bf16 %v1834_v35, %v1736_v9  ;;  %1940 = vmatmul.bf16.gmra.mxu1 %v8392_v53  ;;  %v3107_v63 = vrot.slane %v3106_v24, 4  ;;  %v1691_v35 = vpop.f32.mrf.mxu0 }
 0x2ec   : > { %v5610_v15 = vpack.i.b16 %v5609_v44, %v5608_v23  ;;  %5725 = vst [vmem:[%s9109_s6 + $0x4] sm:$0xf] %v5606_v3  ;;  %v5131_v52 = vrot.slane %v5130_v0, 4  ;;  %v5141_v32 = vperm.slane %v5137_v20, %v8416_v27  ;;  %v3112_v37 = vperm.slane %v3106_v24, %v8424_v19  ;;  %v1740_v3 = vpop.f32.mrf.mxu1 }
 0x2ed   : > { %v5143_v59 = vsel %vm2241_vm10, %v5142_v18, %v3099_v60  ;;  %v3125_v40 = vperm.slane %v2915_v45, %v8416_v27  ;;  %v2880_v13 = vrot.slane %v2848_v31, 4  ;;  %v2919_v22 = vshrl.u32 %v2848_v31, 16 }
 0x2ee   : > { %5741 = vst [vmem:[%s9109_s6 + $0x44] sm:$0xf] %v5610_v15  ;;  %v5132_v7 = vsel %vm2241_vm10, %v5131_v52, %v5124_v54  ;;  %v5147_v10 = vperm.slane %v5143_v59, %v8416_v27  ;;  %v3108_v8 = vsel %vm2241_vm10, 0, %v3107_v63  ;;  %v3117_v9 = vrot.slane %v3112_v37, 4  ;;  %v1789_v63 = vpop.f32.mrf.mxu2 }
 0x2ef   : > { %v5136_v62 = vperm.slane %v5132_v7, %v8424_v19  ;;  %v3126_v53 = vrot.slane %v3125_v40, 4  ;;  %v3116_v5 = vperm.slane %v3108_v8, %v8424_v19  ;;  %v3131_v36 = vperm.slane %v3125_v40, %v8424_v19 }
 0x2f0   : > { %v5148_v14 = vrot.slane %v5147_v10, 4  ;;  %v2918_v30 = vpack.i.b16 %v2880_v13, %v2848_v31  ;;  %v3118_v29 = vsel %vm2241_vm10, 0, %v3117_v9  ;;  %v2920_v28 = vshrl.u32 %v2880_v13, 16 }
 0x2f1   : > { %v5616_v34 = vshrl.u32 %v5136_v62, 16  ;;  %v3127_v16 = vsel %vm2241_vm10, 0, %v3126_v53  ;;  %v3119_v46 = vrot.slane %v3116_v5, 4  ;;  %v3136_v58 = vrot.slane %v3131_v36, 4 }
 0x2f2   : > { %v5149_v39 = vsel %vm2241_vm10, %v5148_v14, %v5141_v32  ;;  %v3135_v42 = vperm.slane %v3127_v16, %v8424_v19  ;;  %v2921_v38 = vpack.i.b16 %v2920_v28, %v2919_v22  ;;  %v3144_v33 = vperm.slane %v2918_v30, %v8416_v27 }
 0x2f3   : > { %v5153_v25 = vperm.slane %v5149_v39, %v8424_v19  ;;  %v1836_v55 = vadd.f32 %v1835_v6, %v1786_v57  ;;  %v3120_v26 = vsel %vm2241_vm10, 0, %v3119_v46  ;;  %v3137_v43 = vsel %vm2241_vm10, 0, %v3136_v58 }
 0x2f4   : > { %v3138_v41 = vrot.slane %v3135_v42, 4  ;;  %v5154_v23 = vsel %vm2241_vm10, %v3119_v46, %v3112_v37  ;;  %v5159_v60 = vrot.slane %v3120_v26, 4  ;;  %v3145_v17 = vrot.slane %v3144_v33, 4  ;;  %v1838_v37 = vpop.f32.mrf.mxu3 }
 0x2f5   : > { %v5614_v54 = vpack.i.b16 %v5153_v25, %v5136_v62  ;;  %v5617_v61 = vshrl.u32 %v5153_v25, 16  ;;  %v5158_v50 = vperm.slane %v5154_v23, %v8416_v27  ;;  %v3150_v1 = vperm.slane %v3144_v33, %v8424_v19  ;;  %v1742_v23 = vpop.f32.mrf.mxu1 }
 0x2f6   : > { %v3139_v12 = vsel %vm2241_vm10, 0, %v3138_v41  ;;  %v5171_v48 = vsel %vm2241_vm10, %v3138_v41, %v3131_v36  ;;  %v5160_v11 = vsel %vm2241_vm10, %v5159_v60, %v3118_v29  ;;  %v3146_v45 = vsel %vm2241_vm10, 0, %v3145_v17  ;;  %v1693_v41 = vpop.f32.mrf.mxu0 }
 0x2f7   : > { %v5618_v44 = vpack.i.b16 %v5617_v61, %v5616_v34  ;;  %5726 = vst [vmem:[%s9109_s6 + $0x8] sm:$0xf] %v5614_v54  ;;  %v5175_v0 = vperm.slane %v5171_v48, %v8416_v27  ;;  %v5176_v20 = vrot.slane %v3139_v12, 4  ;;  %1994 = vmatmul.bf16.gmra.mxu2 %v8484_v21  ;;  %v5164_v18 = vperm.slane %v5160_v11, %v8416_v27 }
 0x2f8   : > { %v3155_v24 = vrot.slane %v3150_v1, 4  ;;  %v3163_v15 = vperm.slane %v2921_v38, %v8416_v27  ;;  %v3154_v32 = vperm.slane %v3146_v45, %v8424_v19  ;;  %v2849_v31 = vpack.c.bf16 %v1836_v55, %v9137_v49 }
 0x2f9   : > { %5742 = vst [vmem:[%s9109_s6 + $0x48] sm:$0xf] %v5618_v44  ;;  %v5177_v52 = vsel %vm2241_vm10, %v5176_v20, %v3137_v43  ;;  %v1741_v59 = vadd.f32 %v1740_v3, %v1691_v35  ;;  %v5165_v40 = vrot.slane %v5164_v18, 4  ;;  %2043 = vmatmul.bf16.gmra.mxu3 %v8486_v4  ;;  %v1839_v6 = vadd.f32 %v1838_v37, %v1789_v63  ;;  %v1791_v35 = vpop.f32.mrf.mxu2 }
 0x2fa   : > { %v5181_v7 = vperm.slane %v5177_v52, %v8416_v27  ;;  %v3156_v10 = vsel %vm2241_vm10, 0, %v3155_v24  ;;  %v3164_v13 = vrot.slane %v3163_v15, 4  ;;  %v3157_v22 = vrot.slane %v3154_v32, 4  ;;  %1896 = vmatmul.bf16.gmra.mxu0 %v8484_v21 }
 0x2fb   : > { %v3169_v62 = vperm.slane %v3163_v15, %v8424_v19  ;;  %v2881_v8 = vrot.slane %v2849_v31, 4  ;;  %v2925_v9 = vshrl.u32 %v2849_v31, 16  ;;  %v5166_v49 = vsel %vm2241_vm10, %v5165_v40, %v5158_v50  ;;  %1945 = vmatmul.bf16.gmra.mxu1 %v8486_v4 }
 0x2fc   : > { %v5182_v53 = vrot.slane %v5181_v7, 4  ;;  %v3165_v57 = vsel %vm2241_vm10, 0, %v3164_v13  ;;  %v5170_v14 = vperm.slane %v5166_v49, %v8424_v19  ;;  %v3158_v5 = vsel %vm2241_vm10, 0, %v3157_v22  ;;  %v1840_v3 = vpop.f32.mrf.mxu3 }
 0x2fd   : > { %v3173_v36 = vperm.slane %v3165_v57, %v8424_v19  ;;  %v3174_v30 = vrot.slane %v3169_v62, 4  ;;  %v5188_v29 = vsel %vm2241_vm10, %v3157_v22, %v3150_v1  ;;  %v5193_v21 = vrot.slane %v3158_v5, 4 }
 0x2fe   : > { %v5183_v34 = vsel %vm2241_vm10, %v5182_v53, %v5175_v0  ;;  %v2924_v16 = vpack.i.b16 %v2881_v8, %v2849_v31  ;;  %v5624_v39 = vshrl.u32 %v5170_v14, 16  ;;  %v5192_v4 = vperm.slane %v5188_v29, %v8416_v27 }
 0x2ff   : > { %v5187_v28 = vperm.slane %v5183_v34, %v8424_v19  ;;  %v3175_v46 = vsel %vm2241_vm10, 0, %v3174_v30  ;;  %v3176_v42 = vrot.slane %v3173_v36, 4  ;;  %v5194_v58 = vsel %vm2241_vm10, %v5193_v21, %v3156_v10  ;;  %v1696_v21 = vpop.f32.mrf.mxu0 }
 0x300   : > { %v2926_v25 = vshrl.u32 %v2881_v8, 16  ;;  %v3182_v38 = vperm.slane %v2924_v16, %v8416_v27  ;;  %v5198_v43 = vperm.slane %v5194_v58, %v8416_v27  ;;  %v2850_v20 = vpack.c.bf16 %v1839_v6, %v1741_v59  ;;  %v1745_v16 = vpop.f32.mrf.mxu1 }
 0x301   : > { %v5622_v33 = vpack.i.b16 %v5187_v28, %v5170_v14  ;;  %v5625_v55 = vshrl.u32 %v5187_v28, 16  ;;  %v3177_v26 = vsel %vm2241_vm10, 0, %v3176_v42  ;;  %v5205_v54 = vsel %vm2241_vm10, %v3176_v42, %v3169_v62 }
 0x302   : > { %v5210_v61 = vrot.slane %v3177_v26, 4  ;;  %v2927_v50 = vpack.i.b16 %v2926_v25, %v2925_v9  ;;  %v3183_v60 = vrot.slane %v3182_v38, 4  ;;  %v5199_v48 = vrot.slane %v5198_v43, 4 }
 0x303   : > { %v5626_v12 = vpack.i.b16 %v5625_v55, %v5624_v39  ;;  %5727 = vst [vmem:[%s9109_s6 + $0xc] sm:$0xf] %v5622_v33  ;;  %v5209_v17 = vperm.slane %v5205_v54, %v8416_v27  ;;  %v3188_v1 = vperm.slane %v3182_v38, %v8424_v19  ;;  %v2882_v63 = vrot.slane %v2850_v20, 4  ;;  %v1794_v33 = vpop.f32.mrf.mxu2 }
 0x304   : > { %v5211_v44 = vsel %vm2241_vm10, %v5210_v61, %v3175_v46  ;;  %v3184_v11 = vsel %vm2241_vm10, 0, %v3183_v60  ;;  %v3201_v0 = vperm.slane %v2927_v50, %v8416_v27  ;;  %v5200_v18 = vsel %vm2241_vm10, %v5199_v48, %v5192_v4  ;;  %v1843_v55 = vpop.f32.mrf.mxu3 }
 0x305   : > { %5743 = vst [vmem:[%s9109_s6 + $0x4c] sm:$0xf] %v5626_v12  ;;  %v5215_v45 = vperm.slane %v5211_v44, %v8416_v27  ;;  %v3192_v24 = vperm.slane %v3184_v11, %v8424_v19  ;;  %v3193_v15 = vrot.slane %v3188_v1, 4  ;;  %v5204_v52 = vperm.slane %v5200_v18, %v8424_v19 }
 0x306   : > { %v3202_v32 = vrot.slane %v3201_v0, 4  ;;  %v3207_v31 = vperm.slane %v3201_v0, %v8424_v19  ;;  %v2931_v10 = vshrl.u32 %v2850_v20, 16  ;;  %v2930_v62 = vpack.i.b16 %v2882_v63, %v2850_v20 }
 0x307   : > { %v5216_v37 = vrot.slane %v5215_v45, 4  ;;  %v3194_v40 = vsel %vm2241_vm10, 0, %v3193_v15  ;;  %v3195_v7 = vrot.slane %v3192_v24, 4  ;;  %1999 = vmatmul.bf16.gmra.mxu2 %v8511_v2  ;;  %v5632_v59 = vshrl.u32 %v5204_v52, 16 }
 0x308   : > { %v3203_v13 = vsel %vm2241_vm10, 0, %v3202_v32  ;;  %v3212_v22 = vrot.slane %v3207_v31, 4  ;;  %v2932_v30 = vshrl.u32 %v2882_v63, 16  ;;  %v3220_v34 = vperm.slane %v2930_v62, %v8416_v27 }
 0x309   : > { %v5217_v8 = vsel %vm2241_vm10, %v5216_v37, %v5209_v17  ;;  %v3196_v9 = vsel %vm2241_vm10, 0, %v3195_v7  ;;  %v3211_v49 = vperm.slane %v3203_v13, %v8424_v19  ;;  %v5222_v53 = vsel %vm2241_vm10, %v3195_v7, %v3188_v1  ;;  %2048 = vmatmul.bf16.gmra.mxu3 %v8513_v51  ;;  %v1747_v13 = vpop.f32.mrf.mxu1 }
 0x30a   : > { %v5221_v57 = vperm.slane %v5217_v8, %v8424_v19  ;;  %v3213_v6 = vsel %vm2241_vm10, 0, %v3212_v22  ;;  %v5226_v14 = vperm.slane %v5222_v53, %v8416_v27  ;;  %v5227_v5 = vrot.slane %v3196_v9, 4  ;;  %1901 = vmatmul.bf16.gmra.mxu0 %v8511_v2 }
 0x30b   : > { %v3214_v36 = vrot.slane %v3211_v49, 4  ;;  %v1743_v29 = vadd.f32 %v1742_v23, %v1693_v41  ;;  %v1841_v42 = vadd.f32 %v1840_v3, %v1791_v35  ;;  %1950 = vmatmul.bf16.gmra.mxu1 %v8513_v51  ;;  %v2933_v38 = vpack.i.b16 %v2932_v30, %v2931_v10 }
 0x30c   : > { %v5630_v28 = vpack.i.b16 %v5221_v57, %v5204_v52  ;;  %v5633_v39 = vshrl.u32 %v5221_v57, 16  ;;  %v5228_v46 = vsel %vm2241_vm10, %v5227_v5, %v3194_v40  ;;  %v3221_v41 = vrot.slane %v3220_v34, 4 }
 0x30d   : > { %v3215_v4 = vsel %vm2241_vm10, 0, %v3214_v36  ;;  %v5232_v58 = vperm.slane %v5228_v46, %v8416_v27  ;;  %v5239_v25 = vsel %vm2241_vm10, %v3214_v36, %v3207_v31  ;;  %v3226_v54 = vperm.slane %v3220_v34, %v8424_v19 }
 0x30e   : > { %v5634_v26 = vpack.i.b16 %v5633_v39, %v5632_v59  ;;  %5728 = vst [vmem:[%s9109_s6 + $0x10] sm:$0xf] %v5630_v28  ;;  %v5243_v2 = vperm.slane %v5239_v25, %v8416_v27  ;;  %v5244_v43 = vrot.slane %v3215_v4, 4  ;;  %v3239_v51 = vperm.slane %v2933_v38, %v8416_v27  ;;  %v1698_v59 = vpop.f32.mrf.mxu0  ;;  %v1796_v28 = vpop.f32.mrf.mxu2 }
 0x30f   : > { %v5233_v23 = vrot.slane %v5232_v58, 4  ;;  %v2851_v61 = vpack.c.bf16 %v1841_v42, %v1743_v29  ;;  %v3222_v60 = vsel %vm2241_vm10, 0, %v3221_v41  ;;  %v1746_v12 = vadd.f32 %v1745_v16, %v1696_v21  ;;  %v1845_v39 = vpop.f32.mrf.mxu3 }
 0x310   : > { %5744 = vst [vmem:[%s9109_s6 + $0x50] sm:$0xf] %v5634_v26  ;;  %v5245_v50 = vsel %vm2241_vm10, %v5244_v43, %v3213_v6  ;;  %v1844_v48 = vadd.f32 %v1843_v55, %v1794_v33  ;;  %v3230_v35 = vperm.slane %v3222_v60, %v8424_v19  ;;  %v3231_v3 = vrot.slane %v3226_v54, 4 }
 0x311   : > { %v5234_v17 = vsel %vm2241_vm10, %v5233_v23, %v5226_v14  ;;  %v5249_v1 = vperm.slane %v5245_v50, %v8416_v27  ;;  %v3240_v11 = vrot.slane %v3239_v51, 4  ;;  %v3245_v0 = vperm.slane %v3239_v51, %v8424_v19 }
 0x312   : > { %v5238_v44 = vperm.slane %v5234_v17, %v8424_v19  ;;  %v2883_v20 = vrot.slane %v2851_v61, 4  ;;  %v3232_v45 = vsel %vm2241_vm10, 0, %v3231_v3  ;;  %v3233_v24 = vrot.slane %v3230_v35, 4 }
 0x313   : > { %v5250_v18 = vrot.slane %v5249_v1, 4  ;;  %v2937_v15 = vshrl.u32 %v2851_v61, 16  ;;  %v3241_v32 = vsel %vm2241_vm10, 0, %v3240_v11  ;;  %v3250_v31 = vrot.slane %v3245_v0, 4 }
 0x314   : > { %v5640_v52 = vshrl.u32 %v5238_v44, 16  ;;  %v2936_v63 = vpack.i.b16 %v2883_v20, %v2851_v61  ;;  %v3234_v40 = vsel %vm2241_vm10, 0, %v3233_v24  ;;  %v3249_v7 = vperm.slane %v3241_v32, %v8424_v19 }
 0x315   : > { %v5251_v37 = vsel %vm2241_vm10, %v5250_v18, %v5243_v2  ;;  %v5256_v10 = vsel %vm2241_vm10, %v3233_v24, %v3226_v54  ;;  %v3251_v62 = vsel %vm2241_vm10, 0, %v3250_v31  ;;  %v5261_v9 = vrot.slane %v3234_v40, 4 }
 0x316   : > { %v5255_v22 = vperm.slane %v5251_v37, %v8424_v19  ;;  %v5260_v8 = vperm.slane %v5256_v10, %v8416_v27  ;;  %v3252_v49 = vrot.slane %v3249_v7, 4  ;;  %v2938_v53 = vshrl.u32 %v2883_v20, 16  ;;  %v1701_v31 = vpop.f32.mrf.mxu0 }
 0x317   : > { %v3258_v57 = vperm.slane %v2936_v63, %v8416_v27  ;;  %v2852_v6 = vpack.c.bf16 %v1844_v48, %v1746_v12  ;;  %2004 = vmatmul.bf16.gmra.mxu2 %v8536_v56  ;;  %v5262_v36 = vsel %vm2241_vm10, %v5261_v9, %v3232_v45  ;;  %v1748_v30 = vadd.f32 %v1747_v13, %v1698_v59  ;;  %v1750_v63 = vpop.f32.mrf.mxu1 }
 0x318   : > { %v5638_v14 = vpack.i.b16 %v5255_v22, %v5238_v44  ;;  %v5641_v5 = vshrl.u32 %v5255_v22, 16  ;;  %v3253_v34 = vsel %vm2241_vm10, 0, %v3252_v49  ;;  %v5266_v29 = vperm.slane %v5262_v36, %v8416_v27 }
 0x319   : > { %v5273_v21 = vsel %vm2241_vm10, %v3252_v49, %v3245_v0  ;;  %v2939_v16 = vpack.i.b16 %v2938_v53, %v2937_v15  ;;  %v5278_v4 = vrot.slane %v3253_v34, 4  ;;  %v3259_v58 = vrot.slane %v3258_v57, 4  ;;  %2053 = vmatmul.bf16.gmra.mxu3 %v8538_v47 }
 0x31a   : > { %v5642_v46 = vpack.i.b16 %v5641_v5, %v5640_v52  ;;  %5729 = vst [vmem:[%s9109_s6 + $0x14] sm:$0xf] %v5638_v14  ;;  %v5277_v42 = vperm.slane %v5273_v21, %v8416_v27  ;;  %v5267_v25 = vrot.slane %v5266_v29, 4  ;;  %v3264_v38 = vperm.slane %v3258_v57, %v8424_v19  ;;  %1906 = vmatmul.bf16.gmra.mxu0 %v8536_v56 }
 0x31b   : > { %v3277_v33 = vperm.slane %v2939_v16, %v8416_v27  ;;  %v2884_v55 = vrot.slane %v2852_v6, 4  ;;  %v5279_v26 = vsel %vm2241_vm10, %v5278_v4, %v3251_v62  ;;  %v3260_v2 = vsel %vm2241_vm10, 0, %v3259_v58  ;;  %1955 = vmatmul.bf16.gmra.mxu1 %v8538_v47 }
 0x31c   : > { %5745 = vst [vmem:[%s9109_s6 + $0x54] sm:$0xf] %v5642_v46  ;;  %v2943_v43 = vshrl.u32 %v2852_v6, 16  ;;  %v1846_v41 = vadd.f32 %v1845_v39, %v1796_v28  ;;  %v5268_v23 = vsel %vm2241_vm10, %v5267_v25, %v5260_v8  ;;  %v5283_v54 = vperm.slane %v5279_v26, %v8416_v27  ;;  %v1799_v46 = vpop.f32.mrf.mxu2 }
 0x31d   : > { %v3268_v51 = vperm.slane %v3260_v2, %v8424_v19  ;;  %v3269_v61 = vrot.slane %v3264_v38, 4  ;;  %v5272_v50 = vperm.slane %v5268_v23, %v8424_v19  ;;  %v3278_v60 = vrot.slane %v3277_v33, 4 }
 0x31e   : > { %v3283_v56 = vperm.slane %v3277_v33, %v8424_v19  ;;  %v2942_v12 = vpack.i.b16 %v2884_v55, %v2852_v6  ;;  %v5284_v48 = vrot.slane %v5283_v54, 4  ;;  %v2944_v35 = vshrl.u32 %v2884_v55, 16 }
 0x31f   : > { %v3270_v17 = vsel %vm2241_vm10, 0, %v3269_v61  ;;  %v3271_v1 = vrot.slane %v3268_v51, 4  ;;  %v5648_v3 = vshrl.u32 %v5272_v50, 16  ;;  %v3279_v47 = vsel %vm2241_vm10, 0, %v3278_v60 }
 0x320   : > { %v3288_v44 = vrot.slane %v3283_v56, 4  ;;  %v3296_v11 = vperm.slane %v2942_v12, %v8416_v27  ;;  %v5285_v0 = vsel %vm2241_vm10, %v5284_v48, %v5277_v42  ;;  %v3287_v18 = vperm.slane %v3279_v47, %v8424_v19  ;;  %v1848_v42 = vpop.f32.mrf.mxu3  ;;  %v1752_v12 = vpop.f32.mrf.mxu1 }
 0x321   : > { %v3272_v20 = vsel %vm2241_vm10, 0, %v3271_v1  ;;  %v5290_v45 = vsel %vm2241_vm10, %v3271_v1, %v3264_v38  ;;  %v5289_v24 = vperm.slane %v5285_v0, %v8424_v19  ;;  %v2945_v40 = vpack.i.b16 %v2944_v35, %v2943_v43 }
 0x322   : > { %v3289_v15 = vsel %vm2241_vm10, 0, %v3288_v44  ;;  %v5294_v52 = vperm.slane %v5290_v45, %v8416_v27  ;;  %v5295_v32 = vrot.slane %v3272_v20, 4  ;;  %v3290_v37 = vrot.slane %v3287_v18, 4 }
 0x323   : > { %v3297_v7 = vrot.slane %v3296_v11, 4  ;;  %v3302_v10 = vperm.slane %v3296_v11, %v8424_v19  ;;  %v5646_v59 = vpack.i.b16 %v5289_v24, %v5272_v50  ;;  %v5649_v13 = vshrl.u32 %v5289_v24, 16 }
 0x324   : > { %v5296_v22 = vsel %vm2241_vm10, %v5295_v32, %v3270_v17  ;;  %v2853_v62 = vpack.c.bf16 %v1846_v41, %v1748_v30  ;;  %v3291_v8 = vsel %vm2241_vm10, 0, %v3290_v37  ;;  %v5307_v49 = vsel %vm2241_vm10, %v3290_v37, %v3283_v56  ;;  %v1703_v56 = vpop.f32.mrf.mxu0 }
 0x325   : > { %v5300_v9 = vperm.slane %v5296_v22, %v8416_v27  ;;  %v3298_v53 = vsel %vm2241_vm10, 0, %v3297_v7  ;;  %v5650_v57 = vpack.i.b16 %v5649_v13, %v5648_v3  ;;  %5730 = vst [vmem:[%s9109_s6 + $0x18] sm:$0xf] %v5646_v59  ;;  %v5311_v6 = vperm.slane %v5307_v49, %v8416_v27  ;;  %v1801_v22 = vpop.f32.mrf.mxu2 }
 0x326   : > { %v5312_v14 = vrot.slane %v3291_v8, 4  ;;  %v3306_v5 = vperm.slane %v3298_v53, %v8424_v19  ;;  %v3307_v34 = vrot.slane %v3302_v10, 4  ;;  %v3315_v29 = vperm.slane %v2945_v40, %v8416_v27 }
 0x327   : > { %v5301_v36 = vrot.slane %v5300_v9, 4  ;;  %v2885_v30 = vrot.slane %v2853_v62, 4  ;;  %5746 = vst [vmem:[%s9109_s6 + $0x58] sm:$0xf] %v5650_v57  ;;  %v2949_v28 = vshrl.u32 %v2853_v62, 16  ;;  %v1751_v39 = vadd.f32 %v1750_v63, %v1701_v31 }
 0x328   : > { %v5313_v21 = vsel %vm2241_vm10, %v5312_v14, %v3289_v15  ;;  %v3309_v16 = vrot.slane %v3306_v5, 4  ;;  %v3308_v25 = vsel %vm2241_vm10, 0, %v3307_v34  ;;  %v3316_v38 = vrot.slane %v3315_v29, 4 }
 0x329   : > { %v5302_v4 = vsel %vm2241_vm10, %v5301_v36, %v5294_v52  ;;  %v5317_v58 = vperm.slane %v5313_v21, %v8416_v27  ;;  %v3321_v26 = vperm.slane %v3315_v29, %v8424_v19  ;;  %v2948_v60 = vpack.i.b16 %v2885_v30, %v2853_v62  ;;  %v1850_v62 = vpop.f32.mrf.mxu3 }
 0x32a   : > { %v5306_v33 = vperm.slane %v5302_v4, %v8424_v19  ;;  %v3310_v55 = vsel %vm2241_vm10, 0, %v3309_v16  ;;  %v5324_v2 = vsel %vm2241_vm10, %v3309_v16, %v3302_v10  ;;  %v3317_v41 = vsel %vm2241_vm10, 0, %v3316_v38  ;;  %v1755_v38 = vpop.f32.mrf.mxu1 }
 0x32b   : > { %v5318_v43 = vrot.slane %v5317_v58, 4  ;;  %v5328_v23 = vperm.slane %v5324_v2, %v8416_v27  ;;  %v5329_v54 = vrot.slane %v3310_v55, 4  ;;  %v3325_v61 = vperm.slane %v3317_v41, %v8424_v19 }
 0x32c   : > { %v5656_v51 = vshrl.u32 %v5306_v33, 16  ;;  %v3326_v50 = vrot.slane %v3321_v26, 4  ;;  %v2950_v1 = vshrl.u32 %v2885_v30, 16  ;;  %v1849_v35 = vadd.f32 %v1848_v42, %v1799_v46 }
 0x32d   : > { %v5319_v48 = vsel %vm2241_vm10, %v5318_v43, %v5311_v6  ;;  %v5330_v17 = vsel %vm2241_vm10, %v5329_v54, %v3308_v25  ;;  %v3328_v44 = vrot.slane %v3325_v61, 4  ;;  %v3334_v20 = vperm.slane %v2948_v60, %v8416_v27  ;;  %v1706_v25 = vpop.f32.mrf.mxu0 }
 0x32e   : > { %v5323_v3 = vperm.slane %v5319_v48, %v8424_v19  ;;  %v3327_v47 = vsel %vm2241_vm10, 0, %v3326_v50  ;;  %v5334_v11 = vperm.slane %v5330_v17, %v8416_v27  ;;  %v2951_v0 = vpack.i.b16 %v2950_v1, %v2949_v28 }
 0x32f   : > { %v2854_v18 = vpack.c.bf16 %v1849_v35, %v1751_v39  ;;  %v1753_v45 = vadd.f32 %v1752_v12, %v1703_v56  ;;  %v3329_v52 = vsel %vm2241_vm10, 0, %v3328_v44  ;;  %v5341_v31 = vsel %vm2241_vm10, %v3328_v44, %v3321_v26  ;;  %v1804_v44 = vpop.f32.mrf.mxu2 }
 0x330   : > { %v5654_v24 = vpack.i.b16 %v5323_v3, %v5306_v33  ;;  %v5657_v15 = vshrl.u32 %v5323_v3, 16  ;;  %v5335_v32 = vrot.slane %v5334_v11, 4  ;;  %v5346_v63 = vrot.slane %v3329_v52, 4 }
 0x331   : > { %v3335_v37 = vrot.slane %v3334_v20, 4  ;;  %v3340_v40 = vperm.slane %v3334_v20, %v8424_v19  ;;  %v5345_v59 = vperm.slane %v5341_v31, %v8416_v27  ;;  %v3353_v13 = vperm.slane %v2951_v0, %v8416_v27  ;;  %v1853_v11 = vpop.f32.mrf.mxu3 }
 0x332   : > { %v5658_v7 = vpack.i.b16 %v5657_v15, %v5656_v51  ;;  %5731 = vst [vmem:[%s9109_s6 + $0x1c] sm:$0xf] %v5654_v24  ;;  %v5336_v10 = vsel %vm2241_vm10, %v5335_v32, %v5328_v23  ;;  %v5347_v9 = vsel %vm2241_vm10, %v5346_v63, %v3327_v47  ;;  %v2886_v29 = vrot.slane %v2854_v18, 4 }
 0x333   : > { %v5340_v8 = vperm.slane %v5336_v10, %v8424_v19  ;;  %v3336_v49 = vsel %vm2241_vm10, 0, %v3335_v37  ;;  %v3345_v53 = vrot.slane %v3340_v40, 4  ;;  %v5351_v57 = vperm.slane %v5347_v9, %v8416_v27 }
 0x334   : > { %5747 = vst [vmem:[%s9109_s6 + $0x5c] sm:$0xf] %v5658_v7  ;;  %v3344_v6 = vperm.slane %v3336_v49, %v8424_v19  ;;  %v3354_v14 = vrot.slane %v3353_v13, 4  ;;  %v3359_v5 = vperm.slane %v3353_v13, %v8424_v19  ;;  %v2955_v30 = vshrl.u32 %v2854_v18, 16 }
 0x335   : > { %v5664_v36 = vshrl.u32 %v5340_v8, 16  ;;  %v3346_v34 = vsel %vm2241_vm10, 0, %v3345_v53  ;;  %v5352_v21 = vrot.slane %v5351_v57, 4  ;;  %v2954_v42 = vpack.i.b16 %v2886_v29, %v2854_v18 }
 0x336   : > { %v3347_v16 = vrot.slane %v3344_v6, 4  ;;  %v3355_v28 = vsel %vm2241_vm10, 0, %v3354_v14  ;;  %v3364_v39 = vrot.slane %v3359_v5, 4  ;;  %v2956_v4 = vshrl.u32 %v2886_v29, 16  ;;  %v1708_v14 = vpop.f32.mrf.mxu0 }
 0x337   : > { %v3363_v46 = vperm.slane %v3355_v28, %v8424_v19  ;;  %v1851_v58 = vadd.f32 %v1850_v62, %v1801_v22  ;;  %v5353_v33 = vsel %vm2241_vm10, %v5352_v21, %v5345_v59  ;;  %v3372_v61 = vperm.slane %v2954_v42, %v8416_v27 }
 0x338   : > { %v3348_v55 = vsel %vm2241_vm10, 0, %v3347_v16  ;;  %v3365_v26 = vsel %vm2241_vm10, 0, %v3364_v39  ;;  %v5358_v2 = vsel %vm2241_vm10, %v3347_v16, %v3340_v40  ;;  %v5357_v43 = vperm.slane %v5353_v33, %v8424_v19 }
 0x339   : > { %v3366_v41 = vrot.slane %v3363_v46, 4  ;;  %v5362_v23 = vperm.slane %v5358_v2, %v8416_v27  ;;  %v5363_v54 = vrot.slane %v3348_v55, 4  ;;  %v2957_v51 = vpack.i.b16 %v2956_v4, %v2955_v30  ;;  %v1855_v2 = vpop.f32.mrf.mxu3 }
 0x33a   : > { %v2855_v50 = vpack.c.bf16 %v1851_v58, %v1753_v45  ;;  %v9337_v60 = vadd.f32 %v1755_v38, %v1706_v25  ;;  %v5662_v56 = vpack.i.b16 %v5357_v43, %v5340_v8  ;;  %v5665_v12 = vshrl.u32 %v5357_v43, 16 }
 0x33b   : > { %v3367_v48 = vsel %vm2241_vm10, 0, %v3366_v41  ;;  %v5364_v17 = vsel %vm2241_vm10, %v5363_v54, %v3346_v34  ;;  %v5375_v35 = vsel %vm2241_vm10, %v3366_v41, %v3359_v5  ;;  %v3373_v47 = vrot.slane %v3372_v61, 4  ;;  %v1757_v5 = vpop.f32.mrf.mxu1 }
 0x33c   : > { %v5368_v1 = vperm.slane %v5364_v17, %v8416_v27  ;;  %v5380_v3 = vrot.slane %v3367_v48, 4  ;;  %v5666_v0 = vpack.i.b16 %v5665_v12, %v5664_v36  ;;  %5732 = vst [vmem:[%s9109_s6 + $0x20] sm:$0xf] %v5662_v56  ;;  %v5379_v20 = vperm.slane %v5375_v35, %v8416_v27 }
 0x33d   : > { %v3378_v18 = vperm.slane %v3372_v61, %v8424_v19  ;;  %v3391_v45 = vperm.slane %v2957_v51, %v8416_v27  ;;  %v3374_v52 = vsel %vm2241_vm10, 0, %v3373_v47  ;;  %v2887_v32 = vrot.slane %v2855_v50, 4 }
 0x33e   : > { %v5369_v24 = vrot.slane %v5368_v1, 4  ;;  %v5381_v15 = vsel %vm2241_vm10, %v5380_v3, %v3365_v26  ;;  %5748 = vst [vmem:[%s9109_s6 + $0x60] sm:$0xf] %v5666_v0  ;;  %v3382_v63 = vperm.slane %v3374_v52, %v8424_v19  ;;  %v2961_v13 = vshrl.u32 %v2855_v50, 16  ;;  %v1806_v26 = vpop.f32.mrf.mxu2 }
 0x33f   : > { %v5385_v31 = vperm.slane %v5381_v15, %v8416_v27  ;;  %v3383_v37 = vrot.slane %v3378_v18, 4  ;;  %v3392_v40 = vrot.slane %v3391_v45, 4  ;;  %v3397_v10 = vperm.slane %v3391_v45, %v8424_v19 }
 0x340   : > { %v5370_v7 = vsel %vm2241_vm10, %v5369_v24, %v5362_v23  ;;  %v2960_v59 = vpack.i.b16 %v2887_v32, %v2855_v50  ;;  %v3385_v9 = vrot.slane %v3382_v63, 4  ;;  %v2962_v57 = vshrl.u32 %v2887_v32, 16 }
 0x341   : > { %v5374_v22 = vperm.slane %v5370_v7, %v8424_v19  ;;  %v5386_v62 = vrot.slane %v5385_v31, 4  ;;  %v3384_v8 = vsel %vm2241_vm10, 0, %v3383_v37  ;;  %v3393_v49 = vsel %vm2241_vm10, 0, %v3392_v40 }
 0x342   : > { %v3402_v53 = vrot.slane %v3397_v10, 4  ;;  %v3410_v6 = vperm.slane %v2960_v59, %v8416_v27  ;;  %v3386_v29 = vsel %vm2241_vm10, 0, %v3385_v9  ;;  %v3401_v30 = vperm.slane %v3393_v49, %v8424_v19 }
 0x343   : > { %v5387_v36 = vsel %vm2241_vm10, %v5386_v62, %v5379_v20  ;;  %v5672_v34 = vshrl.u32 %v5374_v22, 16  ;;  %v5392_v28 = vsel %vm2241_vm10, %v3385_v9, %v3378_v18  ;;  %v5397_v39 = vrot.slane %v3386_v29, 4  ;;  %v1760_v31 = vpop.f32.mrf.mxu1 }
 0x344   : > { %v5391_v21 = vperm.slane %v5387_v36, %v8424_v19  ;;  %v3403_v16 = vsel %vm2241_vm10, 0, %v3402_v53  ;;  %v3404_v46 = vrot.slane %v3401_v30, 4  ;;  %v5396_v42 = vperm.slane %v5392_v28, %v8416_v27  ;;  %v1858_v36 = vpop.f32.mrf.mxu3 }
 0x345   : > { %v2963_v4 = vpack.i.b16 %v2962_v57, %v2961_v13  ;;  %v3411_v58 = vrot.slane %v3410_v6, 4  ;;  %v5398_v33 = vsel %vm2241_vm10, %v5397_v39, %v3384_v8  ;;  %v3416_v55 = vperm.slane %v3410_v6, %v8424_v19 }
 0x346   : > { %v5670_v25 = vpack.i.b16 %v5391_v21, %v5374_v22  ;;  %v5673_v38 = vshrl.u32 %v5391_v21, 16  ;;  %v3405_v43 = vsel %vm2241_vm10, 0, %v3404_v46  ;;  %v5402_v41 = vperm.slane %v5398_v33, %v8416_v27 }
 0x347   : > { %v5409_v23 = vsel %vm2241_vm10, %v3404_v46, %v3397_v10  ;;  %v3412_v54 = vsel %vm2241_vm10, 0, %v3411_v58  ;;  %v5414_v50 = vrot.slane %v3405_v43, 4  ;;  %v3421_v48 = vrot.slane %v3416_v55, 4 }
 0x348   : > { %v5674_v51 = vpack.i.b16 %v5673_v38, %v5672_v34  ;;  %5733 = vst [vmem:[%s9109_s6 + $0x24] sm:$0xf] %v5670_v25  ;;  %v5413_v61 = vperm.slane %v5409_v23, %v8416_v27  ;;  %v3420_v56 = vperm.slane %v3412_v54, %v8424_v19  ;;  %v5403_v12 = vrot.slane %v5402_v41, 4 }
 0x349   : > { %v3429_v17 = vperm.slane %v2963_v4, %v8416_v27  ;;  %v1854_v1 = vadd.f32 %v1853_v11, %v1804_v44  ;;  %v5415_v35 = vsel %vm2241_vm10, %v5414_v50, %v3403_v16  ;;  %v1758_v47 = vadd.f32 %v1757_v5, %v1708_v14  ;;  %v1711_v11 = vpop.f32.mrf.mxu0  ;;  %v1809_v5 = vpop.f32.mrf.mxu2 }
 0x34a   : > { %5749 = vst [vmem:[%s9109_s6 + $0x64] sm:$0xf] %v5674_v51  ;;  %v3423_v3 = vrot.slane %v3420_v56, 4  ;;  %v1856_v0 = vadd.f32 %v1855_v2, %v1806_v26  ;;  %v5404_v20 = vsel %vm2241_vm10, %v5403_v12, %v5396_v42  ;;  %v5419_v18 = vperm.slane %v5415_v35, %v8416_v27 }
 0x34b   : > { %v3422_v45 = vsel %vm2241_vm10, 0, %v3421_v48  ;;  %v3430_v24 = vrot.slane %v3429_v17, 4  ;;  %v5408_v15 = vperm.slane %v5404_v20, %v8424_v19  ;;  %v3435_v32 = vperm.slane %v3429_v17, %v8424_v19 }
 0x34c   : > { %v3424_v52 = vsel %vm2241_vm10, 0, %v3423_v3  ;;  %v5426_v44 = vsel %vm2241_vm10, %v3423_v3, %v3416_v55  ;;  %v5420_v63 = vrot.slane %v5419_v18, 4  ;;  %v2856_v22 = vpack.c.bf16 %v1854_v1, %v9337_v60 }
 0x34d   : > { %v3431_v37 = vsel %vm2241_vm10, 0, %v3430_v24  ;;  %v5430_v40 = vperm.slane %v5426_v44, %v8416_v27  ;;  %v5431_v7 = vrot.slane %v3424_v52, 4  ;;  %v5680_v10 = vshrl.u32 %v5408_v15, 16  ;;  %v1762_v24 = vpop.f32.mrf.mxu1 }
 0x34e   : > { %v3439_v59 = vperm.slane %v3431_v37, %v8424_v19  ;;  %v3440_v13 = vrot.slane %v3435_v32, 4  ;;  %v5421_v62 = vsel %vm2241_vm10, %v5420_v63, %v5413_v61  ;;  %v2857_v9 = vpack.c.bf16 %v1856_v0, %v1758_v47 }
 0x34f   : > { %v5432_v8 = vsel %vm2241_vm10, %v5431_v7, %v3422_v45  ;;  %v9390_v49 = vadd.f32 %v1760_v31, %v1711_v11  ;;  %v5425_v53 = vperm.slane %v5421_v62, %v8424_v19  ;;  %v2888_v34 = vrot.slane %v2856_v22, 4  ;;  %v9416_v31 = vpop.f32.mrf.mxu3 }
 0x350   : > { %v3441_v57 = vsel %vm2241_vm10, 0, %v3440_v13  ;;  %v3442_v6 = vrot.slane %v3439_v59, 4  ;;  %v5436_v14 = vperm.slane %v5432_v8, %v8416_v27  ;;  %v2967_v29 = vshrl.u32 %v2856_v22, 16 }
 0x351   : > { %v2889_v60 = vrot.slane %v2857_v9, 4  ;;  %v2973_v30 = vshrl.u32 %v2857_v9, 16  ;;  %v5678_v21 = vpack.i.b16 %v5425_v53, %v5408_v15  ;;  %v5681_v16 = vshrl.u32 %v5425_v53, 16  ;;  %v1713_v45 = vpop.f32.mrf.mxu0  ;;  %v9414_v11 = vpop.f32.mrf.mxu2 }
 0x352   : > { %v3443_v28 = vsel %vm2241_vm10, 0, %v3442_v6  ;;  %v5437_v39 = vrot.slane %v5436_v14, 4  ;;  %v5443_v46 = vsel %vm2241_vm10, %v3442_v6, %v3435_v32  ;;  %v2966_v4 = vpack.i.b16 %v2888_v34, %v2856_v22 }
 0x353   : > { %v5448_v42 = vrot.slane %v3443_v28, 4  ;;  %v2968_v58 = vshrl.u32 %v2888_v34, 16  ;;  %v5682_v25 = vpack.i.b16 %v5681_v16, %v5680_v10  ;;  %5734 = vst [vmem:[%s9109_s6 + $0x28] sm:$0xf] %v5678_v21  ;;  %v5447_v33 = vperm.slane %v5443_v46, %v8416_v27 }
 0x354   : > { %v5438_v38 = vsel %vm2241_vm10, %v5437_v39, %v5430_v40  ;;  %v2972_v55 = vpack.i.b16 %v2889_v60, %v2857_v9  ;;  %v3448_v41 = vperm.slane %v2966_v4, %v8416_v27  ;;  %v2974_v54 = vshrl.u32 %v2889_v60, 16 }
 0x355   : > { %v5442_v26 = vperm.slane %v5438_v38, %v8424_v19  ;;  %v5449_v2 = vsel %vm2241_vm10, %v5448_v42, %v3441_v57  ;;  %v2969_v43 = vpack.i.b16 %v2968_v58, %v2967_v29  ;;  %5750 = vst [vmem:[%s9109_s6 + $0x68] sm:$0xf] %v5682_v25  ;;  %v1859_v61 = vadd.f32 %v1858_v36, %v1809_v5 }
 0x356   : > { %v5453_v23 = vperm.slane %v5449_v2, %v8416_v27  ;;  %v3486_v51 = vperm.slane %v2972_v55, %v8416_v27  ;;  %v3449_v56 = vrot.slane %v3448_v41, 4  ;;  %v3454_v12 = vperm.slane %v3448_v41, %v8424_v19 }
 0x357   : > { %v5688_v50 = vshrl.u32 %v5442_v26, 16  ;;  %v3467_v48 = vperm.slane %v2969_v43, %v8416_v27  ;;  %v2975_v1 = vpack.i.b16 %v2974_v54, %v2973_v30  ;;  %v2858_v43 = vpack.c.bf16 %v1859_v61, %v9390_v49 }
 0x358   : > { %v5454_v17 = vrot.slane %v5453_v23, 4  ;;  %v3487_v35 = vrot.slane %v3486_v51, 4  ;;  %v3492_v3 = vperm.slane %v3486_v51, %v8424_v19  ;;  %v3450_v47 = vsel %vm2241_vm10, 0, %v3449_v56  ;;  %v1921_v23 = vpop.f32.mrf.mxu1 }
 0x359   : > { %v3459_v0 = vrot.slane %v3454_v12, 4  ;;  %v3468_v20 = vrot.slane %v3467_v48, 4  ;;  %v3473_v18 = vperm.slane %v3467_v48, %v8424_v19  ;;  %v3458_v52 = vperm.slane %v3450_v47, %v8424_v19  ;;  %v1872_v41 = vpop.f32.mrf.mxu0  ;;  %v2019_v48 = vpop.f32.mrf.mxu3 }
 0x35a   : > { %v5455_v15 = vsel %vm2241_vm10, %v5454_v17, %v5447_v33  ;;  %v3488_v32 = vsel %vm2241_vm10, 0, %v3487_v35  ;;  %v3497_v44 = vrot.slane %v3492_v3, 4  ;;  %v3505_v53 = vperm.slane %v2975_v1, %v8416_v27 }
 0x35b   : > { %v5459_v63 = vperm.slane %v5455_v15, %v8424_v19  ;;  %v3460_v37 = vsel %vm2241_vm10, 0, %v3459_v0  ;;  %v3469_v40 = vsel %vm2241_vm10, 0, %v3468_v20  ;;  %v3478_v7 = vrot.slane %v3473_v18, 4 }
 0x35c   : > { %v3461_v10 = vrot.slane %v3458_v52, 4  ;;  %v3477_v59 = vperm.slane %v3469_v40, %v8424_v19  ;;  %v3496_v13 = vperm.slane %v3488_v32, %v8424_v19  ;;  %v3498_v22 = vsel %vm2241_vm10, 0, %v3497_v44 }
 0x35d   : > { %v5686_v62 = vpack.i.b16 %v5459_v63, %v5442_v26  ;;  %v5689_v8 = vshrl.u32 %v5459_v63, 16  ;;  %v3479_v9 = vsel %vm2241_vm10, 0, %v3478_v7  ;;  %v3506_v60 = vrot.slane %v3505_v53, 4 }
 0x35e   : > { %v3462_v57 = vsel %vm2241_vm10, 0, %v3461_v10  ;;  %v3480_v6 = vrot.slane %v3477_v59, 4  ;;  %v5460_v14 = vsel %vm2241_vm10, %v3461_v10, %v3454_v12  ;;  %v3499_v5 = vrot.slane %v3496_v13, 4  ;;  %v1970_v12 = vpop.f32.mrf.mxu2 }
 0x35f   : > { %v5690_v36 = vpack.i.b16 %v5689_v8, %v5688_v50  ;;  %5735 = vst [vmem:[%s9109_s6 + $0x2c] sm:$0xf] %v5686_v62  ;;  %v5464_v34 = vperm.slane %v5460_v14, %v8416_v27  ;;  %v5465_v29 = vrot.slane %v3462_v57, 4  ;;  %v3511_v28 = vperm.slane %v3505_v53, %v8424_v19 }
 0x360   : > { %v3481_v30 = vsel %vm2241_vm10, 0, %v3480_v6  ;;  %v5477_v21 = vsel %vm2241_vm10, %v3480_v6, %v3473_v18  ;;  %v3500_v16 = vsel %vm2241_vm10, 0, %v3499_v5  ;;  %v3507_v4 = vsel %vm2241_vm10, 0, %v3506_v60 }
 0x361   : > { %5751 = vst [vmem:[%s9109_s6 + $0x6c] sm:$0xf] %v5690_v36  ;;  %v5466_v39 = vsel %vm2241_vm10, %v5465_v29, %v3460_v37  ;;  %v5481_v46 = vperm.slane %v5477_v21, %v8416_v27  ;;  %v5482_v42 = vrot.slane %v3481_v30, 4  ;;  %v3515_v25 = vperm.slane %v3507_v4, %v8424_v19  ;;  %v1874_v30 = vpop.f32.mrf.mxu0 }
 0x362   : > { %v5470_v58 = vperm.slane %v5466_v39, %v8416_v27  ;;  %v3516_v38 = vrot.slane %v3511_v28, 4  ;;  %v5494_v33 = vsel %vm2241_vm10, %v3499_v5, %v3492_v3  ;;  %v5499_v2 = vrot.slane %v3500_v16, 4 }
 0x363   : > { %v5483_v55 = vsel %vm2241_vm10, %v5482_v42, %v3479_v9  ;;  %v5498_v26 = vperm.slane %v5494_v33, %v8416_v27  ;;  %v3518_v56 = vrot.slane %v3515_v25, 4  ;;  %v2890_v1 = vrot.slane %v2858_v43, 4 }
 0x364   : > { %v5471_v54 = vrot.slane %v5470_v58, 4  ;;  %v5487_v51 = vperm.slane %v5483_v55, %v8416_v27  ;;  %v3517_v50 = vsel %vm2241_vm10, 0, %v3516_v38  ;;  %v5500_v17 = vsel %vm2241_vm10, %v5499_v2, %v3498_v22 }
 0x365   : > { %v2979_v35 = vshrl.u32 %v2858_v43, 16  ;;  %v1763_v3 = vadd.f32 %v1762_v24, %v1713_v45  ;;  %v3519_v49 = vsel %vm2241_vm10, 0, %v3518_v56  ;;  %v5504_v61 = vperm.slane %v5500_v17, %v8416_v27 }
 0x366   : > { %v5472_v47 = vsel %vm2241_vm10, %v5471_v54, %v5464_v34  ;;  %v5488_v0 = vrot.slane %v5487_v51, 4  ;;  %v5511_v18 = vsel %vm2241_vm10, %v3518_v56, %v3511_v28  ;;  %v5516_v15 = vrot.slane %v3519_v49, 4  ;;  %v1972_v39 = vpop.f32.mrf.mxu2 }
 0x367   : > { %v5476_v20 = vperm.slane %v5472_v47, %v8424_v19  ;;  %v2978_v52 = vpack.i.b16 %v2890_v1, %v2858_v43  ;;  %v5505_v44 = vrot.slane %v5504_v61, 4  ;;  %v5515_v63 = vperm.slane %v5511_v18, %v8416_v27 }
 0x368   : > { %v5489_v32 = vsel %vm2241_vm10, %v5488_v0, %v5481_v46  ;;  %v2980_v37 = vshrl.u32 %v2890_v1, 16  ;;  %v5517_v40 = vsel %vm2241_vm10, %v5516_v15, %v3517_v50  ;;  %v1861_v22 = vadd.f32 %v9416_v31, %v9414_v11  ;;  %v1923_v11 = vpop.f32.mrf.mxu1  ;;  %v2021_v46 = vpop.f32.mrf.mxu3 }
 0x369   : > { %v5493_v45 = vperm.slane %v5489_v32, %v8424_v19  ;;  %v5696_v24 = vshrl.u32 %v5476_v20, 16  ;;  %v3524_v7 = vperm.slane %v2978_v52, %v8416_v27  ;;  %v5506_v10 = vsel %vm2241_vm10, %v5505_v44, %v5498_v26 }
 0x36a   : > { %v5521_v59 = vperm.slane %v5517_v40, %v8416_v27  ;;  %v2981_v13 = vpack.i.b16 %v2980_v37, %v2979_v35  ;;  %v5510_v9 = vperm.slane %v5506_v10, %v8424_v19  ;;  %v2859_v5 = vpack.c.bf16 %v1861_v22, %v1763_v3  ;;  %v9488_v40 = vpop.f32.mrf.mxu0 }
 0x36b   : > { %v5694_v62 = vpack.i.b16 %v5493_v45, %v5476_v20  ;;  %v5697_v8 = vshrl.u32 %v5493_v45, 16  ;;  %v3525_v53 = vrot.slane %v3524_v7, 4  ;;  %v3530_v6 = vperm.slane %v3524_v7, %v8424_v19 }
 0x36c   : > { %v5522_v57 = vrot.slane %v5521_v59, 4  ;;  %v3543_v14 = vperm.slane %v2981_v13, %v8416_v27  ;;  %v5704_v34 = vshrl.u32 %v5510_v9, 16  ;;  %v1922_v60 = vadd.f32 %v1921_v23, %v1872_v41 }
 0x36d   : > { %v5698_v36 = vpack.i.b16 %v5697_v8, %v5696_v24  ;;  %5736 = vst [vmem:[%s9109_s6 + $0x30] sm:$0xf] %v5694_v62  ;;  %v3526_v29 = vsel %vm2241_vm10, 0, %v3525_v53  ;;  %v3535_v16 = vrot.slane %v3530_v6, 4  ;;  %v2891_v58 = vrot.slane %v2859_v5, 4 }
 0x36e   : > { %v5523_v31 = vsel %vm2241_vm10, %v5522_v57, %v5515_v63  ;;  %v3534_v21 = vperm.slane %v3526_v29, %v8424_v19  ;;  %v3544_v28 = vrot.slane %v3543_v14, 4  ;;  %v3549_v4 = vperm.slane %v3543_v14, %v8424_v19  ;;  %v9496_v62 = vpop.f32.mrf.mxu2 }
 0x36f   : > { %5752 = vst [vmem:[%s9109_s6 + $0x70] sm:$0xf] %v5698_v36  ;;  %v5527_v42 = vperm.slane %v5523_v31, %v8424_v19  ;;  %v2985_v25 = vshrl.u32 %v2859_v5, 16  ;;  %v3536_v38 = vsel %vm2241_vm10, 0, %v3535_v16  ;;  %v2020_v26 = vadd.f32 %v2019_v48, %v1970_v12 }
 0x370   : > { %v3537_v33 = vrot.slane %v3534_v21, 4  ;;  %v3545_v55 = vsel %vm2241_vm10, 0, %v3544_v28  ;;  %v3554_v23 = vrot.slane %v3549_v4, 4  ;;  %v2984_v50 = vpack.i.b16 %v2891_v58, %v2859_v5  ;;  %v9490_v7 = vpop.f32.mrf.mxu1  ;;  %v9498_v8 = vpop.f32.mrf.mxu3 }
 0x371   : > { %v5702_v2 = vpack.i.b16 %v5527_v42, %v5510_v9  ;;  %v5705_v43 = vshrl.u32 %v5527_v42, 16  ;;  %v3553_v41 = vperm.slane %v3545_v55, %v8424_v19  ;;  %v2986_v56 = vshrl.u32 %v2891_v58, 16 }
 0x372   : > { %v3538_v54 = vsel %vm2241_vm10, 0, %v3537_v33  ;;  %v5528_v51 = vsel %vm2241_vm10, %v3537_v33, %v3530_v6  ;;  %v3555_v1 = vsel %vm2241_vm10, 0, %v3554_v23  ;;  %v3562_v47 = vperm.slane %v2984_v50, %v8416_v27 }
 0x373   : > { %v5706_v17 = vpack.i.b16 %v5705_v43, %v5704_v34  ;;  %5737 = vst [vmem:[%s9109_s6 + $0x34] sm:$0xf] %v5702_v2  ;;  %v3556_v35 = vrot.slane %v3553_v41, 4  ;;  %v5532_v3 = vperm.slane %v5528_v51, %v8416_v27  ;;  %v5533_v12 = vrot.slane %v3538_v54, 4 }
 0x374   : > { %v2987_v48 = vpack.i.b16 %v2986_v56, %v2985_v25  ;;  %v3596_v0 = vpack.c.bf16 %v2020_v26, %v1922_v60  ;;  %v1924_v20 = vadd.f32 %v1923_v11, %v1874_v30  ;;  %v2022_v18 = vadd.f32 %v2021_v46, %v1972_v39 }
 0x375   : > { %5753 = vst [vmem:[%s9109_s6 + $0x74] sm:$0xf] %v5706_v17  ;;  %v3557_v49 = vsel %vm2241_vm10, 0, %v3556_v35  ;;  %v5545_v61 = vsel %vm2241_vm10, %v3556_v35, %v3549_v4  ;;  %v5534_v15 = vsel %vm2241_vm10, %v5533_v12, %v3536_v38  ;;  %v3563_v44 = vrot.slane %v3562_v47, 4  ;;  %v9521_v35 = vpop.f32.mrf.mxu0 }
 0x376   : > { %v5549_v52 = vperm.slane %v5545_v61, %v8416_v27  ;;  %v5550_v32 = vrot.slane %v3557_v49, 4  ;;  %v5538_v63 = vperm.slane %v5534_v15, %v8416_v27  ;;  %v3568_v37 = vperm.slane %v3562_v47, %v8424_v19  ;;  %v9528_v49 = vpop.f32.mrf.mxu2 }
 0x377   : > { %v3581_v45 = vperm.slane %v2987_v48, %v8416_v27  ;;  %v3628_v24 = vrot.slane %v3596_v0, 4  ;;  %v3564_v59 = vsel %vm2241_vm10, 0, %v3563_v44  ;;  %v3647_v13 = vshrl.u32 %v3596_v0, 16 }
 0x378   : > { %v5551_v10 = vsel %vm2241_vm10, %v5550_v32, %v3555_v1  ;;  %v9494_v22 = vpack.c.bf16 %v2022_v18, %v1924_v20  ;;  %v5539_v9 = vrot.slane %v5538_v63, 4  ;;  %v3572_v57 = vperm.slane %v3564_v59, %v8424_v19  ;;  %v9530_v61 = vpop.f32.mrf.mxu3 }
 0x379   : > { %v5555_v53 = vperm.slane %v5551_v10, %v8416_v27  ;;  %v3573_v6 = vrot.slane %v3568_v37, 4  ;;  %v3582_v14 = vrot.slane %v3581_v45, 4  ;;  %v3587_v5 = vperm.slane %v3581_v45, %v8424_v19 }
 0x37a   : > { %v3646_v36 = vpack.i.b16 %v3628_v24, %v3596_v0  ;;  %v3648_v34 = vshrl.u32 %v3628_v24, 16  ;;  %v5540_v29 = vsel %vm2241_vm10, %v5539_v9, %v5532_v3  ;;  %v3575_v11 = vrot.slane %v3572_v57, 4  ;;  %v9523_v3 = vpop.f32.mrf.mxu1 }
 0x37b   : > { %v5556_v60 = vrot.slane %v5555_v53, 4  ;;  %v3574_v30 = vsel %vm2241_vm10, 0, %v3573_v6  ;;  %v5544_v31 = vperm.slane %v5540_v29, %v8424_v19  ;;  %v3583_v21 = vsel %vm2241_vm10, 0, %v3582_v14 }
 0x37c   : > { %v3592_v16 = vrot.slane %v3587_v5, 4  ;;  %v3649_v28 = vpack.i.b16 %v3648_v34, %v3647_v13  ;;  %v3576_v46 = vsel %vm2241_vm10, 0, %v3575_v11  ;;  %v3591_v42 = vperm.slane %v3583_v21, %v8424_v19 }
 0x37d   : > { %v5557_v39 = vsel %vm2241_vm10, %v5556_v60, %v5549_v52  ;;  %v5562_v4 = vsel %vm2241_vm10, %v3575_v11, %v3568_v37  ;;  %v5712_v25 = vshrl.u32 %v5544_v31, 16  ;;  %v5567_v26 = vrot.slane %v3576_v46, 4 }
 0x37e   : > { %v5561_v58 = vperm.slane %v5557_v39, %v8424_v19  ;;  %v3593_v38 = vsel %vm2241_vm10, 0, %v3592_v16  ;;  %v5566_v33 = vperm.slane %v5562_v4, %v8416_v27  ;;  %v3594_v55 = vrot.slane %v3591_v42, 4 }
 0x37f   : > { %v3744_v2 = vperm.slane %v3646_v36, %v8416_v27  ;;  %v3763_v43 = vperm.slane %v3649_v28, %v8416_v27  ;;  %v3629_v54 = vrot.slane %v9494_v22, 4  ;;  %v3653_v51 = vshrl.u32 %v9494_v22, 16 }
 0x380   : > { %v5710_v41 = vpack.i.b16 %v5561_v58, %v5544_v31  ;;  %v5713_v23 = vshrl.u32 %v5561_v58, 16  ;;  %v3595_v50 = vsel %vm2241_vm10, 0, %v3594_v55  ;;  %v5568_v56 = vsel %vm2241_vm10, %v5567_v26, %v3574_v30 }
 0x381   : > { %v5579_v17 = vsel %vm2241_vm10, %v3594_v55, %v3587_v5  ;;  %v3745_v1 = vrot.slane %v3744_v2, 4  ;;  %v5572_v48 = vperm.slane %v5568_v56, %v8416_v27  ;;  %v5584_v0 = vrot.slane %v3595_v50, 4 }
 0x382   : > { %v5714_v12 = vpack.i.b16 %v5713_v23, %v5712_v25  ;;  %5738 = vst [vmem:[%s9109_s6 + $0x38] sm:$0xf] %v5710_v41  ;;  %v5583_v47 = vperm.slane %v5579_v17, %v8416_v27  ;;  %v3750_v18 = vperm.slane %v3744_v2, %v8424_v19  ;;  %v3764_v15 = vrot.slane %v3763_v43, 4  ;;  %v1980_v41 = vpop.f32.mrf.mxu2  ;;  %v2029_v23 = vpop.f32.mrf.mxu3 }
 0x383   : > { %v3746_v20 = vsel %vm2241_vm10, 0, %v3745_v1  ;;  %v3769_v52 = vperm.slane %v3763_v43, %v8424_v19  ;;  %v5573_v32 = vrot.slane %v5572_v48, 4  ;;  %v5585_v44 = vsel %vm2241_vm10, %v5584_v0, %v3593_v38  ;;  %v1882_v38 = vpop.f32.mrf.mxu0 }
 0x384   : > { %5754 = vst [vmem:[%s9109_s6 + $0x78] sm:$0xf] %v5714_v12  ;;  %v3754_v63 = vperm.slane %v3746_v20, %v8424_v19  ;;  %v3652_v37 = vpack.i.b16 %v3629_v54, %v9494_v22  ;;  %v5589_v45 = vperm.slane %v5585_v44, %v8416_v27  ;;  %v3755_v24 = vrot.slane %v3750_v18, 4 }
 0x385   : > { %v3765_v10 = vsel %vm2241_vm10, 0, %v3764_v15  ;;  %v3774_v59 = vrot.slane %v3769_v52, 4  ;;  %v5574_v13 = vsel %vm2241_vm10, %v5573_v32, %v5566_v33  ;;  %v3654_v57 = vshrl.u32 %v3629_v54, 16  ;;  %v1931_v33 = vpop.f32.mrf.mxu1 }
 0x386   : > { %v3757_v9 = vrot.slane %v3754_v63, 4  ;;  %v3773_v53 = vperm.slane %v3765_v10, %v8424_v19  ;;  %v5578_v6 = vperm.slane %v5574_v13, %v8424_v19  ;;  %v5590_v14 = vrot.slane %v5589_v45, 4 }
 0x387   : > { %v3756_v5 = vsel %vm2241_vm10, 0, %v3755_v24  ;;  %v3775_v36 = vsel %vm2241_vm10, 0, %v3774_v59  ;;  %v3655_v60 = vpack.i.b16 %v3654_v57, %v3653_v51  ;;  %v3782_v46 = vperm.slane %v3652_v37, %v8416_v27 }
 0x388   : > { %v3758_v22 = vsel %vm2241_vm10, 0, %v3757_v9  ;;  %v3776_v34 = vrot.slane %v3773_v53, 4  ;;  %v5756_v29 = vsel %vm2241_vm10, %v3757_v9, %v3750_v18  ;;  %v5591_v30 = vsel %vm2241_vm10, %v5590_v14, %v5583_v47 }
 0x389   : > { %v5720_v11 = vshrl.u32 %v5578_v6, 16  ;;  %v5760_v31 = vperm.slane %v5756_v29, %v8416_v27  ;;  %v5761_v21 = vrot.slane %v3758_v22, 4  ;;  %v5595_v16 = vperm.slane %v5591_v30, %v8424_v19 }
 0x38a   : > { %v3777_v28 = vsel %vm2241_vm10, 0, %v3776_v34  ;;  %v5773_v39 = vsel %vm2241_vm10, %v3776_v34, %v3769_v52  ;;  %v3801_v25 = vperm.slane %v3655_v60, %v8416_v27  ;;  %v3783_v43 = vrot.slane %v3782_v46, 4 }
 0x38b   : > { %v5762_v42 = vsel %vm2241_vm10, %v5761_v21, %v3756_v5  ;;  %v5777_v4 = vperm.slane %v5773_v39, %v8416_v27  ;;  %v5778_v58 = vrot.slane %v3777_v28, 4  ;;  %v5718_v55 = vpack.i.b16 %v5595_v16, %v5578_v6  ;;  %v2031_v21 = vpop.f32.mrf.mxu3 }
 0x38c   : > { %v5721_v26 = vshrl.u32 %v5595_v16, 16  ;;  %v5766_v2 = vperm.slane %v5762_v42, %v8416_v27  ;;  %v3788_v51 = vperm.slane %v3782_v46, %v8424_v19  ;;  %v3802_v50 = vrot.slane %v3801_v25, 4 }
 0x38d   : > { %v5779_v54 = vsel %vm2241_vm10, %v5778_v58, %v3775_v36  ;;  %v3807_v56 = vperm.slane %v3801_v25, %v8424_v19  ;;  %5739 = vst [vmem:[%s9109_s6 + $0x3c] sm:$0xf] %v5718_v55  ;;  %v3784_v48 = vsel %vm2241_vm10, 0, %v3783_v43  ;;  %v1927_v44 = vadd.f32 %v9490_v7, %v9488_v40  ;;  %v1933_v34 = vpop.f32.mrf.mxu1 }
 0x38e   : > { %v5722_v17 = vpack.i.b16 %v5721_v26, %v5720_v11  ;;  %v5767_v1 = vrot.slane %v5766_v2, 4  ;;  %v5783_v12 = vperm.slane %v5779_v54, %v8416_v27  ;;  %v3792_v47 = vperm.slane %v3784_v48, %v8424_v19 }
 0x38f   : > { %v3793_v0 = vrot.slane %v3788_v51, 4  ;;  %v3803_v20 = vsel %vm2241_vm10, 0, %v3802_v50  ;;  %v3812_v18 = vrot.slane %v3807_v56, 4  ;;  %v2025_v13 = vadd.f32 %v9498_v8, %v9496_v62 }
 0x390   : > { %5755 = vst [vmem:[%s9109_s6 + $0x7c] sm:$0xf] %v5722_v17  ;;  %v5768_v15 = vsel %vm2241_vm10, %v5767_v1, %v5760_v31  ;;  %v5784_v52 = vrot.slane %v5783_v12, 4  ;;  %v3811_v32 = vperm.slane %v3803_v20, %v8424_v19  ;;  %v3795_v45 = vrot.slane %v3792_v47, 4  ;;  %v1982_v31 = vpop.f32.mrf.mxu2 }
 0x391   : > { %v5772_v63 = vperm.slane %v5768_v15, %v8424_v19  ;;  %v3794_v37 = vsel %vm2241_vm10, 0, %v3793_v0  ;;  %v3813_v24 = vsel %vm2241_vm10, 0, %v3812_v18  ;;  %v1929_v9 = vadd.f32 %v9523_v3, %v9521_v35  ;;  %v1884_v3 = vpop.f32.mrf.mxu0 }
 0x392   : > { %v5785_v10 = vsel %vm2241_vm10, %v5784_v52, %v5777_v4  ;;  %v3814_v59 = vrot.slane %v3811_v32, 4  ;;  %v3796_v40 = vsel %vm2241_vm10, 0, %v3795_v45  ;;  %v5790_v7 = vsel %vm2241_vm10, %v3795_v45, %v3788_v51 }
 0x393   : > { %v5789_v53 = vperm.slane %v5785_v10, %v8424_v19  ;;  %v6304_v57 = vshrl.u32 %v5772_v63, 16  ;;  %v5794_v14 = vperm.slane %v5790_v7, %v8416_v27  ;;  %v5795_v5 = vrot.slane %v3796_v40, 4 }
 0x394   : > { %v3815_v6 = vsel %vm2241_vm10, 0, %v3814_v59  ;;  %v5807_v36 = vsel %vm2241_vm10, %v3814_v59, %v3807_v56  ;;  %v3598_v60 = vpack.c.bf16 %v2025_v13, %v1927_v44  ;;  %v2027_v30 = vadd.f32 %v9530_v61, %v9528_v49 }
 0x395   : > { %v6302_v22 = vpack.i.b16 %v5789_v53, %v5772_v63  ;;  %v6305_v62 = vshrl.u32 %v5789_v53, 16  ;;  %v5811_v8 = vperm.slane %v5807_v36, %v8416_v27  ;;  %v5812_v35 = vrot.slane %v3815_v6, 4 }
 0x396   : > { %v5796_v29 = vsel %vm2241_vm10, %v5795_v5, %v3794_v37  ;;  %v1932_v11 = vadd.f32 %v1931_v33, %v1882_v38  ;;  %v2030_v46 = vadd.f32 %v2029_v23, %v1980_v41  ;;  %v3630_v4 = vrot.slane %v3598_v60, 4 }
 0x397   : > { %v6306_v16 = vpack.i.b16 %v6305_v62, %v6304_v57  ;;  %6428 = vst [vmem:[%s9590_s21] sm:$0xf] %v6302_v22  ;;  %v5800_v28 = vperm.slane %v5796_v29, %v8416_v27  ;;  %v5813_v39 = vsel %vm2241_vm10, %v5812_v35, %v3813_v24  ;;  %v3659_v58 = vshrl.u32 %v3598_v60, 16 }
 0x398   : > { %v5817_v42 = vperm.slane %v5813_v39, %v8416_v27  ;;  %v3599_v25 = vpack.c.bf16 %v2027_v30, %v1929_v9  ;;  %v9597_v61 = vpack.c.bf16 %v2030_v46, %v1932_v11  ;;  %v9599_v38 = vadd.f32 %v1933_v34, %v1884_v3 }
 0x399   : > { %6444 = vst [vmem:[%s9590_s21 + $0x40] sm:$0xf] %v6306_v16  ;;  %v5801_v49 = vrot.slane %v5800_v28, 4  ;;  %v9601_v33 = vadd.f32 %v2031_v21, %v1982_v31  ;;  %v3658_v26 = vpack.i.b16 %v3630_v4, %v3598_v60  ;;  %v3660_v2 = vshrl.u32 %v3630_v4, 16 }
 0x39a   : > { %v5818_v55 = vrot.slane %v5817_v42, 4  ;;  %v3631_v43 = vrot.slane %v3599_v25, 4  ;;  %v3665_v41 = vshrl.u32 %v3599_v25, 16  ;;  %v3632_v23 = vrot.slane %v9597_v61, 4 }
 0x39b   : > { %v5802_v54 = vsel %vm2241_vm10, %v5801_v49, %v5794_v14  ;;  %v3671_v51 = vshrl.u32 %v9597_v61, 16  ;;  %v3661_v17 = vpack.i.b16 %v3660_v2, %v3659_v58  ;;  %v3820_v1 = vperm.slane %v3658_v26, %v8416_v27 }
 0x39c   : > { %v5806_v50 = vperm.slane %v5802_v54, %v8424_v19  ;;  %v5819_v56 = vsel %vm2241_vm10, %v5818_v55, %v5811_v8  ;;  %v3664_v48 = vpack.i.b16 %v3631_v43, %v3599_v25  ;;  %v3666_v47 = vshrl.u32 %v3631_v43, 16 }
 0x39d   : > { %v5823_v12 = vperm.slane %v5819_v56, %v8424_v19  ;;  %v9611_v0 = vpack.i.b16 %v3632_v23, %v9597_v61  ;;  %v3821_v18 = vrot.slane %v3820_v1, 4  ;;  %v3826_v15 = vperm.slane %v3820_v1, %v8424_v19 }
 0x39e   : > { %v6312_v20 = vshrl.u32 %v5806_v50, 16  ;;  %v3839_v52 = vperm.slane %v3661_v17, %v8416_v27  ;;  %v3667_v63 = vpack.i.b16 %v3666_v47, %v3665_v41  ;;  %v3858_v37 = vperm.slane %v3664_v48, %v8416_v27 }
 0x39f   : > { %v6310_v32 = vpack.i.b16 %v5823_v12, %v5806_v50  ;;  %v6313_v44 = vshrl.u32 %v5823_v12, 16  ;;  %v3822_v45 = vsel %vm2241_vm10, 0, %v3821_v18  ;;  %v3831_v24 = vrot.slane %v3826_v15, 4 }
 0x3a0   : > { %v3840_v10 = vrot.slane %v3839_v52, 4  ;;  %v3845_v59 = vperm.slane %v3839_v52, %v8424_v19  ;;  %v3830_v9 = vperm.slane %v3822_v45, %v8424_v19  ;;  %v3859_v53 = vrot.slane %v3858_v37, 4 }
 0x3a1   : > { %v6314_v13 = vpack.i.b16 %v6313_v44, %v6312_v20  ;;  %6429 = vst [vmem:[%s9590_s21 + $0x4] sm:$0xf] %v6310_v32  ;;  %v3864_v57 = vperm.slane %v3858_v37, %v8424_v19  ;;  %v3832_v40 = vsel %vm2241_vm10, 0, %v3831_v24  ;;  %v3877_v14 = vperm.slane %v3667_v63, %v8416_v27 }
 0x3a2   : > { %v3841_v7 = vsel %vm2241_vm10, 0, %v3840_v10  ;;  %v3850_v6 = vrot.slane %v3845_v59, 4  ;;  %v3833_v5 = vrot.slane %v3830_v9, 4  ;;  %v3860_v22 = vsel %vm2241_vm10, 0, %v3859_v53  ;;  %v1887_v9 = vpop.f32.mrf.mxu0  ;;  %v1936_v53 = vpop.f32.mrf.mxu1 }
 0x3a3   : > { %6445 = vst [vmem:[%s9590_s21 + $0x44] sm:$0xf] %v6314_v13  ;;  %v3849_v36 = vperm.slane %v3841_v7, %v8424_v19  ;;  %v3869_v62 = vrot.slane %v3864_v57, 4  ;;  %v3868_v35 = vperm.slane %v3860_v22, %v8424_v19  ;;  %v3878_v3 = vrot.slane %v3877_v14, 4 }
 0x3a4   : > { %v3851_v8 = vsel %vm2241_vm10, 0, %v3850_v6  ;;  %v3883_v34 = vperm.slane %v3877_v14, %v8424_v19  ;;  %v3834_v29 = vsel %vm2241_vm10, 0, %v3833_v5  ;;  %v5824_v30 = vsel %vm2241_vm10, %v3833_v5, %v3826_v15 }
 0x3a5   : > { %v3852_v60 = vrot.slane %v3849_v36, 4  ;;  %v3870_v11 = vsel %vm2241_vm10, 0, %v3869_v62  ;;  %v5828_v31 = vperm.slane %v5824_v30, %v8416_v27  ;;  %v5829_v21 = vrot.slane %v3834_v29, 4 }
 0x3a6   : > { %v3871_v16 = vrot.slane %v3868_v35, 4  ;;  %v3879_v28 = vsel %vm2241_vm10, 0, %v3878_v3  ;;  %v3888_v4 = vrot.slane %v3883_v34, 4  ;;  %v3672_v17 = vshrl.u32 %v3632_v23, 16  ;;  %v2034_v35 = vpop.f32.mrf.mxu3 }
 0x3a7   : > { %v3853_v39 = vsel %vm2241_vm10, 0, %v3852_v60  ;;  %v5841_v46 = vsel %vm2241_vm10, %v3852_v60, %v3845_v59  ;;  %v3887_v42 = vperm.slane %v3879_v28, %v8424_v19  ;;  %v5830_v58 = vsel %vm2241_vm10, %v5829_v21, %v3832_v40 }
 0x3a8   : > { %v5845_v25 = vperm.slane %v5841_v46, %v8416_v27  ;;  %v5846_v49 = vrot.slane %v3853_v39, 4  ;;  %v3872_v55 = vsel %vm2241_vm10, 0, %v3871_v16  ;;  %v5834_v26 = vperm.slane %v5830_v58, %v8416_v27 }
 0x3a9   : > { %v3889_v2 = vsel %vm2241_vm10, 0, %v3888_v4  ;;  %v3890_v43 = vrot.slane %v3887_v42, 4  ;;  %v5858_v54 = vsel %vm2241_vm10, %v3871_v16, %v3864_v57  ;;  %v5863_v56 = vrot.slane %v3872_v55, 4 }
 0x3aa   : > { %v5847_v41 = vsel %vm2241_vm10, %v5846_v49, %v3851_v8  ;;  %v5862_v50 = vperm.slane %v5858_v54, %v8416_v27  ;;  %v5835_v1 = vrot.slane %v5834_v26, 4  ;;  %v3673_v52 = vpack.i.b16 %v3672_v17, %v3671_v51  ;;  %v1985_v8 = vpop.f32.mrf.mxu2 }
 0x3ab   : > { %v5851_v12 = vperm.slane %v5847_v41, %v8416_v27  ;;  %v3891_v48 = vsel %vm2241_vm10, 0, %v3890_v43  ;;  %v5875_v47 = vsel %vm2241_vm10, %v3890_v43, %v3883_v34  ;;  %v5864_v20 = vsel %vm2241_vm10, %v5863_v56, %v3870_v11 }
 0x3ac   : > { %v5879_v18 = vperm.slane %v5875_v47, %v8416_v27  ;;  %v5880_v15 = vrot.slane %v3891_v48, 4  ;;  %v5836_v32 = vsel %vm2241_vm10, %v5835_v1, %v5828_v31  ;;  %v5868_v23 = vperm.slane %v5864_v20, %v8416_v27  ;;  %v1938_v48 = vpop.f32.mrf.mxu1 }
 0x3ad   : > { %v5852_v44 = vrot.slane %v5851_v12, 4  ;;  %v3896_v63 = vperm.slane %v9611_v0, %v8416_v27  ;;  %v5840_v37 = vperm.slane %v5836_v32, %v8424_v19  ;;  %v3915_v24 = vperm.slane %v3673_v52, %v8416_v27  ;;  %v1889_v12 = vpop.f32.mrf.mxu0 }
 0x3ae   : > { %v5881_v45 = vsel %vm2241_vm10, %v5880_v15, %v3889_v2  ;;  %v3601_v10 = vpack.c.bf16 %v9601_v33, %v9599_v38  ;;  %v5869_v51 = vrot.slane %v5868_v23, 4  ;;  %v1937_v15 = vadd.f32 %v1936_v53, %v1887_v9 }
 0x3af   : > { %v5853_v61 = vsel %vm2241_vm10, %v5852_v44, %v5845_v25  ;;  %v5885_v59 = vperm.slane %v5881_v45, %v8416_v27  ;;  %v3897_v13 = vrot.slane %v3896_v63, 4  ;;  %v6320_v0 = vshrl.u32 %v5840_v37, 16 }
 0x3b0   : > { %v5857_v57 = vperm.slane %v5853_v61, %v8424_v19  ;;  %v3902_v40 = vperm.slane %v3896_v63, %v8424_v19  ;;  %v3916_v7 = vrot.slane %v3915_v24, 4  ;;  %v5870_v6 = vsel %vm2241_vm10, %v5869_v51, %v5862_v50  ;;  %v2036_v61 = vpop.f32.mrf.mxu3 }
 0x3b1   : > { %v5886_v14 = vrot.slane %v5885_v59, 4  ;;  %v3898_v38 = vsel %vm2241_vm10, 0, %v3897_v13  ;;  %v3921_v33 = vperm.slane %v3915_v24, %v8424_v19  ;;  %v5874_v22 = vperm.slane %v5870_v6, %v8424_v19 }
 0x3b2   : > { %v6318_v5 = vpack.i.b16 %v5857_v57, %v5840_v37  ;;  %v6321_v36 = vshrl.u32 %v5857_v57, 16  ;;  %v3906_v62 = vperm.slane %v3898_v38, %v8424_v19  ;;  %v3907_v34 = vrot.slane %v3902_v40, 4 }
 0x3b3   : > { %v5887_v3 = vsel %vm2241_vm10, %v5886_v14, %v5879_v18  ;;  %v3917_v29 = vsel %vm2241_vm10, 0, %v3916_v7  ;;  %v3926_v60 = vrot.slane %v3921_v33, 4  ;;  %v6328_v21 = vshrl.u32 %v5874_v22, 16 }
 0x3b4   : > { %v6322_v30 = vpack.i.b16 %v6321_v36, %v6320_v0  ;;  %6430 = vst [vmem:[%s9590_s21 + $0x8] sm:$0xf] %v6318_v5  ;;  %v5891_v11 = vperm.slane %v5887_v3, %v8424_v19  ;;  %v3909_v31 = vrot.slane %v3906_v62, 4  ;;  %v3908_v16 = vsel %vm2241_vm10, 0, %v3907_v34 }
 0x3b5   : > { %v3925_v28 = vperm.slane %v3917_v29, %v8424_v19  ;;  %v3633_v39 = vrot.slane %v3601_v10, 4  ;;  %v3927_v25 = vsel %vm2241_vm10, 0, %v3926_v60  ;;  %v3677_v54 = vshrl.u32 %v3601_v10, 16 }
 0x3b6   : > { %6446 = vst [vmem:[%s9590_s21 + $0x48] sm:$0xf] %v6322_v30  ;;  %v6326_v46 = vpack.i.b16 %v5891_v11, %v5874_v22  ;;  %v6329_v42 = vshrl.u32 %v5891_v11, 16  ;;  %v3910_v4 = vsel %vm2241_vm10, 0, %v3909_v31  ;;  %v5892_v58 = vsel %vm2241_vm10, %v3909_v31, %v3902_v40 }
 0x3b7   : > { %v3928_v49 = vrot.slane %v3925_v28, 4  ;;  %v5897_v55 = vrot.slane %v3910_v4, 4  ;;  %v3676_v26 = vpack.i.b16 %v3633_v39, %v3601_v10  ;;  %v5896_v43 = vperm.slane %v5892_v58, %v8416_v27  ;;  %v1987_v10 = vpop.f32.mrf.mxu2 }
 0x3b8   : > { %v6330_v2 = vpack.i.b16 %v6329_v42, %v6328_v21  ;;  %6431 = vst [vmem:[%s9590_s21 + $0xc] sm:$0xf] %v6326_v46  ;;  %v3678_v41 = vshrl.u32 %v3633_v39, 16  ;;  %v2035_v23 = vadd.f32 %v2034_v35, %v1985_v8  ;;  %v1939_v24 = vadd.f32 %v1938_v48, %v1889_v12 }
 0x3b9   : > { %v3929_v50 = vsel %vm2241_vm10, 0, %v3928_v49  ;;  %v5898_v56 = vsel %vm2241_vm10, %v5897_v55, %v3908_v16  ;;  %v5909_v17 = vsel %vm2241_vm10, %v3928_v49, %v3921_v33  ;;  %v3934_v1 = vperm.slane %v3676_v26, %v8416_v27  ;;  %v1892_v55 = vpop.f32.mrf.mxu0  ;;  %v1941_v26 = vpop.f32.mrf.mxu1 }
 0x3ba   : > { %6447 = vst [vmem:[%s9590_s21 + $0x4c] sm:$0xf] %v6330_v2  ;;  %v5902_v47 = vperm.slane %v5898_v56, %v8416_v27  ;;  %v5914_v20 = vrot.slane %v3929_v50, 4  ;;  %v3679_v18 = vpack.i.b16 %v3678_v41, %v3677_v54  ;;  %v5913_v52 = vperm.slane %v5909_v17, %v8416_v27 }
 0x3bb   : > { %v3935_v32 = vrot.slane %v3934_v1, 4  ;;  %v3940_v44 = vperm.slane %v3934_v1, %v8424_v19  ;;  %v3602_v9 = vpack.c.bf16 %v2035_v23, %v1937_v15  ;;  %v2037_v38 = vadd.f32 %v2036_v61, %v1987_v10  ;;  %v2039_v15 = vpop.f32.mrf.mxu3 }
 0x3bc   : > { %v5903_v63 = vrot.slane %v5902_v47, 4  ;;  %v5915_v37 = vsel %vm2241_vm10, %v5914_v20, %v3927_v25  ;;  %v3953_v45 = vperm.slane %v3679_v18, %v8416_v27 }
 0x3bd   : > { %v5919_v51 = vperm.slane %v5915_v37, %v8416_v27  ;;  %v3936_v59 = vsel %vm2241_vm10, 0, %v3935_v32  ;;  %v3945_v13 = vrot.slane %v3940_v44, 4  ;;  %v3634_v14 = vrot.slane %v3602_v9, 4 }
 0x3be   : > { %v5904_v53 = vsel %vm2241_vm10, %v5903_v63, %v5896_v43  ;;  %v3944_v57 = vperm.slane %v3936_v59, %v8424_v19  ;;  %v3954_v0 = vrot.slane %v3953_v45, 4  ;;  %v3959_v40 = vperm.slane %v3953_v45, %v8424_v19 }
 0x3bf   : > { %v5908_v7 = vperm.slane %v5904_v53, %v8424_v19  ;;  %v5920_v6 = vrot.slane %v5919_v51, 4  ;;  %v3946_v33 = vsel %vm2241_vm10, 0, %v3945_v13  ;;  %v3682_v35 = vpack.i.b16 %v3634_v14, %v3602_v9  ;;  %v1990_v18 = vpop.f32.mrf.mxu2 }
 0x3c0   : > { %v3947_v5 = vrot.slane %v3944_v57, 4  ;;  %v3955_v36 = vsel %vm2241_vm10, 0, %v3954_v0  ;;  %v3964_v22 = vrot.slane %v3959_v40, 4  ;;  %v3683_v3 = vshrl.u32 %v3602_v9, 16 }
 0x3c1   : > { %v5921_v62 = vsel %vm2241_vm10, %v5920_v6, %v5913_v52  ;;  %v3963_v8 = vperm.slane %v3955_v36, %v8424_v19  ;;  %v6336_v29 = vshrl.u32 %v5908_v7, 16  ;;  %v3684_v16 = vshrl.u32 %v3634_v14, 16 }
 0x3c2   : > { %v5925_v34 = vperm.slane %v5921_v62, %v8424_v19  ;;  %v3948_v60 = vsel %vm2241_vm10, 0, %v3947_v5  ;;  %v3965_v30 = vsel %vm2241_vm10, 0, %v3964_v22  ;;  %v5926_v31 = vsel %vm2241_vm10, %v3947_v5, %v3940_v44 }
 0x3c3   : > { %v3966_v11 = vrot.slane %v3963_v8, 4  ;;  %v5931_v21 = vrot.slane %v3948_v60, 4  ;;  %v3972_v46 = vperm.slane %v3682_v35, %v8416_v27  ;;  %v3603_v42 = vpack.c.bf16 %v2037_v38, %v1939_v24  ;;  %v1894_v35 = vpop.f32.mrf.mxu0 }
 0x3c4   : > { %v6334_v28 = vpack.i.b16 %v5925_v34, %v5908_v7  ;;  %v6337_v39 = vshrl.u32 %v5925_v34, 16  ;;  %v3685_v49 = vpack.i.b16 %v3684_v16, %v3683_v3  ;;  %v5930_v43 = vperm.slane %v5926_v31, %v8416_v27  ;;  %v1943_v3 = vpop.f32.mrf.mxu1 }
 0x3c5   : > { %v3967_v4 = vsel %vm2241_vm10, 0, %v3966_v11  ;;  %v5932_v58 = vsel %vm2241_vm10, %v5931_v21, %v3946_v33  ;;  %v5943_v25 = vsel %vm2241_vm10, %v3966_v11, %v3959_v40  ;;  %v3973_v50 = vrot.slane %v3972_v46, 4 }
 0x3c6   : > { %v6338_v2 = vpack.i.b16 %v6337_v39, %v6336_v29  ;;  %6432 = vst [vmem:[%s9590_s21 + $0x10] sm:$0xf] %v6334_v28  ;;  %v5936_v54 = vperm.slane %v5932_v58, %v8416_v27  ;;  %v5948_v41 = vrot.slane %v3967_v4, 4  ;;  %v3978_v56 = vperm.slane %v3972_v46, %v8424_v19  ;;  %v2041_v58 = vpop.f32.mrf.mxu3 }
 0x3c7   : > { %v3991_v17 = vperm.slane %v3685_v49, %v8416_v27  ;;  %v3635_v1 = vrot.slane %v3603_v42, 4  ;;  %v5947_v48 = vperm.slane %v5943_v25, %v8416_v27  ;;  %v3689_v20 = vshrl.u32 %v3603_v42, 16  ;;  %v1992_v4 = vpop.f32.mrf.mxu2 }
 0x3c8   : > { %6448 = vst [vmem:[%s9590_s21 + $0x50] sm:$0xf] %v6338_v2  ;;  %v5937_v12 = vrot.slane %v5936_v54, 4  ;;  %v5949_v47 = vsel %vm2241_vm10, %v5948_v41, %v3965_v30  ;;  %v3974_v32 = vsel %vm2241_vm10, 0, %v3973_v50  ;;  %v3983_v44 = vrot.slane %v3978_v56, 4 }
 0x3c9   : > { %v5953_v52 = vperm.slane %v5949_v47, %v8416_v27  ;;  %v3992_v23 = vrot.slane %v3991_v17, 4  ;;  %v3982_v37 = vperm.slane %v3974_v32, %v8424_v19  ;;  %v3997_v45 = vperm.slane %v3991_v17, %v8424_v19 }
 0x3ca   : > { %v5938_v63 = vsel %vm2241_vm10, %v5937_v12, %v5930_v43  ;;  %v3688_v24 = vpack.i.b16 %v3635_v1, %v3603_v42  ;;  %v1942_v59 = vadd.f32 %v1941_v26, %v1892_v55  ;;  %v3690_v57 = vshrl.u32 %v3635_v1, 16 }
 0x3cb   : > { %v5942_v10 = vperm.slane %v5938_v63, %v8424_v19  ;;  %v5954_v61 = vrot.slane %v5953_v52, 4  ;;  %v3993_v51 = vsel %vm2241_vm10, 0, %v3992_v23  ;;  %v3985_v13 = vrot.slane %v3982_v37, 4 }
 0x3cc   : > { %v4001_v9 = vperm.slane %v3993_v51, %v8424_v19  ;;  %v4002_v53 = vrot.slane %v3997_v45, 4  ;;  %v3984_v7 = vsel %vm2241_vm10, 0, %v3983_v44  ;;  %v4010_v6 = vperm.slane %v3688_v24, %v8416_v27  ;;  %v1897_v51 = vpop.f32.mrf.mxu0 }
 0x3cd   : > { %v5955_v0 = vsel %vm2241_vm10, %v5954_v61, %v5947_v48  ;;  %v6344_v40 = vshrl.u32 %v5942_v10, 16  ;;  %v3986_v38 = vsel %vm2241_vm10, 0, %v3985_v13  ;;  %v2040_v5 = vadd.f32 %v2039_v15, %v1990_v18 }
 0x3ce   : > { %v5959_v14 = vperm.slane %v5955_v0, %v8424_v19  ;;  %v4004_v33 = vrot.slane %v4001_v9, 4  ;;  %v5960_v36 = vsel %vm2241_vm10, %v3985_v13, %v3978_v56  ;;  %v5965_v22 = vrot.slane %v3986_v38, 4 }
 0x3cf   : > { %v3691_v62 = vpack.i.b16 %v3690_v57, %v3689_v20  ;;  %v4011_v8 = vrot.slane %v4010_v6, 4  ;;  %v4003_v60 = vsel %vm2241_vm10, 0, %v4002_v53  ;;  %v5964_v39 = vperm.slane %v5960_v36, %v8416_v27  ;;  %v1995_v36 = vpop.f32.mrf.mxu2 }
 0x3d0   : > { %v6342_v34 = vpack.i.b16 %v5959_v14, %v5942_v10  ;;  %v6345_v29 = vshrl.u32 %v5959_v14, 16  ;;  %v4005_v30 = vsel %vm2241_vm10, 0, %v4004_v33  ;;  %v5966_v11 = vsel %vm2241_vm10, %v5965_v22, %v3984_v7  ;;  %v2044_v22 = vpop.f32.mrf.mxu3 }
 0x3d1   : > { %v5977_v31 = vsel %vm2241_vm10, %v4004_v33, %v3997_v45  ;;  %v5982_v21 = vrot.slane %v4005_v30, 4  ;;  %v4012_v16 = vsel %vm2241_vm10, 0, %v4011_v8  ;;  %v5970_v46 = vperm.slane %v5966_v11, %v8416_v27 }
 0x3d2   : > { %v6346_v28 = vpack.i.b16 %v6345_v29, %v6344_v40  ;;  %6433 = vst [vmem:[%s9590_s21 + $0x14] sm:$0xf] %v6342_v34  ;;  %v4016_v42 = vperm.slane %v4010_v6, %v8424_v19  ;;  %v4020_v49 = vperm.slane %v4012_v16, %v8424_v19  ;;  %v4029_v55 = vperm.slane %v3691_v62, %v8416_v27 }
 0x3d3   : > { %v5983_v25 = vsel %vm2241_vm10, %v5982_v21, %v4003_v60  ;;  %v3604_v26 = vpack.c.bf16 %v2040_v5, %v1942_v59  ;;  %v5971_v2 = vrot.slane %v5970_v46, 4  ;;  %v5981_v43 = vperm.slane %v5977_v31, %v8416_v27  ;;  %v1946_v59 = vpop.f32.mrf.mxu1 }
 0x3d4   : > { %6449 = vst [vmem:[%s9590_s21 + $0x54] sm:$0xf] %v6346_v28  ;;  %v5987_v54 = vperm.slane %v5983_v25, %v8416_v27  ;;  %v4021_v41 = vrot.slane %v4016_v42, 4  ;;  %v4023_v50 = vrot.slane %v4020_v49, 4  ;;  %v4030_v56 = vrot.slane %v4029_v55, 4 }
 0x3d5   : > { %v4035_v17 = vperm.slane %v4029_v55, %v8424_v19  ;;  %v1944_v1 = vadd.f32 %v1943_v3, %v1894_v35  ;;  %v5972_v12 = vsel %vm2241_vm10, %v5971_v2, %v5964_v39  ;;  %v3636_v20 = vrot.slane %v3604_v26, 4 }
 0x3d6   : > { %v5988_v48 = vrot.slane %v5987_v54, 4  ;;  %v4022_v47 = vsel %vm2241_vm10, 0, %v4021_v41  ;;  %v5976_v18 = vperm.slane %v5972_v12, %v8424_v19  ;;  %v4024_v15 = vsel %vm2241_vm10, 0, %v4023_v50 }
 0x3d7   : > { %v4031_v52 = vsel %vm2241_vm10, 0, %v4030_v56  ;;  %v4040_v32 = vrot.slane %v4035_v17, 4  ;;  %v5999_v63 = vrot.slane %v4024_v15, 4  ;;  %v3695_v37 = vshrl.u32 %v3604_v26, 16 }
 0x3d8   : > { %v5989_v44 = vsel %vm2241_vm10, %v5988_v48, %v5981_v43  ;;  %v4039_v23 = vperm.slane %v4031_v52, %v8424_v19  ;;  %v6352_v24 = vshrl.u32 %v5976_v18, 16  ;;  %v5994_v61 = vsel %vm2241_vm10, %v4023_v50, %v4016_v42 }
 0x3d9   : > { %v5993_v45 = vperm.slane %v5989_v44, %v8424_v19  ;;  %v4041_v10 = vsel %vm2241_vm10, 0, %v4040_v32  ;;  %v6000_v9 = vsel %vm2241_vm10, %v5999_v63, %v4022_v47  ;;  %v3694_v53 = vpack.i.b16 %v3636_v20, %v3604_v26 }
 0x3da   : > { %v4042_v13 = vrot.slane %v4039_v23, 4  ;;  %v3696_v57 = vshrl.u32 %v3636_v20, 16  ;;  %v6004_v7 = vperm.slane %v6000_v9, %v8416_v27  ;;  %v2042_v6 = vadd.f32 %v2041_v58, %v1992_v4 }
 0x3db   : > { %v6350_v0 = vpack.i.b16 %v5993_v45, %v5976_v18  ;;  %v6353_v40 = vshrl.u32 %v5993_v45, 16  ;;  %v4048_v5 = vperm.slane %v3694_v53, %v8416_v27  ;;  %v5998_v8 = vperm.slane %v5994_v61, %v8416_v27 }
 0x3dc   : > { %v4043_v14 = vsel %vm2241_vm10, 0, %v4042_v13  ;;  %v6011_v38 = vsel %vm2241_vm10, %v4042_v13, %v4035_v17  ;;  %v3697_v33 = vpack.i.b16 %v3696_v57, %v3695_v37  ;;  %v6005_v35 = vrot.slane %v6004_v7, 4  ;;  %v9779_v17 = vpop.f32.mrf.mxu0  ;;  %v9798_v7 = vpop.f32.mrf.mxu2 }
 0x3dd   : > { %v6354_v62 = vpack.i.b16 %v6353_v40, %v6352_v24  ;;  %6434 = vst [vmem:[%s9590_s21 + $0x18] sm:$0xf] %v6350_v0  ;;  %v6016_v3 = vrot.slane %v4043_v14, 4  ;;  %v4049_v34 = vrot.slane %v4048_v5, 4  ;;  %v4054_v29 = vperm.slane %v4048_v5, %v8424_v19 }
 0x3de   : > { %v4067_v60 = vperm.slane %v3697_v33, %v8416_v27  ;;  %v3605_v30 = vpack.c.bf16 %v2042_v6, %v1944_v1  ;;  %v6006_v11 = vsel %vm2241_vm10, %v6005_v35, %v5998_v8  ;;  %v6015_v31 = vperm.slane %v6011_v38, %v8416_v27  ;;  %v9781_v1 = vpop.f32.mrf.mxu1  ;;  %v9800_v6 = vpop.f32.mrf.mxu3 }
 0x3df   : > { %6450 = vst [vmem:[%s9590_s21 + $0x58] sm:$0xf] %v6354_v62  ;;  %v6017_v21 = vsel %vm2241_vm10, %v6016_v3, %v4041_v10  ;;  %v2045_v16 = vadd.f32 %v2044_v22, %v1995_v36  ;;  %v6010_v28 = vperm.slane %v6006_v11, %v8424_v19  ;;  %v4050_v46 = vsel %vm2241_vm10, 0, %v4049_v34 }
 0x3e0   : > { %v6021_v39 = vperm.slane %v6017_v21, %v8416_v27  ;;  %v4059_v42 = vrot.slane %v4054_v29, 4  ;;  %v4058_v4 = vperm.slane %v4050_v46, %v8424_v19  ;;  %v4068_v58 = vrot.slane %v4067_v60, 4 }
 0x3e1   : > { %v4073_v25 = vperm.slane %v4067_v60, %v8424_v19  ;;  %v3637_v49 = vrot.slane %v3605_v30, 4  ;;  %v6360_v26 = vshrl.u32 %v6010_v28, 16  ;;  %v3701_v2 = vshrl.u32 %v3605_v30, 16 }
 0x3e2   : > { %v6022_v55 = vrot.slane %v6021_v39, 4  ;;  %v1947_v43 = vadd.f32 %v1946_v59, %v1897_v51  ;;  %v4061_v54 = vrot.slane %v4058_v4, 4  ;;  %v4069_v41 = vsel %vm2241_vm10, 0, %v4068_v58 }
 0x3e3   : > { %v4078_v50 = vrot.slane %v4073_v25, 4  ;;  %v3700_v56 = vpack.i.b16 %v3637_v49, %v3605_v30  ;;  %v4077_v48 = vperm.slane %v4069_v41, %v8424_v19  ;;  %v3702_v47 = vshrl.u32 %v3637_v49, 16 }
 0x3e4   : > { %v6023_v12 = vsel %vm2241_vm10, %v6022_v55, %v6015_v31  ;;  %v3606_v20 = vpack.c.bf16 %v2045_v16, %v1947_v43  ;;  %v4060_v15 = vsel %vm2241_vm10, 0, %v4059_v42  ;;  %v4062_v52 = vsel %vm2241_vm10, 0, %v4061_v54  ;;  %v1902_v21 = vpop.f32.mrf.mxu0 }
 0x3e5   : > { %v6027_v18 = vperm.slane %v6023_v12, %v8424_v19  ;;  %v4079_v32 = vsel %vm2241_vm10, 0, %v4078_v50  ;;  %v4080_v44 = vrot.slane %v4077_v48, 4  ;;  %v6028_v23 = vsel %vm2241_vm10, %v4061_v54, %v4054_v29 }
 0x3e6   : > { %v6033_v63 = vrot.slane %v4062_v52, 4  ;;  %v3703_v37 = vpack.i.b16 %v3702_v47, %v3701_v2  ;;  %v4086_v10 = vperm.slane %v3700_v56, %v8416_v27  ;;  %v3638_v61 = vrot.slane %v3606_v20, 4  ;;  %v1951_v16 = vpop.f32.mrf.mxu1 }
 0x3e7   : > { %v6358_v45 = vpack.i.b16 %v6027_v18, %v6010_v28  ;;  %v6361_v24 = vshrl.u32 %v6027_v18, 16  ;;  %v4081_v51 = vsel %vm2241_vm10, 0, %v4080_v44  ;;  %v6045_v13 = vsel %vm2241_vm10, %v4080_v44, %v4073_v25  ;;  %v2000_v44 = vpop.f32.mrf.mxu2 }
 0x3e8   : > { %v6034_v59 = vsel %vm2241_vm10, %v6033_v63, %v4060_v15  ;;  %v4105_v9 = vperm.slane %v3703_v37, %v8416_v27  ;;  %v6032_v57 = vperm.slane %v6028_v23, %v8416_v27  ;;  %v6050_v40 = vrot.slane %v4081_v51, 4  ;;  %v2049_v23 = vpop.f32.mrf.mxu3 }
 0x3e9   : > { %v6362_v53 = vpack.i.b16 %v6361_v24, %v6360_v26  ;;  %6435 = vst [vmem:[%s9590_s21 + $0x1c] sm:$0xf] %v6358_v45  ;;  %v6038_v0 = vperm.slane %v6034_v59, %v8416_v27  ;;  %v4087_v14 = vrot.slane %v4086_v10, 4  ;;  %v4092_v38 = vperm.slane %v4086_v10, %v8424_v19 }
 0x3ea   : > { %v4106_v33 = vrot.slane %v4105_v9, 4  ;;  %v4111_v5 = vperm.slane %v4105_v9, %v8424_v19  ;;  %v6049_v22 = vperm.slane %v6045_v13, %v8416_v27  ;;  %v6051_v62 = vsel %vm2241_vm10, %v6050_v40, %v4079_v32 }
 0x3eb   : > { %6451 = vst [vmem:[%s9590_s21 + $0x5c] sm:$0xf] %v6362_v53  ;;  %v6039_v36 = vrot.slane %v6038_v0, 4  ;;  %v3706_v8 = vpack.i.b16 %v3638_v61, %v3606_v20  ;;  %v6055_v35 = vperm.slane %v6051_v62, %v8416_v27  ;;  %v4088_v3 = vsel %vm2241_vm10, 0, %v4087_v14 }
 0x3ec   : > { %v4097_v34 = vrot.slane %v4092_v38, 4  ;;  %v4107_v29 = vsel %vm2241_vm10, 0, %v4106_v33  ;;  %v4096_v30 = vperm.slane %v4088_v3, %v8424_v19  ;;  %v4116_v31 = vrot.slane %v4111_v5, 4  ;;  %v1904_v14 = vpop.f32.mrf.mxu0 }
 0x3ed   : > { %v6040_v60 = vsel %vm2241_vm10, %v6039_v36, %v6032_v57  ;;  %v4115_v11 = vperm.slane %v4107_v29, %v8424_v19  ;;  %v6056_v39 = vrot.slane %v6055_v35, 4  ;;  %v3707_v46 = vshrl.u32 %v3606_v20, 16 }
 0x3ee   : > { %v6044_v28 = vperm.slane %v6040_v60, %v8424_v19  ;;  %v3708_v42 = vshrl.u32 %v3638_v61, 16  ;;  %v4098_v4 = vsel %vm2241_vm10, 0, %v4097_v34  ;;  %v4099_v58 = vrot.slane %v4096_v30, 4 }
 0x3ef   : > { %v4118_v25 = vrot.slane %v4115_v11, 4  ;;  %v4124_v49 = vperm.slane %v3706_v8, %v8416_v27  ;;  %v6057_v55 = vsel %vm2241_vm10, %v6056_v39, %v6049_v22  ;;  %v4117_v2 = vsel %vm2241_vm10, 0, %v4116_v31 }
 0x3f0   : > { %v6368_v26 = vshrl.u32 %v6044_v28, 16  ;;  %v3709_v43 = vpack.i.b16 %v3708_v42, %v3707_v46  ;;  %v6061_v54 = vperm.slane %v6057_v55, %v8424_v19  ;;  %v4100_v41 = vsel %vm2241_vm10, 0, %v4099_v58 }
 0x3f1   : > { %v4119_v50 = vsel %vm2241_vm10, 0, %v4118_v25  ;;  %v6062_v56 = vsel %vm2241_vm10, %v4099_v58, %v4092_v38  ;;  %v6067_v48 = vrot.slane %v4100_v41, 4  ;;  %v1949_v20 = vadd.f32 %v9781_v1, %v9779_v17  ;;  %v1953_v38 = vpop.f32.mrf.mxu1 }
 0x3f2   : > { %v6066_v12 = vperm.slane %v6062_v56, %v8416_v27  ;;  %v6084_v47 = vrot.slane %v4119_v50, 4  ;;  %v6366_v18 = vpack.i.b16 %v6061_v54, %v6044_v28  ;;  %v6369_v15 = vshrl.u32 %v6061_v54, 16 }
 0x3f3   : > { %v6079_v52 = vsel %vm2241_vm10, %v4118_v25, %v4111_v5  ;;  %v4125_v32 = vrot.slane %v4124_v49, 4  ;;  %v6068_v63 = vsel %vm2241_vm10, %v6067_v48, %v4098_v4  ;;  %v4130_v45 = vperm.slane %v4124_v49, %v8424_v19  ;;  %v2002_v25 = vpop.f32.mrf.mxu2  ;;  %v2051_v49 = vpop.f32.mrf.mxu3 }
 0x3f4   : > { %v6085_v37 = vsel %vm2241_vm10, %v6084_v47, %v4117_v2  ;;  %v4143_v24 = vperm.slane %v3709_v43, %v8416_v27  ;;  %v6370_v10 = vpack.i.b16 %v6369_v15, %v6368_v26  ;;  %6436 = vst [vmem:[%s9590_s21 + $0x20] sm:$0xf] %v6366_v18  ;;  %v6072_v17 = vperm.slane %v6068_v63, %v8416_v27  ;;  %v1907_v63 = vpop.f32.mrf.mxu0 }
 0x3f5   : > { %v6089_v1 = vperm.slane %v6085_v37, %v8416_v27  ;;  %v4126_v61 = vsel %vm2241_vm10, 0, %v4125_v32  ;;  %v4135_v59 = vrot.slane %v4130_v45, 4  ;;  %v6083_v57 = vperm.slane %v6079_v52, %v8416_v27 }
 0x3f6   : > { %v4134_v51 = vperm.slane %v4126_v61, %v8424_v19  ;;  %v4144_v13 = vrot.slane %v4143_v24, 4  ;;  %v4149_v9 = vperm.slane %v4143_v24, %v8424_v19  ;;  %6452 = vst [vmem:[%s9590_s21 + $0x60] sm:$0xf] %v6370_v10  ;;  %v6073_v53 = vrot.slane %v6072_v17, 4 }
 0x3f7   : > { %v6090_v0 = vrot.slane %v6089_v1, 4  ;;  %v2047_v40 = vadd.f32 %v9800_v6, %v9798_v7  ;;  %v1952_v22 = vadd.f32 %v1951_v16, %v1902_v21  ;;  %v4136_v7 = vsel %vm2241_vm10, 0, %v4135_v59 }
 0x3f8   : > { %v4137_v33 = vrot.slane %v4134_v51, 4  ;;  %v4145_v5 = vsel %vm2241_vm10, 0, %v4144_v13  ;;  %v4154_v36 = vrot.slane %v4149_v9, 4  ;;  %v6074_v62 = vsel %vm2241_vm10, %v6073_v53, %v6066_v12 }
 0x3f9   : > { %v6091_v8 = vsel %vm2241_vm10, %v6090_v0, %v6083_v57  ;;  %v4153_v35 = vperm.slane %v4145_v5, %v8424_v19  ;;  %v3607_v3 = vpack.c.bf16 %v2047_v40, %v1949_v20  ;;  %v6078_v34 = vperm.slane %v6074_v62, %v8424_v19  ;;  %v1956_v37 = vpop.f32.mrf.mxu1 }
 0x3fa   : > { %v6095_v29 = vperm.slane %v6091_v8, %v8424_v19  ;;  %v4138_v6 = vsel %vm2241_vm10, 0, %v4137_v33  ;;  %v6096_v30 = vsel %vm2241_vm10, %v4137_v33, %v4130_v45  ;;  %v4155_v39 = vsel %vm2241_vm10, 0, %v4154_v36 }
 0x3fb   : > { %v4156_v60 = vrot.slane %v4153_v35, 4  ;;  %v6101_v11 = vrot.slane %v4138_v6, 4  ;;  %v3639_v31 = vrot.slane %v3607_v3, 4  ;;  %v6376_v16 = vshrl.u32 %v6078_v34, 16 }
 0x3fc   : > { %v6374_v21 = vpack.i.b16 %v6095_v29, %v6078_v34  ;;  %v6377_v28 = vshrl.u32 %v6095_v29, 16  ;;  %v6100_v42 = vperm.slane %v6096_v30, %v8416_v27  ;;  %v3713_v54 = vshrl.u32 %v3607_v3, 16 }
 0x3fd   : > { %v4157_v46 = vsel %vm2241_vm10, 0, %v4156_v60  ;;  %v6102_v4 = vsel %vm2241_vm10, %v6101_v11, %v4136_v7  ;;  %v3712_v58 = vpack.i.b16 %v3639_v31, %v3607_v3  ;;  %v6113_v2 = vsel %vm2241_vm10, %v4156_v60, %v4149_v9 }
 0x3fe   : > { %v6378_v55 = vpack.i.b16 %v6377_v28, %v6376_v16  ;;  %6437 = vst [vmem:[%s9590_s21 + $0x24] sm:$0xf] %v6374_v21  ;;  %v6106_v26 = vperm.slane %v6102_v4, %v8416_v27  ;;  %v6118_v43 = vrot.slane %v4157_v46, 4  ;;  %v3714_v41 = vshrl.u32 %v3639_v31, 16 }
 0x3ff   : > { %v4162_v50 = vperm.slane %v3712_v58, %v8416_v27  ;;  %v2050_v56 = vadd.f32 %v2049_v23, %v2000_v44  ;;  %v1954_v47 = vadd.f32 %v1953_v38, %v1904_v14  ;;  %v2052_v20 = vadd.f32 %v2051_v49, %v2002_v25 }
 0x400   : > { %6453 = vst [vmem:[%s9590_s21 + $0x64] sm:$0xf] %v6378_v55  ;;  %v6107_v12 = vrot.slane %v6106_v26, 4  ;;  %v6119_v48 = vsel %vm2241_vm10, %v6118_v43, %v4155_v39  ;;  %v3715_v15 = vpack.i.b16 %v3714_v41, %v3713_v54  ;;  %v6117_v24 = vperm.slane %v6113_v2, %v8416_v27 }
 0x401   : > { %v6123_v18 = vperm.slane %v6119_v48, %v8416_v27  ;;  %v4163_v52 = vrot.slane %v4162_v50, 4  ;;  %v4168_v32 = vperm.slane %v4162_v50, %v8424_v19  ;;  %v3608_v10 = vpack.c.bf16 %v2050_v56, %v1952_v22 }
 0x402   : > { %v6108_v45 = vsel %vm2241_vm10, %v6107_v12, %v6100_v42  ;;  %v3609_v44 = vpack.c.bf16 %v2052_v20, %v1954_v47  ;;  %v4181_v59 = vperm.slane %v3715_v15, %v8416_v27  ;;  %v9867_v9 = vadd.f32 %v1956_v37, %v1907_v63 }
 0x403   : > { %v6112_v23 = vperm.slane %v6108_v45, %v8424_v19  ;;  %v6124_v17 = vrot.slane %v6123_v18, 4  ;;  %v4164_v1 = vsel %vm2241_vm10, 0, %v4163_v52  ;;  %v4173_v61 = vrot.slane %v4168_v32, 4 }
 0x404   : > { %v4172_v51 = vperm.slane %v4164_v1, %v8424_v19  ;;  %v3640_v13 = vrot.slane %v3608_v10, 4  ;;  %v3719_v0 = vshrl.u32 %v3608_v10, 16  ;;  %v3641_v40 = vrot.slane %v3609_v44, 4 }
 0x405   : > { %v6125_v53 = vsel %vm2241_vm10, %v6124_v17, %v6117_v24  ;;  %v6384_v57 = vshrl.u32 %v6112_v23, 16  ;;  %v4182_v33 = vrot.slane %v4181_v59, 4  ;;  %v4187_v5 = vperm.slane %v4181_v59, %v8424_v19 }
 0x406   : > { %v6129_v14 = vperm.slane %v6125_v53, %v8424_v19  ;;  %v4175_v38 = vrot.slane %v4172_v51, 4  ;;  %v4174_v36 = vsel %vm2241_vm10, 0, %v4173_v61  ;;  %v3718_v22 = vpack.i.b16 %v3640_v13, %v3608_v10  ;;  %v2005_v10 = vpop.f32.mrf.mxu2 }
 0x407   : > { %v3720_v62 = vshrl.u32 %v3640_v13, 16  ;;  %v3724_v8 = vpack.i.b16 %v3641_v40, %v3609_v44  ;;  %v4183_v29 = vsel %vm2241_vm10, 0, %v4182_v33  ;;  %v4192_v6 = vrot.slane %v4187_v5, 4 }
 0x408   : > { %v6382_v35 = vpack.i.b16 %v6129_v14, %v6112_v23  ;;  %v6385_v3 = vshrl.u32 %v6129_v14, 16  ;;  %v4176_v34 = vsel %vm2241_vm10, 0, %v4175_v38  ;;  %v4191_v7 = vperm.slane %v4183_v29, %v8424_v19 }
 0x409   : > { %v6130_v60 = vsel %vm2241_vm10, %v4175_v38, %v4168_v32  ;;  %v6135_v30 = vrot.slane %v4176_v34, 4  ;;  %v3721_v31 = vpack.i.b16 %v3720_v62, %v3719_v0  ;;  %v4200_v21 = vperm.slane %v3718_v22, %v8416_v27 }
 0x40a   : > { %v6386_v11 = vpack.i.b16 %v6385_v3, %v6384_v57  ;;  %6438 = vst [vmem:[%s9590_s21 + $0x28] sm:$0xf] %v6382_v35  ;;  %v3725_v16 = vshrl.u32 %v3609_v44, 16  ;;  %v4194_v28 = vrot.slane %v4191_v7, 4  ;;  %v6134_v39 = vperm.slane %v6130_v60, %v8416_v27  ;;  %v2054_v44 = vpop.f32.mrf.mxu3 }
 0x40b   : > { %v6136_v46 = vsel %vm2241_vm10, %v6135_v30, %v4174_v36  ;;  %v3726_v42 = vshrl.u32 %v3641_v40, 16  ;;  %v4201_v58 = vrot.slane %v4200_v21, 4  ;;  %v4206_v25 = vperm.slane %v4200_v21, %v8424_v19 }
 0x40c   : > { %6454 = vst [vmem:[%s9590_s21 + $0x68] sm:$0xf] %v6386_v11  ;;  %v6140_v4 = vperm.slane %v6136_v46, %v8416_v27  ;;  %v4219_v49 = vperm.slane %v3721_v31, %v8416_v27  ;;  %v4193_v55 = vsel %vm2241_vm10, 0, %v4192_v6  ;;  %v4195_v26 = vsel %vm2241_vm10, 0, %v4194_v28 }
 0x40d   : > { %v6147_v2 = vsel %vm2241_vm10, %v4194_v28, %v4187_v5  ;;  %v4238_v43 = vperm.slane %v3724_v8, %v8416_v27  ;;  %v6152_v41 = vrot.slane %v4195_v26, 4  ;;  %v4202_v50 = vsel %vm2241_vm10, 0, %v4201_v58  ;;  %v1909_v58 = vpop.f32.mrf.mxu0 }
 0x40e   : > { %v6141_v54 = vrot.slane %v6140_v4, 4  ;;  %v3727_v56 = vpack.i.b16 %v3726_v42, %v3725_v16  ;;  %v4210_v12 = vperm.slane %v4202_v50, %v8424_v19  ;;  %v4211_v48 = vrot.slane %v4206_v25, 4 }
 0x40f   : > { %v4220_v47 = vrot.slane %v4219_v49, 4  ;;  %v4225_v20 = vperm.slane %v4219_v49, %v8424_v19  ;;  %v6153_v15 = vsel %vm2241_vm10, %v6152_v41, %v4193_v55  ;;  %v4239_v52 = vrot.slane %v4238_v43, 4 }
 0x410   : > { %v6142_v18 = vsel %vm2241_vm10, %v6141_v54, %v6134_v39  ;;  %v4244_v32 = vperm.slane %v4238_v43, %v8424_v19  ;;  %v6151_v37 = vperm.slane %v6147_v2, %v8416_v27  ;;  %v6157_v45 = vperm.slane %v6153_v15, %v8416_v27  ;;  %v2007_v43 = vpop.f32.mrf.mxu2 }
 0x411   : > { %v6146_v63 = vperm.slane %v6142_v18, %v8424_v19  ;;  %v4213_v24 = vrot.slane %v4210_v12, 4  ;;  %v4212_v23 = vsel %vm2241_vm10, 0, %v4211_v48  ;;  %v4221_v17 = vsel %vm2241_vm10, 0, %v4220_v47 }
 0x412   : > { %v4230_v1 = vrot.slane %v4225_v20, 4  ;;  %v4240_v61 = vsel %vm2241_vm10, 0, %v4239_v52  ;;  %v6158_v51 = vrot.slane %v6157_v45, 4  ;;  %v4229_v13 = vperm.slane %v4221_v17, %v8424_v19  ;;  %v2056_v54 = vpop.f32.mrf.mxu3 }
 0x413   : > { %v4214_v59 = vsel %vm2241_vm10, 0, %v4213_v24  ;;  %v4249_v53 = vrot.slane %v4244_v32, 4  ;;  %v6392_v57 = vshrl.u32 %v6146_v63, 16  ;;  %v6164_v0 = vsel %vm2241_vm10, %v4213_v24, %v4206_v25  ;;  %v1958_v25 = vpop.f32.mrf.mxu1 }
 0x414   : > { %v6169_v40 = vrot.slane %v4214_v59, 4  ;;  %v4248_v14 = vperm.slane %v4240_v61, %v8424_v19  ;;  %v6159_v38 = vsel %vm2241_vm10, %v6158_v51, %v6151_v37  ;;  %v4231_v33 = vsel %vm2241_vm10, 0, %v4230_v1 }
 0x415   : > { %v4232_v5 = vrot.slane %v4229_v13, 4  ;;  %v6168_v36 = vperm.slane %v6164_v0, %v8416_v27  ;;  %v6163_v22 = vperm.slane %v6159_v38, %v8424_v19  ;;  %v4257_v35 = vperm.slane %v3727_v56, %v8416_v27 }
 0x416   : > { %v6170_v62 = vsel %vm2241_vm10, %v6169_v40, %v4212_v23  ;;  %v4251_v8 = vrot.slane %v4248_v14, 4  ;;  %v4250_v7 = vsel %vm2241_vm10, 0, %v4249_v53  ;;  %v2055_v11 = vadd.f32 %v2054_v44, %v2005_v10 }
 0x417   : > { %v4233_v3 = vsel %vm2241_vm10, 0, %v4232_v5  ;;  %v6174_v34 = vperm.slane %v6170_v62, %v8416_v27  ;;  %v6181_v29 = vsel %vm2241_vm10, %v4232_v5, %v4225_v20  ;;  %v6390_v6 = vpack.i.b16 %v6163_v22, %v6146_v63 }
 0x418   : > { %v6393_v60 = vshrl.u32 %v6163_v22, 16  ;;  %v6186_v30 = vrot.slane %v4233_v3, 4  ;;  %v4252_v21 = vsel %vm2241_vm10, 0, %v4251_v8  ;;  %v4258_v16 = vrot.slane %v4257_v35, 4 }
 0x419   : > { %v6175_v31 = vrot.slane %v6174_v34, 4  ;;  %v4263_v28 = vperm.slane %v4257_v35, %v8424_v19  ;;  %6439 = vst [vmem:[%s9590_s21 + $0x2c] sm:$0xf] %v6390_v6  ;;  %v6198_v42 = vsel %vm2241_vm10, %v4251_v8, %v4244_v32  ;;  %v6203_v4 = vrot.slane %v4252_v21, 4 }
 0x41a   : > { %v6394_v39 = vpack.i.b16 %v6393_v60, %v6392_v57  ;;  %v6187_v46 = vsel %vm2241_vm10, %v6186_v30, %v4231_v33  ;;  %v4259_v26 = vsel %vm2241_vm10, 0, %v4258_v16  ;;  %v6185_v12 = vperm.slane %v6181_v29, %v8416_v27 }
 0x41b   : > { %v6176_v49 = vsel %vm2241_vm10, %v6175_v31, %v6168_v36  ;;  %v6191_v55 = vperm.slane %v6187_v46, %v8416_v27  ;;  %v4268_v2 = vrot.slane %v4263_v28, 4  ;;  %v4267_v50 = vperm.slane %v4259_v26, %v8424_v19 }
 0x41c   : > { %6455 = vst [vmem:[%s9590_s21 + $0x6c] sm:$0xf] %v6394_v39  ;;  %v6180_v41 = vperm.slane %v6176_v49, %v8424_v19  ;;  %v6204_v56 = vsel %vm2241_vm10, %v6203_v4, %v4250_v7  ;;  %v3610_v20 = vpack.c.bf16 %v2055_v11, %v9867_v9  ;;  %v6202_v15 = vperm.slane %v6198_v42, %v8416_v27 }
 0x41d   : > { %v6192_v48 = vrot.slane %v6191_v55, 4  ;;  %v6208_v47 = vperm.slane %v6204_v56, %v8416_v27  ;;  %v4270_v18 = vrot.slane %v4267_v50, 4  ;;  %v1959_v52 = vadd.f32 %v1958_v25, %v1909_v58 }
 0x41e   : > { %v2057_v32 = vadd.f32 %v2056_v54, %v2007_v43  ;;  %v4269_v37 = vsel %vm2241_vm10, 0, %v4268_v2  ;;  %v3642_v24 = vrot.slane %v3610_v20, 4  ;;  %v6400_v44 = vshrl.u32 %v6180_v41, 16 }
 0x41f   : > { %v6193_v63 = vsel %vm2241_vm10, %v6192_v48, %v6185_v12  ;;  %v6209_v45 = vrot.slane %v6208_v47, 4  ;;  %v4271_v23 = vsel %vm2241_vm10, 0, %v4270_v18  ;;  %v3731_v51 = vshrl.u32 %v3610_v20, 16 }
 0x420   : > { %v6197_v10 = vperm.slane %v6193_v63, %v8424_v19  ;;  %v3611_v17 = vpack.c.bf16 %v2057_v32, %v1959_v52  ;;  %v6220_v1 = vrot.slane %v4271_v23, 4  ;;  %v3730_v61 = vpack.i.b16 %v3642_v24, %v3610_v20 }
 0x421   : > { %v6210_v9 = vsel %vm2241_vm10, %v6209_v45, %v6202_v15  ;;  %v6215_v53 = vsel %vm2241_vm10, %v4270_v18, %v4263_v28  ;;  %v3732_v57 = vshrl.u32 %v3642_v24, 16 }
 0x422   : > { %v6398_v59 = vpack.i.b16 %v6197_v10, %v6180_v41  ;;  %v6401_v13 = vshrl.u32 %v6197_v10, 16  ;;  %v6214_v0 = vperm.slane %v6210_v9, %v8424_v19  ;;  %v6221_v40 = vsel %vm2241_vm10, %v6220_v1, %v4269_v37 }
 0x423   : > { %v4276_v14 = vperm.slane %v3730_v61, %v8416_v27  ;;  %v3643_v38 = vrot.slane %v3611_v17, 4  ;;  %v6225_v5 = vperm.slane %v6221_v40, %v8416_v27  ;;  %v3733_v36 = vpack.i.b16 %v3732_v57, %v3731_v51 }
 0x424   : > { %v6402_v33 = vpack.i.b16 %v6401_v13, %v6400_v44  ;;  %6440 = vst [vmem:[%s9590_s21 + $0x30] sm:$0xf] %v6398_v59  ;;  %v3737_v22 = vshrl.u32 %v3611_v17, 16  ;;  %v6219_v34 = vperm.slane %v6215_v53, %v8416_v27  ;;  %v6408_v31 = vshrl.u32 %v6214_v0, 16 }
 0x425   : > { %v4277_v62 = vrot.slane %v4276_v14, 4  ;;  %v4282_v8 = vperm.slane %v4276_v14, %v8424_v19  ;;  %v3736_v35 = vpack.i.b16 %v3643_v38, %v3611_v17  ;;  %v3738_v3 = vshrl.u32 %v3643_v38, 16 }
 0x426   : > { %6456 = vst [vmem:[%s9590_s21 + $0x70] sm:$0xf] %v6402_v33  ;;  %v6226_v29 = vrot.slane %v6225_v5, 4  ;;  %v4295_v7 = vperm.slane %v3733_v36, %v8416_v27 }
 0x427   : > { %v4278_v6 = vsel %vm2241_vm10, 0, %v4277_v62  ;;  %v3739_v60 = vpack.i.b16 %v3738_v3, %v3737_v22  ;;  %v4314_v30 = vperm.slane %v3736_v35, %v8416_v27  ;;  %v4287_v39 = vrot.slane %v4282_v8, 4 }
 0x428   : > { %v6227_v11 = vsel %vm2241_vm10, %v6226_v29, %v6219_v34  ;;  %v4286_v21 = vperm.slane %v4278_v6, %v8424_v19  ;;  %v4296_v16 = vrot.slane %v4295_v7, 4  ;;  %v4301_v46 = vperm.slane %v4295_v7, %v8424_v19 }
 0x429   : > { %v6231_v28 = vperm.slane %v6227_v11, %v8424_v19  ;;  %v4315_v42 = vrot.slane %v4314_v30, 4  ;;  %v4320_v25 = vperm.slane %v4314_v30, %v8424_v19  ;;  %v4333_v49 = vperm.slane %v3739_v60, %v8416_v27 }
 0x42a   : > { %v4289_v4 = vrot.slane %v4286_v21, 4  ;;  %v4297_v58 = vsel %vm2241_vm10, 0, %v4296_v16  ;;  %v4306_v56 = vrot.slane %v4301_v46, 4  ;;  %v4288_v47 = vsel %vm2241_vm10, 0, %v4287_v39 }
 0x42b   : > { %v6406_v55 = vpack.i.b16 %v6231_v28, %v6214_v0  ;;  %v6409_v26 = vshrl.u32 %v6231_v28, 16  ;;  %v4305_v2 = vperm.slane %v4297_v58, %v8424_v19  ;;  %v4316_v43 = vsel %vm2241_vm10, 0, %v4315_v42 }
 0x42c   : > { %v4290_v54 = vsel %vm2241_vm10, 0, %v4289_v4  ;;  %v4324_v41 = vperm.slane %v4316_v43, %v8424_v19  ;;  %v4334_v18 = vrot.slane %v4333_v49, 4  ;;  %v6232_v52 = vsel %vm2241_vm10, %v4289_v4, %v4282_v8 }
 0x42d   : > { %v6410_v50 = vpack.i.b16 %v6409_v26, %v6408_v31  ;;  %6441 = vst [vmem:[%s9590_s21 + $0x34] sm:$0xf] %v6406_v55  ;;  %v4308_v12 = vrot.slane %v4305_v2, 4  ;;  %v6237_v48 = vrot.slane %v4290_v54, 4  ;;  %v4325_v63 = vrot.slane %v4320_v25, 4 }
 0x42e   : > { %v4327_v20 = vrot.slane %v4324_v41, 4  ;;  %v4339_v10 = vperm.slane %v4333_v49, %v8424_v19  ;;  %v4307_v44 = vsel %vm2241_vm10, 0, %v4306_v56  ;;  %v4335_v17 = vsel %vm2241_vm10, 0, %v4334_v18 }
 0x42f   : > { %6457 = vst [vmem:[%s9590_s21 + $0x74] sm:$0xf] %v6410_v50  ;;  %v4309_v15 = vsel %vm2241_vm10, 0, %v4308_v12  ;;  %v6238_v32 = vsel %vm2241_vm10, %v6237_v48, %v4288_v47  ;;  %v6249_v45 = vsel %vm2241_vm10, %v4308_v12, %v4301_v46  ;;  %v6236_v9 = vperm.slane %v6232_v52, %v8416_v27 }
 0x430   : > { %v6242_v37 = vperm.slane %v6238_v32, %v8416_v27  ;;  %v6254_v24 = vrot.slane %v4309_v15, 4  ;;  %v4328_v23 = vsel %vm2241_vm10, 0, %v4327_v20  ;;  %v4343_v51 = vperm.slane %v4335_v17, %v8424_v19 }
 0x431   : > { %v6253_v59 = vperm.slane %v6249_v45, %v8416_v27  ;;  %v6271_v53 = vrot.slane %v4328_v23, 4  ;;  %v4326_v0 = vsel %vm2241_vm10, 0, %v4325_v63  ;;  %v4344_v40 = vrot.slane %v4339_v10, 4 }
 0x432   : > { %v6243_v1 = vrot.slane %v6242_v37, 4  ;;  %v6255_v61 = vsel %vm2241_vm10, %v6254_v24, %v4307_v44  ;;  %v4346_v14 = vrot.slane %v4343_v51, 4  ;;  %v6266_v5 = vsel %vm2241_vm10, %v4327_v20, %v4320_v25 }
 0x433   : > { %v6259_v13 = vperm.slane %v6255_v61, %v8416_v27  ;;  %v6272_v36 = vsel %vm2241_vm10, %v6271_v53, %v4326_v0  ;;  %v4345_v34 = vsel %vm2241_vm10, 0, %v4344_v40  ;;  %v6270_v29 = vperm.slane %v6266_v5, %v8416_v27 }
 0x434   : > { %v6244_v57 = vsel %vm2241_vm10, %v6243_v1, %v6236_v9  ;;  %v4347_v22 = vsel %vm2241_vm10, 0, %v4346_v14  ;;  %v6276_v62 = vperm.slane %v6272_v36, %v8416_v27  ;;  %v6283_v60 = vsel %vm2241_vm10, %v4346_v14, %v4339_v10 }
 0x435   : > { %v6248_v38 = vperm.slane %v6244_v57, %v8424_v19  ;;  %v6260_v33 = vrot.slane %v6259_v13, 4  ;;  %v6288_v35 = vrot.slane %v4347_v22, 4  ;;  %v6287_v39 = vperm.slane %v6283_v60, %v8416_v27 }
 0x436   : > { %v6277_v7 = vrot.slane %v6276_v62, 4 }
 0x437   : > { %v6261_v8 = vsel %vm2241_vm10, %v6260_v33, %v6253_v59  ;;  %v6416_v6 = vshrl.u32 %v6248_v38, 16  ;;  %v6289_v30 = vsel %vm2241_vm10, %v6288_v35, %v4345_v34 }
 0x438   : > { %v6265_v3 = vperm.slane %v6261_v8, %v8424_v19  ;;  %v6278_v21 = vsel %vm2241_vm10, %v6277_v7, %v6270_v29  ;;  %v6293_v16 = vperm.slane %v6289_v30, %v8416_v27 }
 0x439   : > { %v6282_v42 = vperm.slane %v6278_v21, %v8424_v19 }
 0x43a   : > { %v6414_v11 = vpack.i.b16 %v6265_v3, %v6248_v38  ;;  %v6417_v31 = vshrl.u32 %v6265_v3, 16  ;;  %v6294_v46 = vrot.slane %v6293_v16, 4 }
 0x43b   : > { %v6424_v49 = vshrl.u32 %v6282_v42, 16 }
 0x43c   : > { %v6418_v28 = vpack.i.b16 %v6417_v31, %v6416_v6  ;;  %6442 = vst [vmem:[%s9590_s21 + $0x38] sm:$0xf] %v6414_v11  ;;  %v6295_v4 = vsel %vm2241_vm10, %v6294_v46, %v6287_v39 }
 0x43d   : > { %v6299_v58 = vperm.slane %v6295_v4, %v8424_v19 }
 0x43e   : > { %6458 = vst [vmem:[%s9590_s21 + $0x78] sm:$0xf] %v6418_v28 }
 0x43f   : > { %v6422_v25 = vpack.i.b16 %v6299_v58, %v6282_v42  ;;  %v6425_v55 = vshrl.u32 %v6299_v58, 16 }
 0x441   : > { %v6426_v26 = vpack.i.b16 %v6425_v55, %v6424_v49  ;;  %6443 = vst [vmem:[%s9590_s21 + $0x3c] sm:$0xf] %v6422_v25 }
 0x443   : > { %6459 = vst [vmem:[%s9590_s21 + $0x7c] sm:$0xf] %v6426_v26 }
 0x444   : > { %s7190_s12 = sshll.u32 %s7683_s24, 4  ;;  %s7191_s9 = sshll.u32 %s7687_s25, 7 }
 0x445   : > { %s6482_s13 = sadd.s32 %s7191_s9, %s7190_s12  ;;  %s6495_s15 = sshll.u32 %s8575_s5, 4  ;;  %s6496_s15 = int_to_ptr.vmem [resolvable:$true] %s6495_s15 }
 0x446   : > { %s10007_s20 = sshll.u32 %s6482_s13, 2  ;;  %s7711_s1 = smov 1024  }
 0x447   : > { %s6484_s16 = scalar_lea.hbm %s10101_s4, %s10007_s20  ;;  %7312 = sst [smem:[#allocation15]] (%p7869_p3), %s7711_s1 }
 0x448   : > { %s6497_s19 = sshll.u32 %s6484_s16, 4  ;;  %s7712_s24 = smov 4096   ;;  %s6498_s19 = int_to_ptr.hbm [resolvable:$true] %s6497_s19 }
 0x449   : > { %7313 = sst [smem:[#allocation15 + $0x1]] (%p7869_p3), %s7712_s24  ;;  %s7713_s25 = smov 16  }
 0x44a   : > { %7314 = sst [smem:[#allocation15 + $0x2]] (%p7869_p3), %s7713_s25  ;;  %s7714_s30 = smov 64  }
 0x44b   : > { %7315 = sst [smem:[#allocation15 + $0x3]] (%p7869_p3), %s7714_s30  ;;  %s7715_s10 = smov 4  }
 0x44c   : > { %7316 = sst [smem:[#allocation15 + $0x4]] (%p7869_p3), %s7714_s30  ;;  %s7716_s14 = smov [#allocation14]  }
 0x44d   : > { %7317 = sst [smem:[#allocation15 + $0x5]] (%p7869_p3), %s7715_s10  ;;  %s7717_s2 = smov 0  }
 0x44e   : > { %7318 = dma.general (%p7869_p3), %s6496_s15, 2048, %s6498_s19, %s6461_s7, %s7716_s14, [#allocation15], %s7717_s2, 0  }
 0x44f   : > { %s10129_s12 = sld [smem:[#allocation32_spill]]  ;;  %s6537_s13 = sshll.u32 %s9109_s6, 4  ;;  %s6538_s13 = int_to_ptr.vmem [resolvable:$true] %s6537_s13 }
 0x450   : > { %s7718_s17 = smov 1024   ;;  %s7719_s7 = smov 4096  }
 0x451   : > { %7319 = sst [smem:[#allocation17]] (%p7869_p3), %s7718_s17  ;;  %s7720_s15 = smov 16  }
 0x452   : > { %7320 = sst [smem:[#allocation17 + $0x1]] (%p7869_p3), %s7719_s7  ;;  %s7721_s16 = smov 64  }
 0x453   : > { %7321 = sst [smem:[#allocation17 + $0x2]] (%p7869_p3), %s7720_s15  ;;  %s7722_s6 = smov 4  }
 0x454   : > { %7322 = sst [smem:[#allocation17 + $0x3]] (%p7869_p3), %s7721_s16  ;;  %s7723_s19 = smov [#allocation16]  }
 0x455   : > { %s6526_s9 = scalar_lea.hbm %s10129_s12, %s10007_s20  ;;  %7323 = sst [smem:[#allocation17 + $0x4]] (%p7869_p3), %s7721_s16 }
 0x456   : > { %s6539_s29 = sshll.u32 %s6526_s9, 4  ;;  %7324 = sst [smem:[#allocation17 + $0x5]] (%p7869_p3), %s7722_s6  ;;  %s6540_s29 = int_to_ptr.hbm [resolvable:$true] %s6539_s29 }
 0x457   : > { %s7724_s1 = smov 0  }
 0x458   : > { %7325 = dma.general (%p7869_p3), %s6538_s13, 2048, %s6540_s29, %s10002_s8, %s7723_s19, [#allocation17], %s7724_s1, 0  }
 0x459   : > { %s10130_s30 = sld [smem:[#allocation33_spill]]  ;;  %s6579_s14 = sshll.u32 %s9590_s21, 4  ;;  %s6580_s14 = int_to_ptr.vmem [resolvable:$true] %s6579_s14 }
 0x45a   : > { %s7725_s5 = smov 1024   ;;  %s7726_s26 = smov 4096  }
 0x45b   : > { %7326 = sst [smem:[#allocation19]] (%p7869_p3), %s7725_s5  ;;  %s7727_s12 = smov 16  }
 0x45c   : > { %7327 = sst [smem:[#allocation19 + $0x1]] (%p7869_p3), %s7726_s26  ;;  %s7728_s9 = smov 64  }
 0x45d   : > { %7328 = sst [smem:[#allocation19 + $0x2]] (%p7869_p3), %s7727_s12  ;;  %s7729_s21 = smov 4  }
 0x45e   : > { %7329 = sst [smem:[#allocation19 + $0x3]] (%p7869_p3), %s7728_s9  ;;  %s7731_s13 = smov 0  }
 0x45f   : > { %s6568_s10 = scalar_lea.hbm %s10130_s30, %s10007_s20  ;;  %7330 = sst [smem:[#allocation19 + $0x4]] (%p7869_p3), %s7728_s9 }
 0x460   : > { %s6581_s2 = sshll.u32 %s6568_s10, 4  ;;  %7331 = sst [smem:[#allocation19 + $0x5]] (%p7869_p3), %s7729_s21  ;;  %s6582_s2 = int_to_ptr.hbm [resolvable:$true] %s6581_s2 }
 0x461   : > { %s7730_s20 = smov [#allocation18]  }
 0x462   : > { %7332 = dma.general (%p7869_p3), %s6580_s14, 2048, %s6582_s2, %s10002_s8, %s7730_s20, [#allocation19], %s7731_s13, 0  }
 0x463 PF: > { %s10131_s29 = sld [smem:[#allocation25_spill]]  ;;  %p7367_p1 = scmp.ge.s32.totalorder %s7699_s28, 2 }
 0x465   : > { %p7351_p4 = pnand %p7367_p1, %p7824_p6 }
 0x467   : > { %p7352_p8 = pneg %p7351_p4 }
 0x469   : > { %s6609_s7 = sand.u32 1, %s10131_s29  }
 0x46a   : > { %s6610_s15 = scalar_lea.sflag [#allocation4], %s6609_s7 }
 0x46b   : > { %7662 = dma.done.wait (%p7352_p8), %s6610_s15, 2048  }
 0x46c   : > { %7664 = vsyncadd (%p7352_p8), %s6610_s15, 4294965248  ;;  %s10133_s16 = sadd.s32 4294967294, %s7699_s28  }
 0x46d   : > { %s6619_s6 = sand.u32 1, %s10133_s16  }
 0x46e   : > { %s6620_s19 = scalar_lea.sflag [#allocation12], %s6619_s6 }
 0x46f   : > { %7666 = dma.done.wait (%p7352_p8), %s6620_s19, 4096  }
 0x470   : > { %7668 = vsyncadd (%p7352_p8), %s6620_s19, 4294963200  ;;  %s28_s28 = sadd.s32 1, %s7699_s28   ;;  %s10134_s24 = sld [smem:[#allocation26_spill]] }
 0x471   : > { %p25_p10 = scmp.ge.s32.totalorder %s28_s28, 10   ;;  %s10135_s26 = sld [smem:[#allocation28_spill]] }
 0x472   : > { %s10136_s21 = smov %s7675_s22  ;;  %s10137_s22 = smov %s7679_s23 }
 0x473   : > { %s10138_s23 = smov %s7886_s3  ;;  %s10139_s25 = smov %s7695_s27 }
 0x474   : > { %s10140_s27 = smov %s10146_s11  ;;  %27 = sbr.rel (!%p25_p10) target bundleno = 17 (0x11), region = 140 }
 0x479   :  { %6636 = vsyncpa [#allocation3], 1 }
 0x47a   :  { %6638 = vsyncpa [#allocation3 + $0x1], 1 }
 0x47b   :  { %6639 = vsyncpa [#allocation6], 1 }
 0x47c   :  { %6640 = vsyncpa [#allocation9], 1 }
 0x47d   :  { %6641 = vsyncpa [#allocation4], 1 }
 0x47e   :  { %6643 = vsyncpa [#allocation4 + $0x1], 1 }
 0x47f   :  { %6644 = vsyncpa [#allocation12], 1 }
 0x480   :  { %6646 = vsyncpa [#allocation12 + $0x1], 1 }

</bundles_post_ra>
